<compile_context>
chip_gen: v5e
topology: v5e:2x2
jax: 0.10.0
libtpu: 0.0.40
codegen_flags: <defaults>
</compile_context>

<pallas_src>
import jax
import jax.numpy as jnp
from jax.experimental import pallas as pl
from jax.experimental.pallas import tpu as pltpu

EPS = 1e-5


def _vmem_limit_bytes():
    """Generation-specific scoped-VMEM limit: ~80% of physical, capped at 100 MiB."""
    try:
        cap = pltpu.get_tpu_info().vmem_capacity_bytes
    except Exception:
        cap = 64 * 1024 * 1024  # conservative (v7x-sized) fallback
    return int(min(cap * 4 // 5, 100 * 1024 * 1024))


_VMEM_LIMIT = _vmem_limit_bytes()


# --------------------- pass 1: conv1 + per-tile BN1 stats ---------------------
def _conv_stats_kernel(xp_ref, w_ref, y_ref, st_ref, col_ref):
    """xp_ref (1,Hp,Wp,C) f32 | w_ref (9C,C) bf16 | y_ref (1,H*W,C) f32
    st_ref (1,2,C) f32 = [tile mean ; centered sum-of-squares] | col_ref (H*W,9C) bf16."""
    _, Hp, Wp, C = xp_ref.shape
    H, W = Hp - 2, Wp - 2
    M = H * W
    # im2col scatter: slice the ref directly, cast to bf16 at write time.
    for kh in range(3):
        for kw in range(3):
            k = kh * 3 + kw
            col_ref[:, k * C:(k + 1) * C] = (
                xp_ref[0, kh:kh + H, kw:kw + W, :].reshape(M, C).astype(jnp.bfloat16))
    y = jnp.dot(col_ref[...], w_ref[...], preferred_element_type=jnp.float32)  # (M, C) f32
    y_ref[0] = y
    mu = jnp.mean(y, axis=0, keepdims=True)                                    # (1, C)
    st_ref[0, 0:1, :] = mu
    st_ref[0, 1:2, :] = jnp.sum((y - mu) ** 2, axis=0, keepdims=True)


# --------- pass 2: BN1 (fused scale/shift) + ReLU -> conv2 + per-tile BN2 stats ---------
def _bn_relu_conv_stats_kernel(y1_ref, sc_ref, sh_ref, w_ref, y2_ref, st_ref,
                               mid_ref, col_ref):
    """y1_ref (1,H*W,C) f32 | sc/sh (1,C) f32 | w_ref (9C,C) bf16 | y2_ref (1,H*W,C) f32
    st_ref (1,2,C) f32 | mid_ref (Hp,Wp,C) bf16 scratch | col_ref (H*W,9C) bf16 scratch."""
    Hp, Wp, C = mid_ref.shape
    H, W = Hp - 2, Wp - 2
    M = H * W
    h1 = jnp.maximum(y1_ref[0] * sc_ref[...] + sh_ref[...], 0.0)               # (M, C) f32
    # Zero only the 1-pixel halo of the bf16 padded intermediate, then write the interior.
    mid_ref[0:1, :, :] = jnp.zeros((1, Wp, C), jnp.bfloat16)
    mid_ref[Hp - 1:Hp, :, :] = jnp.zeros((1, Wp, C), jnp.bfloat16)
    mid_ref[:, 0:1, :] = jnp.zeros((Hp, 1, C), jnp.bfloat16)
    mid_ref[:, Wp - 1:Wp, :] = jnp.zeros((Hp, 1, C), jnp.bfloat16)
    mid_ref[1:1 + H, 1:1 + W, :] = h1.reshape(H, W, C).astype(jnp.bfloat16)
    for kh in range(3):
        for kw in range(3):
            k = kh * 3 + kw
            col_ref[:, k * C:(k + 1) * C] = mid_ref[kh:kh + H, kw:kw + W, :].reshape(M, C)
    y2 = jnp.dot(col_ref[...], w_ref[...], preferred_element_type=jnp.float32)
    y2_ref[0] = y2
    mu = jnp.mean(y2, axis=0, keepdims=True)
    st_ref[0, 0:1, :] = mu
    st_ref[0, 1:2, :] = jnp.sum((y2 - mu) ** 2, axis=0, keepdims=True)


# --------------- pass 3: BN2 + identity residual + ReLU, lane-dense layout ---------------
def _finalize_kernel(y2_ref, xres_ref, sc_ref, sh_ref, out_ref):
    """All refs in (1,H,W*C) / (1,W*C) layout: pure lane-dense elementwise epilogue."""
    out_ref[0] = jnp.maximum(y2_ref[0] * sc_ref[...] + sh_ref[...] + xres_ref[0], 0.0)


def _combine_bn_stats(stats, rows_per_tile, total_rows):
    """Chan-combine equal-sized per-tile (mean, centered SSQ) -> global (mean, biased var)."""
    means = stats[:, 0, :]                                    # (T, C)
    m2s = stats[:, 1, :]                                      # (T, C)
    mean = jnp.mean(means, axis=0, keepdims=True)             # (1, C)  exact (equal tiles)
    m2 = (jnp.sum(m2s, axis=0, keepdims=True)
          + rows_per_tile * jnp.sum((means - mean) ** 2, axis=0, keepdims=True))
    return mean, m2 / total_rows


@jax.jit
def basic_block_forward(x_nchw, w1, w2, g1, b1, g2, b2):
    """x_nchw: (N, C, H, W).  Weights w*: (3, 3, Cin, Cout) HWIO.  Returns NCHW."""
    N, C, H, W = x_nchw.shape
    Cout = w1.shape[-1]
    assert Cout == C and w1.shape[2] == C and w2.shape[2] == C and w2.shape[3] == C, \
        "BasicBlock with stride=1 / downsample=None requires inplanes == planes"
    Hp, Wp, M = H + 2, W + 2, H * W

    x_nhwc = jnp.transpose(x_nchw, (0, 2, 3, 1)).astype(jnp.float32)
    x_pad = jnp.pad(x_nhwc, ((0, 0), (1, 1), (1, 1), (0, 0)))      # spatial zero-pad
    x_res = x_nhwc.reshape(N, H, W * C)                            # lane-dense residual view

    # (KH, KW, Cin, Cout) -> (9*Cin, Cout), bf16 for the MXU (f32 accumulation in-kernel).
    w1_flat = w1.reshape(9 * C, C).astype(jnp.bfloat16)
    w2_flat = w2.reshape(9 * C, C).astype(jnp.bfloat16)
    g1_ = g1.reshape(1, C).astype(jnp.float32)
    b1_ = b1.reshape(1, C).astype(jnp.float32)
    g2_ = g2.reshape(1, C).astype(jnp.float32)
    b2_ = b2.reshape(1, C).astype(jnp.float32)

    cparams = pltpu.CompilerParams(dimension_semantics=("parallel",),
                                   vmem_limit_bytes=_VMEM_LIMIT)
    conv_flops = 2 * N * M * 9 * C * C

    # ---------------- pass 1: conv1 + per-image BN1 partial stats ----------------
    y1, st1 = pl.pallas_call(
        _conv_stats_kernel,
        grid=(N,),
        out_shape=(jax.ShapeDtypeStruct((N, M, C), jnp.float32),
                   jax.ShapeDtypeStruct((N, 2, C), jnp.float32)),
        in_specs=[pl.BlockSpec((1, Hp, Wp, C), lambda i: (i, 0, 0, 0)),
                  pl.BlockSpec((9 * C, C), lambda i: (0, 0))],
        out_specs=(pl.BlockSpec((1, M, C), lambda i: (i, 0, 0)),
                   pl.BlockSpec((1, 2, C), lambda i: (i, 0, 0))),
        scratch_shapes=[pltpu.VMEM((M, 9 * C), jnp.bfloat16)],
        compiler_params=cparams,
        cost_estimate=pl.CostEstimate(
            flops=conv_flops, transcendentals=0,
            bytes_accessed=4 * N * Hp * Wp * C + 2 * 9 * C * C + 4 * N * M * C + 8 * N * C),
    )(x_pad, w1_flat)

    mean1, var1 = _combine_bn_stats(st1, M, N * M)
    scale1 = g1_ * jax.lax.rsqrt(var1 + EPS)
    shift1 = b1_ - mean1 * scale1

    # ---------- pass 2: BN1 scale/shift + ReLU -> conv2 + per-image BN2 stats ----------
    y2, st2 = pl.pallas_call(
        _bn_relu_conv_stats_kernel,
        grid=(N,),
        out_shape=(jax.ShapeDtypeStruct((N, M, C), jnp.float32),
                   jax.ShapeDtypeStruct((N, 2, C), jnp.float32)),
        in_specs=[pl.BlockSpec((1, M, C), lambda i: (i, 0, 0)),
                  pl.BlockSpec((1, C), lambda i: (0, 0)),
                  pl.BlockSpec((1, C), lambda i: (0, 0)),
                  pl.BlockSpec((9 * C, C), lambda i: (0, 0))],
        out_specs=(pl.BlockSpec((1, M, C), lambda i: (i, 0, 0)),
                   pl.BlockSpec((1, 2, C), lambda i: (i, 0, 0))),
        scratch_shapes=[pltpu.VMEM((Hp, Wp, C), jnp.bfloat16),    # padded intermediate (bf16)
                        pltpu.VMEM((M, 9 * C), jnp.bfloat16)],    # im2col scratch (bf16)
        compiler_params=cparams,
        cost_estimate=pl.CostEstimate(
            flops=conv_flops, transcendentals=0,
            bytes_accessed=8 * N * M * C + 2 * 9 * C * C + 8 * N * C + 8 * C),
    )(y1, scale1, shift1, w2_flat)

    mean2, var2 = _combine_bn_stats(st2, M, N * M)
    scale2 = g2_ * jax.lax.rsqrt(var2 + EPS)
    shift2 = b2_ - mean2 * scale2

    # -------- pass 3: BN2 scale/shift + residual + ReLU, lane-dense (H, W*C) layout --------
    y2_wide = y2.reshape(N, H, W * C)            # free row-major reshape in HBM
    scale2_w = jnp.tile(scale2, (1, W))          # per-channel -> (1, W*C) lane pattern
    shift2_w = jnp.tile(shift2, (1, W))

    out = pl.pallas_call(
        _finalize_kernel,
        grid=(N,),
        out_shape=jax.ShapeDtypeStruct((N, H, W * C), jnp.float32),
        in_specs=[pl.BlockSpec((1, H, W * C), lambda i: (i, 0, 0)),
                  pl.BlockSpec((1, H, W * C), lambda i: (i, 0, 0)),
                  pl.BlockSpec((1, W * C), lambda i: (0, 0)),
                  pl.BlockSpec((1, W * C), lambda i: (0, 0))],
        out_specs=pl.BlockSpec((1, H, W * C), lambda i: (i, 0, 0)),
        compiler_params=cparams,
        cost_estimate=pl.CostEstimate(
            flops=3 * N * M * C, transcendentals=0, bytes_accessed=12 * N * M * C),
    )(y2_wide, x_res, scale2_w, shift2_w)

    return jnp.transpose(out.reshape(N, H, W, C), (0, 3, 1, 2))   # back to NCHW


# ------------------------- pure-JAX reference (for verification) -------------------------
def _ref_conv3x3(x_nchw, w_hwio):
    w_oihw = jnp.transpose(w_hwio, (3, 2, 0, 1))
    return jax.lax.conv_general_dilated(
        x_nchw, w_oihw, window_strides=(1, 1), padding=((1, 1), (1, 1)),
        dimension_numbers=('NCHW', 'OIHW', 'NCHW'))


def _ref_bn_train(x_nchw, g, b):
    mean = x_nchw.mean(axis=(0, 2, 3), keepdims=True)
    var = ((x_nchw - mean) ** 2).mean(axis=(0, 2, 3), keepdims=True)
    return (x_nchw - mean) * jax.lax.rsqrt(var + EPS) * g.reshape(1, -1, 1, 1) \
        + b.reshape(1, -1, 1, 1)


def ref_basic_block(x, w1, w2, g1, b1, g2, b2):
    out = jnp.maximum(_ref_bn_train(_ref_conv3x3(x, w1), g1, b1), 0.0)
    out = _ref_bn_train(_ref_conv3x3(out, w2), g2, b2)
    return jnp.maximum(out + x, 0.0)


if __name__ == "__main__":
    # Small shapes: inplanes = planes = 8 (stride=1, downsample=None ⇒ shapes must match).
    # W * C = 128 so the epilogue store is lane-dense.
    N, C, H, W = 2, 8, 16, 16

    key = jax.random.PRNGKey(0)
    kx, kw1, kw2, kg1, kb1, kg2, kb2 = jax.random.split(key, 7)

    x = jax.random.normal(kx, (N, C, H, W), jnp.float32)
    w1 = jax.random.normal(kw1, (3, 3, C, C), jnp.float32) * 0.1     # conv1 weight (HWIO)
    w2 = jax.random.normal(kw2, (3, 3, C, C), jnp.float32) * 0.1     # conv2 weight (HWIO)
    g1 = 1.0 + 0.1 * jax.random.normal(kg1, (C,), jnp.float32)       # bn1 gamma
    b1 = 0.1 * jax.random.normal(kb1, (C,), jnp.float32)             # bn1 beta
    g2 = 1.0 + 0.1 * jax.random.normal(kg2, (C,), jnp.float32)       # bn2 gamma
    b2 = 0.1 * jax.random.normal(kb2, (C,), jnp.float32)             # bn2 beta

    out = basic_block_forward(x, w1, w2, g1, b1, g2, b2)
    out = jax.block_until_ready(out)

    ref = jax.block_until_ready(ref_basic_block(x, w1, w2, g1, b1, g2, b2))
    assert out.shape == (N, C, H, W)
    # conv inputs/weights are bf16 on the MXU (f32 accumulation), so allow ~1e-2-scale error.
    assert jnp.allclose(out, ref, atol=5e-2, rtol=5e-2), \
        f"max abs err {jnp.max(jnp.abs(out - ref))}"

    print("KERNEL_OK")
</pallas_src>

<mosaic_0001>
module attributes {stable_mosaic.version = 11 : i64} {
  func.func @_conv_stats_kernel(%arg0: i32, %arg1: memref<1x18x18x8xf32, #tpu.memory_space<vmem>>, %arg2: memref<72x8xbf16, #tpu.memory_space<vmem>>, %arg3: memref<1x256x8xf32, #tpu.memory_space<vmem>>, %arg4: memref<1x2x8xf32, #tpu.memory_space<vmem>>, %arg5: memref<256x72xbf16, #tpu.memory_space<vmem>>) attributes {dimension_semantics = [#tpu.dimension_semantics<parallel>], iteration_bounds = array<i64: 2>, scalar_prefetch = 0 : i64, scratch_operands = 1 : i64, tpu.core_type = #tpu.core_type<tc>, window_params = [{transform_indices = @transform_0, window_bounds = array<i64: 1, 18, 18, 8>}, {pipeline_mode = #tpu.pipeline_mode<synchronous>, transform_indices = @transform_1, window_bounds = array<i64: 72, 8>}, {transform_indices = @transform_2, window_bounds = array<i64: 1, 256, 8>}, {transform_indices = @transform_3, window_bounds = array<i64: 1, 2, 8>}]} {
    %c0 = arith.constant 0 : index
    %c0_0 = arith.constant 0 : index
    %c0_1 = arith.constant 0 : index
    %c0_2 = arith.constant 0 : index
    %0 = vector.load %arg1[%c0, %c0_0, %c0_1, %c0_2] : memref<1x18x18x8xf32, #tpu.memory_space<vmem>>, vector<1x16x16x8xf32>
    %1 = vector.shape_cast %0 : vector<1x16x16x8xf32> to vector<16x16x8xf32>
    %2 = vector.shape_cast %1 : vector<16x16x8xf32> to vector<256x8xf32>
    %3 = arith.truncf %2 : vector<256x8xf32> to vector<256x8xbf16>
    %c0_3 = arith.constant 0 : index
    %c0_4 = arith.constant 0 : index
    %4 = vector.load %arg5[%c0_3, %c0_4] : memref<256x72xbf16, #tpu.memory_space<vmem>>, vector<256x8xbf16>
    tpu.vector_store %arg5[%c0_3, %c0_4], %3 {strides = array<i32>} : memref<256x72xbf16, #tpu.memory_space<vmem>>, vector<256x8xbf16>,
    %c0_5 = arith.constant 0 : index
    %c0_6 = arith.constant 0 : index
    %c1 = arith.constant 1 : index
    %c0_7 = arith.constant 0 : index
    %5 = vector.load %arg1[%c0_5, %c0_6, %c1, %c0_7] : memref<1x18x18x8xf32, #tpu.memory_space<vmem>>, vector<1x16x16x8xf32>
    %6 = vector.shape_cast %5 : vector<1x16x16x8xf32> to vector<16x16x8xf32>
    %7 = vector.shape_cast %6 : vector<16x16x8xf32> to vector<256x8xf32>
    %8 = arith.truncf %7 : vector<256x8xf32> to vector<256x8xbf16>
    %c0_8 = arith.constant 0 : index
    %c8 = arith.constant 8 : index
    %9 = vector.load %arg5[%c0_8, %c8] : memref<256x72xbf16, #tpu.memory_space<vmem>>, vector<256x8xbf16>
    tpu.vector_store %arg5[%c0_8, %c8], %8 {strides = array<i32>} : memref<256x72xbf16, #tpu.memory_space<vmem>>, vector<256x8xbf16>,
    %c0_9 = arith.constant 0 : index
    %c0_10 = arith.constant 0 : index
    %c2 = arith.constant 2 : index
    %c0_11 = arith.constant 0 : index
    %10 = vector.load %arg1[%c0_9, %c0_10, %c2, %c0_11] : memref<1x18x18x8xf32, #tpu.memory_space<vmem>>, vector<1x16x16x8xf32>
    %11 = vector.shape_cast %10 : vector<1x16x16x8xf32> to vector<16x16x8xf32>
    %12 = vector.shape_cast %11 : vector<16x16x8xf32> to vector<256x8xf32>
    %13 = arith.truncf %12 : vector<256x8xf32> to vector<256x8xbf16>
    %c0_12 = arith.constant 0 : index
    %c16 = arith.constant 16 : index
    %14 = vector.load %arg5[%c0_12, %c16] : memref<256x72xbf16, #tpu.memory_space<vmem>>, vector<256x8xbf16>
    tpu.vector_store %arg5[%c0_12, %c16], %13 {strides = array<i32>} : memref<256x72xbf16, #tpu.memory_space<vmem>>, vector<256x8xbf16>,
    %c0_13 = arith.constant 0 : index
    %c1_14 = arith.constant 1 : index
    %c0_15 = arith.constant 0 : index
    %c0_16 = arith.constant 0 : index
    %15 = vector.load %arg1[%c0_13, %c1_14, %c0_15, %c0_16] : memref<1x18x18x8xf32, #tpu.memory_space<vmem>>, vector<1x16x16x8xf32>
    %16 = vector.shape_cast %15 : vector<1x16x16x8xf32> to vector<16x16x8xf32>
    %17 = vector.shape_cast %16 : vector<16x16x8xf32> to vector<256x8xf32>
    %18 = arith.truncf %17 : vector<256x8xf32> to vector<256x8xbf16>
    %c0_17 = arith.constant 0 : index
    %c24 = arith.constant 24 : index
    %19 = vector.load %arg5[%c0_17, %c24] : memref<256x72xbf16, #tpu.memory_space<vmem>>, vector<256x8xbf16>
    tpu.vector_store %arg5[%c0_17, %c24], %18 {strides = array<i32>} : memref<256x72xbf16, #tpu.memory_space<vmem>>, vector<256x8xbf16>,
    %c0_18 = arith.constant 0 : index
    %c1_19 = arith.constant 1 : index
    %c1_20 = arith.constant 1 : index
    %c0_21 = arith.constant 0 : index
    %20 = vector.load %arg1[%c0_18, %c1_19, %c1_20, %c0_21] : memref<1x18x18x8xf32, #tpu.memory_space<vmem>>, vector<1x16x16x8xf32>
    %21 = vector.shape_cast %20 : vector<1x16x16x8xf32> to vector<16x16x8xf32>
    %22 = vector.shape_cast %21 : vector<16x16x8xf32> to vector<256x8xf32>
    %23 = arith.truncf %22 : vector<256x8xf32> to vector<256x8xbf16>
    %c0_22 = arith.constant 0 : index
    %c32 = arith.constant 32 : index
    %24 = vector.load %arg5[%c0_22, %c32] : memref<256x72xbf16, #tpu.memory_space<vmem>>, vector<256x8xbf16>
    tpu.vector_store %arg5[%c0_22, %c32], %23 {strides = array<i32>} : memref<256x72xbf16, #tpu.memory_space<vmem>>, vector<256x8xbf16>,
    %c0_23 = arith.constant 0 : index
    %c1_24 = arith.constant 1 : index
    %c2_25 = arith.constant 2 : index
    %c0_26 = arith.constant 0 : index
    %25 = vector.load %arg1[%c0_23, %c1_24, %c2_25, %c0_26] : memref<1x18x18x8xf32, #tpu.memory_space<vmem>>, vector<1x16x16x8xf32>
    %26 = vector.shape_cast %25 : vector<1x16x16x8xf32> to vector<16x16x8xf32>
    %27 = vector.shape_cast %26 : vector<16x16x8xf32> to vector<256x8xf32>
    %28 = arith.truncf %27 : vector<256x8xf32> to vector<256x8xbf16>
    %c0_27 = arith.constant 0 : index
    %c40 = arith.constant 40 : index
    %29 = vector.load %arg5[%c0_27, %c40] : memref<256x72xbf16, #tpu.memory_space<vmem>>, vector<256x8xbf16>
    tpu.vector_store %arg5[%c0_27, %c40], %28 {strides = array<i32>} : memref<256x72xbf16, #tpu.memory_space<vmem>>, vector<256x8xbf16>,
    %c0_28 = arith.constant 0 : index
    %c2_29 = arith.constant 2 : index
    %c0_30 = arith.constant 0 : index
    %c0_31 = arith.constant 0 : index
    %30 = vector.load %arg1[%c0_28, %c2_29, %c0_30, %c0_31] : memref<1x18x18x8xf32, #tpu.memory_space<vmem>>, vector<1x16x16x8xf32>
    %31 = vector.shape_cast %30 : vector<1x16x16x8xf32> to vector<16x16x8xf32>
    %32 = vector.shape_cast %31 : vector<16x16x8xf32> to vector<256x8xf32>
    %33 = arith.truncf %32 : vector<256x8xf32> to vector<256x8xbf16>
    %c0_32 = arith.constant 0 : index
    %c48 = arith.constant 48 : index
    %34 = vector.load %arg5[%c0_32, %c48] : memref<256x72xbf16, #tpu.memory_space<vmem>>, vector<256x8xbf16>
    tpu.vector_store %arg5[%c0_32, %c48], %33 {strides = array<i32>} : memref<256x72xbf16, #tpu.memory_space<vmem>>, vector<256x8xbf16>,
    %c0_33 = arith.constant 0 : index
    %c2_34 = arith.constant 2 : index
    %c1_35 = arith.constant 1 : index
    %c0_36 = arith.constant 0 : index
    %35 = vector.load %arg1[%c0_33, %c2_34, %c1_35, %c0_36] : memref<1x18x18x8xf32, #tpu.memory_space<vmem>>, vector<1x16x16x8xf32>
    %36 = vector.shape_cast %35 : vector<1x16x16x8xf32> to vector<16x16x8xf32>
    %37 = vector.shape_cast %36 : vector<16x16x8xf32> to vector<256x8xf32>
    %38 = arith.truncf %37 : vector<256x8xf32> to vector<256x8xbf16>
    %c0_37 = arith.constant 0 : index
    %c56 = arith.constant 56 : index
    %39 = vector.load %arg5[%c0_37, %c56] : memref<256x72xbf16, #tpu.memory_space<vmem>>, vector<256x8xbf16>
    tpu.vector_store %arg5[%c0_37, %c56], %38 {strides = array<i32>} : memref<256x72xbf16, #tpu.memory_space<vmem>>, vector<256x8xbf16>,
    %c0_38 = arith.constant 0 : index
    %c2_39 = arith.constant 2 : index
    %c2_40 = arith.constant 2 : index
    %c0_41 = arith.constant 0 : index
    %40 = vector.load %arg1[%c0_38, %c2_39, %c2_40, %c0_41] : memref<1x18x18x8xf32, #tpu.memory_space<vmem>>, vector<1x16x16x8xf32>
    %41 = vector.shape_cast %40 : vector<1x16x16x8xf32> to vector<16x16x8xf32>
    %42 = vector.shape_cast %41 : vector<16x16x8xf32> to vector<256x8xf32>
    %43 = arith.truncf %42 : vector<256x8xf32> to vector<256x8xbf16>
    %c0_42 = arith.constant 0 : index
    %c64 = arith.constant 64 : index
    %44 = vector.load %arg5[%c0_42, %c64] : memref<256x72xbf16, #tpu.memory_space<vmem>>, vector<256x8xbf16>
    tpu.vector_store %arg5[%c0_42, %c64], %43 {strides = array<i32>} : memref<256x72xbf16, #tpu.memory_space<vmem>>, vector<256x8xbf16>,
    %c0_43 = arith.constant 0 : index
    %c0_44 = arith.constant 0 : index
    %45 = vector.load %arg5[%c0_43, %c0_44] : memref<256x72xbf16, #tpu.memory_space<vmem>>, vector<256x72xbf16>
    %c0_45 = arith.constant 0 : index
    %c0_46 = arith.constant 0 : index
    %46 = vector.load %arg2[%c0_45, %c0_46] : memref<72x8xbf16, #tpu.memory_space<vmem>>, vector<72x8xbf16>
    %cst = arith.constant dense<0.000000e+00> : vector<256x8xf32>
    %47 = tpu.matmul %45, %46, %cst {dimension_numbers = #tpu.dot_dimension_numbers<[1], [0], [0], [1], [0, 0, 1, 1], [], []>} : vector<256x72xbf16>, vector<72x8xbf16>, vector<256x8xf32> -> vector<256x8xf32>
    %c0_47 = arith.constant 0 : index
    %c0_48 = arith.constant 0 : index
    %c0_49 = arith.constant 0 : index
    %48 = vector.load %arg3[%c0_47, %c0_48, %c0_49] : memref<1x256x8xf32, #tpu.memory_space<vmem>>, vector<1x256x8xf32>
    %49 = vector.shape_cast %48 : vector<1x256x8xf32> to vector<256x8xf32>
    %50 = vector.shape_cast %47 : vector<256x8xf32> to vector<1x256x8xf32>
    tpu.vector_store %arg3[%c0_47, %c0_48, %c0_49], %50 {strides = array<i32>} : memref<1x256x8xf32, #tpu.memory_space<vmem>>, vector<1x256x8xf32>,
    %cst_50 = arith.constant dense<0.000000e+00> : vector<8xf32>
    %51 = vector.multi_reduction <add>, %47, %cst_50 [0] : vector<256x8xf32> to vector<8xf32>
    %52 = vector.shape_cast %51 : vector<8xf32> to vector<1x8xf32>
    %cst_51 = arith.constant 2.560000e+02 : f32
    %53 = vector.broadcast %cst_51 : f32 to vector<1x8xf32>
    %54 = arith.divf %52, %53 : vector<1x8xf32>
    %c0_52 = arith.constant 0 : index
    %c0_53 = arith.constant 0 : index
    %c0_54 = arith.constant 0 : index
    %55 = vector.load %arg4[%c0_52, %c0_53, %c0_54] : memref<1x2x8xf32, #tpu.memory_space<vmem>>, vector<1x1x8xf32>
    %56 = vector.shape_cast %55 : vector<1x1x8xf32> to vector<1x8xf32>
    %57 = vector.shape_cast %54 : vector<1x8xf32> to vector<1x1x8xf32>
    tpu.vector_store %arg4[%c0_52, %c0_53, %c0_54], %57 {strides = array<i32>} : memref<1x2x8xf32, #tpu.memory_space<vmem>>, vector<1x1x8xf32>,
    %58 = vector.broadcast %54 : vector<1x8xf32> to vector<256x8xf32>
    %59 = arith.subf %47, %58 : vector<256x8xf32>
    %60 = arith.mulf %59, %59 : vector<256x8xf32>
    %cst_55 = arith.constant dense<0.000000e+00> : vector<8xf32>
    %61 = vector.multi_reduction <add>, %60, %cst_55 [0] : vector<256x8xf32> to vector<8xf32>
    %62 = vector.shape_cast %61 : vector<8xf32> to vector<1x8xf32>
    %c0_56 = arith.constant 0 : index
    %c1_57 = arith.constant 1 : index
    %c0_58 = arith.constant 0 : index
    %63 = vector.load %arg4[%c0_56, %c1_57, %c0_58] : memref<1x2x8xf32, #tpu.memory_space<vmem>>, vector<1x1x8xf32>
    %64 = vector.shape_cast %63 : vector<1x1x8xf32> to vector<1x8xf32>
    %65 = vector.shape_cast %62 : vector<1x8xf32> to vector<1x1x8xf32>
    tpu.vector_store %arg4[%c0_56, %c1_57, %c0_58], %65 {strides = array<i32>} : memref<1x2x8xf32, #tpu.memory_space<vmem>>, vector<1x1x8xf32>,
    return
  }
  func.func @transform_0(%arg0: i32) -> (i32, i32, i32, i32) {
    %c0_i32 = arith.constant 0 : i32
    %c0_i32_0 = arith.constant 0 : i32
    %c0_i32_1 = arith.constant 0 : i32
    %c0_i32_2 = arith.constant 0 : i32
    return %arg0, %c0_i32, %c0_i32_0, %c0_i32_1 : i32, i32, i32, i32
  }
  func.func @transform_1(%arg0: i32) -> (i32, i32) {
    %c0_i32 = arith.constant 0 : i32
    %c0_i32_0 = arith.constant 0 : i32
    %c0_i32_1 = arith.constant 0 : i32
    return %c0_i32, %c0_i32_0 : i32, i32
  }
  func.func @transform_2(%arg0: i32) -> (i32, i32, i32) {
    %c0_i32 = arith.constant 0 : i32
    %c0_i32_0 = arith.constant 0 : i32
    %c0_i32_1 = arith.constant 0 : i32
    return %arg0, %c0_i32, %c0_i32_0 : i32, i32, i32
  }
  func.func @transform_3(%arg0: i32) -> (i32, i32, i32) {
    %c0_i32 = arith.constant 0 : i32
    %c0_i32_0 = arith.constant 0 : i32
    %c0_i32_1 = arith.constant 0 : i32
    return %arg0, %c0_i32, %c0_i32_0 : i32, i32, i32
  }
}

module attributes {stable_mosaic.version = 11 : i64} {
  func.func @_bn_relu_conv_stats_kernel(%arg0: i32, %arg1: memref<1x256x8xf32, #tpu.memory_space<vmem>>, %arg2: memref<1x8xf32, #tpu.memory_space<vmem>>, %arg3: memref<1x8xf32, #tpu.memory_space<vmem>>, %arg4: memref<72x8xbf16, #tpu.memory_space<vmem>>, %arg5: memref<1x256x8xf32, #tpu.memory_space<vmem>>, %arg6: memref<1x2x8xf32, #tpu.memory_space<vmem>>, %arg7: memref<18x18x8xbf16, #tpu.memory_space<vmem>>, %arg8: memref<256x72xbf16, #tpu.memory_space<vmem>>) attributes {dimension_semantics = [#tpu.dimension_semantics<parallel>], iteration_bounds = array<i64: 2>, scalar_prefetch = 0 : i64, scratch_operands = 2 : i64, tpu.core_type = #tpu.core_type<tc>, window_params = [{transform_indices = @transform_0, window_bounds = array<i64: 1, 256, 8>}, {pipeline_mode = #tpu.pipeline_mode<synchronous>, transform_indices = @transform_1, window_bounds = array<i64: 1, 8>}, {pipeline_mode = #tpu.pipeline_mode<synchronous>, transform_indices = @transform_2, window_bounds = array<i64: 1, 8>}, {pipeline_mode = #tpu.pipeline_mode<synchronous>, transform_indices = @transform_3, window_bounds = array<i64: 72, 8>}, {transform_indices = @transform_4, window_bounds = array<i64: 1, 256, 8>}, {transform_indices = @transform_5, window_bounds = array<i64: 1, 2, 8>}]} {
    %c0 = arith.constant 0 : index
    %c0_0 = arith.constant 0 : index
    %c0_1 = arith.constant 0 : index
    %0 = vector.load %arg1[%c0, %c0_0, %c0_1] : memref<1x256x8xf32, #tpu.memory_space<vmem>>, vector<1x256x8xf32>
    %1 = vector.shape_cast %0 : vector<1x256x8xf32> to vector<256x8xf32>
    %c0_2 = arith.constant 0 : index
    %c0_3 = arith.constant 0 : index
    %2 = vector.load %arg2[%c0_2, %c0_3] : memref<1x8xf32, #tpu.memory_space<vmem>>, vector<1x8xf32>
    %3 = vector.broadcast %2 : vector<1x8xf32> to vector<256x8xf32>
    %4 = arith.mulf %1, %3 : vector<256x8xf32>
    %c0_4 = arith.constant 0 : index
    %c0_5 = arith.constant 0 : index
    %5 = vector.load %arg3[%c0_4, %c0_5] : memref<1x8xf32, #tpu.memory_space<vmem>>, vector<1x8xf32>
    %6 = vector.broadcast %5 : vector<1x8xf32> to vector<256x8xf32>
    %7 = arith.addf %4, %6 : vector<256x8xf32>
    %cst = arith.constant 0.000000e+00 : f32
    %8 = vector.broadcast %cst : f32 to vector<256x8xf32>
    %9 = arith.maximumf %7, %8 : vector<256x8xf32>
    %cst_6 = arith.constant 0.000000e+00 : bf16
    %10 = vector.broadcast %cst_6 : bf16 to vector<1x18x8xbf16>
    %c0_7 = arith.constant 0 : index
    %c0_8 = arith.constant 0 : index
    %c0_9 = arith.constant 0 : index
    %11 = vector.load %arg7[%c0_7, %c0_8, %c0_9] : memref<18x18x8xbf16, #tpu.memory_space<vmem>>, vector<1x18x8xbf16>
    tpu.vector_store %arg7[%c0_7, %c0_8, %c0_9], %10 {strides = array<i32>} : memref<18x18x8xbf16, #tpu.memory_space<vmem>>, vector<1x18x8xbf16>,
    %cst_10 = arith.constant 0.000000e+00 : bf16
    %12 = vector.broadcast %cst_10 : bf16 to vector<1x18x8xbf16>
    %c17 = arith.constant 17 : index
    %c0_11 = arith.constant 0 : index
    %c0_12 = arith.constant 0 : index
    %13 = vector.load %arg7[%c17, %c0_11, %c0_12] : memref<18x18x8xbf16, #tpu.memory_space<vmem>>, vector<1x18x8xbf16>
    tpu.vector_store %arg7[%c17, %c0_11, %c0_12], %12 {strides = array<i32>} : memref<18x18x8xbf16, #tpu.memory_space<vmem>>, vector<1x18x8xbf16>,
    %cst_13 = arith.constant 0.000000e+00 : bf16
    %14 = vector.broadcast %cst_13 : bf16 to vector<18x1x8xbf16>
    %c0_14 = arith.constant 0 : index
    %c0_15 = arith.constant 0 : index
    %c0_16 = arith.constant 0 : index
    %15 = vector.load %arg7[%c0_14, %c0_15, %c0_16] : memref<18x18x8xbf16, #tpu.memory_space<vmem>>, vector<18x1x8xbf16>
    tpu.vector_store %arg7[%c0_14, %c0_15, %c0_16], %14 {strides = array<i32>} : memref<18x18x8xbf16, #tpu.memory_space<vmem>>, vector<18x1x8xbf16>,
    %cst_17 = arith.constant 0.000000e+00 : bf16
    %16 = vector.broadcast %cst_17 : bf16 to vector<18x1x8xbf16>
    %c0_18 = arith.constant 0 : index
    %c17_19 = arith.constant 17 : index
    %c0_20 = arith.constant 0 : index
    %17 = vector.load %arg7[%c0_18, %c17_19, %c0_20] : memref<18x18x8xbf16, #tpu.memory_space<vmem>>, vector<18x1x8xbf16>
    tpu.vector_store %arg7[%c0_18, %c17_19, %c0_20], %16 {strides = array<i32>} : memref<18x18x8xbf16, #tpu.memory_space<vmem>>, vector<18x1x8xbf16>,
    %18 = vector.shape_cast %9 : vector<256x8xf32> to vector<16x16x8xf32>
    %19 = arith.truncf %18 : vector<16x16x8xf32> to vector<16x16x8xbf16>
    %c1 = arith.constant 1 : index
    %c1_21 = arith.constant 1 : index
    %c0_22 = arith.constant 0 : index
    %20 = vector.load %arg7[%c1, %c1_21, %c0_22] : memref<18x18x8xbf16, #tpu.memory_space<vmem>>, vector<16x16x8xbf16>
    tpu.vector_store %arg7[%c1, %c1_21, %c0_22], %19 {strides = array<i32>} : memref<18x18x8xbf16, #tpu.memory_space<vmem>>, vector<16x16x8xbf16>,
    %c0_23 = arith.constant 0 : index
    %c0_24 = arith.constant 0 : index
    %c0_25 = arith.constant 0 : index
    %21 = vector.load %arg7[%c0_23, %c0_24, %c0_25] : memref<18x18x8xbf16, #tpu.memory_space<vmem>>, vector<16x16x8xbf16>
    %22 = vector.shape_cast %21 : vector<16x16x8xbf16> to vector<256x8xbf16>
    %c0_26 = arith.constant 0 : index
    %c0_27 = arith.constant 0 : index
    %23 = vector.load %arg8[%c0_26, %c0_27] : memref<256x72xbf16, #tpu.memory_space<vmem>>, vector<256x8xbf16>
    tpu.vector_store %arg8[%c0_26, %c0_27], %22 {strides = array<i32>} : memref<256x72xbf16, #tpu.memory_space<vmem>>, vector<256x8xbf16>,
    %c0_28 = arith.constant 0 : index
    %c1_29 = arith.constant 1 : index
    %c0_30 = arith.constant 0 : index
    %24 = vector.load %arg7[%c0_28, %c1_29, %c0_30] : memref<18x18x8xbf16, #tpu.memory_space<vmem>>, vector<16x16x8xbf16>
    %25 = vector.shape_cast %24 : vector<16x16x8xbf16> to vector<256x8xbf16>
    %c0_31 = arith.constant 0 : index
    %c8 = arith.constant 8 : index
    %26 = vector.load %arg8[%c0_31, %c8] : memref<256x72xbf16, #tpu.memory_space<vmem>>, vector<256x8xbf16>
    tpu.vector_store %arg8[%c0_31, %c8], %25 {strides = array<i32>} : memref<256x72xbf16, #tpu.memory_space<vmem>>, vector<256x8xbf16>,
    %c0_32 = arith.constant 0 : index
    %c2 = arith.constant 2 : index
    %c0_33 = arith.constant 0 : index
    %27 = vector.load %arg7[%c0_32, %c2, %c0_33] : memref<18x18x8xbf16, #tpu.memory_space<vmem>>, vector<16x16x8xbf16>
    %28 = vector.shape_cast %27 : vector<16x16x8xbf16> to vector<256x8xbf16>
    %c0_34 = arith.constant 0 : index
    %c16 = arith.constant 16 : index
    %29 = vector.load %arg8[%c0_34, %c16] : memref<256x72xbf16, #tpu.memory_space<vmem>>, vector<256x8xbf16>
    tpu.vector_store %arg8[%c0_34, %c16], %28 {strides = array<i32>} : memref<256x72xbf16, #tpu.memory_space<vmem>>, vector<256x8xbf16>,
    %c1_35 = arith.constant 1 : index
    %c0_36 = arith.constant 0 : index
    %c0_37 = arith.constant 0 : index
    %30 = vector.load %arg7[%c1_35, %c0_36, %c0_37] : memref<18x18x8xbf16, #tpu.memory_space<vmem>>, vector<16x16x8xbf16>
    %31 = vector.shape_cast %30 : vector<16x16x8xbf16> to vector<256x8xbf16>
    %c0_38 = arith.constant 0 : index
    %c24 = arith.constant 24 : index
    %32 = vector.load %arg8[%c0_38, %c24] : memref<256x72xbf16, #tpu.memory_space<vmem>>, vector<256x8xbf16>
    tpu.vector_store %arg8[%c0_38, %c24], %31 {strides = array<i32>} : memref<256x72xbf16, #tpu.memory_space<vmem>>, vector<256x8xbf16>,
    %c1_39 = arith.constant 1 : index
    %c1_40 = arith.constant 1 : index
    %c0_41 = arith.constant 0 : index
    %33 = vector.load %arg7[%c1_39, %c1_40, %c0_41] : memref<18x18x8xbf16, #tpu.memory_space<vmem>>, vector<16x16x8xbf16>
    %34 = vector.shape_cast %33 : vector<16x16x8xbf16> to vector<256x8xbf16>
    %c0_42 = arith.constant 0 : index
    %c32 = arith.constant 32 : index
    %35 = vector.load %arg8[%c0_42, %c32] : memref<256x72xbf16, #tpu.memory_space<vmem>>, vector<256x8xbf16>
    tpu.vector_store %arg8[%c0_42, %c32], %34 {strides = array<i32>} : memref<256x72xbf16, #tpu.memory_space<vmem>>, vector<256x8xbf16>,
    %c1_43 = arith.constant 1 : index
    %c2_44 = arith.constant 2 : index
    %c0_45 = arith.constant 0 : index
    %36 = vector.load %arg7[%c1_43, %c2_44, %c0_45] : memref<18x18x8xbf16, #tpu.memory_space<vmem>>, vector<16x16x8xbf16>
    %37 = vector.shape_cast %36 : vector<16x16x8xbf16> to vector<256x8xbf16>
    %c0_46 = arith.constant 0 : index
    %c40 = arith.constant 40 : index
    %38 = vector.load %arg8[%c0_46, %c40] : memref<256x72xbf16, #tpu.memory_space<vmem>>, vector<256x8xbf16>
    tpu.vector_store %arg8[%c0_46, %c40], %37 {strides = array<i32>} : memref<256x72xbf16, #tpu.memory_space<vmem>>, vector<256x8xbf16>,
    %c2_47 = arith.constant 2 : index
    %c0_48 = arith.constant 0 : index
    %c0_49 = arith.constant 0 : index
    %39 = vector.load %arg7[%c2_47, %c0_48, %c0_49] : memref<18x18x8xbf16, #tpu.memory_space<vmem>>, vector<16x16x8xbf16>
    %40 = vector.shape_cast %39 : vector<16x16x8xbf16> to vector<256x8xbf16>
    %c0_50 = arith.constant 0 : index
    %c48 = arith.constant 48 : index
    %41 = vector.load %arg8[%c0_50, %c48] : memref<256x72xbf16, #tpu.memory_space<vmem>>, vector<256x8xbf16>
    tpu.vector_store %arg8[%c0_50, %c48], %40 {strides = array<i32>} : memref<256x72xbf16, #tpu.memory_space<vmem>>, vector<256x8xbf16>,
    %c2_51 = arith.constant 2 : index
    %c1_52 = arith.constant 1 : index
    %c0_53 = arith.constant 0 : index
    %42 = vector.load %arg7[%c2_51, %c1_52, %c0_53] : memref<18x18x8xbf16, #tpu.memory_space<vmem>>, vector<16x16x8xbf16>
    %43 = vector.shape_cast %42 : vector<16x16x8xbf16> to vector<256x8xbf16>
    %c0_54 = arith.constant 0 : index
    %c56 = arith.constant 56 : index
    %44 = vector.load %arg8[%c0_54, %c56] : memref<256x72xbf16, #tpu.memory_space<vmem>>, vector<256x8xbf16>
    tpu.vector_store %arg8[%c0_54, %c56], %43 {strides = array<i32>} : memref<256x72xbf16, #tpu.memory_space<vmem>>, vector<256x8xbf16>,
    %c2_55 = arith.constant 2 : index
    %c2_56 = arith.constant 2 : index
    %c0_57 = arith.constant 0 : index
    %45 = vector.load %arg7[%c2_55, %c2_56, %c0_57] : memref<18x18x8xbf16, #tpu.memory_space<vmem>>, vector<16x16x8xbf16>
    %46 = vector.shape_cast %45 : vector<16x16x8xbf16> to vector<256x8xbf16>
    %c0_58 = arith.constant 0 : index
    %c64 = arith.constant 64 : index
    %47 = vector.load %arg8[%c0_58, %c64] : memref<256x72xbf16, #tpu.memory_space<vmem>>, vector<256x8xbf16>
    tpu.vector_store %arg8[%c0_58, %c64], %46 {strides = array<i32>} : memref<256x72xbf16, #tpu.memory_space<vmem>>, vector<256x8xbf16>,
    %c0_59 = arith.constant 0 : index
    %c0_60 = arith.constant 0 : index
    %48 = vector.load %arg8[%c0_59, %c0_60] : memref<256x72xbf16, #tpu.memory_space<vmem>>, vector<256x72xbf16>
    %c0_61 = arith.constant 0 : index
    %c0_62 = arith.constant 0 : index
    %49 = vector.load %arg4[%c0_61, %c0_62] : memref<72x8xbf16, #tpu.memory_space<vmem>>, vector<72x8xbf16>
    %cst_63 = arith.constant dense<0.000000e+00> : vector<256x8xf32>
    %50 = tpu.matmul %48, %49, %cst_63 {dimension_numbers = #tpu.dot_dimension_numbers<[1], [0], [0], [1], [0, 0, 1, 1], [], []>} : vector<256x72xbf16>, vector<72x8xbf16>, vector<256x8xf32> -> vector<256x8xf32>
    %c0_64 = arith.constant 0 : index
    %c0_65 = arith.constant 0 : index
    %c0_66 = arith.constant 0 : index
    %51 = vector.load %arg5[%c0_64, %c0_65, %c0_66] : memref<1x256x8xf32, #tpu.memory_space<vmem>>, vector<1x256x8xf32>
    %52 = vector.shape_cast %51 : vector<1x256x8xf32> to vector<256x8xf32>
    %53 = vector.shape_cast %50 : vector<256x8xf32> to vector<1x256x8xf32>
    tpu.vector_store %arg5[%c0_64, %c0_65, %c0_66], %53 {strides = array<i32>} : memref<1x256x8xf32, #tpu.memory_space<vmem>>, vector<1x256x8xf32>,
    %cst_67 = arith.constant dense<0.000000e+00> : vector<8xf32>
    %54 = vector.multi_reduction <add>, %50, %cst_67 [0] : vector<256x8xf32> to vector<8xf32>
    %55 = vector.shape_cast %54 : vector<8xf32> to vector<1x8xf32>
    %cst_68 = arith.constant 2.560000e+02 : f32
    %56 = vector.broadcast %cst_68 : f32 to vector<1x8xf32>
    %57 = arith.divf %55, %56 : vector<1x8xf32>
    %c0_69 = arith.constant 0 : index
    %c0_70 = arith.constant 0 : index
    %c0_71 = arith.constant 0 : index
    %58 = vector.load %arg6[%c0_69, %c0_70, %c0_71] : memref<1x2x8xf32, #tpu.memory_space<vmem>>, vector<1x1x8xf32>
    %59 = vector.shape_cast %58 : vector<1x1x8xf32> to vector<1x8xf32>
    %60 = vector.shape_cast %57 : vector<1x8xf32> to vector<1x1x8xf32>
    tpu.vector_store %arg6[%c0_69, %c0_70, %c0_71], %60 {strides = array<i32>} : memref<1x2x8xf32, #tpu.memory_space<vmem>>, vector<1x1x8xf32>,
    %61 = vector.broadcast %57 : vector<1x8xf32> to vector<256x8xf32>
    %62 = arith.subf %50, %61 : vector<256x8xf32>
    %63 = arith.mulf %62, %62 : vector<256x8xf32>
    %cst_72 = arith.constant dense<0.000000e+00> : vector<8xf32>
    %64 = vector.multi_reduction <add>, %63, %cst_72 [0] : vector<256x8xf32> to vector<8xf32>
    %65 = vector.shape_cast %64 : vector<8xf32> to vector<1x8xf32>
    %c0_73 = arith.constant 0 : index
    %c1_74 = arith.constant 1 : index
    %c0_75 = arith.constant 0 : index
    %66 = vector.load %arg6[%c0_73, %c1_74, %c0_75] : memref<1x2x8xf32, #tpu.memory_space<vmem>>, vector<1x1x8xf32>
    %67 = vector.shape_cast %66 : vector<1x1x8xf32> to vector<1x8xf32>
    %68 = vector.shape_cast %65 : vector<1x8xf32> to vector<1x1x8xf32>
    tpu.vector_store %arg6[%c0_73, %c1_74, %c0_75], %68 {strides = array<i32>} : memref<1x2x8xf32, #tpu.memory_space<vmem>>, vector<1x1x8xf32>,
    return
  }
  func.func @transform_0(%arg0: i32) -> (i32, i32, i32) {
    %c0_i32 = arith.constant 0 : i32
    %c0_i32_0 = arith.constant 0 : i32
    %c0_i32_1 = arith.constant 0 : i32
    return %arg0, %c0_i32, %c0_i32_0 : i32, i32, i32
  }
  func.func @transform_1(%arg0: i32) -> (i32, i32) {
    %c0_i32 = arith.constant 0 : i32
    %c0_i32_0 = arith.constant 0 : i32
    %c0_i32_1 = arith.constant 0 : i32
    return %c0_i32, %c0_i32_0 : i32, i32
  }
  func.func @transform_2(%arg0: i32) -> (i32, i32) {
    %c0_i32 = arith.constant 0 : i32
    %c0_i32_0 = arith.constant 0 : i32
    %c0_i32_1 = arith.constant 0 : i32
    return %c0_i32, %c0_i32_0 : i32, i32
  }
  func.func @transform_3(%arg0: i32) -> (i32, i32) {
    %c0_i32 = arith.constant 0 : i32
    %c0_i32_0 = arith.constant 0 : i32
    %c0_i32_1 = arith.constant 0 : i32
    return %c0_i32, %c0_i32_0 : i32, i32
  }
  func.func @transform_4(%arg0: i32) -> (i32, i32, i32) {
    %c0_i32 = arith.constant 0 : i32
    %c0_i32_0 = arith.constant 0 : i32
    %c0_i32_1 = arith.constant 0 : i32
    return %arg0, %c0_i32, %c0_i32_0 : i32, i32, i32
  }
  func.func @transform_5(%arg0: i32) -> (i32, i32, i32) {
    %c0_i32 = arith.constant 0 : i32
    %c0_i32_0 = arith.constant 0 : i32
    %c0_i32_1 = arith.constant 0 : i32
    return %arg0, %c0_i32, %c0_i32_0 : i32, i32, i32
  }
}

module attributes {stable_mosaic.version = 11 : i64} {
  func.func @_finalize_kernel(%arg0: i32, %arg1: memref<1x16x128xf32, #tpu.memory_space<vmem>>, %arg2: memref<1x16x128xf32, #tpu.memory_space<vmem>>, %arg3: memref<1x128xf32, #tpu.memory_space<vmem>>, %arg4: memref<1x128xf32, #tpu.memory_space<vmem>>, %arg5: memref<1x16x128xf32, #tpu.memory_space<vmem>>) attributes {dimension_semantics = [#tpu.dimension_semantics<parallel>], iteration_bounds = array<i64: 2>, scalar_prefetch = 0 : i64, scratch_operands = 0 : i64, tpu.core_type = #tpu.core_type<tc>, window_params = [{transform_indices = @transform_0, window_bounds = array<i64: 1, 16, 128>}, {transform_indices = @transform_1, window_bounds = array<i64: 1, 16, 128>}, {pipeline_mode = #tpu.pipeline_mode<synchronous>, transform_indices = @transform_2, window_bounds = array<i64: 1, 128>}, {pipeline_mode = #tpu.pipeline_mode<synchronous>, transform_indices = @transform_3, window_bounds = array<i64: 1, 128>}, {transform_indices = @transform_4, window_bounds = array<i64: 1, 16, 128>}]} {
    %c0 = arith.constant 0 : index
    %c0_0 = arith.constant 0 : index
    %c0_1 = arith.constant 0 : index
    %0 = vector.load %arg1[%c0, %c0_0, %c0_1] : memref<1x16x128xf32, #tpu.memory_space<vmem>>, vector<1x16x128xf32>
    %1 = vector.shape_cast %0 : vector<1x16x128xf32> to vector<16x128xf32>
    %c0_2 = arith.constant 0 : index
    %c0_3 = arith.constant 0 : index
    %2 = vector.load %arg3[%c0_2, %c0_3] : memref<1x128xf32, #tpu.memory_space<vmem>>, vector<1x128xf32>
    %3 = vector.broadcast %2 : vector<1x128xf32> to vector<16x128xf32>
    %4 = arith.mulf %1, %3 : vector<16x128xf32>
    %c0_4 = arith.constant 0 : index
    %c0_5 = arith.constant 0 : index
    %5 = vector.load %arg4[%c0_4, %c0_5] : memref<1x128xf32, #tpu.memory_space<vmem>>, vector<1x128xf32>
    %6 = vector.broadcast %5 : vector<1x128xf32> to vector<16x128xf32>
    %7 = arith.addf %4, %6 : vector<16x128xf32>
    %c0_6 = arith.constant 0 : index
    %c0_7 = arith.constant 0 : index
    %c0_8 = arith.constant 0 : index
    %8 = vector.load %arg2[%c0_6, %c0_7, %c0_8] : memref<1x16x128xf32, #tpu.memory_space<vmem>>, vector<1x16x128xf32>
    %9 = vector.shape_cast %8 : vector<1x16x128xf32> to vector<16x128xf32>
    %10 = arith.addf %7, %9 : vector<16x128xf32>
    %cst = arith.constant 0.000000e+00 : f32
    %11 = vector.broadcast %cst : f32 to vector<16x128xf32>
    %12 = arith.maximumf %10, %11 : vector<16x128xf32>
    %c0_9 = arith.constant 0 : index
    %c0_10 = arith.constant 0 : index
    %c0_11 = arith.constant 0 : index
    %13 = vector.load %arg5[%c0_9, %c0_10, %c0_11] : memref<1x16x128xf32, #tpu.memory_space<vmem>>, vector<1x16x128xf32>
    %14 = vector.shape_cast %13 : vector<1x16x128xf32> to vector<16x128xf32>
    %15 = vector.shape_cast %12 : vector<16x128xf32> to vector<1x16x128xf32>
    tpu.vector_store %arg5[%c0_9, %c0_10, %c0_11], %15 {strides = array<i32>} : memref<1x16x128xf32, #tpu.memory_space<vmem>>, vector<1x16x128xf32>,
    return
  }
  func.func @transform_0(%arg0: i32) -> (i32, i32, i32) {
    %c0_i32 = arith.constant 0 : i32
    %c0_i32_0 = arith.constant 0 : i32
    %c0_i32_1 = arith.constant 0 : i32
    return %arg0, %c0_i32, %c0_i32_0 : i32, i32, i32
  }
  func.func @transform_1(%arg0: i32) -> (i32, i32, i32) {
    %c0_i32 = arith.constant 0 : i32
    %c0_i32_0 = arith.constant 0 : i32
    %c0_i32_1 = arith.constant 0 : i32
    return %arg0, %c0_i32, %c0_i32_0 : i32, i32, i32
  }
  func.func @transform_2(%arg0: i32) -> (i32, i32) {
    %c0_i32 = arith.constant 0 : i32
    %c0_i32_0 = arith.constant 0 : i32
    %c0_i32_1 = arith.constant 0 : i32
    return %c0_i32, %c0_i32_0 : i32, i32
  }
  func.func @transform_3(%arg0: i32) -> (i32, i32) {
    %c0_i32 = arith.constant 0 : i32
    %c0_i32_0 = arith.constant 0 : i32
    %c0_i32_1 = arith.constant 0 : i32
    return %c0_i32, %c0_i32_0 : i32, i32
  }
  func.func @transform_4(%arg0: i32) -> (i32, i32, i32) {
    %c0_i32 = arith.constant 0 : i32
    %c0_i32_0 = arith.constant 0 : i32
    %c0_i32_1 = arith.constant 0 : i32
    return %arg0, %c0_i32, %c0_i32_0 : i32, i32, i32
  }
}

</mosaic_0001>

<bundles_post_ra>
// kernel: basic_block_forward.5
= control target key start
LH: loop header
LB: loop body
LE: loop exit
PB: predicated region body
PF: predicated region fallthrough
CT: control target
= control target key end

     0   :  { %s366_s15 = smov 0   ;;  %s392_s0 = inlined_call_operand.vmem [shape: f32[2,16,128], index: 0, kind: input, shape index: {}]   ;;  %s393_s1 = inlined_call_operand.vmem [shape: f32[2,16,128], index: 1, kind: input, shape index: {}]   ;;  %s394_s2 = inlined_call_operand.vmem [shape: f32[1,128], index: 2, kind: input, shape index: {}]   ;;  %s395_s3 = inlined_call_operand.vmem [shape: f32[1,128], index: 3, kind: input, shape index: {}]   ;;  %s396_s4 = inlined_call_operand.vmem [shape: f32[2,16,128], index: 4, kind: output, shape index: {}]  }
   0x1 LB: > { %s307_s16 = sadd.s32 4294967295, %s339_s15   ;;  %p311_p0 = scmp.ge.s32.totalorder %s339_s15, 1  ;;  %s339_s15 = sphi %s366_s15, %s14_s15  }
   0x2   : > { %p172_p1 = scmp.lt.s32.totalorder %s339_s15, 3 }
   0x4   : > { %p173_p2 = pnand %p311_p0, %p172_p1 }
   0x5   : > { %p203_p3 = scmp.lt.s32.totalorder (!%p173_p2), %s307_s16, 1 }
   0x6   : > { %176 = sbr.rel (%p173_p2) target bundleno = 25 (0x19), region = 36 }
   0xb   : > { %s398_s16 = smov (!%p203_p3, %s307_s16), 1  ;;  %v331_v0 = vld [vmem:[%s394_s2] ss:$0 sm:$0xff] }
   0xc   : > { %s320_s19 = sshll.u32 %s398_s16, 4  ;;  %v332_v1 = vld [vmem:[%s395_s3] ss:$0 sm:$0xff] }
   0xd   : > { %s207_s22 = scalar_lea.vmem %s392_s0, %s320_s19  ;;  %s212_s25 = scalar_lea.vmem %s393_s1, %s320_s19 }
   0xe   : > { %v218_v2 = vld [vmem:[%s207_s22] sm:$0xff]  ;;  %v219_v3 = vld [vmem:[%s207_s22 + $0x8] sm:$0xff]  ;;  %s217_s30 = scalar_lea.vmem %s396_s4, %s320_s19 }
   0xf   : > { %v224_v4 = vmul.f32 %v331_v0, %v218_v2  ;;  %v225_v5 = vmul.f32 %v331_v0, %v219_v3  ;;  %v232_v6 = vld [vmem:[%s212_s25] sm:$0xff]  ;;  %v233_v7 = vld [vmem:[%s212_s25 + $0x8] sm:$0xff] }
  0x11   : > { %v230_v8 = vadd.f32 %v332_v1, %v224_v4  ;;  %v231_v9 = vadd.f32 %v332_v1, %v225_v5 }
  0x13   : > { %v234_v10 = vadd.f32 %v232_v6, %v230_v8  ;;  %v235_v11 = vadd.f32 %v233_v7, %v231_v9 }
  0x15   : > { %v236_v12 = vmax.f32 %v234_v10, 0.0  ;;  %v237_v13 = vmax.f32 %v235_v11, 0.0 }
  0x17   : > { %238 = vst [vmem:[%s217_s30] sm:$0xff] %v236_v12 }
  0x18   : > { %239 = vst [vmem:[%s217_s30 + $0x8] sm:$0xff] %v237_v13 }
  0x19 PF: > { %s14_s15 = sadd.s32 1, %s339_s15  }
  0x1a   : > { %p11_p4 = scmp.ge.s32.totalorder %s14_s15, 4  }
  0x1c   :  { %13 = sbr.rel (!%p11_p4) target bundleno = 1 (0x1), region = 69 }

// kernel: basic_block_forward.3
= control target key start
LH: loop header
LB: loop body
LE: loop exit
PB: predicated region body
PF: predicated region fallthrough
CT: control target
= control target key end

     0   :  { %s3096_s12 = smov 0   ;;  %s4514_s0 = inlined_call_operand.vmem [shape: f32[2,18,18,8], index: 0, kind: input, shape index: {}]   ;;  %s4515_s1 = inlined_call_operand.vmem [shape: bf16[72,8], index: 1, kind: input, shape index: {}]   ;;  %s4516_s2 = inlined_call_operand.vmem [shape: f32[2,256,8], index: 2, kind: output, shape index: {0}]   ;;  %s4517_s3 = inlined_call_operand.vmem [shape: f32[2,2,8], index: 3, kind: output, shape index: {1}]  }
   0x1 LB: > { %s2704_s13 = sadd.s32 4294967295, %s3065_s12   ;;  %p2708_p0 = scmp.ge.s32.totalorder %s3065_s12, 1  ;;  %s3065_s12 = sphi %s3096_s12, %s14_s12  }
   0x2   : > { %p140_p1 = scmp.lt.s32.totalorder %s3065_s12, 3 }
   0x4   : > { %p141_p2 = pnand %p2708_p0, %p140_p1 }
   0x5   : > { %p168_p3 = scmp.lt.s32.totalorder (!%p141_p2), %s2704_s13, 1  ;;  %s3067_s18 = smov (!%p141_p2), 8  }
   0x6   : > { %144 = sbr.rel (%p141_p2) target bundleno = 1059 (0x423), region = 28  ;;  %s3068_s19 = smov (!%p141_p2), 16  }
   0x7   : > { %s3069_s20 = smov (!%p141_p2), 24   ;;  %s3070_s21 = smov (!%p141_p2), 32  }
   0x8   : > { %s3071_s22 = smov (!%p141_p2), 40   ;;  %s3072_s23 = smov (!%p141_p2), 48  }
   0x9   : > { %s3073_s24 = smov (!%p141_p2), 56   ;;  %s3074_s25 = smov (!%p141_p2), 64  }
   0xb   : > { %s4519_s13 = smov (!%p168_p3, %s2704_s13), 1  ;;  %vm247_vm0 = vcmask 60416   ;;  %vm472_vm1 = vcmask 126016   ;;  %vm697_vm2 = vcmask 191616   ;;  %vm923_vm3 = vcmask 257216  }
   0xc   : > { %s3039_s14 = smul.u32 432, %s4519_s13  ;;  %vm1148_vm4 = vcmask 322816   ;;  %vm1373_vm5 = vcmask 388416   ;;  %vm2279_vm6 = vcmask 1043456   ;;  %vm1599_vm7 = vcmask 454016   ;;  %s3003_s9 = sshll.u32 %s4519_s13, 8 }
   0xd   : > { %vm1824_vm8 = vcmask 519616   ;;  %vm2049_vm9 = vcmask 585216   ;;  %vm2230_vm10 = vcmask 588800   ;;  %vm2372_vm11 = vcmask 64512   ;;  %s2712_s15 = sshll.u32 %s4519_s13, 1 }
   0xe   : > { %s3110_s17 = scalar_lea.vmem %s4514_s0, %s3039_s14  ;;  %s4056_s14 = scalar_lea.vmem %s4516_s2, %s3003_s9  ;;  %vm2482_vm13 = vcmask 57344  }
   0xf   : > { %v282_v0 = vld [vmem:[%s3110_s17 + $0x19] sm:$0xff]  ;;  %v280_v1 = vld [vmem:[%s3110_s17 + $0x1] sm:$0xff]  ;;  %v284_v4 = vld [vmem:[%s3110_s17 + $0x31] sm:$0xff] }
  0x10   : > { %v3114_v2 = vpack.c.bf16 %v282_v0, %v282_v0  ;;  %v312_v3 = vpack.c.bf16 %v280_v1, %v280_v1  ;;  %v316_v5 = vpack.c.bf16 %v284_v4, %v284_v4  ;;  %v283_v6 = vld [vmem:[%s3110_s17 + $0x21] sm:$0xff]  ;;  %v281_v7 = vld [vmem:[%s3110_s17 + $0x9] sm:$0xff]  ;;  %v285_v8 = vld [vmem:[%s3110_s17 + $0x39] sm:$0xff] }
  0x11   : > { %v3124_v9 = vpack.c.bf16 %v283_v6, %v283_v6  ;;  %v313_v10 = vpack.c.bf16 %v281_v7, %v281_v7  ;;  %v3126_v11 = vpack.c.bf16 %v285_v8, %v285_v8  ;;  %v287_v12 = vld [vmem:[%s3110_s17 + $0x51] sm:$0xff]  ;;  %v286_v13 = vld [vmem:[%s3110_s17 + $0x49] sm:$0xff]  ;;  %v288_v14 = vld [vmem:[%s3110_s17 + $0x61] sm:$0xff] }
  0x12   : > { %380 = vrot.lane.b32.xlu1 %v3114_v2, %s3067_s18  ;;  %376 = vrot.lane.b32.xlu0 %v312_v3, %s3067_s18  ;;  %v319_v15 = vpack.c.bf16 %v287_v12, %v287_v12  ;;  %v3136_v16 = vpack.c.bf16 %v286_v13, %v286_v13  ;;  %v3138_v17 = vpack.c.bf16 %v288_v14, %v288_v14  ;;  %v290_v18 = vld [vmem:[%s3110_s17 + $0x79] sm:$0xff]  ;;  %v289_v19 = vld [vmem:[%s3110_s17 + $0x69] sm:$0xff] }
  0x13   : > { %384 = vrot.lane.b32.xlu2 %v316_v5, %s3067_s18  ;;  %v291_v20 = vld [vmem:[%s3110_s17 + $0x81] sm:$0xff]  ;;  %v322_v21 = vpack.c.bf16 %v290_v18, %v290_v18  ;;  %v3148_v22 = vpack.c.bf16 %v289_v19, %v289_v19  ;;  %v293_v24 = vld [vmem:[%s3110_s17 + $0x99] sm:$0xff]  ;;  %v292_v25 = vld [vmem:[%s3110_s17 + $0x91] sm:$0xff] }
  0x14   : > { %v3150_v23 = vpack.c.bf16 %v291_v20, %v291_v20  ;;  %v294_v26 = vld [vmem:[%s3110_s17 + $0xa9] sm:$0xff]  ;;  %v325_v27 = vpack.c.bf16 %v293_v24, %v293_v24  ;;  %v3160_v28 = vpack.c.bf16 %v292_v25, %v292_v25  ;;  %v296_v30 = vld [vmem:[%s3110_s17 + $0xc1] sm:$0xff]  ;;  %v295_v31 = vld [vmem:[%s3110_s17 + $0xb1] sm:$0xff] }
  0x15   : > { %v3162_v29 = vpack.c.bf16 %v294_v26, %v294_v26  ;;  %v297_v32 = vld [vmem:[%s3110_s17 + $0xc9] sm:$0xff]  ;;  %v328_v33 = vpack.c.bf16 %v296_v30, %v296_v30  ;;  %v3172_v34 = vpack.c.bf16 %v295_v31, %v295_v31  ;;  %v299_v36 = vld [vmem:[%s3110_s17 + $0xe1] sm:$0xff]  ;;  %v298_v37 = vld [vmem:[%s3110_s17 + $0xd9] sm:$0xff] }
  0x16   : > { %v3174_v35 = vpack.c.bf16 %v297_v32, %v297_v32  ;;  %v300_v38 = vld [vmem:[%s3110_s17 + $0xf1] sm:$0xff]  ;;  %v331_v39 = vpack.c.bf16 %v299_v36, %v299_v36  ;;  %v330_v40 = vpack.c.bf16 %v298_v37, %v298_v37  ;;  %v302_v42 = vld [vmem:[%s3110_s17 + $0x109] sm:$0xff]  ;;  %v301_v43 = vld [vmem:[%s3110_s17 + $0xf9] sm:$0xff] }
  0x17   : > { %v332_v41 = vpack.c.bf16 %v300_v38, %v300_v38  ;;  %v303_v44 = vld [vmem:[%s3110_s17 + $0x111] sm:$0xff]  ;;  %v334_v45 = vpack.c.bf16 %v302_v42, %v302_v42  ;;  %v333_v46 = vpack.c.bf16 %v301_v43, %v301_v43  ;;  %v305_v48 = vld [vmem:[%s3110_s17 + $0x129] sm:$0xff]  ;;  %v304_v49 = vld [vmem:[%s3110_s17 + $0x121] sm:$0xff] }
  0x18   : > { %v335_v47 = vpack.c.bf16 %v303_v44, %v303_v44  ;;  %v306_v50 = vld [vmem:[%s3110_s17 + $0x139] sm:$0xff]  ;;  %v337_v51 = vpack.c.bf16 %v305_v48, %v305_v48  ;;  %v336_v52 = vpack.c.bf16 %v304_v49, %v304_v49  ;;  %v308_v54 = vld [vmem:[%s3110_s17 + $0x151] sm:$0xff]  ;;  %v307_v55 = vld [vmem:[%s3110_s17 + $0x141] sm:$0xff] }
  0x19   : > { %v338_v53 = vpack.c.bf16 %v306_v50, %v306_v50  ;;  %v309_v56 = vld [vmem:[%s3110_s17 + $0x159] sm:$0xff]  ;;  %v340_v57 = vpack.c.bf16 %v308_v54, %v308_v54  ;;  %v339_v58 = vpack.c.bf16 %v307_v55, %v307_v55  ;;  %v311_v60 = vld [vmem:[%s3110_s17 + $0x171] sm:$0xff]  ;;  %v310_v61 = vld [vmem:[%s3110_s17 + $0x169] sm:$0xff] }
  0x1a   : > { %382 = vrot.lane.b32.xlu1 %v3124_v9, %s3067_s18  ;;  %378 = vrot.lane.b32.xlu0 %v313_v10, %s3067_s18  ;;  %v341_v59 = vpack.c.bf16 %v309_v56, %v309_v56  ;;  %v505_v62 = vld [vmem:[%s3110_s17 + $0x2] sm:$0xff]  ;;  %v343_v63 = vpack.c.bf16 %v311_v60, %v311_v60  ;;  %v342_v0 = vpack.c.bf16 %v310_v61, %v310_v61  ;;  %v187_v4 = vld [vmem:[%s3110_s17 + $0x30] sm:$0xff] }
  0x1b   : > { %386 = vrot.lane.b32.xlu2 %v3126_v11, %s3067_s18  ;;  %v537_v1 = vpack.c.bf16 %v505_v62, %v505_v62  ;;  %v183_v3 = vld [vmem:[%s3110_s17] sm:$0xff]  ;;  %v506_v7 = vld [vmem:[%s3110_s17 + $0xa] sm:$0xff]  ;;  %v3214_v8 = vpack.c.bf16 %v187_v4, %v187_v4  ;;  %v185_v10 = vld [vmem:[%s3110_s17 + $0x18] sm:$0xff] }
  0x1c   : > { %v215_v5 = vpack.c.bf16 %v183_v3, %v183_v3  ;;  %v507_v6 = vld [vmem:[%s3110_s17 + $0x1a] sm:$0xff]  ;;  %v508_v12 = vld [vmem:[%s3110_s17 + $0x22] sm:$0xff]  ;;  %v3222_v13 = vpack.c.bf16 %v185_v10, %v185_v10  ;;  %v509_v24 = vld [vmem:[%s3110_s17 + $0x32] sm:$0xff] }
  0x1d   : > { %252 = vst.msk [vmem:[#allocation2 + $0x10] sm:$0xf] %vm247_vm0, %v3214_v8  ;;  %v539_v14 = vpack.c.bf16 %v507_v6, %v507_v6  ;;  %v540_v18 = vpack.c.bf16 %v508_v12, %v508_v12  ;;  %v188_v19 = vld [vmem:[%s3110_s17 + $0x38] sm:$0xff]  ;;  %v184_v20 = vld [vmem:[%s3110_s17 + $0x8] sm:$0xff]  ;;  %v191_v38 = vld [vmem:[%s3110_s17 + $0x60] sm:$0xff] }
  0x1e   : > { %248 = vst.msk [vmem:[#allocation2] sm:$0xf] %vm247_vm0, %v215_v5  ;;  %v3232_v25 = vpack.c.bf16 %v188_v19, %v188_v19  ;;  %v216_v26 = vpack.c.bf16 %v184_v20, %v184_v20  ;;  %v511_v30 = vld [vmem:[%s3110_s17 + $0x4a] sm:$0xff]  ;;  %v3251_v42 = vpack.c.bf16 %v191_v38, %v191_v38  ;;  %v515_v54 = vld [vmem:[%s3110_s17 + $0x7a] sm:$0xff]  ;;  %v520_v12 = vld [vmem:[%s3110_s17 + $0xb2] sm:$0xff] }
  0x1f   : > { %250 = vst.msk [vmem:[#allocation2 + $0x8] sm:$0xf] %vm247_vm0, %v3222_v13  ;;  %v543_v37 = vpack.c.bf16 %v511_v30, %v511_v30  ;;  %v190_v44 = vld [vmem:[%s3110_s17 + $0x50] sm:$0xff]  ;;  %v547_v61 = vpack.c.bf16 %v515_v54, %v515_v54  ;;  %v518_v3 = vld [vmem:[%s3110_s17 + $0x9a] sm:$0xff] }
  0x20   : > { %253 = vst.msk [vmem:[#allocation2 + $0x14] sm:$0xf] %vm247_vm0, %v3232_v25  ;;  %v195_v4 = vld [vmem:[%s3110_s17 + $0x90] sm:$0xff]  ;;  %v196_v10 = vld [vmem:[%s3110_s17 + $0x98] sm:$0xff] }
  0x21   : > { %249 = vst.msk [vmem:[#allocation2 + $0x4] sm:$0xf] %vm247_vm0, %v216_v26  ;;  %v3304_v20 = vpack.c.bf16 %v195_v4, %v195_v4  ;;  %v522_v26 = vld [vmem:[%s3110_s17 + $0xca] sm:$0xff]  ;;  %v523_v38 = vld [vmem:[%s3110_s17 + $0xda] sm:$0xff]  ;;  %v528_v4 = vld [vmem:[%s3110_s17 + $0x112] sm:$0xff] }
  0x22   : > { %390 = vrot.lane.b32.xlu1 %v319_v15, %s3067_s18  ;;  %388 = vrot.lane.b32.xlu0 %v3136_v16, %s3067_s18  ;;  %v538_v15 = vpack.c.bf16 %v506_v7, %v506_v7  ;;  %256 = vst.msk [vmem:[#allocation2 + $0x20] sm:$0xf] %vm247_vm0, %v3251_v42  ;;  %v198_v30 = vld [vmem:[%s3110_s17 + $0xb0] sm:$0xff] }
  0x23   : > { %392 = vrot.lane.b32.xlu2 %v3138_v17, %s3067_s18  ;;  %260 = vst.msk [vmem:[#allocation2 + $0x30] sm:$0xf] %vm247_vm0, %v3304_v20 }
  0x2a   : > { %396 = vrot.lane.b32.xlu1 %v322_v21, %s3067_s18  ;;  %394 = vrot.lane.b32.xlu0 %v3148_v22, %s3067_s18  ;;  %v510_v21 = vld [vmem:[%s3110_s17 + $0x3a] sm:$0xff] }
  0x2b   : > { %398 = vrot.lane.b32.xlu2 %v3150_v23, %s3067_s18  ;;  %v542_v32 = vpack.c.bf16 %v510_v21, %v510_v21  ;;  %v552_v21 = vpack.c.bf16 %v520_v12, %v520_v12 }
  0x32   : > { %402 = vrot.lane.b32.xlu1 %v325_v27, %s3067_s18  ;;  %400 = vrot.lane.b32.xlu0 %v3160_v28, %s3067_s18  ;;  %v186_v27 = vld [vmem:[%s3110_s17 + $0x20] sm:$0xff] }
  0x33   : > { %404 = vrot.lane.b32.xlu2 %v3162_v29, %s3067_s18  ;;  %v3239_v31 = vpack.c.bf16 %v186_v27, %v186_v27  ;;  %v521_v27 = vld [vmem:[%s3110_s17 + $0xc2] sm:$0xff] }
  0x35   : > { %251 = vst.msk [vmem:[#allocation2 + $0xc] sm:$0xf] %vm247_vm0, %v3239_v31 }
  0x3a   : > { %408 = vrot.lane.b32.xlu1 %v328_v33, %s3067_s18  ;;  %406 = vrot.lane.b32.xlu0 %v3172_v34, %s3067_s18  ;;  %v541_v33 = vpack.c.bf16 %v509_v24, %v509_v24  ;;  %v200_v24 = vld [vmem:[%s3110_s17 + $0xc8] sm:$0xff] }
  0x3b   : > { %410 = vrot.lane.b32.xlu2 %v3174_v35, %s3067_s18 }
  0x42   : > { %414 = vrot.lane.b32.xlu1 %v331_v39, %s3067_s18  ;;  %412 = vrot.lane.b32.xlu0 %v330_v40, %s3067_s18  ;;  %v189_v39 = vld [vmem:[%s3110_s17 + $0x48] sm:$0xff] }
  0x43   : > { %416 = vrot.lane.b32.xlu2 %v332_v41, %s3067_s18  ;;  %v513_v40 = vld [vmem:[%s3110_s17 + $0x62] sm:$0xff]  ;;  %v512_v41 = vld [vmem:[%s3110_s17 + $0x52] sm:$0xff]  ;;  %v3253_v43 = vpack.c.bf16 %v189_v39, %v189_v39 }
  0x44   : > { %v544_v48 = vpack.c.bf16 %v512_v41, %v512_v41  ;;  %v553_v41 = vpack.c.bf16 %v521_v27, %v521_v27 }
  0x45   : > { %254 = vst.msk [vmem:[#allocation2 + $0x18] sm:$0xf] %vm247_vm0, %v3253_v43 }
  0x4a   : > { %420 = vrot.lane.b32.xlu1 %v334_v45, %s3067_s18  ;;  %418 = vrot.lane.b32.xlu0 %v333_v46, %s3067_s18  ;;  %v514_v45 = vld [vmem:[%s3110_s17 + $0x6a] sm:$0xff]  ;;  %v3260_v46 = vpack.c.bf16 %v190_v44, %v190_v44 }
  0x4b   : > { %422 = vrot.lane.b32.xlu2 %v335_v47, %s3067_s18  ;;  %v545_v47 = vpack.c.bf16 %v513_v40, %v513_v40  ;;  %v546_v50 = vpack.c.bf16 %v514_v45, %v514_v45  ;;  %v554_v40 = vpack.c.bf16 %v522_v26, %v522_v26  ;;  %v3328_v45 = vpack.c.bf16 %v198_v30, %v198_v30 }
  0x4c   : > { %255 = vst.msk [vmem:[#allocation2 + $0x1c] sm:$0xf] %vm247_vm0, %v3260_v46 }
  0x4d   : > { %263 = vst.msk [vmem:[#allocation2 + $0x3c] sm:$0xf] %vm247_vm0, %v3328_v45 }
  0x52   : > { %426 = vrot.lane.b32.xlu1 %v337_v51, %s3067_s18  ;;  %424 = vrot.lane.b32.xlu0 %v336_v52, %s3067_s18  ;;  %v194_v51 = vld [vmem:[%s3110_s17 + $0x80] sm:$0xff]  ;;  %v192_v52 = vld [vmem:[%s3110_s17 + $0x68] sm:$0xff] }
  0x53   : > { %428 = vrot.lane.b32.xlu2 %v338_v53, %s3067_s18  ;;  %v516_v53 = vld [vmem:[%s3110_s17 + $0x82] sm:$0xff]  ;;  %v3273_v55 = vpack.c.bf16 %v194_v51, %v194_v51  ;;  %v3275_v56 = vpack.c.bf16 %v192_v52, %v192_v52  ;;  %v201_v51 = vld [vmem:[%s3110_s17 + $0xd8] sm:$0xff] }
  0x54   : > { %v548_v60 = vpack.c.bf16 %v516_v53, %v516_v53 }
  0x55   : > { %259 = vst.msk [vmem:[#allocation2 + $0x2c] sm:$0xf] %vm247_vm0, %v3273_v55 }
  0x56   : > { %257 = vst.msk [vmem:[#allocation2 + $0x24] sm:$0xf] %vm247_vm0, %v3275_v56 }
  0x5a   : > { %432 = vrot.lane.b32.xlu1 %v340_v57, %s3067_s18  ;;  %430 = vrot.lane.b32.xlu0 %v339_v58, %s3067_s18  ;;  %v193_v57 = vld [vmem:[%s3110_s17 + $0x78] sm:$0xff] }
  0x5b   : > { %434 = vrot.lane.b32.xlu2 %v341_v59, %s3067_s18  ;;  %v517_v58 = vld [vmem:[%s3110_s17 + $0x92] sm:$0xff]  ;;  %v3282_v59 = vpack.c.bf16 %v193_v57, %v193_v57  ;;  %v202_v57 = vld [vmem:[%s3110_s17 + $0xe0] sm:$0xff] }
  0x5d   : > { %258 = vst.msk [vmem:[#allocation2 + $0x28] sm:$0xf] %vm247_vm0, %v3282_v59 }
  0x62   : > { %438 = vrot.lane.b32.xlu1 %v343_v63, %s3067_s18  ;;  %436 = vrot.lane.b32.xlu0 %v342_v0, %s3067_s18  ;;  %v549_v63 = vpack.c.bf16 %v517_v58, %v517_v58  ;;  %v197_v0 = vld [vmem:[%s3110_s17 + $0xa8] sm:$0xff]  ;;  %v526_v58 = vld [vmem:[%s3110_s17 + $0xfa] sm:$0xff]  ;;  %s4394_s18 = scalar_lea.vmem %s4517_s3, %s2712_s15 }
  0x63   : > { %601 = vrot.lane.b32.xlu2 %v537_v1, %s3068_s19  ;;  %v519_v1 = vld [vmem:[%s3110_s17 + $0xaa] sm:$0xff]  ;;  %v3296_v7 = vpack.c.bf16 %v197_v0, %v197_v0  ;;  %v3352_v0 = vpack.c.bf16 %v201_v51, %v201_v51 }
  0x65   : > { %262 = vst.msk [vmem:[#allocation2 + $0x38] sm:$0xf] %vm247_vm0, %v3296_v7 }
  0x66   : > { %266 = vst.msk [vmem:[#allocation2 + $0x48] sm:$0xf] %vm247_vm0, %v3352_v0 }
  0x6a   : > { %605 = vrot.lane.b32.xlu1 %v539_v14, %s3068_s19  ;;  %603 = vrot.lane.b32.xlu0 %v538_v15, %s3068_s19  ;;  %v3301_v14 = vpack.c.bf16 %v196_v10, %v196_v10  ;;  %v551_v15 = vpack.c.bf16 %v519_v1, %v519_v1  ;;  %v558_v1 = vpack.c.bf16 %v526_v58, %v526_v58 }
  0x6b   : > { %607 = vrot.lane.b32.xlu2 %v540_v18, %s3068_s19  ;;  %v550_v18 = vpack.c.bf16 %v518_v3, %v518_v3  ;;  %v206_v3 = vld [vmem:[%s3110_s17 + $0x110] sm:$0xff] }
  0x6c   : > { %261 = vst.msk [vmem:[#allocation2 + $0x34] sm:$0xf] %vm247_vm0, %v3301_v14 }
  0x6d   : > { %v385_v36 = vpop.permute.xlu2 %384 }
  0x6e   : > { %477 = vst.msk [vmem:[#allocation2 + $0x10] sm:$0xf] %vm472_vm1, %v385_v36  ;;  %v3320_v36 = vpack.c.bf16 %v200_v24, %v200_v24  ;;  %v560_v24 = vpack.c.bf16 %v528_v4, %v528_v4 }
  0x70   : > { %265 = vst.msk [vmem:[#allocation2 + $0x44] sm:$0xf] %vm247_vm0, %v3320_v36 }
  0x72   : > { %611 = vrot.lane.b32.xlu1 %v542_v32, %s3068_s19  ;;  %609 = vrot.lane.b32.xlu0 %v541_v33, %s3068_s19 }
  0x73   : > { %613 = vrot.lane.b32.xlu2 %v543_v37, %s3068_s19  ;;  %v199_v37 = vld [vmem:[%s3110_s17 + $0xc0] sm:$0xff] }
  0x74   : > { %v3325_v39 = vpack.c.bf16 %v199_v37, %v199_v37  ;;  %v531_v37 = vld [vmem:[%s3110_s17 + $0x13a] sm:$0xff] }
  0x75   : > { %v387_v49 = vpop.permute.xlu2 %386  ;;  %v563_v51 = vpack.c.bf16 %v531_v37, %v531_v37 }
  0x76   : > { %478 = vst.msk [vmem:[#allocation2 + $0x14] sm:$0xf] %vm472_vm1, %v387_v49  ;;  %v525_v49 = vld [vmem:[%s3110_s17 + $0xf2] sm:$0xff] }
  0x77   : > { %264 = vst.msk [vmem:[#allocation2 + $0x40] sm:$0xf] %vm247_vm0, %v3325_v39 }
  0x7a   : > { %617 = vrot.lane.b32.xlu1 %v545_v47, %s3068_s19  ;;  %615 = vrot.lane.b32.xlu0 %v544_v48, %s3068_s19  ;;  %v555_v47 = vpack.c.bf16 %v523_v38, %v523_v38  ;;  %v203_v48 = vld [vmem:[%s3110_s17 + $0xf0] sm:$0xff] }
  0x7b   : > { %619 = vrot.lane.b32.xlu2 %v546_v50, %s3068_s19  ;;  %v524_v50 = vld [vmem:[%s3110_s17 + $0xe2] sm:$0xff]  ;;  %v3344_v54 = vpack.c.bf16 %v203_v48, %v203_v48  ;;  %v530_v38 = vld [vmem:[%s3110_s17 + $0x12a] sm:$0xff] }
  0x7c   : > { %v208_v48 = vld [vmem:[%s3110_s17 + $0x128] sm:$0xff] }
  0x7d   : > { %v393_v62 = vpop.permute.xlu2 %392  ;;  %268 = vst.msk [vmem:[#allocation2 + $0x50] sm:$0xf] %vm247_vm0, %v3344_v54 }
  0x7e   : > { %481 = vst.msk [vmem:[#allocation2 + $0x20] sm:$0xf] %vm472_vm1, %v393_v62  ;;  %v556_v62 = vpack.c.bf16 %v524_v50, %v524_v50  ;;  %v3397_v50 = vpack.c.bf16 %v208_v48, %v208_v48 }
  0x80   : > { %273 = vst.msk [vmem:[#allocation2 + $0x64] sm:$0xf] %vm247_vm0, %v3397_v50 }
  0x82   : > { %623 = vrot.lane.b32.xlu1 %v548_v60, %s3068_s19  ;;  %621 = vrot.lane.b32.xlu0 %v547_v61, %s3068_s19  ;;  %v3349_v60 = vpack.c.bf16 %v202_v57, %v202_v57  ;;  %v557_v61 = vpack.c.bf16 %v525_v49, %v525_v49  ;;  %v532_v49 = vld [vmem:[%s3110_s17 + $0x142] sm:$0xff] }
  0x83   : > { %625 = vrot.lane.b32.xlu2 %v549_v63, %s3068_s19  ;;  %v564_v58 = vpack.c.bf16 %v532_v49, %v532_v49 }
  0x84   : > { %v381_v5 = vpop.permute.xlu1 %380  ;;  %v377_v6 = vpop.permute.xlu0 %376  ;;  %267 = vst.msk [vmem:[#allocation2 + $0x4c] sm:$0xf] %vm247_vm0, %v3349_v60 }
  0x85   : > { %475 = vst.msk [vmem:[#allocation2 + $0x8] sm:$0xf] %vm472_vm1, %v381_v5  ;;  %v399_v19 = vpop.permute.xlu2 %398  ;;  %v527_v5 = vld [vmem:[%s3110_s17 + $0x10a] sm:$0xff] }
  0x86   : > { %473 = vst.msk [vmem:[#allocation2] sm:$0xf] %vm472_vm1, %v377_v6  ;;  %v204_v6 = vld [vmem:[%s3110_s17 + $0xf8] sm:$0xff]  ;;  %v559_v26 = vpack.c.bf16 %v527_v5, %v527_v5 }
  0x87   : > { %484 = vst.msk [vmem:[#allocation2 + $0x2c] sm:$0xf] %vm472_vm1, %v399_v19  ;;  %v529_v19 = vld [vmem:[%s3110_s17 + $0x122] sm:$0xff]  ;;  %v3376_v30 = vpack.c.bf16 %v204_v6, %v204_v6  ;;  %v211_v6 = vld [vmem:[%s3110_s17 + $0x150] sm:$0xff] }
  0x89   : > { %269 = vst.msk [vmem:[#allocation2 + $0x54] sm:$0xf] %vm247_vm0, %v3376_v30 }
  0x8a   : > { %629 = vrot.lane.b32.xlu1 %v551_v15, %s3068_s19  ;;  %627 = vrot.lane.b32.xlu0 %v550_v18, %s3068_s19  ;;  %v3368_v15 = vpack.c.bf16 %v206_v3, %v206_v3  ;;  %v205_v18 = vld [vmem:[%s3110_s17 + $0x108] sm:$0xff] }
  0x8b   : > { %631 = vrot.lane.b32.xlu2 %v552_v21, %s3068_s19  ;;  %v3373_v21 = vpack.c.bf16 %v205_v18, %v205_v18 }
  0x8c   : > { %v383_v32 = vpop.permute.xlu1 %382  ;;  %v379_v33 = vpop.permute.xlu0 %378  ;;  %271 = vst.msk [vmem:[#allocation2 + $0x5c] sm:$0xf] %vm247_vm0, %v3368_v15 }
  0x8d   : > { %476 = vst.msk [vmem:[#allocation2 + $0xc] sm:$0xf] %vm472_vm1, %v383_v32  ;;  %v405_v44 = vpop.permute.xlu2 %404  ;;  %v561_v32 = vpack.c.bf16 %v529_v19, %v529_v19 }
  0x8e   : > { %474 = vst.msk [vmem:[#allocation2 + $0x4] sm:$0xf] %vm472_vm1, %v379_v33  ;;  %v209_v33 = vld [vmem:[%s3110_s17 + $0x138] sm:$0xff] }
  0x8f   : > { %487 = vst.msk [vmem:[#allocation2 + $0x38] sm:$0xf] %vm472_vm1, %v405_v44 }
  0x90   : > { %270 = vst.msk [vmem:[#allocation2 + $0x58] sm:$0xf] %vm247_vm0, %v3373_v21 }
  0x92   : > { %635 = vrot.lane.b32.xlu1 %v554_v40, %s3068_s19  ;;  %633 = vrot.lane.b32.xlu0 %v553_v41, %s3068_s19  ;;  %v207_v40 = vld [vmem:[%s3110_s17 + $0x120] sm:$0xff] }
  0x93   : > { %637 = vrot.lane.b32.xlu2 %v555_v47, %s3068_s19  ;;  %v3392_v47 = vpack.c.bf16 %v209_v33, %v209_v33  ;;  %v3400_v57 = vpack.c.bf16 %v207_v40, %v207_v40  ;;  %v536_v33 = vld [vmem:[%s3110_s17 + $0x172] sm:$0xff] }
  0x94   : > { %v391_v52 = vpop.permute.xlu1 %390  ;;  %v389_v53 = vpop.permute.xlu0 %388  ;;  %v214_v40 = vld [vmem:[%s3110_s17 + $0x170] sm:$0xff]  ;;  %v568_v48 = vpack.c.bf16 %v536_v33, %v536_v33 }
  0x95   : > { %480 = vst.msk [vmem:[#allocation2 + $0x1c] sm:$0xf] %vm472_vm1, %v391_v52  ;;  %v411_v63 = vpop.permute.xlu2 %410  ;;  %v562_v52 = vpack.c.bf16 %v530_v38, %v530_v38 }
  0x96   : > { %479 = vst.msk [vmem:[#allocation2 + $0x18] sm:$0xf] %vm472_vm1, %v389_v53 }
  0x97   : > { %490 = vst.msk [vmem:[#allocation2 + $0x44] sm:$0xf] %vm472_vm1, %v411_v63  ;;  %v533_v63 = vld [vmem:[%s3110_s17 + $0x152] sm:$0xff] }
  0x98   : > { %274 = vst.msk [vmem:[#allocation2 + $0x68] sm:$0xf] %vm247_vm0, %v3392_v47  ;;  %v565_v19 = vpack.c.bf16 %v533_v63, %v533_v63 }
  0x99   : > { %272 = vst.msk [vmem:[#allocation2 + $0x60] sm:$0xf] %vm247_vm0, %v3400_v57 }
  0x9a   : > { %641 = vrot.lane.b32.xlu1 %v557_v61, %s3068_s19  ;;  %639 = vrot.lane.b32.xlu0 %v556_v62, %s3068_s19  ;;  %v212_v61 = vld [vmem:[%s3110_s17 + $0x158] sm:$0xff] }
  0x9b   : > { %643 = vrot.lane.b32.xlu2 %v558_v1, %s3068_s19  ;;  %v534_v62 = vld [vmem:[%s3110_s17 + $0x15a] sm:$0xff]  ;;  %v3416_v5 = vpack.c.bf16 %v212_v61, %v212_v61 }
  0x9c   : > { %v397_v10 = vpop.permute.xlu1 %396  ;;  %v395_v12 = vpop.permute.xlu0 %394  ;;  %v210_v1 = vld [vmem:[%s3110_s17 + $0x140] sm:$0xff]  ;;  %v566_v18 = vpack.c.bf16 %v534_v62, %v534_v62 }
  0x9d   : > { %483 = vst.msk [vmem:[#allocation2 + $0x28] sm:$0xf] %vm472_vm1, %v397_v10  ;;  %v417_v27 = vpop.permute.xlu2 %416  ;;  %v535_v10 = vld [vmem:[%s3110_s17 + $0x16a] sm:$0xff] }
  0x9e   : > { %482 = vst.msk [vmem:[#allocation2 + $0x24] sm:$0xf] %vm472_vm1, %v395_v12  ;;  %v3421_v12 = vpack.c.bf16 %v211_v6, %v211_v6 }
  0x9f   : > { %493 = vst.msk [vmem:[#allocation2 + $0x50] sm:$0xf] %vm472_vm1, %v417_v27  ;;  %v567_v27 = vpack.c.bf16 %v535_v10, %v535_v10 }
  0xa0   : > { %277 = vst.msk [vmem:[#allocation2 + $0x74] sm:$0xf] %vm247_vm0, %v3416_v5 }
  0xa1   : > { %276 = vst.msk [vmem:[#allocation2 + $0x70] sm:$0xf] %vm247_vm0, %v3421_v12 }
  0xa2   : > { %647 = vrot.lane.b32.xlu1 %v560_v24, %s3068_s19  ;;  %645 = vrot.lane.b32.xlu0 %v559_v26, %s3068_s19  ;;  %v3424_v26 = vpack.c.bf16 %v210_v1, %v210_v1  ;;  %v2744_v1 = vld [vmem:[%s3110_s17 + $0x188] sm:$0xff] }
  0xa3   : > { %649 = vrot.lane.b32.xlu2 %v561_v32, %s3068_s19  ;;  %v213_v32 = vld [vmem:[%s3110_s17 + $0x168] sm:$0xff] }
  0xa4   : > { %v403_v41 = vpop.permute.xlu1 %402  ;;  %v401_v44 = vpop.permute.xlu0 %400  ;;  %275 = vst.msk [vmem:[#allocation2 + $0x6c] sm:$0xf] %vm247_vm0, %v3424_v26 }
  0xa5   : > { %486 = vst.msk [vmem:[#allocation2 + $0x34] sm:$0xf] %vm472_vm1, %v403_v41  ;;  %v423_v53 = vpop.permute.xlu2 %422  ;;  %v3440_v41 = vpack.c.bf16 %v214_v40, %v214_v40 }
  0xa6   : > { %485 = vst.msk [vmem:[#allocation2 + $0x30] sm:$0xf] %vm472_vm1, %v401_v44  ;;  %v3442_v44 = vpack.c.bf16 %v213_v32, %v213_v32 }
  0xa7   : > { %496 = vst.msk [vmem:[#allocation2 + $0x5c] sm:$0xf] %vm472_vm1, %v423_v53 }
  0xa8   : > { %279 = vst.msk [vmem:[#allocation2 + $0x7c] sm:$0xf] %vm247_vm0, %v3440_v41 }
  0xa9   : > { %278 = vst.msk [vmem:[#allocation2 + $0x78] sm:$0xf] %vm247_vm0, %v3442_v44 }
  0xaa   : > { %653 = vrot.lane.b32.xlu1 %v563_v51, %s3068_s19  ;;  %651 = vrot.lane.b32.xlu0 %v562_v52, %s3068_s19 }
  0xab   : > { %655 = vrot.lane.b32.xlu2 %v564_v58, %s3068_s19 }
  0xac   : > { %v409_v3 = vpop.permute.xlu1 %408  ;;  %v407_v4 = vpop.permute.xlu0 %406 }
  0xad   : > { %489 = vst.msk [vmem:[#allocation2 + $0x40] sm:$0xf] %vm472_vm1, %v409_v3  ;;  %v429_v24 = vpop.permute.xlu2 %428 }
  0xae   : > { %488 = vst.msk [vmem:[#allocation2 + $0x3c] sm:$0xf] %vm472_vm1, %v407_v4 }
  0xaf   : > { %499 = vst.msk [vmem:[#allocation2 + $0x68] sm:$0xf] %vm472_vm1, %v429_v24 }
  0xb2   : > { %659 = vrot.lane.b32.xlu1 %v566_v18, %s3068_s19  ;;  %657 = vrot.lane.b32.xlu0 %v565_v19, %s3068_s19 }
  0xb3   : > { %661 = vrot.lane.b32.xlu2 %v567_v27, %s3068_s19  ;;  %v2750_v27 = vld [vmem:[%s3110_s17 + $0x51] sm:$0xff] }
  0xb4   : > { %v415_v37 = vpop.permute.xlu1 %414  ;;  %v413_v38 = vpop.permute.xlu0 %412  ;;  %v3561_v33 = vpack.c.bf16 %v2750_v27, %v2750_v27  ;;  %v2776_v27 = vld [vmem:[%s3110_s17 + $0x189] sm:$0xff] }
  0xb5   : > { %492 = vst.msk [vmem:[#allocation2 + $0x4c] sm:$0xf] %vm472_vm1, %v415_v37  ;;  %v435_v49 = vpop.permute.xlu2 %434  ;;  %v2753_v37 = vld [vmem:[%s3110_s17 + $0x79] sm:$0xff] }
  0xb6   : > { %491 = vst.msk [vmem:[#allocation2 + $0x48] sm:$0xf] %vm472_vm1, %v413_v38  ;;  %v996_v40 = vpack.c.bf16 %v2753_v37, %v2753_v37  ;;  %v2777_v37 = vld [vmem:[%s3110_s17 + $0x1a] sm:$0xff] }
  0xb7   : > { %502 = vst.msk [vmem:[#allocation2 + $0x74] sm:$0xf] %vm472_vm1, %v435_v49  ;;  %v2759_v49 = vld [vmem:[%s3110_s17 + $0xc1] sm:$0xff] }
  0xba   : > { %827 = vrot.lane.b32.xlu1 %v3222_v13, %s3069_s20  ;;  %663 = vrot.lane.b32.xlu0 %v568_v48, %s3068_s19 }
  0xbb   : > { %829 = vrot.lane.b32.xlu2 %v3239_v31, %s3069_s20 }
  0xbc   : > { %v421_v51 = vpop.permute.xlu1 %420  ;;  %v419_v52 = vpop.permute.xlu0 %418 }
  0xbd   : > { %495 = vst.msk [vmem:[#allocation2 + $0x58] sm:$0xf] %vm472_vm1, %v421_v51  ;;  %v602_v53 = vpop.permute.xlu2 %601 }
  0xbe   : > { %494 = vst.msk [vmem:[#allocation2 + $0x54] sm:$0xf] %vm472_vm1, %v419_v52  ;;  %v3594_v52 = vpack.c.bf16 %v2759_v49, %v2759_v49  ;;  %v2809_v49 = vld [vmem:[%s3110_s17 + $0x30] sm:$0xff] }
  0xbf   : > { %698 = vst.msk [vmem:[#allocation2] sm:$0xf] %vm697_vm2, %v602_v53 }
  0xc2   : > { %833 = vrot.lane.b32.xlu1 %v3232_v25, %s3069_s20  ;;  %831 = vrot.lane.b32.xlu0 %v3214_v8, %s3069_s20 }
  0xc3   : > { %835 = vrot.lane.b32.xlu2 %v3253_v43, %s3069_s20 }
  0xc4   : > { %v427_v13 = vpop.permute.xlu1 %426  ;;  %v425_v58 = vpop.permute.xlu0 %424 }
  0xc5   : > { %498 = vst.msk [vmem:[#allocation2 + $0x64] sm:$0xf] %vm472_vm1, %v427_v13  ;;  %v608_v31 = vpop.permute.xlu2 %607  ;;  %v2762_v13 = vld [vmem:[%s3110_s17 + $0xe1] sm:$0xff] }
  0xc6   : > { %497 = vst.msk [vmem:[#allocation2 + $0x60] sm:$0xf] %vm472_vm1, %v425_v58 }
  0xc7   : > { %701 = vst.msk [vmem:[#allocation2 + $0xc] sm:$0xf] %vm697_vm2, %v608_v31 }
  0xca   : > { %839 = vrot.lane.b32.xlu1 %v3251_v42, %s3069_s20  ;;  %837 = vrot.lane.b32.xlu0 %v3260_v46, %s3069_s20 }
  0xcb   : > { %841 = vrot.lane.b32.xlu2 %v3275_v56, %s3069_s20 }
  0xcc   : > { %v433_v25 = vpop.permute.xlu1 %432  ;;  %v431_v8 = vpop.permute.xlu0 %430 }
  0xcd   : > { %501 = vst.msk [vmem:[#allocation2 + $0x70] sm:$0xf] %vm472_vm1, %v433_v25  ;;  %v614_v43 = vpop.permute.xlu2 %613  ;;  %v2763_v25 = vld [vmem:[%s3110_s17 + $0xf1] sm:$0xff] }
  0xce   : > { %500 = vst.msk [vmem:[#allocation2 + $0x6c] sm:$0xf] %vm472_vm1, %v431_v8 }
  0xcf   : > { %704 = vst.msk [vmem:[#allocation2 + $0x18] sm:$0xf] %vm697_vm2, %v614_v43 }
  0xd2   : > { %845 = vrot.lane.b32.xlu1 %v3273_v55, %s3069_s20  ;;  %843 = vrot.lane.b32.xlu0 %v3282_v59, %s3069_s20 }
  0xd3   : > { %847 = vrot.lane.b32.xlu2 %v3304_v20, %s3069_s20 }
  0xd4   : > { %v439_v42 = vpop.permute.xlu1 %438  ;;  %v437_v46 = vpop.permute.xlu0 %436 }
  0xd5   : > { %504 = vst.msk [vmem:[#allocation2 + $0x7c] sm:$0xf] %vm472_vm1, %v439_v42  ;;  %v620_v56 = vpop.permute.xlu2 %619  ;;  %v2765_v42 = vld [vmem:[%s3110_s17 + $0x109] sm:$0xff] }
  0xd6   : > { %503 = vst.msk [vmem:[#allocation2 + $0x78] sm:$0xf] %vm472_vm1, %v437_v46 }
  0xd7   : > { %707 = vst.msk [vmem:[#allocation2 + $0x24] sm:$0xf] %vm697_vm2, %v620_v56  ;;  %v3618_v56 = vpack.c.bf16 %v2763_v25, %v2763_v25 }
  0xda   : > { %851 = vrot.lane.b32.xlu1 %v3296_v7, %s3069_s20  ;;  %849 = vrot.lane.b32.xlu0 %v3301_v14, %s3069_s20 }
  0xdb   : > { %853 = vrot.lane.b32.xlu2 %v3328_v45, %s3069_s20 }
  0xdc   : > { %v606_v55 = vpop.permute.xlu1 %605  ;;  %v604_v59 = vpop.permute.xlu0 %603 }
  0xdd   : > { %700 = vst.msk [vmem:[#allocation2 + $0x8] sm:$0xf] %vm697_vm2, %v606_v55  ;;  %v626_v61 = vpop.permute.xlu2 %625 }
  0xde   : > { %699 = vst.msk [vmem:[#allocation2 + $0x4] sm:$0xf] %vm697_vm2, %v604_v59  ;;  %v2767_v59 = vld [vmem:[%s3110_s17 + $0x121] sm:$0xff] }
  0xdf   : > { %710 = vst.msk [vmem:[#allocation2 + $0x30] sm:$0xf] %vm697_vm2, %v626_v61  ;;  %v2766_v61 = vld [vmem:[%s3110_s17 + $0x111] sm:$0xff] }
  0xe2   : > { %857 = vrot.lane.b32.xlu1 %v3320_v36, %s3069_s20  ;;  %855 = vrot.lane.b32.xlu0 %v3325_v39, %s3069_s20 }
  0xe3   : > { %859 = vrot.lane.b32.xlu2 %v3352_v0, %s3069_s20 }
  0xe4   : > { %v612_v7 = vpop.permute.xlu1 %611  ;;  %v610_v14 = vpop.permute.xlu0 %609 }
  0xe5   : > { %703 = vst.msk [vmem:[#allocation2 + $0x14] sm:$0xf] %vm697_vm2, %v612_v7  ;;  %v632_v45 = vpop.permute.xlu2 %631 }
  0xe6   : > { %702 = vst.msk [vmem:[#allocation2 + $0x10] sm:$0xf] %vm697_vm2, %v610_v14 }
  0xe7   : > { %713 = vst.msk [vmem:[#allocation2 + $0x3c] sm:$0xf] %vm697_vm2, %v632_v45  ;;  %v2768_v45 = vld [vmem:[%s3110_s17 + $0x129] sm:$0xff] }
  0xea   : > { %863 = vrot.lane.b32.xlu1 %v3344_v54, %s3069_s20  ;;  %861 = vrot.lane.b32.xlu0 %v3349_v60, %s3069_s20 }
  0xeb   : > { %865 = vrot.lane.b32.xlu2 %v3376_v30, %s3069_s20 }
  0xec   : > { %v618_v36 = vpop.permute.xlu1 %617  ;;  %v616_v39 = vpop.permute.xlu0 %615 }
  0xed   : > { %706 = vst.msk [vmem:[#allocation2 + $0x20] sm:$0xf] %vm697_vm2, %v618_v36  ;;  %v638_v0 = vpop.permute.xlu2 %637  ;;  %v1010_v36 = vpack.c.bf16 %v2767_v59, %v2767_v59 }
  0xee   : > { %705 = vst.msk [vmem:[#allocation2 + $0x1c] sm:$0xf] %vm697_vm2, %v616_v39  ;;  %v3634_v39 = vpack.c.bf16 %v2766_v61, %v2766_v61 }
  0xef   : > { %716 = vst.msk [vmem:[#allocation2 + $0x48] sm:$0xf] %vm697_vm2, %v638_v0 }
  0xf2   : > { %869 = vrot.lane.b32.xlu1 %v3368_v15, %s3069_s20  ;;  %867 = vrot.lane.b32.xlu0 %v3373_v21, %s3069_s20 }
  0xf3   : > { %871 = vrot.lane.b32.xlu2 %v3400_v57, %s3069_s20 }
  0xf4   : > { %v624_v62 = vpop.permute.xlu1 %623  ;;  %v622_v60 = vpop.permute.xlu0 %621 }
  0xf5   : > { %709 = vst.msk [vmem:[#allocation2 + $0x2c] sm:$0xf] %vm697_vm2, %v624_v62  ;;  %v644_v30 = vpop.permute.xlu2 %643  ;;  %v3637_v62 = vpack.c.bf16 %v2768_v45, %v2768_v45 }
  0xf6   : > { %708 = vst.msk [vmem:[#allocation2 + $0x28] sm:$0xf] %vm697_vm2, %v622_v60  ;;  %v2770_v60 = vld [vmem:[%s3110_s17 + $0x141] sm:$0xff] }
  0xf7   : > { %719 = vst.msk [vmem:[#allocation2 + $0x54] sm:$0xf] %vm697_vm2, %v644_v30  ;;  %v2769_v30 = vld [vmem:[%s3110_s17 + $0x139] sm:$0xff] }
  0xfa   : > { %875 = vrot.lane.b32.xlu1 %v3392_v47, %s3069_s20  ;;  %873 = vrot.lane.b32.xlu0 %v3397_v50, %s3069_s20  ;;  %v2743_v47 = vld [vmem:[%s3110_s17 + $0x180] sm:$0xff] }
  0xfb   : > { %877 = vrot.lane.b32.xlu2 %v3424_v26, %s3069_s20  ;;  %v793_v3 = vpack.c.bf16 %v2743_v47, %v2743_v47  ;;  %v1013_v47 = vpack.c.bf16 %v2770_v60, %v2770_v60 }
  0xfc   : > { %v630_v15 = vpop.permute.xlu1 %629  ;;  %v628_v21 = vpop.permute.xlu0 %627 }
  0xfd   : > { %712 = vst.msk [vmem:[#allocation2 + $0x38] sm:$0xf] %vm697_vm2, %v630_v15  ;;  %v650_v57 = vpop.permute.xlu2 %649 }
  0xfe   : > { %711 = vst.msk [vmem:[#allocation2 + $0x34] sm:$0xf] %vm697_vm2, %v628_v21 }
  0xff   : > { %722 = vst.msk [vmem:[#allocation2 + $0x60] sm:$0xf] %vm697_vm2, %v650_v57  ;;  %v2771_v57 = vld [vmem:[%s3110_s17 + $0x151] sm:$0xff] }
 0x102   : > { %881 = vrot.lane.b32.xlu1 %v3416_v5, %s3069_s20  ;;  %879 = vrot.lane.b32.xlu0 %v3421_v12, %s3069_s20  ;;  %v794_v5 = vpack.c.bf16 %v2744_v1, %v2744_v1  ;;  %v2747_v12 = vld [vmem:[%s3110_s17 + $0x31] sm:$0xff]  ;;  %v3650_v1 = vpack.c.bf16 %v2771_v57, %v2771_v57 }
 0x103   : > { %883 = vrot.lane.b32.xlu2 %v3442_v44, %s3069_s20  ;;  %v3549_v19 = vpack.c.bf16 %v2747_v12, %v2747_v12 }
 0x104   : > { %v636_v50 = vpop.permute.xlu1 %635  ;;  %v634_v63 = vpop.permute.xlu0 %633 }
 0x105   : > { %715 = vst.msk [vmem:[#allocation2 + $0x44] sm:$0xf] %vm697_vm2, %v636_v50  ;;  %v656_v4 = vpop.permute.xlu2 %655  ;;  %v1012_v50 = vpack.c.bf16 %v2769_v30, %v2769_v30 }
 0x106   : > { %714 = vst.msk [vmem:[#allocation2 + $0x40] sm:$0xf] %vm697_vm2, %v634_v63 }
 0x107   : > { %725 = vst.msk [vmem:[#allocation2 + $0x6c] sm:$0xf] %vm697_vm2, %v656_v4  ;;  %v2772_v4 = vld [vmem:[%s3110_s17 + $0x159] sm:$0xff] }
 0x10a   : > { %887 = vrot.lane.b32.xlu1 %v793_v3, %s3069_s20  ;;  %885 = vrot.lane.b32.xlu0 %v3440_v41, %s3069_s20  ;;  %v2756_v41 = vld [vmem:[%s3110_s17 + $0x99] sm:$0xff]  ;;  %v2773_v3 = vld [vmem:[%s3110_s17 + $0x169] sm:$0xff] }
 0x10b   : > { %889 = vrot.lane.b32.xlu2 %v794_v5, %s3069_s20  ;;  %v3582_v48 = vpack.c.bf16 %v2756_v41, %v2756_v41  ;;  %v1016_v12 = vpack.c.bf16 %v2773_v3, %v2773_v3  ;;  %v2779_v41 = vld [vmem:[%s3110_s17 + $0x32] sm:$0xff] }
 0x10c   : > { %v642_v6 = vpop.permute.xlu1 %641  ;;  %v640_v10 = vpop.permute.xlu0 %639 }
 0x10d   : > { %718 = vst.msk [vmem:[#allocation2 + $0x50] sm:$0xf] %vm697_vm2, %v642_v6  ;;  %v662_v18 = vpop.permute.xlu2 %661 }
 0x10e   : > { %717 = vst.msk [vmem:[#allocation2 + $0x4c] sm:$0xf] %vm697_vm2, %v640_v10  ;;  %v2774_v10 = vld [vmem:[%s3110_s17 + $0x171] sm:$0xff] }
 0x10f   : > { %728 = vst.msk [vmem:[#allocation2 + $0x78] sm:$0xf] %vm697_vm2, %v662_v18  ;;  %v3661_v18 = vpack.c.bf16 %v2772_v4, %v2772_v4 }
 0x112   : > { %1054 = vrot.lane.b32.xlu1 %v3124_v9, %s3070_s21  ;;  %1052 = vrot.lane.b32.xlu0 %v3114_v2, %s3070_s21 }
 0x113   : > { %1056 = vrot.lane.b32.xlu2 %v3549_v19, %s3070_s21 }
 0x114   : > { %v648_v24 = vpop.permute.xlu1 %647  ;;  %v646_v26 = vpop.permute.xlu0 %645 }
 0x115   : > { %721 = vst.msk [vmem:[#allocation2 + $0x5c] sm:$0xf] %vm697_vm2, %v648_v24  ;;  %v830_v32 = vpop.permute.xlu2 %829 }
 0x116   : > { %720 = vst.msk [vmem:[#allocation2 + $0x58] sm:$0xf] %vm697_vm2, %v646_v26  ;;  %v3664_v26 = vpack.c.bf16 %v2774_v10, %v2774_v10 }
 0x117   : > { %925 = vst.msk [vmem:[#allocation2 + $0x4] sm:$0xf] %vm923_vm3, %v830_v32  ;;  %v2775_v32 = vld [vmem:[%s3110_s17 + $0x181] sm:$0xff] }
 0x11a   : > { %1060 = vrot.lane.b32.xlu1 %v3136_v16, %s3070_s21  ;;  %1058 = vrot.lane.b32.xlu0 %v3126_v11, %s3070_s21 }
 0x11b   : > { %1062 = vrot.lane.b32.xlu2 %v3561_v33, %s3070_s21 }
 0x11c   : > { %v654_v2 = vpop.permute.xlu1 %653  ;;  %v652_v9 = vpop.permute.xlu0 %651 }
 0x11d   : > { %724 = vst.msk [vmem:[#allocation2 + $0x68] sm:$0xf] %vm697_vm2, %v654_v2  ;;  %v836_v38 = vpop.permute.xlu2 %835 }
 0x11e   : > { %723 = vst.msk [vmem:[#allocation2 + $0x64] sm:$0xf] %vm697_vm2, %v652_v9 }
 0x11f   : > { %928 = vst.msk [vmem:[#allocation2 + $0x10] sm:$0xf] %vm923_vm3, %v836_v38  ;;  %v1019_v38 = vpack.c.bf16 %v2776_v27, %v2776_v27 }
 0x122   : > { %1066 = vrot.lane.b32.xlu1 %v3148_v22, %s3070_s21  ;;  %1064 = vrot.lane.b32.xlu0 %v3138_v17, %s3070_s21 }
 0x123   : > { %1068 = vrot.lane.b32.xlu2 %v996_v40, %s3070_s21  ;;  %v1018_v40 = vpack.c.bf16 %v2775_v32, %v2775_v32 }
 0x124   : > { %v660_v11 = vpop.permute.xlu1 %659  ;;  %v658_v16 = vpop.permute.xlu0 %657 }
 0x125   : > { %727 = vst.msk [vmem:[#allocation2 + $0x74] sm:$0xf] %vm697_vm2, %v660_v11  ;;  %v842_v44 = vpop.permute.xlu2 %841 }
 0x126   : > { %726 = vst.msk [vmem:[#allocation2 + $0x70] sm:$0xf] %vm697_vm2, %v658_v16  ;;  %v1213_v16 = vpack.c.bf16 %v2777_v37, %v2777_v37  ;;  %v2876_v37 = vld [vmem:[%s3110_s17 + $0x52] sm:$0xff] }
 0x127   : > { %931 = vst.msk [vmem:[#allocation2 + $0x1c] sm:$0xf] %vm923_vm3, %v842_v44  ;;  %v2778_v44 = vld [vmem:[%s3110_s17 + $0x22] sm:$0xff] }
 0x12a   : > { %1072 = vrot.lane.b32.xlu1 %v3160_v28, %s3070_s21  ;;  %1070 = vrot.lane.b32.xlu0 %v3150_v23, %s3070_s21  ;;  %v2761_v23 = vld [vmem:[%s3110_s17 + $0xd9] sm:$0xff] }
 0x12b   : > { %1074 = vrot.lane.b32.xlu2 %v3582_v48, %s3070_s21  ;;  %v1004_v58 = vpack.c.bf16 %v2761_v23, %v2761_v23  ;;  %v1214_v23 = vpack.c.bf16 %v2778_v44, %v2778_v44 }
 0x12c   : > { %v828_v17 = vpop.permute.xlu1 %827  ;;  %v664_v22 = vpop.permute.xlu0 %663 }
 0x12d   : > { %924 = vst.msk [vmem:[#allocation2] sm:$0xf] %vm923_vm3, %v828_v17  ;;  %v848_v51 = vpop.permute.xlu2 %847 }
 0x12e   : > { %729 = vst.msk [vmem:[#allocation2 + $0x7c] sm:$0xf] %vm697_vm2, %v664_v22 }
 0x12f   : > { %934 = vst.msk [vmem:[#allocation2 + $0x28] sm:$0xf] %vm923_vm3, %v848_v51  ;;  %v1215_v51 = vpack.c.bf16 %v2779_v41, %v2779_v41 }
 0x132   : > { %1078 = vrot.lane.b32.xlu1 %v3172_v34, %s3070_s21  ;;  %1076 = vrot.lane.b32.xlu0 %v3162_v29, %s3070_s21  ;;  %v1005_v34 = vpack.c.bf16 %v2762_v13, %v2762_v13  ;;  %v2764_v29 = vld [vmem:[%s3110_s17 + $0xf9] sm:$0xff] }
 0x133   : > { %1080 = vrot.lane.b32.xlu2 %v3594_v52, %s3070_s21  ;;  %v3616_v46 = vpack.c.bf16 %v2764_v29, %v2764_v29  ;;  %v2810_v13 = vld [vmem:[%s3110_s17 + $0x38] sm:$0xff] }
 0x134   : > { %v834_v28 = vpop.permute.xlu1 %833  ;;  %v832_v53 = vpop.permute.xlu0 %831  ;;  %v1440_v29 = vpack.c.bf16 %v2810_v13, %v2810_v13  ;;  %v2826_v13 = vld [vmem:[%s3110_s17 + $0xf8] sm:$0xff] }
 0x135   : > { %927 = vst.msk [vmem:[#allocation2 + $0xc] sm:$0xf] %vm923_vm3, %v834_v28  ;;  %v854_v31 = vpop.permute.xlu2 %853 }
 0x136   : > { %926 = vst.msk [vmem:[#allocation2 + $0x8] sm:$0xf] %vm923_vm3, %v832_v53  ;;  %v1439_v53 = vpack.c.bf16 %v2809_v49, %v2809_v49 }
 0x137   : > { %937 = vst.msk [vmem:[#allocation2 + $0x34] sm:$0xf] %vm923_vm3, %v854_v31 }
 0x13a   : > { %1084 = vrot.lane.b32.xlu1 %v1004_v58, %s3070_s21  ;;  %1082 = vrot.lane.b32.xlu0 %v3174_v35, %s3070_s21  ;;  %v3621_v35 = vpack.c.bf16 %v2765_v42, %v2765_v42 }
 0x13b   : > { %1086 = vrot.lane.b32.xlu2 %v1005_v34, %s3070_s21  ;;  %v2842_v34 = vld [vmem:[%s3110_s17 + $0x39] sm:$0xff] }
 0x13c   : > { %v840_v8 = vpop.permute.xlu1 %839  ;;  %v838_v43 = vpop.permute.xlu0 %837 }
 0x13d   : > { %930 = vst.msk [vmem:[#allocation2 + $0x18] sm:$0xf] %vm923_vm3, %v840_v8  ;;  %v860_v55 = vpop.permute.xlu2 %859  ;;  %v1665_v8 = vpack.c.bf16 %v2842_v34, %v2842_v34  ;;  %v1456_v34 = vpack.c.bf16 %v2826_v13, %v2826_v13  ;;  %v2884_v13 = vld [vmem:[%s3110_s17 + $0xb2] sm:$0xff] }
 0x13e   : > { %929 = vst.msk [vmem:[#allocation2 + $0x14] sm:$0xf] %vm923_vm3, %v838_v43  ;;  %v2874_v43 = vld [vmem:[%s3110_s17 + $0x3a] sm:$0xff] }
 0x13f   : > { %940 = vst.msk [vmem:[#allocation2 + $0x40] sm:$0xf] %vm923_vm3, %v860_v55  ;;  %v1890_v59 = vpack.c.bf16 %v2874_v43, %v2874_v43 }
 0x142   : > { %1090 = vrot.lane.b32.xlu1 %v3616_v46, %s3070_s21  ;;  %1088 = vrot.lane.b32.xlu0 %v3618_v56, %s3070_s21 }
 0x143   : > { %1092 = vrot.lane.b32.xlu2 %v3621_v35, %s3070_s21 }
 0x144   : > { %v846_v7 = vpop.permute.xlu1 %845  ;;  %v844_v14 = vpop.permute.xlu0 %843 }
 0x145   : > { %933 = vst.msk [vmem:[#allocation2 + $0x24] sm:$0xf] %vm923_vm3, %v846_v7  ;;  %v866_v0 = vpop.permute.xlu2 %865  ;;  %v2785_v7 = vld [vmem:[%s3110_s17 + $0x7a] sm:$0xff] }
 0x146   : > { %932 = vst.msk [vmem:[#allocation2 + $0x20] sm:$0xf] %vm923_vm3, %v844_v14  ;;  %v3712_v60 = vpack.c.bf16 %v2785_v7, %v2785_v7  ;;  %v2813_v7 = vld [vmem:[%s3110_s17 + $0x60] sm:$0xff] }
 0x147   : > { %943 = vst.msk [vmem:[#allocation2 + $0x4c] sm:$0xf] %vm923_vm3, %v866_v0 }
 0x14a   : > { %1096 = vrot.lane.b32.xlu1 %v1010_v36, %s3070_s21  ;;  %1094 = vrot.lane.b32.xlu0 %v3634_v39, %s3070_s21  ;;  %v2811_v36 = vld [vmem:[%s3110_s17 + $0x48] sm:$0xff] }
 0x14b   : > { %1098 = vrot.lane.b32.xlu2 %v3637_v62, %s3070_s21 }
 0x14c   : > { %v852_v15 = vpop.permute.xlu1 %851  ;;  %v850_v21 = vpop.permute.xlu0 %849 }
 0x14d   : > { %936 = vst.msk [vmem:[#allocation2 + $0x30] sm:$0xf] %vm923_vm3, %v852_v15  ;;  %v872_v63 = vpop.permute.xlu2 %871  ;;  %v1441_v15 = vpack.c.bf16 %v2811_v36, %v2811_v36 }
 0x14e   : > { %935 = vst.msk [vmem:[#allocation2 + $0x2c] sm:$0xf] %vm923_vm3, %v850_v21  ;;  %v2812_v21 = vld [vmem:[%s3110_s17 + $0x50] sm:$0xff] }
 0x14f   : > { %946 = vst.msk [vmem:[#allocation2 + $0x58] sm:$0xf] %vm923_vm3, %v872_v63  ;;  %v1442_v63 = vpack.c.bf16 %v2812_v21, %v2812_v21  ;;  %v2819_v21 = vld [vmem:[%s3110_s17 + $0xa8] sm:$0xff] }
 0x152   : > { %1102 = vrot.lane.b32.xlu1 %v1013_v47, %s3070_s21  ;;  %1100 = vrot.lane.b32.xlu0 %v1012_v50, %s3070_s21  ;;  %v2818_v50 = vld [vmem:[%s3110_s17 + $0x98] sm:$0xff] }
 0x153   : > { %1104 = vrot.lane.b32.xlu2 %v3650_v1, %s3070_s21  ;;  %v1448_v4 = vpack.c.bf16 %v2818_v50, %v2818_v50 }
 0x154   : > { %v858_v5 = vpop.permute.xlu1 %857  ;;  %v856_v6 = vpop.permute.xlu0 %855 }
 0x155   : > { %939 = vst.msk [vmem:[#allocation2 + $0x3c] sm:$0xf] %vm923_vm3, %v858_v5  ;;  %v878_v24 = vpop.permute.xlu2 %877  ;;  %v2843_v5 = vld [vmem:[%s3110_s17 + $0x49] sm:$0xff] }
 0x156   : > { %938 = vst.msk [vmem:[#allocation2 + $0x38] sm:$0xf] %vm923_vm3, %v856_v6 }
 0x157   : > { %949 = vst.msk [vmem:[#allocation2 + $0x64] sm:$0xf] %vm923_vm3, %v878_v24  ;;  %v1666_v24 = vpack.c.bf16 %v2843_v5, %v2843_v5 }
 0x15a   : > { %1108 = vrot.lane.b32.xlu1 %v1016_v12, %s3070_s21  ;;  %1106 = vrot.lane.b32.xlu0 %v3661_v18, %s3070_s21  ;;  %v2849_v12 = vld [vmem:[%s3110_s17 + $0x91] sm:$0xff] }
 0x15b   : > { %1110 = vrot.lane.b32.xlu2 %v3664_v26, %s3070_s21  ;;  %v1672_v32 = vpack.c.bf16 %v2849_v12, %v2849_v12 }
 0x15c   : > { %v864_v2 = vpop.permute.xlu1 %863  ;;  %v862_v9 = vpop.permute.xlu0 %861 }
 0x15d   : > { %942 = vst.msk [vmem:[#allocation2 + $0x48] sm:$0xf] %vm923_vm3, %v864_v2  ;;  %v884_v11 = vpop.permute.xlu2 %883 }
 0x15e   : > { %941 = vst.msk [vmem:[#allocation2 + $0x44] sm:$0xf] %vm923_vm3, %v862_v9 }
 0x15f   : > { %952 = vst.msk [vmem:[#allocation2 + $0x70] sm:$0xf] %vm923_vm3, %v884_v11  ;;  %v1892_v11 = vpack.c.bf16 %v2876_v37, %v2876_v37 }
 0x162   : > { %1114 = vrot.lane.b32.xlu1 %v1019_v38, %s3070_s21  ;;  %1112 = vrot.lane.b32.xlu0 %v1018_v40, %s3070_s21 }
 0x163   : > { %1277 = vrot.lane.b32.xlu2 %v1213_v16, %s3071_s22  ;;  %v2881_v16 = vld [vmem:[%s3110_s17 + $0x92] sm:$0xff] }
 0x164   : > { %v870_v17 = vpop.permute.xlu1 %869  ;;  %v868_v22 = vpop.permute.xlu0 %867  ;;  %v1897_v49 = vpack.c.bf16 %v2881_v16, %v2881_v16  ;;  %v3020_v16 = vld [vmem:[%s4515_s1] sm:$0xff] }
 0x165   : > { %945 = vst.msk [vmem:[#allocation2 + $0x54] sm:$0xf] %vm923_vm3, %v870_v17  ;;  %v890_v28 = vpop.permute.xlu2 %889  ;;  %v2793_v17 = vld [vmem:[%s3110_s17 + $0xda] sm:$0xff] }
 0x166   : > { %944 = vst.msk [vmem:[#allocation2 + $0x50] sm:$0xf] %vm923_vm3, %v868_v22 }
 0x167   : > { %955 = vst.msk [vmem:[#allocation2 + $0x7c] sm:$0xf] %vm923_vm3, %v890_v28 }
 0x16a   : > { %1281 = vrot.lane.b32.xlu1 %v1215_v51, %s3071_s22  ;;  %1279 = vrot.lane.b32.xlu0 %v1214_v23, %s3071_s22  ;;  %v3753_v23 = vpack.c.bf16 %v2793_v17, %v2793_v17 }
 0x16b   : > { %1503 = vrot.lane.b32.xlu2 %v1439_v53, %s3072_s23 }
 0x16c   : > { %v876_v58 = vpop.permute.xlu1 %875  ;;  %v874_v31 = vpop.permute.xlu0 %873 }
 0x16d   : > { %948 = vst.msk [vmem:[#allocation2 + $0x60] sm:$0xf] %vm923_vm3, %v876_v58  ;;  %v1057_v25 = vpop.permute.xlu2 %1056 }
 0x16e   : > { %947 = vst.msk [vmem:[#allocation2 + $0x5c] sm:$0xf] %vm923_vm3, %v874_v31 }
 0x16f   : > { %1151 = vst.msk [vmem:[#allocation2 + $0x8] sm:$0xf] %vm1148_vm4, %v1057_v25 }
 0x172   : > { %1728 = vrot.lane.b32.xlu1 %v3549_v19, %s3073_s24  ;;  %1505 = vrot.lane.b32.xlu0 %v1440_v29, %s3072_s23  ;;  %v2786_v19 = vld [vmem:[%s3110_s17 + $0x82] sm:$0xff] }
 0x173   : > { %1730 = vrot.lane.b32.xlu2 %v1665_v8, %s3073_s24  ;;  %v3710_v0 = vpack.c.bf16 %v2786_v19, %v2786_v19  ;;  %v2889_v8 = vld [vmem:[%s3110_s17 + $0xf2] sm:$0xff] }
 0x174   : > { %v882_v42 = vpop.permute.xlu1 %881  ;;  %v880_v55 = vpop.permute.xlu0 %879 }
 0x175   : > { %951 = vst.msk [vmem:[#allocation2 + $0x6c] sm:$0xf] %vm923_vm3, %v882_v42  ;;  %v1063_v61 = vpop.permute.xlu2 %1062  ;;  %v3775_v42 = vpack.c.bf16 %v2889_v8, %v2889_v8 }
 0x176   : > { %950 = vst.msk [vmem:[#allocation2 + $0x68] sm:$0xf] %vm923_vm3, %v880_v55 }
 0x177   : > { %1154 = vst.msk [vmem:[#allocation2 + $0x14] sm:$0xf] %vm1148_vm4, %v1063_v61 }
 0x17a   : > { %1955 = vrot.lane.b32.xlu1 %v1890_v59, %s3074_s25  ;;  %1953 = vrot.lane.b32.xlu0 %v1215_v51, %s3074_s25 }
 0x17b   : > { %1283 = vrot.lane.b32.xlu2 %v1890_v59, %s3071_s22 }
 0x17c   : > { %v888_v14 = vpop.permute.xlu1 %887  ;;  %v886_v45 = vpop.permute.xlu0 %885 }
 0x17d   : > { %954 = vst.msk [vmem:[#allocation2 + $0x78] sm:$0xf] %vm923_vm3, %v888_v14  ;;  %v1069_v30 = vpop.permute.xlu2 %1068 }
 0x17e   : > { %953 = vst.msk [vmem:[#allocation2 + $0x74] sm:$0xf] %vm923_vm3, %v886_v45  ;;  %v2122_v45 = vld [vmem:[%s4515_s1 + $0x20] sm:$0xf] }
 0x17f   : > { %1157 = vst.msk [vmem:[#allocation2 + $0x20] sm:$0xf] %vm1148_vm4, %v1069_v30  ;;  %v2220_v36 = vunpack.c.l.b16 %v2122_v45  ;;  %v1443_v30 = vpack.c.bf16 %v2813_v7, %v2813_v7 }
 0x182   : > { %1295 = vrot.lane.b32.xlu1 %v3710_v0, %s3071_s22  ;;  %1293 = vrot.lane.b32.xlu0 %v3712_v60, %s3071_s22 }
 0x183   : > { %1507 = vrot.lane.b32.xlu2 %v1441_v15, %s3072_s23  ;;  %v2225_v15 = vpack.c.b16 %v2220_v36, %v2220_v36 }
 0x184   : > { %v1055_v57 = vpop.permute.xlu1 %1054  ;;  %v1053_v47 = vpop.permute.xlu0 %1052 }
 0x185   : > { %1150 = vst.msk [vmem:[#allocation2 + $0x4] sm:$0xf] %vm1148_vm4, %v1055_v57  ;;  %v1075_v3 = vpop.permute.xlu2 %1074  ;;  %v2814_v57 = vld [vmem:[%s3110_s17 + $0x68] sm:$0xff] }
 0x186   : > { %1149 = vst.msk [vmem:[#allocation2] sm:$0xf] %vm1148_vm4, %v1053_v47  ;;  %v2281_v47 = vsel %vm2279_vm6, %v2225_v15, 0  ;;  %v1444_v5 = vpack.c.bf16 %v2814_v57, %v2814_v57 }
 0x187   : > { %1160 = vst.msk [vmem:[#allocation2 + $0x2c] sm:$0xf] %vm1148_vm4, %v1075_v3  ;;  %2286 = vmatpush.bf16.msra.mxu0 %v2281_v47  ;;  %v2820_v3 = vld [vmem:[%s3110_s17 + $0xb0] sm:$0xff]  ;;  %3024 = vmatpush.bf16.msra.mxu1 %v2281_v47 }
 0x188   : > { %3025 = vmatpush.bf16.msra.mxu2 %v2281_v47  ;;  %3026 = vmatpush.bf16.msra.mxu3 %v2281_v47  ;;  %v1450_v12 = vpack.c.bf16 %v2820_v3, %v2820_v3 }
 0x18a   : > { %1519 = vrot.lane.b32.xlu1 %v3304_v20, %s3072_s23  ;;  %1509 = vrot.lane.b32.xlu0 %v1442_v63, %s3072_s23  ;;  %v2875_v20 = vld [vmem:[%s3110_s17 + $0x4a] sm:$0xff] }
 0x18b   : > { %1521 = vrot.lane.b32.xlu2 %v1448_v4, %s3072_s23  ;;  %v1891_v38 = vpack.c.bf16 %v2875_v20, %v2875_v20  ;;  %v1449_v4 = vpack.c.bf16 %v2819_v21, %v2819_v21 }
 0x18c   : > { %v1061_v6 = vpop.permute.xlu1 %1060  ;;  %v1059_v10 = vpop.permute.xlu0 %1058 }
 0x18d   : > { %1153 = vst.msk [vmem:[#allocation2 + $0x10] sm:$0xf] %vm1148_vm4, %v1061_v6  ;;  %v1081_v27 = vpop.permute.xlu2 %1080 }
 0x18e   : > { %1152 = vst.msk [vmem:[#allocation2 + $0xc] sm:$0xf] %vm1148_vm4, %v1059_v10  ;;  %v3023_v10 = vld [vmem:[%s4515_s1 + $0x18] sm:$0xff] }
 0x18f   : > { %1163 = vst.msk [vmem:[#allocation2 + $0x38] sm:$0xf] %vm1148_vm4, %v1081_v27  ;;  %2287 = vmatpush.bf16.msra.mxu0 %v3023_v10  ;;  %3027 = vmatpush.bf16.msra.mxu1 %v3023_v10  ;;  %v2846_v27 = vld [vmem:[%s3110_s17 + $0x69] sm:$0xff] }
 0x190   : > { %3028 = vmatpush.bf16.msra.mxu2 %v3023_v10  ;;  %3029 = vmatpush.bf16.msra.mxu3 %v3023_v10  ;;  %v1669_v37 = vpack.c.bf16 %v2846_v27, %v2846_v27 }
 0x192   : > { %1734 = vrot.lane.b32.xlu1 %v3561_v33, %s3073_s24  ;;  %1732 = vrot.lane.b32.xlu0 %v1666_v24, %s3073_s24  ;;  %v2882_v33 = vld [vmem:[%s3110_s17 + $0x9a] sm:$0xff]  ;;  %v3022_v24 = vld [vmem:[%s4515_s1 + $0x10] sm:$0xff] }
 0x193   : > { %1744 = vrot.lane.b32.xlu2 %v1672_v32, %s3073_s24  ;;  %v1898_v22 = vpack.c.bf16 %v2882_v33, %v2882_v33  ;;  %v2845_v32 = vld [vmem:[%s3110_s17 + $0x61] sm:$0xff]  ;;  %2288 = vmatpush.bf16.msra.mxu0 %v3022_v24 }
 0x194   : > { %v1067_v2 = vpop.permute.xlu1 %1066  ;;  %v1065_v9 = vpop.permute.xlu0 %1064  ;;  %3030 = vmatpush.bf16.msra.mxu1 %v3022_v24  ;;  %3031 = vmatpush.bf16.msra.mxu2 %v3022_v24 }
 0x195   : > { %1156 = vst.msk [vmem:[#allocation2 + $0x1c] sm:$0xf] %vm1148_vm4, %v1067_v2  ;;  %v1087_v40 = vpop.permute.xlu2 %1086  ;;  %3032 = vmatpush.bf16.msra.mxu3 %v3022_v24 }
 0x196   : > { %1155 = vst.msk [vmem:[#allocation2 + $0x18] sm:$0xf] %vm1148_vm4, %v1065_v9  ;;  %v2851_v9 = vld [vmem:[%s3110_s17 + $0xa9] sm:$0xff] }
 0x197   : > { %1166 = vst.msk [vmem:[#allocation2 + $0x44] sm:$0xf] %vm1148_vm4, %v1087_v40  ;;  %v1674_v33 = vpack.c.bf16 %v2851_v9, %v2851_v9 }
 0x19a   : > { %1957 = vrot.lane.b32.xlu1 %v1891_v38, %s3074_s25  ;;  %1746 = vrot.lane.b32.xlu0 %v3582_v48, %s3073_s24  ;;  %v2794_v48 = vld [vmem:[%s3110_s17 + $0xe2] sm:$0xff] }
 0x19b   : > { %1959 = vrot.lane.b32.xlu2 %v1892_v11, %s3074_s25  ;;  %v3763_v58 = vpack.c.bf16 %v2794_v48, %v2794_v48 }
 0x19c   : > { %v1073_v41 = vpop.permute.xlu1 %1072  ;;  %v1071_v44 = vpop.permute.xlu0 %1070 }
 0x19d   : > { %1159 = vst.msk [vmem:[#allocation2 + $0x28] sm:$0xf] %vm1148_vm4, %v1073_v41  ;;  %v1093_v51 = vpop.permute.xlu2 %1092  ;;  %v2877_v41 = vld [vmem:[%s3110_s17 + $0x62] sm:$0xff] }
 0x19e   : > { %1158 = vst.msk [vmem:[#allocation2 + $0x24] sm:$0xf] %vm1148_vm4, %v1071_v44  ;;  %v2852_v44 = vld [vmem:[%s3110_s17 + $0xb1] sm:$0xff] }
 0x19f   : > { %1169 = vst.msk [vmem:[#allocation2 + $0x50] sm:$0xf] %vm1148_vm4, %v1093_v51  ;;  %v3837_v51 = vpack.c.bf16 %v2877_v41, %v2877_v41  ;;  %v1675_v48 = vpack.c.bf16 %v2852_v44, %v2852_v44 }
 0x1a2   : > { %1971 = vrot.lane.b32.xlu1 %v1898_v22, %s3074_s25  ;;  %1969 = vrot.lane.b32.xlu0 %v1897_v49, %s3074_s25 }
 0x1a3   : > { %1309 = vrot.lane.b32.xlu2 %v3753_v23, %s3071_s22 }
 0x1a4   : > { %v1079_v28 = vpop.permute.xlu1 %1078  ;;  %v1077_v53 = vpop.permute.xlu0 %1076 }
 0x1a5   : > { %1162 = vst.msk [vmem:[#allocation2 + $0x34] sm:$0xf] %vm1148_vm4, %v1079_v28  ;;  %v1099_v31 = vpop.permute.xlu2 %1098 }
 0x1a6   : > { %1161 = vst.msk [vmem:[#allocation2 + $0x30] sm:$0xf] %vm1148_vm4, %v1077_v53 }
 0x1a7   : > { %1172 = vst.msk [vmem:[#allocation2 + $0x5c] sm:$0xf] %vm1148_vm4, %v1099_v31  ;;  %v2883_v31 = vld [vmem:[%s3110_s17 + $0xaa] sm:$0xff] }
 0x1a8   : > { %v3853_v8 = vpack.c.bf16 %v2883_v31, %v2883_v31 }
 0x1aa   : > { %1535 = vrot.lane.b32.xlu1 %v3344_v54, %s3072_s23  ;;  %1311 = vrot.lane.b32.xlu0 %v3763_v58, %s3071_s22  ;;  %v2890_v54 = vld [vmem:[%s3110_s17 + $0xfa] sm:$0xff] }
 0x1ab   : > { %1537 = vrot.lane.b32.xlu2 %v1456_v34, %s3072_s23  ;;  %v3786_v61 = vpack.c.bf16 %v2890_v54, %v2890_v54  ;;  %v2801_v54 = vld [vmem:[%s3110_s17 + $0x13a] sm:$0xff] }
 0x1ac   : > { %v1085_v29 = vpop.permute.xlu1 %1084  ;;  %v1083_v25 = vpop.permute.xlu0 %1082 }
 0x1ad   : > { %1165 = vst.msk [vmem:[#allocation2 + $0x40] sm:$0xf] %vm1148_vm4, %v1085_v29  ;;  %v1105_v43 = vpop.permute.xlu2 %1104 }
 0x1ae   : > { %1164 = vst.msk [vmem:[#allocation2 + $0x3c] sm:$0xf] %vm1148_vm4, %v1083_v25  ;;  %v3851_v25 = vpack.c.bf16 %v2884_v13, %v2884_v13 }
 0x1af   : > { %1175 = vst.msk [vmem:[#allocation2 + $0x68] sm:$0xf] %vm1148_vm4, %v1105_v43 }
 0x1b2   : > { %1762 = vrot.lane.b32.xlu1 %v3616_v46, %s3073_s24  ;;  %1760 = vrot.lane.b32.xlu0 %v3618_v56, %s3073_s24 }
 0x1b3   : > { %1985 = vrot.lane.b32.xlu2 %v3775_v42, %s3074_s25 }
 0x1b4   : > { %v1091_v55 = vpop.permute.xlu1 %1090  ;;  %v1089_v59 = vpop.permute.xlu0 %1088 }
 0x1b5   : > { %1168 = vst.msk [vmem:[#allocation2 + $0x4c] sm:$0xf] %vm1148_vm4, %v1091_v55  ;;  %v1111_v19 = vpop.permute.xlu2 %1110 }
 0x1b6   : > { %1167 = vst.msk [vmem:[#allocation2 + $0x48] sm:$0xf] %vm1148_vm4, %v1089_v59 }
 0x1b7   : > { %1178 = vst.msk [vmem:[#allocation2 + $0x74] sm:$0xf] %vm1148_vm4, %v1111_v19  ;;  %v2802_v19 = vld [vmem:[%s3110_s17 + $0x142] sm:$0xff] }
 0x1b8   : > { %v3869_v7 = vpack.c.bf16 %v2802_v19, %v2802_v19  ;;  %v2854_v19 = vld [vmem:[%s3110_s17 + $0xc9] sm:$0xff] }
 0x1ba   : > { %1285 = vrot.lane.b32.xlu1 %v1891_v38, %s3071_s22  ;;  %1987 = vrot.lane.b32.xlu0 %v3786_v61, %s3074_s25  ;;  %v1668_v38 = vpack.c.bf16 %v2845_v32, %v2845_v32 }
 0x1bb   : > { %1287 = vrot.lane.b32.xlu2 %v1892_v11, %s3071_s22  ;;  %v3021_v11 = vld [vmem:[%s4515_s1 + $0x8] sm:$0xff] }
 0x1bc   : > { %v1097_v46 = vpop.permute.xlu1 %1096  ;;  %v1095_v56 = vpop.permute.xlu0 %1094  ;;  %2289 = vmatpush.bf16.msra.mxu0 %v3021_v11  ;;  %3033 = vmatpush.bf16.msra.mxu1 %v3021_v11 }
 0x1bd   : > { %1171 = vst.msk [vmem:[#allocation2 + $0x58] sm:$0xf] %vm1148_vm4, %v1097_v46  ;;  %v1278_v14 = vpop.permute.xlu2 %1277  ;;  %3034 = vmatpush.bf16.msra.mxu2 %v3021_v11  ;;  %3035 = vmatpush.bf16.msra.mxu3 %v3021_v11  ;;  %v3866_v46 = vpack.c.bf16 %v2801_v54, %v2801_v54  ;;  %v2848_v54 = vld [vmem:[%s3110_s17 + $0x81] sm:$0xff] }
 0x1be   : > { %1170 = vst.msk [vmem:[#allocation2 + $0x54] sm:$0xf] %vm1148_vm4, %v1095_v56 }
 0x1bf   : > { %1374 = vst.msk [vmem:[#allocation2] sm:$0xf] %vm1373_vm5, %v1278_v14  ;;  %v2827_v14 = vld [vmem:[%s3110_s17 + $0x108] sm:$0xff] }
 0x1c0   : > { %2290 = vmatpush.bf16.msra.mxu0 %v3020_v16  ;;  %3036 = vmatpush.bf16.msra.mxu1 %v3020_v16  ;;  %v1457_v21 = vpack.c.bf16 %v2827_v14, %v2827_v14  ;;  %v1677_v14 = vpack.c.bf16 %v2854_v19, %v2854_v19  ;;  %v2855_v19 = vld [vmem:[%s3110_s17 + $0xd9] sm:$0xff] }
 0x1c1   : > { %3037 = vmatpush.bf16.msra.mxu2 %v3020_v16  ;;  %3038 = vmatpush.bf16.msra.mxu3 %v3020_v16 }
 0x1c2   : > { %1299 = vrot.lane.b32.xlu1 %v1898_v22, %s3071_s22  ;;  %1297 = vrot.lane.b32.xlu0 %v1897_v49, %s3071_s22  ;;  %v2878_v49 = vld [vmem:[%s3110_s17 + $0x6a] sm:$0xff] }
 0x1c3   : > { %1511 = vrot.lane.b32.xlu2 %v1443_v30, %s3072_s23  ;;  %v3840_v53 = vpack.c.bf16 %v2878_v49, %v2878_v49  ;;  %v2833_v30 = vld [vmem:[%s3110_s17 + $0x150] sm:$0xff] }
 0x1c4   : > { %v1103_v50 = vpop.permute.xlu1 %1102  ;;  %v1101_v63 = vpop.permute.xlu0 %1100  ;;  %v1463_v47 = vpack.c.bf16 %v2833_v30, %v2833_v30  ;;  %v2885_v30 = vld [vmem:[%s3110_s17 + $0xc2] sm:$0xff] }
 0x1c5   : > { %1174 = vst.msk [vmem:[#allocation2 + $0x64] sm:$0xf] %vm1148_vm4, %v1103_v50  ;;  %v1504_v6 = vpop.permute.xlu2 %1503 }
 0x1c6   : > { %1173 = vst.msk [vmem:[#allocation2 + $0x60] sm:$0xf] %vm1148_vm4, %v1101_v63 }
 0x1c7   : > { %1600 = vst.msk [vmem:[#allocation2] sm:$0xf] %vm1599_vm7, %v1504_v6 }
 0x1ca   : > { %1523 = vrot.lane.b32.xlu1 %v1449_v4, %s3072_s23  ;;  %1513 = vrot.lane.b32.xlu0 %v1444_v5, %s3072_s23 }
 0x1cb   : > { %1525 = vrot.lane.b32.xlu2 %v1450_v12, %s3072_s23  ;;  %v2891_v12 = vld [vmem:[%s3110_s17 + $0x10a] sm:$0xff] }
 0x1cc   : > { %v1109_v20 = vpop.permute.xlu1 %1108  ;;  %v1107_v2 = vpop.permute.xlu0 %1106  ;;  %v3900_v27 = vpack.c.bf16 %v2891_v12, %v2891_v12 }
 0x1cd   : > { %1177 = vst.msk [vmem:[#allocation2 + $0x70] sm:$0xf] %vm1148_vm4, %v1109_v20  ;;  %v1731_v40 = vpop.permute.xlu2 %1730 }
 0x1ce   : > { %1176 = vst.msk [vmem:[#allocation2 + $0x6c] sm:$0xf] %vm1148_vm4, %v1107_v2  ;;  %v2898_v2 = vld [vmem:[%s3110_s17 + $0x15a] sm:$0xff] }
 0x1d2   : > { %1738 = vrot.lane.b32.xlu1 %v1669_v37, %s3073_s24  ;;  %1736 = vrot.lane.b32.xlu0 %v1668_v38, %s3073_s24 }
 0x1d3   : > { %1748 = vrot.lane.b32.xlu2 %v1674_v33, %s3073_s24  ;;  %v2815_v33 = vld [vmem:[%s3110_s17 + $0x78] sm:$0xff] }
 0x1d4   : > { %v1115_v17 = vpop.permute.xlu1 %1114  ;;  %v1113_v22 = vpop.permute.xlu0 %1112 }
 0x1d5   : > { %1180 = vst.msk [vmem:[#allocation2 + $0x7c] sm:$0xf] %vm1148_vm4, %v1115_v17  ;;  %v1284_v28 = vpop.permute.xlu2 %1283  ;;  %v2816_v17 = vld [vmem:[%s3110_s17 + $0x80] sm:$0xff] }
 0x1d6   : > { %1179 = vst.msk [vmem:[#allocation2 + $0x78] sm:$0xf] %vm1148_vm4, %v1113_v22  ;;  %v1445_v22 = vpack.c.bf16 %v2815_v33, %v2815_v33 }
 0x1d7   : > { %1377 = vst.msk [vmem:[#allocation2 + $0xc] sm:$0xf] %vm1373_vm5, %v1284_v28  ;;  %v2821_v28 = vld [vmem:[%s3110_s17 + $0xc0] sm:$0xff] }
 0x1da   : > { %1961 = vrot.lane.b32.xlu1 %v3837_v51, %s3074_s25  ;;  %1750 = vrot.lane.b32.xlu0 %v1675_v48, %s3073_s24  ;;  %v2822_v48 = vld [vmem:[%s3110_s17 + $0xc8] sm:$0xff] }
 0x1db   : > { %1963 = vrot.lane.b32.xlu2 %v3840_v53, %s3074_s25 }
 0x1dc   : > { %v1282_v34 = vpop.permute.xlu1 %1281  ;;  %v1280_v29 = vpop.permute.xlu0 %1279 }
 0x1dd   : > { %1376 = vst.msk [vmem:[#allocation2 + $0x8] sm:$0xf] %vm1373_vm5, %v1282_v34  ;;  %v1508_v43 = vpop.permute.xlu2 %1507  ;;  %v2847_v34 = vld [vmem:[%s3110_s17 + $0x79] sm:$0xff] }
 0x1de   : > { %1375 = vst.msk [vmem:[#allocation2 + $0x4] sm:$0xf] %vm1373_vm5, %v1280_v29  ;;  %v1452_v29 = vpack.c.bf16 %v2822_v48, %v2822_v48 }
 0x1df   : > { %1602 = vst.msk [vmem:[#allocation2 + $0x8] sm:$0xf] %vm1599_vm7, %v1508_v43 }
 0x1e2   : > { %1975 = vrot.lane.b32.xlu1 %v3851_v25, %s3074_s25  ;;  %1973 = vrot.lane.b32.xlu0 %v3853_v8, %s3074_s25 }
 0x1e3   : > { %1313 = vrot.lane.b32.xlu2 %v3775_v42, %s3071_s22  ;;  %v2828_v42 = vld [vmem:[%s3110_s17 + $0x110] sm:$0xff] }
 0x1e4   : > { %v1729_v55 = vpop.permute.xlu1 %1728  ;;  %v1506_v59 = vpop.permute.xlu0 %1505  ;;  %v1458_v15 = vpack.c.bf16 %v2828_v42, %v2828_v42 }
 0x1e5   : > { %1825 = vst.msk [vmem:[#allocation2] sm:$0xf] %vm1824_vm8, %v1729_v55  ;;  %v1522_v56 = vpop.permute.xlu2 %1521 }
 0x1e6   : > { %1601 = vst.msk [vmem:[#allocation2 + $0x4] sm:$0xf] %vm1599_vm7, %v1506_v59 }
 0x1e7   : > { %1826 = vst.msk [vmem:[#allocation2 + $0x4] sm:$0xf] %vm1824_vm8, %v1731_v40 }
 0x1ea   : > { %1325 = vrot.lane.b32.xlu1 %v3866_v46, %s3071_s22  ;;  %1315 = vrot.lane.b32.xlu0 %v3786_v61, %s3071_s22  ;;  %v2834_v61 = vld [vmem:[%s3110_s17 + $0x158] sm:$0xff] }
 0x1eb   : > { %1327 = vrot.lane.b32.xlu2 %v3869_v7, %s3071_s22  ;;  %v1464_v4 = vpack.c.bf16 %v2834_v61, %v2834_v61 }
 0x1ec   : > { %v1956_v45 = vpop.permute.xlu1 %1955  ;;  %v1954_v36 = vpop.permute.xlu0 %1953 }
 0x1ed   : > { %2051 = vst.msk [vmem:[#allocation2 + $0x4] sm:$0xf] %vm2049_vm9, %v1956_v45  ;;  %v1745_v57 = vpop.permute.xlu2 %1744 }
 0x1ee   : > { %2050 = vst.msk [vmem:[#allocation2] sm:$0xf] %vm2049_vm9, %v1954_v36 }
 0x1f2   : > { %1541 = vrot.lane.b32.xlu1 %v1458_v15, %s3072_s23  ;;  %1539 = vrot.lane.b32.xlu0 %v1457_v21, %s3072_s23  ;;  %v3967_v21 = vpack.c.bf16 %v2885_v30, %v2885_v30 }
 0x1f3   : > { %1551 = vrot.lane.b32.xlu2 %v1463_v47, %s3072_s23 }
 0x1f4   : > { %v1296_v50 = vpop.permute.xlu1 %1295  ;;  %v1294_v63 = vpop.permute.xlu0 %1293 }
 0x1f5   : > { %1383 = vst.msk [vmem:[#allocation2 + $0x24] sm:$0xf] %vm1373_vm5, %v1296_v50  ;;  %v3004_v3 = vld [vmem:[#allocation2] sm:$0xff]  ;;  %v1960_v5 = vpop.permute.xlu2 %1959 }
 0x1f6   : > { %1382 = vst.msk [vmem:[#allocation2 + $0x20] sm:$0xf] %vm1373_vm5, %v1294_v63  ;;  %2985 = vmatmul.msk.bf16.vlgmr.msra.gmra.mxu0 %vm2230_vm10, %v3004_v3  ;;  %v2829_v3 = vld [vmem:[%s3110_s17 + $0x120] sm:$0xff] }
 0x1f7   : > { %1609 = vst.msk [vmem:[#allocation2 + $0x24] sm:$0xf] %vm1599_vm7, %v1522_v56  ;;  %v1671_v56 = vpack.c.bf16 %v2848_v54, %v2848_v54 }
 0x1fa   : > { %1764 = vrot.lane.b32.xlu1 %v3621_v35, %s3073_s24  ;;  %1553 = vrot.lane.b32.xlu0 %v1464_v4, %s3072_s23  ;;  %v2897_v35 = vld [vmem:[%s3110_s17 + $0x152] sm:$0xff] }
 0x1fb   : > { %1766 = vrot.lane.b32.xlu2 %v3634_v39, %s3073_s24  ;;  %v2892_v39 = vld [vmem:[%s3110_s17 + $0x112] sm:$0xff]  ;;  %v3913_v9 = vpack.c.bf16 %v2897_v35, %v2897_v35 }
 0x1fc   : > { %v1520_v6 = vpop.permute.xlu1 %1519  ;;  %v1510_v10 = vpop.permute.xlu0 %1509  ;;  %v3915_v37 = vpack.c.bf16 %v2892_v39, %v2892_v39 }
 0x1fd   : > { %1608 = vst.msk [vmem:[#allocation2 + $0x20] sm:$0xf] %vm1599_vm7, %v1520_v6  ;;  %v1310_v24 = vpop.permute.xlu2 %1309  ;;  %v2835_v6 = vld [vmem:[%s3110_s17 + $0x168] sm:$0xff] }
 0x1fe   : > { %1603 = vst.msk [vmem:[#allocation2 + $0xc] sm:$0xf] %vm1599_vm7, %v1510_v10  ;;  %v2830_v10 = vld [vmem:[%s3110_s17 + $0x128] sm:$0xff]  ;;  %v1465_v35 = vpack.c.bf16 %v2835_v6, %v2835_v6 }
 0x1ff   : > { %1833 = vst.msk [vmem:[#allocation2 + $0x20] sm:$0xf] %vm1824_vm8, %v1745_v57  ;;  %v1460_v39 = vpack.c.bf16 %v2830_v10, %v2830_v10  ;;  %v2838_v6 = vld [vmem:[%s3110_s17 + $0x188] sm:$0xff] }
 0x200   : > { %1390 = vst.msk [vmem:[#allocation2 + $0x40] sm:$0xf] %vm1373_vm5, %v1310_v24 }
 0x202   : > { %1778 = vrot.lane.b32.xlu1 %v3661_v18, %s3073_s24  ;;  %1776 = vrot.lane.b32.xlu0 %v3650_v1, %s3073_s24  ;;  %v3918_v1 = vpack.c.bf16 %v2898_v2, %v2898_v2  ;;  %v2861_v2 = vld [vmem:[%s3110_s17 + $0x121] sm:$0xff] }
 0x203   : > { %1989 = vrot.lane.b32.xlu2 %v3900_v27, %s3074_s25 }
 0x204   : > { %v1735_v32 = vpop.permute.xlu1 %1734  ;;  %v1733_v20 = vpop.permute.xlu0 %1732 }
 0x205   : > { %1828 = vst.msk [vmem:[#allocation2 + $0xc] sm:$0xf] %vm1824_vm8, %v1735_v32  ;;  %v1538_v18 = vpop.permute.xlu2 %1537 }
 0x206   : > { %1827 = vst.msk [vmem:[#allocation2 + $0x8] sm:$0xf] %vm1824_vm8, %v1733_v20 }
 0x207   : > { %2053 = vst.msk [vmem:[#allocation2 + $0xc] sm:$0xf] %vm2049_vm9, %v1960_v5  ;;  %v1459_v5 = vpack.c.bf16 %v2829_v3, %v2829_v3 }
 0x20a   : > { %2001 = vrot.lane.b32.xlu1 %v3913_v9, %s3074_s25  ;;  %1991 = vrot.lane.b32.xlu0 %v3915_v37, %s3074_s25 }
 0x20b   : > { %2003 = vrot.lane.b32.xlu2 %v3918_v1, %s3074_s25 }
 0x20c   : > { %v1958_v38 = vpop.permute.xlu1 %1957  ;;  %v1747_v40 = vpop.permute.xlu0 %1746 }
 0x20d   : > { %2052 = vst.msk [vmem:[#allocation2 + $0x8] sm:$0xf] %vm2049_vm9, %v1958_v38  ;;  %v1986_v11 = vpop.permute.xlu2 %1985 }
 0x20e   : > { %1834 = vst.msk [vmem:[#allocation2 + $0x24] sm:$0xf] %vm1824_vm8, %v1747_v40 }
 0x212   : > { %1291 = vrot.lane.b32.xlu1 %v3840_v53, %s3071_s22  ;;  %1289 = vrot.lane.b32.xlu0 %v3837_v51, %s3071_s22  ;;  %v1446_v51 = vpack.c.bf16 %v2816_v17, %v2816_v17 }
 0x213   : > { %1301 = vrot.lane.b32.xlu2 %v3853_v8, %s3071_s22  ;;  %v1451_v8 = vpack.c.bf16 %v2821_v28, %v2821_v28 }
 0x214   : > { %v1972_v16 = vpop.permute.xlu1 %1971  ;;  %v1970_v41 = vpop.permute.xlu0 %1969  ;;  %v3005_v44 = vld [vmem:[#allocation2 + $0x8] sm:$0xff] }
 0x215   : > { %2059 = vst.msk [vmem:[#allocation2 + $0x24] sm:$0xf] %vm2049_vm9, %v1972_v16  ;;  %2986 = vmatmul.msk.bf16.gmra.mxu0 %vm2230_vm10, %v3005_v44  ;;  %v1288_v49 = vpop.permute.xlu2 %1287  ;;  %v2894_v44 = vld [vmem:[%s3110_s17 + $0x12a] sm:$0xff] }
 0x216   : > { %2058 = vst.msk [vmem:[#allocation2 + $0x20] sm:$0xf] %vm2049_vm9, %v1970_v41 }
 0x217   : > { %1379 = vst.msk [vmem:[#allocation2 + $0x14] sm:$0xf] %vm1373_vm5, %v1288_v49  ;;  %v2900_v49 = vld [vmem:[%s3110_s17 + $0x172] sm:$0xff] }
 0x21a   : > { %1515 = vrot.lane.b32.xlu1 %v1445_v22, %s3072_s23  ;;  %1303 = vrot.lane.b32.xlu0 %v3851_v25, %s3071_s22  ;;  %v1670_v25 = vpack.c.bf16 %v2847_v34, %v2847_v34 }
 0x21b   : > { %1517 = vrot.lane.b32.xlu2 %v1446_v51, %s3072_s23  ;;  %v2899_v51 = vld [vmem:[%s3110_s17 + $0x16a] sm:$0xff] }
 0x21c   : > { %v1536_v53 = vpop.permute.xlu1 %1535  ;;  %v1312_v13 = vpop.permute.xlu0 %1311 }
 0x21d   : > { %1616 = vst.msk [vmem:[#allocation2 + $0x40] sm:$0xf] %vm1599_vm7, %v1536_v53  ;;  %v3008_v31 = vld [vmem:[#allocation2 + $0x20] sm:$0xff]  ;;  %v1512_v43 = vpop.permute.xlu2 %1511 }
 0x21e   : > { %1391 = vst.msk [vmem:[#allocation2 + $0x44] sm:$0xf] %vm1373_vm5, %v1312_v13  ;;  %2989 = vmatmul.msk.bf16.vlgmr.msra.gmra.mxu1 %vm2230_vm10, %v3008_v31  ;;  %v1916_v13 = vpack.c.bf16 %v2900_v49, %v2900_v49  ;;  %v1915_v31 = vpack.c.bf16 %v2899_v51, %v2899_v51 }
 0x21f   : > { %1617 = vst.msk [vmem:[#allocation2 + $0x44] sm:$0xf] %vm1599_vm7, %v1538_v18  ;;  %v2867_v18 = vld [vmem:[%s3110_s17 + $0x169] sm:$0xff] }
 0x220   : > { %v1690_v40 = vpack.c.bf16 %v2867_v18, %v2867_v18 }
 0x222   : > { %1529 = vrot.lane.b32.xlu1 %v1452_v29, %s3072_s23  ;;  %1527 = vrot.lane.b32.xlu0 %v1451_v8, %s3072_s23 }
 0x223   : > { %1740 = vrot.lane.b32.xlu2 %v1670_v25, %s3073_s24 }
 0x224   : > { %v1763_v55 = vpop.permute.xlu1 %1762  ;;  %v1761_v59 = vpop.permute.xlu0 %1760 }
 0x225   : > { %1842 = vst.msk [vmem:[#allocation2 + $0x44] sm:$0xf] %vm1824_vm8, %v1763_v55  ;;  %v1526_v42 = vpop.permute.xlu2 %1525 }
 0x226   : > { %1841 = vst.msk [vmem:[#allocation2 + $0x40] sm:$0xf] %vm1824_vm8, %v1761_v59  ;;  %v2856_v59 = vld [vmem:[%s3110_s17 + $0xe1] sm:$0xff] }
 0x227   : > { %2066 = vst.msk [vmem:[#allocation2 + $0x40] sm:$0xf] %vm2049_vm9, %v1986_v11  ;;  %v2893_v11 = vld [vmem:[%s3110_s17 + $0x122] sm:$0xff] }
 0x228   : > { %v1909_v17 = vpack.c.bf16 %v2893_v11, %v2893_v11 }
 0x22a   : > { %1752 = vrot.lane.b32.xlu1 %v3594_v52, %s3073_s24  ;;  %1742 = vrot.lane.b32.xlu0 %v1671_v56, %s3073_s24  ;;  %v2886_v52 = vld [vmem:[%s3110_s17 + $0xca] sm:$0xff] }
 0x22b   : > { %1754 = vrot.lane.b32.xlu2 %v1677_v14, %s3073_s24  ;;  %v3978_v50 = vpack.c.bf16 %v2886_v52, %v2886_v52  ;;  %v1679_v14 = vpack.c.bf16 %v2856_v59, %v2856_v59 }
 0x22c   : > { %v1286_v45 = vpop.permute.xlu1 %1285  ;;  %v1988_v36 = vpop.permute.xlu0 %1987 }
 0x22d   : > { %1378 = vst.msk [vmem:[#allocation2 + $0x10] sm:$0xf] %vm1373_vm5, %v1286_v45  ;;  %v1749_v15 = vpop.permute.xlu2 %1748  ;;  %v1678_v45 = vpack.c.bf16 %v2855_v19, %v2855_v19 }
 0x22e   : > { %2067 = vst.msk [vmem:[#allocation2 + $0x44] sm:$0xf] %vm2049_vm9, %v1988_v36 }
 0x22f   : > { %1604 = vst.msk [vmem:[#allocation2 + $0x10] sm:$0xf] %vm1599_vm7, %v1512_v43  ;;  %v2824_v43 = vld [vmem:[%s3110_s17 + $0xe0] sm:$0xff] }
 0x230   : > { %v1454_v55 = vpack.c.bf16 %v2824_v43, %v2824_v43  ;;  %v2871_v43 = vld [vmem:[%s3110_s17 + $0x199] sm:$0xff] }
 0x231   : > { %v1694_v19 = vpack.c.bf16 %v2871_v43, %v2871_v43 }
 0x232   : > { %1967 = vrot.lane.b32.xlu1 %v3710_v0, %s3074_s25  ;;  %1965 = vrot.lane.b32.xlu0 %v3712_v60, %s3074_s25 }
 0x233   : > { %1977 = vrot.lane.b32.xlu2 %v3967_v21, %s3074_s25 }
 0x234   : > { %v1300_v57 = vpop.permute.xlu1 %1299  ;;  %v1298_v47 = vpop.permute.xlu0 %1297 }
 0x235   : > { %1385 = vst.msk [vmem:[#allocation2 + $0x2c] sm:$0xf] %vm1373_vm5, %v1300_v57  ;;  %v3012_v61 = vld [vmem:[#allocation2 + $0x40] sm:$0xff]  ;;  %v1964_v63 = vpop.permute.xlu2 %1963 }
 0x236   : > { %1384 = vst.msk [vmem:[#allocation2 + $0x28] sm:$0xf] %vm1373_vm5, %v1298_v47  ;;  %2993 = vmatmul.msk.bf16.vlgmr.msra.gmra.mxu2 %vm2230_vm10, %v3012_v61  ;;  %v2831_v61 = vld [vmem:[%s3110_s17 + $0x138] sm:$0xff] }
 0x237   : > { %1611 = vst.msk [vmem:[#allocation2 + $0x2c] sm:$0xf] %vm1599_vm7, %v1526_v42 }
 0x23a   : > { %1317 = vrot.lane.b32.xlu1 %v3900_v27, %s3071_s22  ;;  %1979 = vrot.lane.b32.xlu0 %v3978_v50, %s3074_s25  ;;  %v2836_v27 = vld [vmem:[%s3110_s17 + $0x170] sm:$0xff] }
 0x23b   : > { %1319 = vrot.lane.b32.xlu2 %v3915_v37, %s3071_s22  ;;  %v1466_v20 = vpack.c.bf16 %v2836_v27, %v2836_v27  ;;  %v1468_v27 = vpack.c.bf16 %v2838_v6, %v2838_v6 }
 0x23c   : > { %v1524_v0 = vpop.permute.xlu1 %1523  ;;  %v1514_v60 = vpop.permute.xlu0 %1513 }
 0x23d   : > { %1610 = vst.msk [vmem:[#allocation2 + $0x28] sm:$0xf] %vm1599_vm7, %v1524_v0  ;;  %v1314_v4 = vpop.permute.xlu2 %1313  ;;  %v2832_v0 = vld [vmem:[%s3110_s17 + $0x140] sm:$0xff] }
 0x23e   : > { %1605 = vst.msk [vmem:[#allocation2 + $0x14] sm:$0xf] %vm1599_vm7, %v1514_v60 }
 0x23f   : > { %1835 = vst.msk [vmem:[#allocation2 + $0x28] sm:$0xf] %vm1824_vm8, %v1749_v15 }
 0x240   : > { %1392 = vst.msk [vmem:[#allocation2 + $0x48] sm:$0xf] %vm1373_vm5, %v1314_v4 }
 0x242   : > { %1331 = vrot.lane.b32.xlu1 %v3918_v1, %s3071_s22  ;;  %1329 = vrot.lane.b32.xlu0 %v3913_v9, %s3071_s22  ;;  %v1684_v1 = vpack.c.bf16 %v2861_v2, %v2861_v2  ;;  %v2869_v2 = vld [vmem:[%s3110_s17 + $0x181] sm:$0xff] }
 0x243   : > { %1543 = vrot.lane.b32.xlu2 %v1459_v5, %s3072_s23 }
 0x244   : > { %v1739_v12 = vpop.permute.xlu1 %1738  ;;  %v1737_v24 = vpop.permute.xlu0 %1736 }
 0x245   : > { %1830 = vst.msk [vmem:[#allocation2 + $0x14] sm:$0xf] %vm1824_vm8, %v1739_v12  ;;  %v1328_v32 = vpop.permute.xlu2 %1327  ;;  %v1462_v12 = vpack.c.bf16 %v2832_v0, %v2832_v0 }
 0x246   : > { %1829 = vst.msk [vmem:[#allocation2 + $0x10] sm:$0xf] %vm1824_vm8, %v1737_v24 }
 0x247   : > { %2055 = vst.msk [vmem:[#allocation2 + $0x14] sm:$0xf] %vm2049_vm9, %v1964_v63  ;;  %v1461_v63 = vpack.c.bf16 %v2831_v61, %v2831_v61 }
 0x248   : > { %1399 = vst.msk [vmem:[#allocation2 + $0x64] sm:$0xf] %vm1373_vm5, %v1328_v32 }
 0x24a   : > { %1555 = vrot.lane.b32.xlu1 %v1465_v35, %s3072_s23  ;;  %1545 = vrot.lane.b32.xlu0 %v1460_v39, %s3072_s23  ;;  %v2864_v35 = vld [vmem:[%s3110_s17 + $0x141] sm:$0xff]  ;;  %v2863_v39 = vld [vmem:[%s3110_s17 + $0x139] sm:$0xff] }
 0x24b   : > { %1557 = vrot.lane.b32.xlu2 %v1466_v20, %s3072_s23 }
 0x24c   : > { %v1962_v9 = vpop.permute.xlu1 %1961  ;;  %v1751_v37 = vpop.permute.xlu0 %1750 }
 0x24d   : > { %2054 = vst.msk [vmem:[#allocation2 + $0x10] sm:$0xf] %vm2049_vm9, %v1962_v9  ;;  %v1552_v38 = vpop.permute.xlu2 %1551  ;;  %v1687_v9 = vpack.c.bf16 %v2864_v35, %v2864_v35 }
 0x24e   : > { %1836 = vst.msk [vmem:[#allocation2 + $0x2c] sm:$0xf] %vm1824_vm8, %v1751_v37  ;;  %v1686_v37 = vpack.c.bf16 %v2863_v39, %v2863_v39 }
 0x252   : > { %1770 = vrot.lane.b32.xlu1 %v3637_v62, %s3073_s24  ;;  %1768 = vrot.lane.b32.xlu0 %v1684_v1, %s3073_s24  ;;  %v1910_v62 = vpack.c.bf16 %v2894_v44, %v2894_v44  ;;  %v1692_v1 = vpack.c.bf16 %v2869_v2, %v2869_v2 }
 0x253   : > { %1780 = vrot.lane.b32.xlu2 %v1690_v40, %s3073_s24  ;;  %v2870_v40 = vld [vmem:[%s3110_s17 + $0x189] sm:$0xff] }
 0x254   : > { %v1976_v33 = vpop.permute.xlu1 %1975  ;;  %v1974_v16 = vpop.permute.xlu0 %1973  ;;  %v3006_v41 = vld [vmem:[#allocation2 + $0x10] sm:$0xff] }
 0x255   : > { %2061 = vst.msk [vmem:[#allocation2 + $0x2c] sm:$0xf] %vm2049_vm9, %v1976_v33  ;;  %2987 = vmatmul.msk.bf16.gmra.mxu0 %vm2230_vm10, %v3006_v41  ;;  %v1767_v22 = vpop.permute.xlu2 %1766 }
 0x256   : > { %2060 = vst.msk [vmem:[#allocation2 + $0x28] sm:$0xf] %vm2049_vm9, %v1974_v16  ;;  %v1693_v16 = vpack.c.bf16 %v2870_v40, %v2870_v40 }
 0x25a   : > { %1993 = vrot.lane.b32.xlu1 %v1909_v17, %s3074_s25  ;;  %1782 = vrot.lane.b32.xlu0 %v3664_v26, %s3073_s24  ;;  %v2823_v26 = vld [vmem:[%s3110_s17 + $0xd8] sm:$0xff] }
 0x25b   : > { %1995 = vrot.lane.b32.xlu2 %v1910_v62, %s3074_s25  ;;  %v1453_v25 = vpack.c.bf16 %v2823_v26, %v2823_v26 }
 0x25c   : > { %v1326_v48 = vpop.permute.xlu1 %1325  ;;  %v1316_v28 = vpop.permute.xlu0 %1315 }
 0x25d   : > { %1398 = vst.msk [vmem:[#allocation2 + $0x60] sm:$0xf] %vm1373_vm5, %v1326_v48  ;;  %v3009_v53 = vld [vmem:[#allocation2 + $0x28] sm:$0xff]  ;;  %v1990_v34 = vpop.permute.xlu2 %1989 }
 0x25e   : > { %1393 = vst.msk [vmem:[#allocation2 + $0x4c] sm:$0xf] %vm1373_vm5, %v1316_v28  ;;  %2990 = vmatmul.msk.bf16.gmra.mxu1 %vm2230_vm10, %v3009_v53 }
 0x25f   : > { %1624 = vst.msk [vmem:[#allocation2 + $0x60] sm:$0xf] %vm1599_vm7, %v1552_v38 }
 0x262   : > { %2007 = vrot.lane.b32.xlu1 %v1916_v13, %s3074_s25  ;;  %2005 = vrot.lane.b32.xlu0 %v1915_v31, %s3074_s25 }
 0x263   : > { %1305 = vrot.lane.b32.xlu2 %v3967_v21, %s3071_s22 }
 0x264   : > { %v1542_v29 = vpop.permute.xlu1 %1541  ;;  %v1540_v8 = vpop.permute.xlu0 %1539 }
 0x265   : > { %1619 = vst.msk [vmem:[#allocation2 + $0x4c] sm:$0xf] %vm1599_vm7, %v1542_v29  ;;  %v2004_v54 = vpop.permute.xlu2 %2003  ;;  %v2840_v29 = vld [vmem:[%s3110_s17 + $0x1a0] sm:$0xff] }
 0x266   : > { %1618 = vst.msk [vmem:[#allocation2 + $0x48] sm:$0xf] %vm1599_vm7, %v1540_v8  ;;  %v1470_v8 = vpack.c.bf16 %v2840_v29, %v2840_v29 }
 0x267   : > { %1844 = vst.msk [vmem:[#allocation2 + $0x4c] sm:$0xf] %vm1824_vm8, %v1767_v22  ;;  %v2901_v22 = vld [vmem:[%s3110_s17 + $0x182] sm:$0xff] }
 0x268   : > { %v1917_v48 = vpack.c.bf16 %v2901_v22, %v2901_v22 }
 0x26a   : > { %1531 = vrot.lane.b32.xlu1 %v1453_v25, %s3072_s23  ;;  %1307 = vrot.lane.b32.xlu0 %v3978_v50, %s3071_s22  ;;  %v2872_v25 = vld [vmem:[%s3110_s17 + $0x1a1] sm:$0xff] }
 0x26b   : > { %1533 = vrot.lane.b32.xlu2 %v1454_v55, %s3072_s23 }
 0x26c   : > { %v1765_v56 = vpop.permute.xlu1 %1764  ;;  %v1554_v42 = vpop.permute.xlu0 %1553 }
 0x26d   : > { %1843 = vst.msk [vmem:[#allocation2 + $0x48] sm:$0xf] %vm1824_vm8, %v1765_v56  ;;  %v1302_v36 = vpop.permute.xlu2 %1301  ;;  %v1695_v56 = vpack.c.bf16 %v2872_v25, %v2872_v25 }
 0x26e   : > { %1625 = vst.msk [vmem:[#allocation2 + $0x64] sm:$0xf] %vm1599_vm7, %v1554_v42 }
 0x26f   : > { %2068 = vst.msk [vmem:[#allocation2 + $0x48] sm:$0xf] %vm2049_vm9, %v1990_v34 }
 0x270   : > { %1386 = vst.msk [vmem:[#allocation2 + $0x30] sm:$0xf] %vm1373_vm5, %v1302_v36  ;;  %v2904_v36 = vld [vmem:[%s3110_s17 + $0x1a2] sm:$0xff] }
 0x272   : > { %1758 = vrot.lane.b32.xlu1 %v1679_v14, %s3073_s24  ;;  %1756 = vrot.lane.b32.xlu0 %v1678_v45, %s3073_s24  ;;  %v2903_v14 = vld [vmem:[%s3110_s17 + $0x19a] sm:$0xff] }
 0x273   : > { %1981 = vrot.lane.b32.xlu2 %v3753_v23, %s3074_s25  ;;  %v4061_v21 = vpop.f32.mrf.mxu0  ;;  %v1919_v45 = vpack.c.bf16 %v2903_v14, %v2903_v14 }
 0x274   : > { %v1779_v30 = vpop.permute.xlu1 %1778  ;;  %v1777_v15 = vpop.permute.xlu0 %1776  ;;  %2373 = vst.msk [vmem:[%s4056_s14] sm:$0xff] %vm2372_vm11, %v4061_v21 }
 0x275   : > { %1850 = vst.msk [vmem:[#allocation2 + $0x64] sm:$0xf] %vm1824_vm8, %v1779_v30  ;;  %v1518_v52 = vpop.permute.xlu2 %1517 }
 0x276   : > { %1849 = vst.msk [vmem:[#allocation2 + $0x60] sm:$0xf] %vm1824_vm8, %v1777_v15 }
 0x277   : > { %2075 = vst.msk [vmem:[#allocation2 + $0x64] sm:$0xf] %vm2049_vm9, %v2004_v54 }
 0x27a   : > { %1321 = vrot.lane.b32.xlu1 %v1909_v17, %s3071_s22  ;;  %1983 = vrot.lane.b32.xlu0 %v3763_v58, %s3074_s25  ;;  %v2837_v58 = vld [vmem:[%s3110_s17 + $0x180] sm:$0xff]  ;;  %v2902_v17 = vld [vmem:[%s3110_s17 + $0x18a] sm:$0xff] }
 0x27b   : > { %1323 = vrot.lane.b32.xlu2 %v1910_v62, %s3071_s22  ;;  %v4073_v47 = vpop.f32.mrf.mxu0  ;;  %v1467_v10 = vpack.c.bf16 %v2837_v58, %v2837_v58 }
 0x27c   : > { %v2002_v23 = vpop.permute.xlu1 %2001  ;;  %v1992_v57 = vpop.permute.xlu0 %1991  ;;  %2374 = vst.msk [vmem:[%s4056_s14 + $0x8] sm:$0xff] %vm2372_vm11, %v4073_v47 }
 0x27d   : > { %2074 = vst.msk [vmem:[#allocation2 + $0x60] sm:$0xf] %vm2049_vm9, %v2002_v23  ;;  %v1741_v50 = vpop.permute.xlu2 %1740  ;;  %v1920_v23 = vpack.c.bf16 %v2904_v36, %v2904_v36 }
 0x27e   : > { %2069 = vst.msk [vmem:[#allocation2 + $0x4c] sm:$0xf] %vm2049_vm9, %v1992_v57 }
 0x282   : > { %1335 = vrot.lane.b32.xlu1 %v1916_v13, %s3071_s22  ;;  %1333 = vrot.lane.b32.xlu0 %v1915_v31, %s3071_s22 }
 0x283   : > { %1547 = vrot.lane.b32.xlu2 %v1461_v63, %s3072_s23 }
 0x284   : > { %v1292_v60 = vpop.permute.xlu1 %1291  ;;  %v1290_v3 = vpop.permute.xlu0 %1289  ;;  %v3016_v4 = vld [vmem:[#allocation2 + $0x60] sm:$0xff] }
 0x285   : > { %1381 = vst.msk [vmem:[#allocation2 + $0x1c] sm:$0xf] %vm1373_vm5, %v1292_v60  ;;  %v3013_v5 = vld [vmem:[#allocation2 + $0x48] sm:$0xff]  ;;  %2997 = vmatmul.msk.bf16.vlgmr.msra.gmra.mxu3 %vm2230_vm10, %v3016_v4  ;;  %v1755_v24 = vpop.permute.xlu2 %1754 }
 0x286   : > { %1380 = vst.msk [vmem:[#allocation2 + $0x18] sm:$0xf] %vm1373_vm5, %v1290_v3  ;;  %2994 = vmatmul.msk.bf16.gmra.mxu2 %vm2230_vm10, %v3013_v5 }
 0x287   : > { %1607 = vst.msk [vmem:[#allocation2 + $0x1c] sm:$0xf] %vm1599_vm7, %v1518_v52 }
 0x28a   : > { %1559 = vrot.lane.b32.xlu1 %v1467_v10, %s3072_s23  ;;  %1549 = vrot.lane.b32.xlu0 %v1462_v12, %s3072_s23 }
 0x28b   : > { %1561 = vrot.lane.b32.xlu2 %v1468_v27, %s3072_s23 }
 0x28c   : > { %v1516_v32 = vpop.permute.xlu1 %1515  ;;  %v1304_v20 = vpop.permute.xlu0 %1303 }
 0x28d   : > { %1606 = vst.msk [vmem:[#allocation2 + $0x18] sm:$0xf] %vm1599_vm7, %v1516_v32  ;;  %v1978_v18 = vpop.permute.xlu2 %1977 }
 0x28e   : > { %1387 = vst.msk [vmem:[#allocation2 + $0x34] sm:$0xf] %vm1373_vm5, %v1304_v20 }
 0x28f   : > { %1831 = vst.msk [vmem:[#allocation2 + $0x18] sm:$0xf] %vm1824_vm8, %v1741_v50 }
 0x292   : > { %1774 = vrot.lane.b32.xlu1 %v1687_v9, %s3073_s24  ;;  %1772 = vrot.lane.b32.xlu0 %v1686_v37, %s3073_s24  ;;  %v4102_v38 = vpop.f32.mrf.mxu0 }
 0x293   : > { %2375 = vst.msk [vmem:[%s4056_s14 + $0x10] sm:$0xff] %vm2372_vm11, %v4102_v38  ;;  %1784 = vrot.lane.b32.xlu2 %v1692_v1, %s3073_s24 }
 0x294   : > { %v1530_v11 = vpop.permute.xlu1 %1529  ;;  %v1528_v33 = vpop.permute.xlu0 %1527 }
 0x295   : > { %1613 = vst.msk [vmem:[#allocation2 + $0x34] sm:$0xf] %vm1599_vm7, %v1530_v11  ;;  %v1320_v41 = vpop.permute.xlu2 %1319 }
 0x296   : > { %1612 = vst.msk [vmem:[#allocation2 + $0x30] sm:$0xf] %vm1599_vm7, %v1528_v33 }
 0x297   : > { %1838 = vst.msk [vmem:[#allocation2 + $0x34] sm:$0xf] %vm1824_vm8, %v1755_v24 }
 0x298   : > { %1395 = vst.msk [vmem:[#allocation2 + $0x54] sm:$0xf] %vm1373_vm5, %v1320_v41 }
 0x29a   : > { %1997 = vrot.lane.b32.xlu1 %v3866_v46, %s3074_s25  ;;  %1786 = vrot.lane.b32.xlu0 %v1693_v16, %s3073_s24  ;;  %v4116_v44 = vpop.f32.mrf.mxu0  ;;  %v1918_v46 = vpack.c.bf16 %v2902_v17, %v2902_v17 }
 0x29b   : > { %2376 = vst.msk [vmem:[%s4056_s14 + $0x18] sm:$0xff] %vm2372_vm11, %v4116_v44  ;;  %1999 = vrot.lane.b32.xlu2 %v3869_v7, %s3074_s25  ;;  %v4126_v51 = vpop.f32.mrf.mxu1  ;;  %v2839_v7 = vld [vmem:[%s3110_s17 + $0x198] sm:$0xff] }
 0x29c   : > { %v1753_v62 = vpop.permute.xlu1 %1752  ;;  %v1743_v49 = vpop.permute.xlu0 %1742  ;;  %2381 = vst.msk [vmem:[%s4056_s14 + $0x40] sm:$0xff] %vm2372_vm11, %v4126_v51  ;;  %v1469_v34 = vpack.c.bf16 %v2839_v7, %v2839_v7 }
 0x29d   : > { %1837 = vst.msk [vmem:[#allocation2 + $0x30] sm:$0xf] %vm1824_vm8, %v1753_v62  ;;  %v1544_v28 = vpop.permute.xlu2 %1543 }
 0x29e   : > { %1832 = vst.msk [vmem:[#allocation2 + $0x1c] sm:$0xf] %vm1824_vm8, %v1743_v49 }
 0x29f   : > { %2062 = vst.msk [vmem:[#allocation2 + $0x30] sm:$0xf] %vm2049_vm9, %v1978_v18 }
 0x2a2   : > { %2011 = vrot.lane.b32.xlu1 %v1918_v46, %s3074_s25  ;;  %2009 = vrot.lane.b32.xlu0 %v1917_v48, %s3074_s25 }
 0x2a3   : > { %1337 = vrot.lane.b32.xlu2 %v1917_v48, %s3071_s22  ;;  %v4138_v31 = vpop.f32.mrf.mxu1 }
 0x2a4   : > { %v1968_v53 = vpop.permute.xlu1 %1967  ;;  %v1966_v13 = vpop.permute.xlu0 %1965  ;;  %2382 = vst.msk [vmem:[%s4056_s14 + $0x48] sm:$0xff] %vm2372_vm11, %v4138_v31 }
 0x2a5   : > { %2057 = vst.msk [vmem:[#allocation2 + $0x1c] sm:$0xf] %vm2049_vm9, %v1968_v53  ;;  %v1558_v26 = vpop.permute.xlu2 %1557 }
 0x2a6   : > { %2056 = vst.msk [vmem:[#allocation2 + $0x18] sm:$0xf] %vm2049_vm9, %v1966_v13 }
 0x2aa   : > { %1339 = vrot.lane.b32.xlu0 %v1918_v46, %s3071_s22  ;;  %1563 = vrot.lane.b32.xlu1 %v1469_v34, %s3072_s23 }
 0x2ab   : > { %1565 = vrot.lane.b32.xlu2 %v1470_v8, %s3072_s23 }
 0x2ac   : > { %v1318_v54 = vpop.permute.xlu1 %1317  ;;  %v1980_v55 = vpop.permute.xlu0 %1979 }
 0x2ad   : > { %1394 = vst.msk [vmem:[#allocation2 + $0x50] sm:$0xf] %vm1373_vm5, %v1318_v54  ;;  %v3007_v59 = vld [vmem:[#allocation2 + $0x18] sm:$0xff]  ;;  %v1781_v42 = vpop.permute.xlu2 %1780 }
 0x2ae   : > { %2063 = vst.msk [vmem:[#allocation2 + $0x34] sm:$0xf] %vm2049_vm9, %v1980_v55  ;;  %2988 = vmatmul.msk.bf16.gmra.mxu0 %vm2230_vm10, %v3007_v59 }
 0x2af   : > { %1620 = vst.msk [vmem:[#allocation2 + $0x50] sm:$0xf] %vm1599_vm7, %v1544_v28 }
 0x2b2   : > { %1788 = vrot.lane.b32.xlu0 %v1694_v19, %s3073_s24  ;;  %1790 = vrot.lane.b32.xlu1 %v1695_v56, %s3073_s24 }
 0x2b3   : > { %2013 = vrot.lane.b32.xlu2 %v1919_v45, %s3074_s25 }
 0x2b4   : > { %v1332_v30 = vpop.permute.xlu1 %1331  ;;  %v1330_v15 = vpop.permute.xlu0 %1329 }
 0x2b5   : > { %1401 = vst.msk [vmem:[#allocation2 + $0x6c] sm:$0xf] %vm1373_vm5, %v1332_v30  ;;  %v3010_v52 = vld [vmem:[#allocation2 + $0x30] sm:$0xff]  ;;  %v1996_v57 = vpop.permute.xlu2 %1995 }
 0x2b6   : > { %1400 = vst.msk [vmem:[#allocation2 + $0x68] sm:$0xf] %vm1373_vm5, %v1330_v15  ;;  %2991 = vmatmul.msk.bf16.gmra.mxu1 %vm2230_vm10, %v3010_v52 }
 0x2b7   : > { %1627 = vst.msk [vmem:[#allocation2 + $0x6c] sm:$0xf] %vm1599_vm7, %v1558_v26 }
 0x2b9   : > { %v4164_v61 = vpop.f32.mrf.mxu2 }
 0x2ba   : > { %2015 = vrot.lane.b32.xlu0 %v1920_v23, %s3074_s25  ;;  %2389 = vst.msk [vmem:[%s4056_s14 + $0x80] sm:$0xff] %vm2372_vm11, %v4164_v61 }
 0x2bc   : > { %v1556_v50 = vpop.permute.xlu1 %1555  ;;  %v1546_v63 = vpop.permute.xlu0 %1545 }
 0x2bd   : > { %1626 = vst.msk [vmem:[#allocation2 + $0x68] sm:$0xf] %vm1599_vm7, %v1556_v50  ;;  %v1306_v58 = vpop.permute.xlu2 %1305 }
 0x2be   : > { %1621 = vst.msk [vmem:[#allocation2 + $0x54] sm:$0xf] %vm1599_vm7, %v1546_v63 }
 0x2bf   : > { %1851 = vst.msk [vmem:[#allocation2 + $0x68] sm:$0xf] %vm1824_vm8, %v1781_v42 }
 0x2c0   : > { %1388 = vst.msk [vmem:[#allocation2 + $0x38] sm:$0xf] %vm1373_vm5, %v1306_v58 }
 0x2c1   : > { %v4173_v0 = vpop.f32.mrf.mxu2 }
 0x2c2   : > { %2390 = vst.msk [vmem:[%s4056_s14 + $0x88] sm:$0xff] %vm2372_vm11, %v4173_v0 }
 0x2c4   : > { %v1771_v60 = vpop.permute.xlu1 %1770  ;;  %v1769_v3 = vpop.permute.xlu0 %1768 }
 0x2c5   : > { %1846 = vst.msk [vmem:[#allocation2 + $0x54] sm:$0xf] %vm1824_vm8, %v1771_v60  ;;  %v1534_v4 = vpop.permute.xlu2 %1533  ;;  %v2406_v60 = vsel %vm2372_vm11, %v4073_v47, 0.0 }
 0x2c6   : > { %1845 = vst.msk [vmem:[#allocation2 + $0x50] sm:$0xf] %vm1824_vm8, %v1769_v3 }
 0x2c7   : > { %2071 = vst.msk [vmem:[#allocation2 + $0x54] sm:$0xf] %vm2049_vm9, %v1996_v57 }
 0x2cc   : > { %v1994_v5 = vpop.permute.xlu1 %1993  ;;  %v1783_v6 = vpop.permute.xlu0 %1782 }
 0x2cd   : > { %2070 = vst.msk [vmem:[#allocation2 + $0x50] sm:$0xf] %vm2049_vm9, %v1994_v5  ;;  %v1982_v10 = vpop.permute.xlu2 %1981  ;;  %v2408_v5 = vsel %vm2372_vm11, %v4102_v38, 0.0 }
 0x2ce   : > { %1852 = vst.msk [vmem:[#allocation2 + $0x6c] sm:$0xf] %vm1824_vm8, %v1783_v6 }
 0x2d2   : > { %v4183_v12 = vpop.f32.mrf.mxu0 }
 0x2d3   : > { %2377 = vst.msk [vmem:[%s4056_s14 + $0x20] sm:$0xff] %vm2372_vm11, %v4183_v12 }
 0x2d4   : > { %v2008_v24 = vpop.permute.xlu1 %2007  ;;  %v2006_v27 = vpop.permute.xlu0 %2005  ;;  %v3014_v35 = vld [vmem:[#allocation2 + $0x50] sm:$0xff] }
 0x2d5   : > { %2077 = vst.msk [vmem:[#allocation2 + $0x6c] sm:$0xf] %vm2049_vm9, %v2008_v24  ;;  %2995 = vmatmul.msk.bf16.gmra.mxu2 %vm2230_vm10, %v3014_v35  ;;  %v1324_v39 = vpop.permute.xlu2 %1323  ;;  %v2410_v24 = vsel %vm2372_vm11, %v4116_v44, 0.0  ;;  %v2412_v35 = vsel %vm2372_vm11, %v4183_v12, 0.0 }
 0x2d6   : > { %2076 = vst.msk [vmem:[#allocation2 + $0x68] sm:$0xf] %vm2049_vm9, %v2006_v27 }
 0x2d7   : > { %1397 = vst.msk [vmem:[#allocation2 + $0x5c] sm:$0xf] %vm1373_vm5, %v1324_v39 }
 0x2da   : > { %v4192_v32 = vpop.f32.mrf.mxu0 }
 0x2db   : > { %2378 = vst.msk [vmem:[%s4056_s14 + $0x28] sm:$0xff] %vm2372_vm11, %v4192_v32  ;;  %v4198_v9 = vpop.f32.mrf.mxu1 }
 0x2dc   : > { %v1532_v20 = vpop.permute.xlu1 %1531  ;;  %v1308_v2 = vpop.permute.xlu0 %1307  ;;  %2383 = vst.msk [vmem:[%s4056_s14 + $0x50] sm:$0xff] %vm2372_vm11, %v4198_v9 }
 0x2dd   : > { %1614 = vst.msk [vmem:[#allocation2 + $0x38] sm:$0xf] %vm1599_vm7, %v1532_v20  ;;  %v3017_v37 = vld [vmem:[#allocation2 + $0x68] sm:$0xff]  ;;  %v1548_v18 = vpop.permute.xlu2 %1547  ;;  %v2414_v20 = vsel %vm2372_vm11, %v4192_v32, 0.0 }
 0x2de   : > { %1389 = vst.msk [vmem:[#allocation2 + $0x3c] sm:$0xf] %vm1373_vm5, %v1308_v2  ;;  %2998 = vmatmul.msk.bf16.gmra.mxu3 %vm2230_vm10, %v3017_v37 }
 0x2df   : > { %1615 = vst.msk [vmem:[#allocation2 + $0x3c] sm:$0xf] %vm1599_vm7, %v1534_v4  ;;  %v2405_v4 = vsel %vm2372_vm11, %v4061_v21, 0.0 }
 0x2e3   : > { %v4207_v11 = vpop.f32.mrf.mxu1 }
 0x2e4   : > { %v1759_v1 = vpop.permute.xlu1 %1758  ;;  %v1757_v40 = vpop.permute.xlu0 %1756  ;;  %2384 = vst.msk [vmem:[%s4056_s14 + $0x58] sm:$0xff] %vm2372_vm11, %v4207_v11 }
 0x2e5   : > { %1840 = vst.msk [vmem:[#allocation2 + $0x3c] sm:$0xf] %vm1824_vm8, %v1759_v1  ;;  %v1562_v33 = vpop.permute.xlu2 %1561 }
 0x2e6   : > { %1839 = vst.msk [vmem:[#allocation2 + $0x38] sm:$0xf] %vm1824_vm8, %v1757_v40 }
 0x2e7   : > { %2064 = vst.msk [vmem:[#allocation2 + $0x38] sm:$0xf] %vm2049_vm9, %v1982_v10  ;;  %v2407_v10 = vadd.f32 %v2406_v60, %v2405_v4 }
 0x2e9   : > { %v2409_v27 = vadd.f32 %v2408_v5, %v2407_v10 }
 0x2eb   : > { %v2411_v39 = vadd.f32 %v2410_v24, %v2409_v27 }
 0x2ec   : > { %v1322_v16 = vpop.permute.xlu1 %1321  ;;  %v1984_v41 = vpop.permute.xlu0 %1983 }
 0x2ed   : > { %1396 = vst.msk [vmem:[#allocation2 + $0x58] sm:$0xf] %vm1373_vm5, %v1322_v16  ;;  %v1785_v17 = vpop.permute.xlu2 %1784  ;;  %v2413_v2 = vadd.f32 %v2412_v35, %v2411_v39 }
 0x2ee   : > { %2065 = vst.msk [vmem:[#allocation2 + $0x3c] sm:$0xf] %vm2049_vm9, %v1984_v41  ;;  %v2420_v41 = vsel %vm2372_vm11, %v4126_v51, 0.0 }
 0x2ef   : > { %1622 = vst.msk [vmem:[#allocation2 + $0x58] sm:$0xf] %vm1599_vm7, %v1548_v18  ;;  %v2415_v1 = vadd.f32 %v2414_v20, %v2413_v2 }
 0x2f4   : > { %v1336_v22 = vpop.permute.xlu1 %1335  ;;  %v1334_v62 = vpop.permute.xlu0 %1333 }
 0x2f5   : > { %1403 = vst.msk [vmem:[#allocation2 + $0x74] sm:$0xf] %vm1373_vm5, %v1336_v22  ;;  %v3011_v49 = vld [vmem:[#allocation2 + $0x38] sm:$0xff]  ;;  %v2000_v46 = vpop.permute.xlu2 %1999 }
 0x2f6   : > { %1402 = vst.msk [vmem:[#allocation2 + $0x70] sm:$0xf] %vm1373_vm5, %v1334_v62  ;;  %2992 = vmatmul.msk.bf16.gmra.mxu1 %vm2230_vm10, %v3011_v49  ;;  %v2422_v62 = vsel %vm2372_vm11, %v4138_v31, 0.0 }
 0x2f7   : > { %1629 = vst.msk [vmem:[#allocation2 + $0x74] sm:$0xf] %vm1599_vm7, %v1562_v33 }
 0x2fc   : > { %v1560_v48 = vpop.permute.xlu1 %1559  ;;  %v1550_v28 = vpop.permute.xlu0 %1549 }
 0x2fd   : > { %1628 = vst.msk [vmem:[#allocation2 + $0x70] sm:$0xf] %vm1599_vm7, %v1560_v48  ;;  %v1338_v7 = vpop.permute.xlu2 %1337 }
 0x2fe   : > { %1623 = vst.msk [vmem:[#allocation2 + $0x5c] sm:$0xf] %vm1599_vm7, %v1550_v28 }
 0x2ff   : > { %1853 = vst.msk [vmem:[#allocation2 + $0x70] sm:$0xf] %vm1824_vm8, %v1785_v17 }
 0x300   : > { %1404 = vst.msk [vmem:[#allocation2 + $0x78] sm:$0xf] %vm1373_vm5, %v1338_v7  ;;  %v2426_v7 = vsel %vm2372_vm11, %v4207_v11, 0.0 }
 0x304   : > { %v1775_v53 = vpop.permute.xlu1 %1774  ;;  %v1773_v13 = vpop.permute.xlu0 %1772 }
 0x305   : > { %1848 = vst.msk [vmem:[#allocation2 + $0x5c] sm:$0xf] %vm1824_vm8, %v1775_v53  ;;  %v1566_v19 = vpop.permute.xlu2 %1565 }
 0x306   : > { %1847 = vst.msk [vmem:[#allocation2 + $0x58] sm:$0xf] %vm1824_vm8, %v1773_v13 }
 0x307   : > { %2073 = vst.msk [vmem:[#allocation2 + $0x5c] sm:$0xf] %vm2049_vm9, %v2000_v46  ;;  %v2424_v46 = vsel %vm2372_vm11, %v4198_v9, 0.0 }
 0x308   : > { %v4228_v34 = vpop.f32.mrf.mxu3 }
 0x309   : > { %v4230_v26 = vpop.f32.mrf.mxu2  ;;  %2397 = vst.msk [vmem:[%s4056_s14 + $0xc0] sm:$0xff] %vm2372_vm11, %v4228_v34 }
 0x30a   : > { %2391 = vst.msk [vmem:[%s4056_s14 + $0x90] sm:$0xff] %vm2372_vm11, %v4230_v26 }
 0x30c   : > { %v1998_v29 = vpop.permute.xlu1 %1997  ;;  %v1787_v8 = vpop.permute.xlu0 %1786 }
 0x30d   : > { %2072 = vst.msk [vmem:[#allocation2 + $0x58] sm:$0xf] %vm2049_vm9, %v1998_v29  ;;  %v2014_v45 = vpop.permute.xlu2 %2013 }
 0x30e   : > { %1854 = vst.msk [vmem:[#allocation2 + $0x74] sm:$0xf] %vm1824_vm8, %v1787_v8 }
 0x310   : > { %v4240_v43 = vpop.f32.mrf.mxu3 }
 0x311   : > { %v4242_v25 = vpop.f32.mrf.mxu2  ;;  %2398 = vst.msk [vmem:[%s4056_s14 + $0xc8] sm:$0xff] %vm2372_vm11, %v4240_v43 }
 0x312   : > { %2392 = vst.msk [vmem:[%s4056_s14 + $0x98] sm:$0xff] %vm2372_vm11, %v4242_v25  ;;  %v2442_v60 = vsel %vm2372_vm11, %v4242_v25, 0.0 }
 0x314   : > { %v2012_v54 = vpop.permute.xlu1 %2011  ;;  %v2010_v55 = vpop.permute.xlu0 %2009  ;;  %v3015_v59 = vld [vmem:[#allocation2 + $0x58] sm:$0xff] }
 0x315   : > { %2079 = vst.msk [vmem:[#allocation2 + $0x74] sm:$0xf] %vm2049_vm9, %v2012_v54  ;;  %2996 = vmatmul.msk.bf16.gmra.mxu2 %vm2230_vm10, %v3015_v59 }
 0x316   : > { %2078 = vst.msk [vmem:[#allocation2 + $0x70] sm:$0xf] %vm2049_vm9, %v2010_v55 }
 0x31c   : > { %v1340_v56 = vpop.permute.xlu0 %1339  ;;  %v1564_v42 = vpop.permute.xlu1 %1563 }
 0x31d   : > { %1405 = vst.msk [vmem:[#allocation2 + $0x7c] sm:$0xf] %vm1373_vm5, %v1340_v56  ;;  %v3018_v14 = vld [vmem:[#allocation2 + $0x70] sm:$0xff] }
 0x31e   : > { %1630 = vst.msk [vmem:[#allocation2 + $0x78] sm:$0xf] %vm1599_vm7, %v1564_v42  ;;  %2999 = vmatmul.msk.bf16.gmra.mxu3 %vm2230_vm10, %v3018_v14  ;;  %v2436_v42 = vsel %vm2372_vm11, %v4164_v61, 0.0 }
 0x31f   : > { %1631 = vst.msk [vmem:[#allocation2 + $0x7c] sm:$0xf] %vm1599_vm7, %v1566_v19 }
 0x324   : > { %v1789_v36 = vpop.permute.xlu0 %1788  ;;  %v1791_v30 = vpop.permute.xlu1 %1790 }
 0x325   : > { %1855 = vst.msk [vmem:[#allocation2 + $0x78] sm:$0xf] %vm1824_vm8, %v1789_v36 }
 0x326   : > { %1856 = vst.msk [vmem:[#allocation2 + $0x7c] sm:$0xf] %vm1824_vm8, %v1791_v30  ;;  %v2440_v30 = vsel %vm2372_vm11, %v4230_v26, 0.0 }
 0x327   : > { %2080 = vst.msk [vmem:[#allocation2 + $0x78] sm:$0xf] %vm2049_vm9, %v2014_v45  ;;  %v2438_v45 = vsel %vm2372_vm11, %v4173_v0, 0.0 }
 0x32b   : > { %v4260_v52 = vpop.f32.mrf.mxu0 }
 0x32c   : > { %v2016_v15 = vpop.permute.xlu0 %2015  ;;  %2379 = vst.msk [vmem:[%s4056_s14 + $0x30] sm:$0xff] %vm2372_vm11, %v4260_v52  ;;  %v2416_v37 = vsel %vm2372_vm11, %v4260_v52, 0.0 }
 0x32d   : > { %2081 = vst.msk [vmem:[#allocation2 + $0x7c] sm:$0xf] %vm2049_vm9, %v2016_v15  ;;  %v2417_v33 = vadd.f32 %v2416_v37, %v2415_v1 }
 0x333   : > { %v4266_v23 = vpop.f32.mrf.mxu0  ;;  %v4268_v57 = vpop.f32.mrf.mxu1 }
 0x334   : > { %v3019_v50 = vld [vmem:[#allocation2 + $0x78] sm:$0xff]  ;;  %2380 = vst.msk [vmem:[%s4056_s14 + $0x38] sm:$0xff] %vm2372_vm11, %v4266_v23  ;;  %v2418_v40 = vsel %vm2372_vm11, %v4266_v23, 0.0  ;;  %v2428_v13 = vsel %vm2372_vm11, %v4268_v57, 0.0 }
 0x335   : > { %2385 = vst.msk [vmem:[%s4056_s14 + $0x60] sm:$0xff] %vm2372_vm11, %v4268_v57  ;;  %3000 = vmatmul.msk.bf16.gmra.mxu3 %vm2230_vm10, %v3019_v50  ;;  %v2419_v16 = vadd.f32 %v2418_v40, %v2417_v33  ;;  %v2452_v40 = vsel %vm2372_vm11, %v4228_v34, 0.0 }
 0x337   : > { %v2421_v17 = vadd.f32 %v2420_v41, %v2419_v16  ;;  %v2454_v41 = vsel %vm2372_vm11, %v4240_v43, 0.0 }
 0x339   : > { %v2423_v49 = vadd.f32 %v2422_v62, %v2421_v17 }
 0x33b   : > { %v4277_v63 = vpop.f32.mrf.mxu1  ;;  %v2425_v48 = vadd.f32 %v2424_v46, %v2423_v49  ;;  %v3075_v46 = vmov 256.0  }
 0x33c   : > { %2386 = vst.msk [vmem:[%s4056_s14 + $0x68] sm:$0xff] %vm2372_vm11, %v4277_v63  ;;  %v2430_v8 = vsel %vm2372_vm11, %v4277_v63, 0.0  ;;  %3057 = vrcp.f32 %v3075_v46 }
 0x33d   : > { %v2427_v53 = vadd.f32 %v2426_v7, %v2425_v48 }
 0x33f   : > { %v2429_v29 = vadd.f32 %v2428_v13, %v2427_v53 }
 0x341   : > { %v2431_v55 = vadd.f32 %v2430_v8, %v2429_v29 }
 0x342   : > { %v3058_v29 = vpop.eup %3057 }
 0x343   : > { %vm2479_vm12 = vweird.f32 %v3058_v29 }
 0x358   : > { %v4282_v58 = vpop.f32.mrf.mxu2 }
 0x359   : > { %2393 = vst.msk [vmem:[%s4056_s14 + $0xa0] sm:$0xff] %vm2372_vm11, %v4282_v58  ;;  %v2444_v5 = vsel %vm2372_vm11, %v4282_v58, 0.0 }
 0x360   : > { %v4289_v3 = vpop.f32.mrf.mxu2 }
 0x361   : > { %2394 = vst.msk [vmem:[%s4056_s14 + $0xa8] sm:$0xff] %vm2372_vm11, %v4289_v3  ;;  %v4298_v6 = vpop.f32.mrf.mxu3  ;;  %v2446_v27 = vsel %vm2372_vm11, %v4289_v3, 0.0 }
 0x362   : > { %2399 = vst.msk [vmem:[%s4056_s14 + $0xd0] sm:$0xff] %vm2372_vm11, %v4298_v6  ;;  %v2456_v62 = vsel %vm2372_vm11, %v4298_v6, 0.0 }
 0x369   : > { %v4311_v18 = vpop.f32.mrf.mxu3 }
 0x36a   : > { %2400 = vst.msk [vmem:[%s4056_s14 + $0xd8] sm:$0xff] %vm2372_vm11, %v4311_v18  ;;  %v2458_v48 = vsel %vm2372_vm11, %v4311_v18, 0.0 }
 0x373   : > { %v4320_v22 = vpop.f32.mrf.mxu1 }
 0x374   : > { %2387 = vst.msk [vmem:[%s4056_s14 + $0x70] sm:$0xff] %vm2372_vm11, %v4320_v22  ;;  %v2432_v54 = vsel %vm2372_vm11, %v4320_v22, 0.0 }
 0x375   : > { %v2433_v19 = vadd.f32 %v2432_v54, %v2431_v55 }
 0x37b   : > { %v4329_v28 = vpop.f32.mrf.mxu1 }
 0x37c   : > { %2388 = vst.msk [vmem:[%s4056_s14 + $0x78] sm:$0xff] %vm2372_vm11, %v4329_v28  ;;  %v2434_v59 = vsel %vm2372_vm11, %v4329_v28, 0.0 }
 0x37d   : > { %v2435_v56 = vadd.f32 %v2434_v59, %v2433_v19  ;;  %v2475_v59 = vmul.f32 256.0, %v3058_v29 }
 0x37f   : > { %v2437_v14 = vadd.f32 %v2436_v42, %v2435_v56 }
 0x381   : > { %v2439_v36 = vadd.f32 %v2438_v45, %v2437_v14  ;;  %v2476_v45 = vsub.f32 1.0, %v2475_v59 }
 0x383   : > { %v2441_v15 = vadd.f32 %v2440_v30, %v2439_v36 }
 0x385   : > { %v2443_v4 = vadd.f32 %v2442_v60, %v2441_v15  ;;  %v2477_v15 = vmul.f32 %v3058_v29, %v2476_v45 }
 0x387   : > { %v2445_v10 = vadd.f32 %v2444_v5, %v2443_v4  ;;  %v2478_v5 = vadd.f32 %v3058_v29, %v2477_v15 }
 0x389   : > { %v2447_v20 = vadd.f32 %v2446_v27, %v2445_v10 }
 0x398   : > { %v4350_v50 = vpop.f32.mrf.mxu2 }
 0x399   : > { %2395 = vst.msk [vmem:[%s4056_s14 + $0xb0] sm:$0xff] %vm2372_vm11, %v4350_v50  ;;  %v2448_v35 = vsel %vm2372_vm11, %v4350_v50, 0.0 }
 0x39a   : > { %v2449_v37 = vadd.f32 %v2448_v35, %v2447_v20  ;;  %v2480_v35 = vsel %vm2479_vm12, %v3058_v29, %v2478_v5 }
 0x3a0   : > { %v4359_v24 = vpop.f32.mrf.mxu2 }
 0x3a1   : > { %2396 = vst.msk [vmem:[%s4056_s14 + $0xb8] sm:$0xff] %vm2372_vm11, %v4359_v24  ;;  %v2362_v39 = vpop.f32.mrf.mxu3  ;;  %v2450_v2 = vsel %vm2372_vm11, %v4359_v24, 0.0 }
 0x3a2   : > { %2401 = vst.msk [vmem:[%s4056_s14 + $0xe0] sm:$0xff] %vm2372_vm11, %v2362_v39  ;;  %v2451_v1 = vadd.f32 %v2450_v2, %v2449_v37  ;;  %v2460_v13 = vsel %vm2372_vm11, %v2362_v39, 0.0 }
 0x3a4   : > { %v2453_v16 = vadd.f32 %v2452_v40, %v2451_v1 }
 0x3a6   : > { %v2455_v17 = vadd.f32 %v2454_v41, %v2453_v16 }
 0x3a8   : > { %v2457_v49 = vadd.f32 %v2456_v62, %v2455_v17 }
 0x3a9   : > { %v2364_v33 = vpop.f32.mrf.mxu3 }
 0x3aa   : > { %2402 = vst.msk [vmem:[%s4056_s14 + $0xe8] sm:$0xff] %vm2372_vm11, %v2364_v33  ;;  %v2459_v7 = vadd.f32 %v2458_v48, %v2457_v49  ;;  %v2462_v54 = vsel %vm2372_vm11, %v2364_v33, 0.0 }
 0x3ac   : > { %v2461_v8 = vadd.f32 %v2460_v13, %v2459_v7 }
 0x3ae   : > { %v2463_v19 = vadd.f32 %v2462_v54, %v2461_v8 }
 0x3b8   : > { %v2367_v53 = vpop.f32.mrf.mxu3 }
 0x3b9   : > { %2403 = vst.msk [vmem:[%s4056_s14 + $0xf0] sm:$0xff] %vm2372_vm11, %v2367_v53  ;;  %v2464_v55 = vsel %vm2372_vm11, %v2367_v53, 0.0 }
 0x3ba   : > { %v2465_v56 = vadd.f32 %v2464_v55, %v2463_v19 }
 0x3c0   : > { %v2369_v42 = vpop.f32.mrf.mxu3 }
 0x3c1   : > { %2404 = vst.msk [vmem:[%s4056_s14 + $0xf8] sm:$0xff] %vm2372_vm11, %v2369_v42  ;;  %v2466_v14 = vsel %vm2372_vm11, %v2369_v42, 0.0 }
 0x3c2   : > { %v2467_v36 = vadd.f32 %v2466_v14, %v2465_v56 }
 0x3c4   : > { %v2468_v30 = vrot.slane %v2467_v36, 4 }
 0x3c6   : > { %v2469_v60 = vadd.f32 %v2468_v30, %v2467_v36 }
 0x3c8   : > { %v2470_v4 = vrot.slane %v2469_v60, 2 }
 0x3ca   : > { %v2471_v10 = vadd.f32 %v2470_v4, %v2469_v60 }
 0x3cc   : > { %v2472_v27 = vrot.slane %v2471_v10, 1 }
 0x3ce   : > { %v2473_v20 = vadd.f32 %v2472_v27, %v2471_v10 }
 0x3d0   : > { %v4396_v2 = vmul.f32 %v2480_v35, %v2473_v20 }
 0x3d2   : > { %2483 = vst.msk [vmem:[%s4394_s18] sm:$0x1] %vm2482_vm13, %v4396_v2  ;;  %v4402_v37 = vsub.f32 %v2362_v39, %v4396_v2  ;;  %v4405_v1 = vsub.f32 %v2364_v33, %v4396_v2  ;;  %v4408_v40 = vsub.f32 %v2367_v53, %v4396_v2  ;;  %v4411_v16 = vsub.f32 %v2369_v42, %v4396_v2 }
 0x3d3   : > { %v2484_v41 = vsub.f32 %v4061_v21, %v4396_v2  ;;  %v2485_v17 = vsub.f32 %v4073_v47, %v4396_v2  ;;  %v2486_v62 = vsub.f32 %v4102_v38, %v4396_v2  ;;  %v2487_v39 = vsub.f32 %v4116_v44, %v4396_v2 }
 0x3d4   : > { %v2488_v46 = vsub.f32 %v4183_v12, %v4396_v2  ;;  %v2489_v7 = vsub.f32 %v4192_v32, %v4396_v2  ;;  %v2490_v38 = vsub.f32 %v4260_v52, %v4396_v2  ;;  %v2491_v12 = vsub.f32 %v4266_v23, %v4396_v2 }
 0x3d5   : > { %v2516_v33 = vmul.f32 %v2484_v41, %v2484_v41  ;;  %v2517_v49 = vmul.f32 %v2485_v17, %v2485_v17  ;;  %v2518_v48 = vmul.f32 %v2486_v62, %v2486_v62  ;;  %v2519_v53 = vmul.f32 %v2487_v39, %v2487_v39 }
 0x3d6   : > { %v2520_v29 = vmul.f32 %v2488_v46, %v2488_v46  ;;  %v2521_v54 = vmul.f32 %v2489_v7, %v2489_v7  ;;  %v2492_v59 = vsub.f32 %v4126_v51, %v4396_v2  ;;  %v2522_v19 = vmul.f32 %v2490_v38, %v2490_v38 }
 0x3d7   : > { %v2548_v21 = vsel %vm2372_vm11, %v2516_v33, 0.0  ;;  %v2549_v47 = vsel %vm2372_vm11, %v2517_v49, 0.0  ;;  %v2551_v44 = vsel %vm2372_vm11, %v2518_v48, 0.0  ;;  %v2553_v55 = vsel %vm2372_vm11, %v2519_v53, 0.0 }
 0x3d8   : > { %v2550_v13 = vadd.f32 %v2549_v47, %v2548_v21  ;;  %v2555_v56 = vsel %vm2372_vm11, %v2520_v29, 0.0  ;;  %v2493_v52 = vsub.f32 %v4138_v31, %v4396_v2  ;;  %v2523_v14 = vmul.f32 %v2491_v12, %v2491_v12 }
 0x3d9   : > { %v2557_v45 = vsel %vm2372_vm11, %v2521_v54, 0.0  ;;  %v2494_v23 = vsub.f32 %v4198_v9, %v4396_v2  ;;  %v2524_v30 = vmul.f32 %v2492_v59, %v2492_v59  ;;  %v2559_v15 = vsel %vm2372_vm11, %v2522_v19, 0.0 }
 0x3da   : > { %v2552_v8 = vadd.f32 %v2551_v44, %v2550_v13  ;;  %v2495_v51 = vsub.f32 %v4207_v11, %v4396_v2  ;;  %v2525_v4 = vmul.f32 %v2493_v52, %v2493_v52  ;;  %v2561_v5 = vsel %vm2372_vm11, %v2523_v14, 0.0 }
 0x3db   : > { %v2496_v31 = vsub.f32 %v4268_v57, %v4396_v2  ;;  %v2526_v27 = vmul.f32 %v2494_v23, %v2494_v23  ;;  %v2563_v35 = vsel %vm2372_vm11, %v2524_v30, 0.0  ;;  %v2497_v9 = vsub.f32 %v4277_v63, %v4396_v2 }
 0x3dc   : > { %v2554_v32 = vadd.f32 %v2553_v55, %v2552_v8  ;;  %v2527_v41 = vmul.f32 %v2495_v51, %v2495_v51  ;;  %v2565_v17 = vsel %vm2372_vm11, %v2525_v4, 0.0  ;;  %v2498_v11 = vsub.f32 %v4320_v22, %v4396_v2 }
 0x3dd   : > { %v2528_v39 = vmul.f32 %v2496_v31, %v2496_v31  ;;  %v2567_v33 = vsel %vm2372_vm11, %v2526_v27, 0.0  ;;  %v2499_v57 = vsub.f32 %v4329_v28, %v4396_v2  ;;  %v2529_v46 = vmul.f32 %v2497_v9, %v2497_v9 }
 0x3de   : > { %v2556_v42 = vadd.f32 %v2555_v56, %v2554_v32  ;;  %v2569_v48 = vsel %vm2372_vm11, %v2527_v41, 0.0  ;;  %v2500_v63 = vsub.f32 %v4164_v61, %v4396_v2  ;;  %v2530_v53 = vmul.f32 %v2498_v11, %v2498_v11 }
 0x3df   : > { %v2571_v21 = vsel %vm2372_vm11, %v2528_v39, 0.0  ;;  %v2501_v22 = vsub.f32 %v4173_v0, %v4396_v2  ;;  %v2531_v13 = vmul.f32 %v2499_v57, %v2499_v57  ;;  %v2573_v38 = vsel %vm2372_vm11, %v2529_v46, 0.0 }
 0x3e0   : > { %v2558_v36 = vadd.f32 %v2557_v45, %v2556_v42  ;;  %v2502_v28 = vsub.f32 %v4230_v26, %v4396_v2  ;;  %v2532_v44 = vmul.f32 %v2500_v63, %v2500_v63  ;;  %v2575_v8 = vsel %vm2372_vm11, %v2530_v53, 0.0 }
 0x3e1   : > { %v2503_v61 = vsub.f32 %v4242_v25, %v4396_v2  ;;  %v2533_v54 = vmul.f32 %v2501_v22, %v2501_v22  ;;  %v2577_v55 = vsel %vm2372_vm11, %v2531_v13, 0.0  ;;  %v2504_v0 = vsub.f32 %v4282_v58, %v4396_v2 }
 0x3e2   : > { %v2560_v60 = vadd.f32 %v2559_v15, %v2558_v36  ;;  %v2534_v59 = vmul.f32 %v2502_v28, %v2502_v28  ;;  %v2579_v19 = vsel %vm2372_vm11, %v2532_v44, 0.0  ;;  %v2505_v26 = vsub.f32 %v4289_v3, %v4396_v2 }
 0x3e3   : > { %v2535_v42 = vmul.f32 %v2503_v61, %v2503_v61  ;;  %v2581_v52 = vsel %vm2372_vm11, %v2533_v54, 0.0  ;;  %v2506_v25 = vsub.f32 %v4350_v50, %v4396_v2  ;;  %v2536_v45 = vmul.f32 %v2504_v0, %v2504_v0 }
 0x3e4   : > { %v2562_v10 = vadd.f32 %v2561_v5, %v2560_v60  ;;  %v2583_v36 = vsel %vm2372_vm11, %v2534_v59, 0.0  ;;  %v2507_v58 = vsub.f32 %v4359_v24, %v4396_v2  ;;  %v2537_v30 = vmul.f32 %v2505_v26, %v2505_v26 }
 0x3e5   : > { %v2585_v15 = vsel %vm2372_vm11, %v2535_v42, 0.0  ;;  %v2508_v3 = vsub.f32 %v4228_v34, %v4396_v2  ;;  %v2538_v51 = vmul.f32 %v2506_v25, %v2506_v25  ;;  %v2587_v4 = vsel %vm2372_vm11, %v2536_v45, 0.0 }
 0x3e6   : > { %v2564_v20 = vadd.f32 %v2563_v35, %v2562_v10  ;;  %v2509_v50 = vsub.f32 %v4240_v43, %v4396_v2  ;;  %v2539_v10 = vmul.f32 %v2507_v58, %v2507_v58  ;;  %v2589_v31 = vsel %vm2372_vm11, %v2537_v30, 0.0 }
 0x3e7   : > { %v2510_v24 = vsub.f32 %v4298_v6, %v4396_v2  ;;  %v2540_v35 = vmul.f32 %v2508_v3, %v2508_v3  ;;  %v2511_v34 = vsub.f32 %v4311_v18, %v4396_v2  ;;  %v2544_v6 = vmul.f32 %v4402_v37, %v4402_v37 }
 0x3e8   : > { %v2566_v62 = vadd.f32 %v2565_v17, %v2564_v20  ;;  %v2591_v20 = vsel %vm2372_vm11, %v2538_v51, 0.0  ;;  %v2541_v41 = vmul.f32 %v2509_v50, %v2509_v50  ;;  %v2593_v17 = vsel %vm2372_vm11, %v2539_v10, 0.0 }
 0x3e9   : > { %v2542_v11 = vmul.f32 %v2510_v24, %v2510_v24  ;;  %v2595_v43 = vsel %vm2372_vm11, %v2540_v35, 0.0  ;;  %v2545_v18 = vmul.f32 %v4405_v1, %v4405_v1  ;;  %v2546_v63 = vmul.f32 %v4408_v40, %v4408_v40 }
 0x3ea   : > { %v2568_v49 = vadd.f32 %v2567_v33, %v2566_v62  ;;  %v2543_v33 = vmul.f32 %v2511_v34, %v2511_v34  ;;  %v2603_v53 = vsel %vm2372_vm11, %v2544_v6, 0.0 }
 0x3eb   : > { %v2599_v46 = vsel %vm2372_vm11, %v2542_v11, 0.0  ;;  %v2605_v37 = vsel %vm2372_vm11, %v2545_v18, 0.0  ;;  %v2607_v13 = vsel %vm2372_vm11, %v2546_v63, 0.0 }
 0x3ec   : > { %v2570_v7 = vadd.f32 %v2569_v48, %v2568_v49  ;;  %v2597_v49 = vsel %vm2372_vm11, %v2541_v41, 0.0  ;;  %v2601_v2 = vsel %vm2372_vm11, %v2543_v33, 0.0 }
 0x3ee   : > { %v2572_v47 = vadd.f32 %v2571_v21, %v2570_v7 }
 0x3f0   : > { %v2574_v29 = vadd.f32 %v2573_v38, %v2572_v47  ;;  %v2547_v47 = vmul.f32 %v4411_v16, %v4411_v16 }
 0x3f2   : > { %v2576_v12 = vadd.f32 %v2575_v8, %v2574_v29  ;;  %v2609_v1 = vsel %vm2372_vm11, %v2547_v47, 0.0 }
 0x3f4   : > { %v2578_v32 = vadd.f32 %v2577_v55, %v2576_v12 }
 0x3f6   : > { %v2580_v56 = vadd.f32 %v2579_v19, %v2578_v32 }
 0x3f8   : > { %v2582_v14 = vadd.f32 %v2581_v52, %v2580_v56 }
 0x3fa   : > { %v2584_v23 = vadd.f32 %v2583_v36, %v2582_v14 }
 0x3fc   : > { %v2586_v60 = vadd.f32 %v2585_v15, %v2584_v23 }
 0x3fe   : > { %v2588_v5 = vadd.f32 %v2587_v4, %v2586_v60 }
 0x400   : > { %v2590_v27 = vadd.f32 %v2589_v31, %v2588_v5 }
 0x402   : > { %v2592_v9 = vadd.f32 %v2591_v20, %v2590_v27 }
 0x404   : > { %v2594_v62 = vadd.f32 %v2593_v17, %v2592_v9 }
 0x406   : > { %v2596_v39 = vadd.f32 %v2595_v43, %v2594_v62 }
 0x408   : > { %v2598_v57 = vadd.f32 %v2597_v49, %v2596_v39 }
 0x40a   : > { %v2600_v48 = vadd.f32 %v2599_v46, %v2598_v57 }
 0x40c   : > { %v2602_v7 = vadd.f32 %v2601_v2, %v2600_v48 }
 0x40e   : > { %v2604_v21 = vadd.f32 %v2603_v53, %v2602_v7 }
 0x410   : > { %v2606_v22 = vadd.f32 %v2605_v37, %v2604_v21 }
 0x412   : > { %v2608_v38 = vadd.f32 %v2607_v13, %v2606_v22 }
 0x414   : > { %v2610_v29 = vadd.f32 %v2609_v1, %v2608_v38 }
 0x416   : > { %v2611_v28 = vrot.slane %v2610_v29, 4 }
 0x418   : > { %v2612_v44 = vadd.f32 %v2611_v28, %v2610_v29 }
 0x41a   : > { %v2613_v8 = vrot.slane %v2612_v44, 2 }
 0x41c   : > { %v2614_v40 = vadd.f32 %v2613_v8, %v2612_v44 }
 0x41e   : > { %v2615_v12 = vrot.slane %v2614_v40, 1 }
 0x420   : > { %v2616_v61 = vadd.f32 %v2615_v12, %v2614_v40 }
 0x422   : > { %2617 = vst.msk [vmem:[%s4394_s18 + $0x1] sm:$0x1] %vm2482_vm13, %v2616_v61 }
 0x423 PF: > { %s14_s12 = sadd.s32 1, %s3065_s12  }
 0x424   : > { %p11_p4 = scmp.ge.s32.totalorder %s14_s12, 4  }
 0x426   :  { %13 = sbr.rel (!%p11_p4) target bundleno = 1 (0x1), region = 72 }

// kernel: basic_block_forward.4
= control target key start
LH: loop header
LB: loop body
LE: loop exit
PB: predicated region body
PF: predicated region fallthrough
CT: control target
= control target key end

     0   :  { %s5003_s18 = smov 0   ;;  %s7183_s0 = inlined_call_operand.vmem [shape: f32[2,256,8], index: 0, kind: input, shape index: {}]   ;;  %s7184_s1 = inlined_call_operand.vmem [shape: f32[1,8], index: 1, kind: input, shape index: {}]   ;;  %s7185_s2 = inlined_call_operand.vmem [shape: f32[1,8], index: 2, kind: input, shape index: {}]   ;;  %s7186_s3 = inlined_call_operand.vmem [shape: bf16[72,8], index: 3, kind: input, shape index: {}]   ;;  %s7187_s4 = inlined_call_operand.vmem [shape: f32[2,256,8], index: 4, kind: output, shape index: {0}]   ;;  %s7188_s5 = inlined_call_operand.vmem [shape: f32[2,2,8], index: 5, kind: output, shape index: {1}]  }
   0x1 LB: > { %s4736_s19 = sadd.s32 4294967295, %s4961_s18   ;;  %p4740_p0 = scmp.ge.s32.totalorder %s4961_s18, 1  ;;  %s4961_s18 = sphi %s5003_s18, %s16_s18  }
   0x2   : > { %p190_p1 = scmp.lt.s32.totalorder %s4961_s18, 3 }
   0x4   : > { %p191_p2 = pnand %p4740_p0, %p190_p1 }
   0x5   : > { %p222_p3 = scmp.lt.s32.totalorder (!%p191_p2), %s4736_s19, 1  ;;  %s4964_s28 = smov (!%p191_p2), 8  }
   0x6   : > { %194 = sbr.rel (%p191_p2) target bundleno = 1134 (0x46e), region = 36  ;;  %s4965_s8 = smov (!%p191_p2), 16  }
   0x7   : > { %s4966_s9 = smov (!%p191_p2), 24   ;;  %s4967_s14 = smov (!%p191_p2), 32  }
   0x8   : > { %s4968_s15 = smov (!%p191_p2), 40   ;;  %s4969_s16 = smov (!%p191_p2), 48  }
   0x9   : > { %s4970_s17 = smov (!%p191_p2), 64   ;;  %s4971_s20 = smov (!%p191_p2), 56  }
   0xb   : > { %vm373_vm0 = vcmask 60416   ;;  %vm376_vm1 = vcmask 57344   ;;  %vm383_vm2 = vsmask.f32 256  ;;  %v4963_v0 = vmov 0   ;;  %s7202_s19 = smov (!%p222_p3, %s4736_s19), 1 }
   0xc   : > { %375 = vst.msk [vmem:[#allocation2 + $0x4] sm:$0xf] %vm373_vm0, %v4963_v0  ;;  %vm5015_vm3 = vmand %vm376_vm1, %vm383_vm2  ;;  %vm439_vm4 = vsmask.f32 7938  ;;  %v5027_v2 = vld [vmem:[%s7184_s1] ss:$0 sm:$0xff] }
   0xd   : > { %377 = vst.msk [vmem:[#allocation2 + $0x8] sm:$0x1] %vm376_vm1, %v4963_v0  ;;  %v388_v3 = vld [vmem:[#allocation2 + $0xc] sm:$0x1]  ;;  %s4892_s22 = sshll.u32 %s7202_s19, 8  ;;  %vm5040_vm5 = vmand %vm376_vm1, %vm439_vm4  ;;  %vm1688_vm12 = vcmask 1042432  }
   0xe   : > { %374 = vst.msk [vmem:[#allocation2] sm:$0xf] %vm373_vm0, %v4963_v0  ;;  %v5034_v4 = vld [vmem:[%s7185_s2] ss:$0 sm:$0xff]  ;;  %v389_v5 = vsel %vm5015_vm3, 0, %v388_v3  ;;  %s5049_s27 = scalar_lea.vmem %s7183_s0, %s4892_s22  ;;  %vm5088_vm9 = vmand %vm373_vm0, %vm439_vm4  ;;  %vm1689_vm13 = vcmask 1046532  }
   0xf   : > { %379 = vst.msk [vmem:[#allocation2 + $0xcc] sm:$0xf] %vm373_vm0, %v4963_v0  ;;  %v394_v7 = vld [vmem:[#allocation2 + $0x24] sm:$0x1]  ;;  %v444_v8 = vld [vmem:[#allocation2 + $0x14] sm:$0x1]  ;;  %vm5581_vm14 = vmor %vm1688_vm12, %vm1689_vm13 }
  0x10   : > { %380 = vst.msk [vmem:[#allocation2 + $0xd0] sm:$0xf] %vm373_vm0, %v4963_v0  ;;  %v237_v10 = vld [vmem:[%s5049_s27] sm:$0xff]  ;;  %v238_v11 = vld [vmem:[%s5049_s27 + $0x8] sm:$0xff]  ;;  %v395_v12 = vsel %vm5015_vm3, 0, %v394_v7  ;;  %v445_v13 = vsel %vm5040_vm5, 0, %v444_v8 }
  0x11   : > { %381 = vst.msk [vmem:[#allocation2 + $0xd4] sm:$0x1] %vm376_vm1, %v4963_v0  ;;  %vm1076_vm6 = vsmask.f32 3328  ;;  %vm1077_vm7 = vsmask.f32 7440  ;;  %v273_v17 = vmul.f32 %v5027_v2, %v237_v10  ;;  %v274_v18 = vmul.f32 %v5027_v2, %v238_v11 }
  0x12   : > { %390 = vst [vmem:[#allocation2 + $0xc] sm:$0x1] %v389_v5  ;;  %v241_v19 = vld [vmem:[%s5049_s27 + $0x20] sm:$0xff]  ;;  %v242_v20 = vld [vmem:[%s5049_s27 + $0x28] sm:$0xff]  ;;  %vm527_vm8 = vsmask.f32 4368  ;;  %vm5094_vm10 = vmor %vm1076_vm6, %vm1077_vm7 }
  0x13   : > { %v1029_v9 = vld [vmem:[#allocation2 + $0x4] sm:$0xf]  ;;  %v277_v23 = vmul.f32 %v5027_v2, %v241_v19  ;;  %v278_v24 = vmul.f32 %v5027_v2, %v242_v20  ;;  %396 = vst [vmem:[#allocation2 + $0x24] sm:$0x1] %v395_v12  ;;  %v243_v25 = vld [vmem:[%s5049_s27 + $0x30] sm:$0xff]  ;;  %v309_v29 = vadd.f32 %v5034_v4, %v273_v17  ;;  %v244_v30 = vld [vmem:[%s5049_s27 + $0x38] sm:$0xff]  ;;  %v310_v31 = vadd.f32 %v5034_v4, %v274_v18 }
  0x14   : > { %v441_v14 = vld [vmem:[#allocation2 + $0x8] sm:$0x1]  ;;  %v1089_v15 = vshll.u32 %v1029_v9, 16  ;;  %v1093_v16 = vshrl.u32 %v1029_v9, 16  ;;  %v279_v34 = vmul.f32 %v5027_v2, %v243_v25  ;;  %v453_v35 = vld [vmem:[#allocation2 + $0x38] sm:$0x1]  ;;  %v280_v39 = vmul.f32 %v5027_v2, %v244_v30  ;;  %vm5100_vm11 = vmor %vm383_vm2, %vm527_vm8 }
  0x15   : > { %v442_v21 = vsel %vm5040_vm5, 0, %v441_v14  ;;  %v385_v22 = vld [vmem:[#allocation2] sm:$0x1]  ;;  %v313_v32 = vadd.f32 %v5034_v4, %v277_v23  ;;  %v314_v33 = vadd.f32 %v5034_v4, %v278_v24  ;;  %v450_v36 = vld [vmem:[#allocation2 + $0x2c] sm:$0x1]  ;;  %v341_v38 = vmax.f32 %v309_v29, 0.0 }
  0x16   : > { %443 = vst [vmem:[#allocation2 + $0x8] sm:$0x1] %v442_v21  ;;  %v5066_v26 = vrot.slane %v1089_v15, 5  ;;  %v1095_v27 = vrot.slane %v1093_v16, 4  ;;  %v386_v28 = vsel %vm5015_vm3, 0, %v385_v22  ;;  %v454_v40 = vsel %vm5040_vm5, 0, %v453_v35 }
  0x17   : > { %387 = vst [vmem:[#allocation2] sm:$0x1] %v386_v28  ;;  %v342_v41 = vmax.f32 %v310_v31, 0.0  ;;  %v345_v42 = vmax.f32 %v313_v32, 0.0  ;;  %v346_v43 = vmax.f32 %v314_v33, 0.0  ;;  %v315_v44 = vadd.f32 %v5034_v4, %v279_v34  ;;  %v247_v45 = vld [vmem:[%s5049_s27 + $0x50] sm:$0xff] }
  0x18   : > { %v1096_v37 = vor.u32 %v1095_v27, %v5066_v26  ;;  %446 = vst [vmem:[#allocation2 + $0x14] sm:$0x1] %v445_v13  ;;  %v495_v47 = vpack.c.bf16 %v341_v38, %v341_v38  ;;  %v316_v48 = vadd.f32 %v5034_v4, %v280_v39  ;;  %v451_v49 = vsel %vm5040_vm5, 0, %v450_v36  ;;  %v248_v31 = vld [vmem:[%s5049_s27 + $0x58] sm:$0xff] }
  0x19   : > { %455 = vst [vmem:[#allocation2 + $0x38] sm:$0x1] %v454_v40  ;;  %v496_v50 = vpack.c.bf16 %v342_v41, %v342_v41  ;;  %v499_v51 = vpack.c.bf16 %v345_v42, %v345_v42  ;;  %v500_v52 = vpack.c.bf16 %v346_v43, %v346_v43  ;;  %v347_v53 = vmax.f32 %v315_v44, 0.0  ;;  %v852_v13 = vld [vmem:[#allocation2 + $0xc] sm:$0xf]  ;;  %v239_v42 = vld [vmem:[%s5049_s27 + $0x10] sm:$0xff] }
  0x1a   : > { %v1097_v46 = vrot.slane %v1096_v37, 4  ;;  %452 = vst [vmem:[#allocation2 + $0x2c] sm:$0x1] %v451_v49  ;;  %v530_v54 = vshrl.u32 %v495_v47, 16  ;;  %v533_v55 = vshll.u32 %v495_v47, 16  ;;  %v348_v56 = vmax.f32 %v316_v48, 0.0 }
  0x1b   : > { %v283_v57 = vmul.f32 %v5027_v2, %v247_v45  ;;  %v538_v59 = vshrl.u32 %v496_v50, 16  ;;  %v541_v60 = vshll.u32 %v496_v50, 16  ;;  %v564_v61 = vshrl.u32 %v499_v51, 16  ;;  %v866_v20 = vld [vmem:[#allocation2 + $0x24] sm:$0xf]  ;;  %v240_v47 = vld [vmem:[%s5049_s27 + $0x18] sm:$0xff] }
  0x1c   : > { %v567_v62 = vshll.u32 %v499_v51, 16  ;;  %v532_v5 = vrot.slane %v530_v54, 7  ;;  %v572_v7 = vshrl.u32 %v500_v52, 16  ;;  %v575_v8 = vshll.u32 %v500_v52, 16  ;;  %v403_v41 = vld [vmem:[#allocation2 + $0x48] sm:$0x1] }
  0x1d   : > { %v1030_v58 = vld [vmem:[#allocation2 + $0x8] sm:$0x1]  ;;  %v540_v12 = vrot.slane %v538_v59, 7  ;;  %v566_v14 = vrot.slane %v564_v61, 7  ;;  %v5117_v38 = vpack.c.bf16 %v347_v53, %v347_v53  ;;  %v502_v39 = vpack.c.bf16 %v348_v56, %v348_v56  ;;  %v391_v48 = vld [vmem:[#allocation2 + $0x18] sm:$0x1] }
  0x1e   : > { %v1099_v0 = vshll.u32 %v1030_v58, 16  ;;  %v1028_v3 = vld [vmem:[#allocation2] sm:$0xf]  ;;  %v535_v17 = vor.u32 %v533_v55, %v532_v5  ;;  %v536_v18 = vrot.slane %v532_v5, 4  ;;  %v574_v19 = vrot.slane %v572_v7, 7 }
  0x1f   : > { %v1080_v10 = vshrl.u32 %v1028_v3, 16  ;;  %v1083_v11 = vshll.u32 %v1028_v3, 16  ;;  %v543_v23 = vor.u32 %v541_v60, %v540_v12  ;;  %v569_v24 = vor.u32 %v567_v62, %v566_v14  ;;  %v856_v30 = vld [vmem:[#allocation2 + $0x14] sm:$0x1]  ;;  %v245_v53 = vld [vmem:[%s5049_s27 + $0x40] sm:$0xff] }
  0x20   : > { %v1101_v15 = vrot.slane %v1099_v0, 5  ;;  %v853_v27 = vsel %vm5088_vm9, %v535_v17, %v852_v13  ;;  %v570_v28 = vrot.slane %v566_v14, 4  ;;  %v577_v29 = vor.u32 %v575_v8, %v574_v19  ;;  %v877_v62 = vld [vmem:[#allocation2 + $0x38] sm:$0x1] }
  0x21   : > { %v1082_v21 = vrot.slane %v1080_v10, 4  ;;  %v1085_v22 = vrot.slane %v1083_v11, 5  ;;  %v544_v33 = vsel %vm5100_vm11, %v536_v18, %v543_v23  ;;  %854 = vst [vmem:[#allocation2 + $0xc] sm:$0xf] %v853_v27  ;;  %v867_v34 = vsel %vm5088_vm9, %v569_v24, %v866_v20  ;;  %v870_v36 = vld [vmem:[#allocation2 + $0x2c] sm:$0x1] }
  0x22   : > { %v1102_v25 = vsel %vm5094_vm10, %v1097_v46, %v1101_v15  ;;  %v545_v35 = vrot.slane %v540_v12, 4  ;;  %855 = vst.msk [vmem:[#allocation2 + $0x10] sm:$0xf] %vm373_vm0, %v544_v33  ;;  %v578_v37 = vsel %vm5100_vm11, %v570_v28, %v577_v29  ;;  %v579_v40 = vrot.slane %v574_v19, 4 }
  0x23   : > { %1465 = vrot.lane.b32.xlu0 %v1102_v25, %s4964_s28  ;;  %v1086_v32 = vor.u32 %v1085_v22, %v1082_v21  ;;  %868 = vst [vmem:[#allocation2 + $0x24] sm:$0xf] %v867_v34  ;;  %v284_v45 = vmul.f32 %v5027_v2, %v248_v31  ;;  %v319_v46 = vadd.f32 %v5034_v4, %v283_v57  ;;  %v581_v49 = vshrl.u32 %v5117_v38, 16 }
  0x24   : > { %v857_v44 = vsel %vm5015_vm3, %v545_v35, %v856_v30  ;;  %869 = vst.msk [vmem:[#allocation2 + $0x28] sm:$0xf] %vm373_vm0, %v578_v37  ;;  %v589_v50 = vshrl.u32 %v502_v39, 16  ;;  %v592_v51 = vshll.u32 %v502_v39, 16  ;;  %v871_v52 = vsel %vm5015_vm3, %v579_v40, %v870_v36 }
  0x25   : > { %v1087_v43 = vrot.slane %v1086_v32, 4  ;;  %858 = vst [vmem:[#allocation2 + $0x14] sm:$0x1] %v857_v44  ;;  %v320_v55 = vadd.f32 %v5034_v4, %v284_v45  ;;  %v351_v56 = vmax.f32 %v319_v46, 0.0  ;;  %v404_v57 = vsel %vm5015_vm3, 0, %v403_v41 }
  0x26   : > { %v5136_v58 = vrot.slane %v581_v49, 7  ;;  %v591_v59 = vrot.slane %v589_v50, 7  ;;  %872 = vst [vmem:[#allocation2 + $0x2c] sm:$0x1] %v871_v52  ;;  %v275_v60 = vmul.f32 %v5027_v2, %v239_v42  ;;  %v276_v61 = vmul.f32 %v5027_v2, %v240_v47 }
  0x27   : > { %v1092_v54 = vsel %vm5094_vm10, %v1087_v43, %v5066_v26  ;;  %v352_v0 = vmax.f32 %v320_v55, 0.0  ;;  %405 = vst [vmem:[#allocation2 + $0x48] sm:$0x1] %v404_v57  ;;  %v505_v3 = vpack.c.bf16 %v351_v56, %v351_v56  ;;  %v392_v26 = vsel %vm5015_vm3, 0, %v391_v48 }
  0x28   : > { %v5143_v5 = vmul.f32 %v5027_v2, %v245_v53  ;;  %v1031_v7 = vld [vmem:[#allocation2 + $0xc] sm:$0xf]  ;;  %v587_v8 = vrot.slane %v5136_v58, 4  ;;  %v594_v10 = vor.u32 %v592_v51, %v591_v59  ;;  %v596_v11 = vrot.slane %v591_v59, 4  ;;  %393 = vst [vmem:[#allocation2 + $0x18] sm:$0x1] %v392_v26 }
  0x29   : > { %v5147_v12 = vadd.f32 %v5034_v4, %v275_v60  ;;  %v1032_v13 = vld [vmem:[#allocation2 + $0x10] sm:$0xf]  ;;  %v1104_v14 = vshrl.u32 %v1031_v7, 16  ;;  %v1107_v15 = vshll.u32 %v1031_v7, 16  ;;  %v506_v17 = vpack.c.bf16 %v352_v0, %v352_v0  ;;  %v246_v59 = vld [vmem:[%s5049_s27 + $0x48] sm:$0xff] }
  0x2a   : > { %v615_v18 = vshrl.u32 %v505_v3, 16  ;;  %v1113_v19 = vshll.u32 %v1032_v13, 16  ;;  %v1117_v20 = vshrl.u32 %v1032_v13, 16  ;;  %v1037_v21 = vld [vmem:[#allocation2 + $0x24] sm:$0xf]  ;;  %v595_v22 = vsel %vm5100_vm11, %v587_v8, %v594_v10 }
  0x2b   : > { %1463 = vrot.lane.b32.xlu0 %v1092_v54, %s4964_s28  ;;  %v878_v23 = vsel %vm5015_vm3, %v596_v11, %v877_v62  ;;  %v1106_v24 = vrot.slane %v1104_v14, 4  ;;  %v1109_v25 = vrot.slane %v1107_v15, 5  ;;  %v1038_v27 = vld [vmem:[#allocation2 + $0x28] sm:$0xf]  ;;  %v1152_v28 = vshrl.u32 %v1037_v21, 16 }
  0x2c   : > { %v1155_v29 = vshll.u32 %v1037_v21, 16  ;;  %v1115_v30 = vrot.slane %v1113_v19, 5  ;;  %v1119_v31 = vrot.slane %v1117_v20, 4  ;;  %v1161_v32 = vshll.u32 %v1038_v27, 16  ;;  %v1033_v34 = vld [vmem:[#allocation2 + $0x14] sm:$0x1] }
  0x2d   : > { %v1165_v33 = vshrl.u32 %v1038_v27, 16  ;;  %v1110_v35 = vor.u32 %v1109_v25, %v1106_v24  ;;  %v1154_v36 = vrot.slane %v1152_v28, 4  ;;  %v1123_v39 = vshll.u32 %v1033_v34, 16  ;;  %876 = vst.msk [vmem:[#allocation2 + $0x34] sm:$0xf] %vm373_vm0, %v595_v22 }
  0x2e   : > { %v1157_v37 = vrot.slane %v1155_v29, 5  ;;  %v1163_v40 = vrot.slane %v1161_v32, 5  ;;  %v1120_v41 = vor.u32 %v1119_v31, %v1115_v30  ;;  %879 = vst [vmem:[#allocation2 + $0x38] sm:$0x1] %v878_v23  ;;  %v1039_v42 = vld [vmem:[#allocation2 + $0x2c] sm:$0x1]  ;;  %v312_v44 = vadd.f32 %v5034_v4, %v276_v61 }
  0x2f   : > { %v1167_v43 = vrot.slane %v1165_v33, 4  ;;  %v1111_v45 = vrot.slane %v1110_v35, 4  ;;  %v1125_v47 = vrot.slane %v1123_v39, 5  ;;  %v1171_v48 = vshll.u32 %v1039_v42, 16  ;;  %v887_v57 = vld [vmem:[#allocation2 + $0x48] sm:$0xf] }
  0x30   : > { %v1158_v46 = vor.u32 %v1157_v37, %v1154_v36  ;;  %v1121_v49 = vrot.slane %v1120_v41, 4  ;;  %v617_v51 = vrot.slane %v615_v18, 7  ;;  %v618_v52 = vshll.u32 %v505_v3, 16  ;;  %v400_v25 = vld [vmem:[#allocation2 + $0x3c] sm:$0x1]  ;;  %v249_v31 = vld [vmem:[%s5049_s27 + $0x60] sm:$0xff] }
  0x31   : > { %v1168_v50 = vor.u32 %v1167_v43, %v1163_v40  ;;  %v1116_v53 = vsel %vm5094_vm10, %v1111_v45, %v1115_v30  ;;  %v5158_v55 = vrot.slane %v1171_v48, 5  ;;  %v623_v56 = vshrl.u32 %v506_v17, 16  ;;  %v250_v32 = vld [vmem:[%s5049_s27 + $0x68] sm:$0xff]  ;;  %v859_v42 = vld [vmem:[#allocation2 + $0x18] sm:$0xf] }
  0x32   : > { %v1159_v54 = vrot.slane %v1158_v46, 4  ;;  %1467 = vrot.lane.b32.xlu1 %v1116_v53, %s4964_s28  ;;  %v1126_v60 = vsel %vm5094_vm10, %v1121_v49, %v1125_v47  ;;  %v620_v62 = vor.u32 %v618_v52, %v617_v51  ;;  %v621_v0 = vrot.slane %v617_v51, 4 }
  0x33   : > { %v5164_v61 = vrot.slane %v1168_v50, 4  ;;  %v5168_v26 = vrot.slane %v623_v56, 7  ;;  %v626_v7 = vshll.u32 %v506_v17, 16  ;;  %v343_v8 = vmax.f32 %v5147_v12, 0.0  ;;  %v253_v56 = vld [vmem:[%s5049_s27 + $0x80] sm:$0xff] }
  0x34   : > { %v1164_v3 = vsel %vm5094_vm10, %v1159_v54, %v1163_v40  ;;  %v1041_v10 = vld [vmem:[#allocation2 + $0x34] sm:$0xf]  ;;  %v888_v13 = vsel %vm5088_vm9, %v620_v62, %v887_v57  ;;  %v344_v14 = vmax.f32 %v312_v44, 0.0  ;;  %v282_v15 = vmul.f32 %v5027_v2, %v246_v59  ;;  %v254_v57 = vld [vmem:[%s5049_s27 + $0x88] sm:$0xff] }
  0x35   : > { %1475 = vrot.lane.b32.xlu0 %v1164_v3, %s4964_s28  ;;  %v1174_v11 = vsel %vm5094_vm10, %v5164_v61, %v5158_v55  ;;  %v1042_v18 = vld [vmem:[#allocation2 + $0x38] sm:$0x1]  ;;  %v1185_v17 = vshll.u32 %v1041_v10, 16  ;;  %v1189_v19 = vshrl.u32 %v1041_v10, 16  ;;  %v628_v12 = vor.u32 %v626_v7, %v5168_v26  ;;  %889 = vst [vmem:[#allocation2 + $0x48] sm:$0xf] %v888_v13 }
  0x36   : > { %v497_v20 = vpack.c.bf16 %v343_v8, %v343_v8  ;;  %v1195_v21 = vshll.u32 %v1042_v18, 16  ;;  %v498_v22 = vpack.c.bf16 %v344_v14, %v344_v14  ;;  %v317_v23 = vadd.f32 %v5034_v4, %v5143_v5  ;;  %v462_v3 = vld [vmem:[#allocation2 + $0x5c] sm:$0x1] }
  0x37   : > { %v318_v24 = vadd.f32 %v5034_v4, %v282_v15  ;;  %v5183_v27 = vrot.slane %v1185_v17, 5  ;;  %v1191_v28 = vrot.slane %v1189_v19, 4  ;;  %v629_v29 = vsel %vm5100_vm11, %v621_v0, %v628_v12 }
  0x38   : > { %v547_v30 = vshrl.u32 %v497_v20, 16  ;;  %v1197_v33 = vrot.slane %v1195_v21, 5  ;;  %890 = vst.msk [vmem:[#allocation2 + $0x4c] sm:$0xf] %vm373_vm0, %v629_v29  ;;  %v550_v34 = vshll.u32 %v497_v20, 16  ;;  %v555_v35 = vshrl.u32 %v498_v22, 16 }
  0x39   : > { %v558_v36 = vshll.u32 %v498_v22, 16  ;;  %v1192_v5 = vor.u32 %v1191_v28, %v5183_v27  ;;  %v349_v39 = vmax.f32 %v317_v23, 0.0  ;;  %v350_v40 = vmax.f32 %v318_v24, 0.0  ;;  %v447_v23 = vld [vmem:[#allocation2 + $0x20] sm:$0x1] }
  0x3a   : > { %v549_v37 = vrot.slane %v547_v30, 7  ;;  %1469 = vrot.lane.b32.xlu1 %v1126_v60, %s4964_s28  ;;  %v5192_v41 = vrot.slane %v555_v35, 7  ;;  %v401_v43 = vsel %vm5015_vm3, 0, %v400_v25  ;;  %v285_v44 = vmul.f32 %v5027_v2, %v249_v31  ;;  %v459_v30 = vld [vmem:[#allocation2 + $0x50] sm:$0x1] }
  0x3b   : > { %v286_v45 = vmul.f32 %v5027_v2, %v250_v32  ;;  %v1193_v46 = vrot.slane %v1192_v5, 4  ;;  %402 = vst [vmem:[#allocation2 + $0x3c] sm:$0x1] %v401_v43  ;;  %v503_v49 = vpack.c.bf16 %v349_v39, %v349_v39  ;;  %v504_v52 = vpack.c.bf16 %v350_v40, %v350_v40 }
  0x3c   : > { %v552_v47 = vor.u32 %v550_v34, %v549_v37  ;;  %v553_v48 = vrot.slane %v549_v37, 4  ;;  %v1046_v50 = vld [vmem:[#allocation2 + $0x48] sm:$0xf]  ;;  %v560_v51 = vor.u32 %v558_v36, %v5192_v41  ;;  %v321_v53 = vadd.f32 %v5034_v4, %v285_v44 }
  0x3d   : > { %v322_v54 = vadd.f32 %v5034_v4, %v286_v45  ;;  %v1198_v59 = vsel %vm5094_vm10, %v1193_v46, %v1197_v33  ;;  %v1224_v60 = vshrl.u32 %v1046_v50, 16  ;;  %v1227_v62 = vshll.u32 %v1046_v50, 16 }
  0x3e   : > { %v860_v0 = vsel %vm5088_vm9, %v552_v47, %v859_v42  ;;  %1481 = vrot.lane.b32.xlu0 %v1198_v59, %s4964_s28  ;;  %v561_v7 = vsel %vm5100_vm11, %v553_v48, %v560_v51  ;;  %v598_v8 = vshrl.u32 %v503_v49, 16  ;;  %v601_v10 = vshll.u32 %v503_v49, 16 }
  0x3f   : > { %861 = vst [vmem:[#allocation2 + $0x18] sm:$0xf] %v860_v0  ;;  %v606_v13 = vshrl.u32 %v504_v52, 16  ;;  %v1047_v14 = vld [vmem:[#allocation2 + $0x4c] sm:$0xf]  ;;  %v1226_v15 = vrot.slane %v1224_v60, 4  ;;  %v289_v17 = vmul.f32 %v5027_v2, %v253_v56  ;;  %v290_v19 = vmul.f32 %v5027_v2, %v254_v57 }
  0x40   : > { %v1229_v18 = vrot.slane %v1227_v62, 5  ;;  %862 = vst.msk [vmem:[#allocation2 + $0x1c] sm:$0xf] %vm373_vm0, %v561_v7  ;;  %v1233_v12 = vshll.u32 %v1047_v14, 16  ;;  %v1237_v20 = vshrl.u32 %v1047_v14, 16  ;;  %v600_v21 = vrot.slane %v598_v8, 7 }
  0x41   : > { %v5213_v22 = vrot.slane %v606_v13, 7  ;;  %v609_v25 = vshll.u32 %v504_v52, 16  ;;  %v353_v28 = vmax.f32 %v321_v53, 0.0  ;;  %v354_v29 = vmax.f32 %v322_v54, 0.0  ;;  %v412_v52 = vld [vmem:[#allocation2 + $0x6c] sm:$0x1] }
  0x42   : > { %v1230_v24 = vor.u32 %v1229_v18, %v1226_v15  ;;  %1477 = vrot.lane.b32.xlu1 %v1174_v11, %s4964_s28  ;;  %v5221_v31 = vrot.slane %v1233_v12, 5  ;;  %v603_v32 = vor.u32 %v601_v10, %v600_v21  ;;  %v604_v33 = vrot.slane %v600_v21, 4  ;;  %v880_v34 = vld [vmem:[#allocation2 + $0x3c] sm:$0xf] }
  0x43   : > { %v463_v35 = vsel %vm5040_vm5, 0, %v462_v3  ;;  %v611_v5 = vor.u32 %v609_v25, %v5213_v22  ;;  %v5226_v37 = vpack.c.bf16 %v353_v28, %v353_v28  ;;  %v508_v39 = vpack.c.bf16 %v354_v29, %v354_v29 }
  0x44   : > { %v1231_v36 = vrot.slane %v1230_v24, 4  ;;  %464 = vst [vmem:[#allocation2 + $0x5c] sm:$0x1] %v463_v35  ;;  %v881_v40 = vsel %vm5088_vm9, %v603_v32, %v880_v34  ;;  %v448_v55 = vsel %vm5040_vm5, 0, %v447_v23  ;;  %v562_v61 = vrot.slane %v5192_v41, 4 }
  0x45   : > { %v460_v11 = vsel %vm5040_vm5, 0, %v459_v30  ;;  %v612_v44 = vsel %vm5100_vm11, %v604_v33, %v611_v5  ;;  %882 = vst [vmem:[#allocation2 + $0x3c] sm:$0xf] %v881_v40  ;;  %v632_v45 = vshrl.u32 %v5226_v37, 16  ;;  %v640_v46 = vshrl.u32 %v508_v39, 16 }
  0x46   : > { %v1236_v42 = vsel %vm5094_vm10, %v1231_v36, %v5221_v31  ;;  %v1034_v43 = vld [vmem:[#allocation2 + $0x18] sm:$0xf]  ;;  %883 = vst.msk [vmem:[#allocation2 + $0x40] sm:$0xf] %vm373_vm0, %v612_v44  ;;  %v325_v50 = vadd.f32 %v5034_v4, %v289_v17  ;;  %v326_v51 = vadd.f32 %v5034_v4, %v290_v19  ;;  %v643_v62 = vshll.u32 %v508_v39, 16  ;;  %v251_v19 = vld [vmem:[%s5049_s27 + $0x70] sm:$0xff] }
  0x47   : > { %1487 = vrot.lane.b32.xlu0 %v1236_v42, %s4964_s28  ;;  %v1035_v47 = vld [vmem:[#allocation2 + $0x1c] sm:$0xf]  ;;  %v1128_v48 = vshrl.u32 %v1034_v43, 16  ;;  %v1131_v49 = vshll.u32 %v1034_v43, 16  ;;  %v5245_v56 = vrot.slane %v632_v45, 7  ;;  %v642_v57 = vrot.slane %v640_v46, 7 }
  0x48   : > { %v1137_v53 = vshll.u32 %v1035_v47, 16  ;;  %v1141_v54 = vshrl.u32 %v1035_v47, 16  ;;  %449 = vst [vmem:[#allocation2 + $0x20] sm:$0x1] %v448_v55  ;;  %v630_v0 = vrot.slane %v5168_v26, 4  ;;  %v1239_v18 = vrot.slane %v1237_v20, 4 }
  0x49   : > { %v1130_v59 = vrot.slane %v1128_v48, 4  ;;  %v1133_v60 = vrot.slane %v1131_v49, 5  ;;  %461 = vst [vmem:[#allocation2 + $0x50] sm:$0x1] %v460_v11  ;;  %v638_v8 = vrot.slane %v5245_v56, 4  ;;  %v647_v10 = vrot.slane %v642_v57, 4 }
  0x4a   : > { %v1139_v3 = vrot.slane %v1137_v53, 5  ;;  %v1143_v7 = vrot.slane %v1141_v54, 4  ;;  %v645_v14 = vor.u32 %v643_v62, %v642_v57  ;;  %v357_v17 = vmax.f32 %v325_v50, 0.0  ;;  %v397_v30 = vld [vmem:[#allocation2 + $0x30] sm:$0x1]  ;;  %v252_v47 = vld [vmem:[%s5049_s27 + $0x78] sm:$0xff] }
  0x4b   : > { %v1134_v13 = vor.u32 %v1133_v60, %v1130_v59  ;;  %v898_v15 = vld [vmem:[#allocation2 + $0x5c] sm:$0x1]  ;;  %v358_v23 = vmax.f32 %v326_v51, 0.0  ;;  %v413_v24 = vsel %vm5015_vm3, 0, %v412_v52  ;;  %v1240_v29 = vor.u32 %v1239_v18, %v5221_v31  ;;  %v255_v11 = vld [vmem:[%s5049_s27 + $0x90] sm:$0xff] }
  0x4c   : > { %v899_v12 = vsel %vm5015_vm3, %v647_v10, %v898_v15  ;;  %v1144_v21 = vor.u32 %v1143_v7, %v1139_v3  ;;  %v1043_v25 = vld [vmem:[#allocation2 + $0x3c] sm:$0xf]  ;;  %v646_v28 = vsel %vm5100_vm11, %v638_v8, %v645_v14  ;;  %v511_v20 = vpack.c.bf16 %v357_v17, %v357_v17  ;;  %414 = vst [vmem:[#allocation2 + $0x6c] sm:$0x1] %v413_v24 }
  0x4d   : > { %v1135_v26 = vrot.slane %v1134_v13, 4  ;;  %900 = vst [vmem:[#allocation2 + $0x5c] sm:$0x1] %v899_v12  ;;  %v5257_v32 = vld [vmem:[#allocation2 + $0x40] sm:$0xf]  ;;  %v1200_v33 = vshrl.u32 %v1043_v25, 16  ;;  %v512_v35 = vpack.c.bf16 %v358_v23, %v358_v23  ;;  %v287_v36 = vmul.f32 %v5027_v2, %v251_v19 }
  0x4e   : > { %v1203_v34 = vshll.u32 %v1043_v25, 16  ;;  %897 = vst.msk [vmem:[#allocation2 + $0x58] sm:$0xf] %vm373_vm0, %v646_v28  ;;  %v1209_v39 = vshll.u32 %v5257_v32, 16  ;;  %v1213_v40 = vshrl.u32 %v5257_v32, 16  ;;  %v5265_v55 = vrot.slane %v1144_v21, 4 }
  0x4f   : > { %v1140_v5 = vsel %vm5094_vm10, %v1135_v26, %v1139_v3  ;;  %v863_v31 = vld [vmem:[#allocation2 + $0x20] sm:$0x1]  ;;  %v1202_v42 = vrot.slane %v1200_v33, 4  ;;  %v5273_v46 = vrot.slane %v1240_v29, 4  ;;  %v666_v50 = vshrl.u32 %v511_v20, 16  ;;  %v256_v52 = vld [vmem:[%s5049_s27 + $0x98] sm:$0xff] }
  0x50   : > { %1471 = vrot.lane.b32.xlu2 %v1140_v5, %s4964_s28  ;;  %v1205_v43 = vrot.slane %v1203_v34, 5  ;;  %v864_v44 = vsel %vm5015_vm3, %v562_v61, %v863_v31  ;;  %v891_v45 = vld [vmem:[#allocation2 + $0x50] sm:$0x1]  ;;  %v5276_v48 = vrot.slane %v1209_v39, 5  ;;  %v669_v51 = vshll.u32 %v511_v20, 16 }
  0x51   : > { %865 = vst [vmem:[#allocation2 + $0x20] sm:$0x1] %v864_v44  ;;  %v892_v49 = vsel %vm5015_vm3, %v630_v0, %v891_v45  ;;  %v674_v54 = vshrl.u32 %v512_v35, 16  ;;  %v677_v41 = vshll.u32 %v512_v35, 16  ;;  %v398_v61 = vsel %vm5015_vm3, 0, %v397_v30 }
  0x52   : > { %v1206_v53 = vor.u32 %v1205_v43, %v1202_v42  ;;  %893 = vst [vmem:[#allocation2 + $0x50] sm:$0x1] %v892_v49  ;;  %v668_v57 = vrot.slane %v666_v50, 7  ;;  %v584_v59 = vshll.u32 %v5117_v38, 16  ;;  %v288_v60 = vmul.f32 %v5027_v2, %v252_v47  ;;  %v409_v3 = vld [vmem:[#allocation2 + $0x60] sm:$0x1] }
  0x53   : > { %v323_v62 = vadd.f32 %v5034_v4, %v287_v36  ;;  %v5286_v8 = vrot.slane %v674_v54, 7  ;;  %399 = vst [vmem:[#allocation2 + $0x30] sm:$0x1] %v398_v61  ;;  %v291_v10 = vmul.f32 %v5027_v2, %v255_v11  ;;  %v292_v13 = vmul.f32 %v5027_v2, %v256_v52  ;;  %v471_v29 = vld [vmem:[#allocation2 + $0x80] sm:$0x1] }
  0x54   : > { %v1207_v0 = vrot.slane %v1206_v53, 4  ;;  %v1051_v7 = vld [vmem:[#allocation2 + $0x5c] sm:$0x1]  ;;  %v671_v18 = vor.u32 %v669_v51, %v668_v57  ;;  %v672_v17 = vrot.slane %v668_v57, 4  ;;  %v586_v38 = vor.u32 %v584_v59, %v5136_v58  ;;  %v908_v43 = vld [vmem:[#allocation2 + $0x6c] sm:$0xf] }
  0x55   : > { %v1050_v14 = vld [vmem:[#allocation2 + $0x58] sm:$0xf]  ;;  %v1267_v15 = vshll.u32 %v1051_v7, 16  ;;  %v679_v23 = vor.u32 %v677_v41, %v5286_v8  ;;  %v324_v26 = vadd.f32 %v5034_v4, %v288_v60  ;;  %v355_v25 = vmax.f32 %v323_v62, 0.0  ;;  %v456_v47 = vld [vmem:[#allocation2 + $0x44] sm:$0x1] }
  0x56   : > { %v1212_v19 = vsel %vm5094_vm10, %v1207_v0, %v5276_v48  ;;  %v1257_v12 = vshll.u32 %v1050_v14, 16  ;;  %v1261_v21 = vshrl.u32 %v1050_v14, 16  ;;  %v410_v28 = vsel %vm5015_vm3, 0, %v409_v3  ;;  %v259_v0 = vld [vmem:[%s5049_s27 + $0xb0] sm:$0xff] }
  0x57   : > { %1483 = vrot.lane.b32.xlu1 %v1212_v19, %s4964_s28  ;;  %v1269_v24 = vrot.slane %v1267_v15, 5  ;;  %v680_v33 = vsel %vm5100_vm11, %v672_v17, %v679_v23  ;;  %411 = vst [vmem:[#allocation2 + $0x60] sm:$0x1] %v410_v28  ;;  %v327_v34 = vadd.f32 %v5034_v4, %v291_v10  ;;  %v356_v5 = vmax.f32 %v324_v26, 0.0  ;;  %v468_v15 = vld [vmem:[#allocation2 + $0x74] sm:$0x1] }
  0x58   : > { %v5299_v20 = vrot.slane %v1257_v12, 5  ;;  %v1263_v58 = vrot.slane %v1261_v21, 4  ;;  %v1036_v30 = vld [vmem:[#allocation2 + $0x20] sm:$0x1]  ;;  %911 = vst.msk [vmem:[#allocation2 + $0x70] sm:$0xf] %vm373_vm0, %v680_v33  ;;  %v509_v39 = vpack.c.bf16 %v355_v25, %v355_v25  ;;  %v328_v31 = vadd.f32 %v5034_v4, %v292_v13 }
  0x59   : > { %v1147_v35 = vshll.u32 %v1036_v30, 16  ;;  %v1048_v36 = vld [vmem:[#allocation2 + $0x50] sm:$0x1]  ;;  %v359_v44 = vmax.f32 %v327_v34, 0.0  ;;  %v472_v45 = vsel %vm5040_vm5, 0, %v471_v29  ;;  %v909_v50 = vsel %vm5088_vm9, %v671_v18, %v908_v43  ;;  %v260_v12 = vld [vmem:[%s5049_s27 + $0xb8] sm:$0xff] }
  0x5a   : > { %v1264_v11 = vor.u32 %v1263_v58, %v5299_v20  ;;  %v1243_v42 = vshll.u32 %v1048_v36, 16  ;;  %v873_v51 = vld [vmem:[#allocation2 + $0x30] sm:$0xf]  ;;  %v510_v52 = vpack.c.bf16 %v356_v5, %v356_v5  ;;  %v649_v53 = vshrl.u32 %v509_v39, 16  ;;  %473 = vst [vmem:[#allocation2 + $0x80] sm:$0x1] %v472_v45 }
  0x5b   : > { %v1149_v49 = vrot.slane %v1147_v35, 5  ;;  %910 = vst [vmem:[#allocation2 + $0x6c] sm:$0xf] %v909_v50  ;;  %v874_v61 = vsel %vm5088_vm9, %v586_v38, %v873_v51  ;;  %v652_v57 = vshll.u32 %v509_v39, 16  ;;  %v360_v13 = vmax.f32 %v328_v31, 0.0 }
  0x5c   : > { %v1265_v54 = vrot.slane %v1264_v11, 4  ;;  %v1245_v41 = vrot.slane %v1243_v42, 5  ;;  %875 = vst [vmem:[#allocation2 + $0x30] sm:$0xf] %v874_v61  ;;  %v651_v60 = vrot.slane %v649_v53, 7  ;;  %v657_v62 = vshrl.u32 %v510_v52, 16 }
  0x5d   : > { %v1150_v59 = vsel %vm5094_vm10, %v5265_v55, %v1149_v49  ;;  %v660_v3 = vshll.u32 %v510_v52, 16  ;;  %v5323_v14 = vpack.c.bf16 %v359_v44, %v359_v44  ;;  %v457_v19 = vsel %vm5040_vm5, 0, %v456_v47 }
  0x5e   : > { %v1270_v7 = vsel %vm5094_vm10, %v1265_v54, %v1269_v24  ;;  %1473 = vrot.lane.b32.xlu2 %v1150_v59, %s4964_s28  ;;  %v1246_v10 = vsel %vm5094_vm10, %v5273_v46, %v1245_v41  ;;  %v654_v55 = vor.u32 %v652_v57, %v651_v60  ;;  %v655_v18 = vrot.slane %v651_v60, 4  ;;  %v901_v38 = vld [vmem:[#allocation2 + $0x60] sm:$0xf]  ;;  %458 = vst [vmem:[#allocation2 + $0x44] sm:$0x1] %v457_v19 }
  0x5f   : > { %1493 = vrot.lane.b32.xlu0 %v1270_v7, %s4964_s28  ;;  %1489 = vrot.lane.b32.xlu1 %v1246_v10, %s4964_s28  ;;  %v5327_v17 = vrot.slane %v657_v62, 7  ;;  %v1056_v21 = vld [vmem:[#allocation2 + $0x70] sm:$0xf]  ;;  %v514_v23 = vpack.c.bf16 %v360_v13, %v360_v13  ;;  %v683_v46 = vshrl.u32 %v5323_v14, 16  ;;  %v613_v24 = vrot.slane %v5213_v22, 4 }
  0x60   : > { %v295_v26 = vmul.f32 %v5027_v2, %v259_v0  ;;  %v1305_v25 = vshll.u32 %v1056_v21, 16  ;;  %v1309_v28 = vshrl.u32 %v1056_v21, 16  ;;  %v902_v58 = vsel %vm5088_vm9, %v654_v55, %v901_v38  ;;  %v257_v0 = vld [vmem:[%s5049_s27 + $0xa0] sm:$0xff]  ;;  %v421_v55 = vld [vmem:[#allocation2 + $0x90] sm:$0x1] }
  0x61   : > { %v662_v29 = vor.u32 %v660_v3, %v5327_v17  ;;  %903 = vst [vmem:[#allocation2 + $0x60] sm:$0xf] %v902_v58  ;;  %v5338_v30 = vrot.slane %v683_v46, 7  ;;  %v691_v33 = vshrl.u32 %v514_v23, 16  ;;  %v694_v34 = vshll.u32 %v514_v23, 16 }
  0x62   : > { %v1215_v35 = vrot.slane %v1213_v40, 4  ;;  %v1055_v36 = vld [vmem:[#allocation2 + $0x6c] sm:$0xf]  ;;  %v1307_v5 = vrot.slane %v1305_v25, 5  ;;  %v469_v39 = vsel %vm5040_vm5, 0, %v468_v15  ;;  %v296_v31 = vmul.f32 %v5027_v2, %v260_v12 }
  0x63   : > { %v663_v22 = vsel %vm5100_vm11, %v655_v18, %v662_v29  ;;  %v1296_v11 = vshrl.u32 %v1055_v36, 16  ;;  %v1299_v42 = vshll.u32 %v1055_v36, 16  ;;  %v1040_v43 = vld [vmem:[#allocation2 + $0x30] sm:$0xf]  ;;  %v331_v32 = vadd.f32 %v5034_v4, %v295_v26  ;;  %470 = vst [vmem:[#allocation2 + $0x74] sm:$0x1] %v469_v39 }
  0x64   : > { %904 = vst.msk [vmem:[#allocation2 + $0x64] sm:$0xf] %vm373_vm0, %v663_v22  ;;  %v1216_v44 = vor.u32 %v1215_v35, %v5276_v48  ;;  %v1176_v40 = vshrl.u32 %v1040_v43, 16  ;;  %v1179_v45 = vshll.u32 %v1040_v43, 16  ;;  %v689_v47 = vrot.slane %v5338_v30, 4 }
  0x65   : > { %v693_v49 = vrot.slane %v691_v33, 7  ;;  %v1298_v50 = vrot.slane %v1296_v11, 4  ;;  %v1301_v51 = vrot.slane %v1299_v42, 5  ;;  %v919_v52 = vld [vmem:[#allocation2 + $0x80] sm:$0x1]  ;;  %v681_v53 = vrot.slane %v5286_v8, 4 }
  0x66   : > { %v5351_v2 = vrot.slane %v1216_v44, 4  ;;  %v1178_v54 = vrot.slane %v1176_v40, 4  ;;  %v1181_v41 = vrot.slane %v1179_v45, 5  ;;  %v884_v57 = vld [vmem:[#allocation2 + $0x44] sm:$0x1]  ;;  %v1311_v62 = vrot.slane %v1309_v28, 4 }
  0x67   : > { %v696_v61 = vor.u32 %v694_v34, %v693_v49  ;;  %v698_v48 = vrot.slane %v693_v49, 4  ;;  %v1302_v59 = vor.u32 %v1301_v51, %v1298_v50  ;;  %v885_v60 = vsel %vm5015_vm3, %v613_v24, %v884_v57  ;;  %v406_v21 = vld [vmem:[#allocation2 + $0x54] sm:$0x1]  ;;  %v5368_v26 = vld [vmem:[%s7184_s1] ss:$0 sm:$0xff] }
  0x68   : > { %v332_v3 = vadd.f32 %v5034_v4, %v296_v31  ;;  %v1182_v7 = vor.u32 %v1181_v41, %v1178_v54  ;;  %v1052_v10 = vld [vmem:[#allocation2 + $0x60] sm:$0xf]  ;;  %886 = vst [vmem:[#allocation2 + $0x44] sm:$0x1] %v885_v60  ;;  %v363_v15 = vmax.f32 %v331_v32, 0.0  ;;  %v1312_v12 = vor.u32 %v1311_v62, %v1307_v5  ;;  %v258_v31 = vld [vmem:[%s5049_s27 + $0xa8] sm:$0xff] }
  0x69   : > { %v697_v13 = vsel %vm5100_vm11, %v689_v47, %v696_v61  ;;  %v920_v8 = vsel %vm5015_vm3, %v698_v48, %v919_v52  ;;  %v1303_v18 = vrot.slane %v1302_v59, 4  ;;  %v1272_v38 = vshrl.u32 %v1052_v10, 16  ;;  %v418_v52 = vld [vmem:[#allocation2 + $0x84] sm:$0x1]  ;;  %v5397_v48 = vld [vmem:[%s7185_s2] ss:$0 sm:$0xff] }
  0x6a   : > { %v1275_v19 = vshll.u32 %v1052_v10, 16  ;;  %918 = vst.msk [vmem:[#allocation2 + $0x7c] sm:$0xf] %vm373_vm0, %v697_v13  ;;  %v1183_v4 = vrot.slane %v1182_v7, 4  ;;  %v364_v46 = vmax.f32 %v332_v3, 0.0  ;;  %v517_v24 = vpack.c.bf16 %v363_v15, %v363_v15 }
  0x6b   : > { %v5363_v23 = vld [vmem:[#allocation2 + $0x64] sm:$0xf]  ;;  %921 = vst [vmem:[#allocation2 + $0x80] sm:$0x1] %v920_v8  ;;  %v293_v25 = vmul.f32 %v5368_v26, %v257_v0  ;;  %v1308_v28 = vsel %vm5094_vm10, %v1303_v18, %v1307_v5  ;;  %v1274_v29 = vrot.slane %v1272_v38, 4  ;;  %v5381_v39 = vrot.slane %v1312_v12, 4 }
  0x6c   : > { %v1277_v58 = vrot.slane %v1275_v19, 5  ;;  %v1281_v33 = vshll.u32 %v5363_v23, 16  ;;  %v912_v34 = vld [vmem:[#allocation2 + $0x74] sm:$0x1]  ;;  %1499 = vrot.lane.b32.xlu0 %v1308_v28, %s4964_s28  ;;  %v1188_v35 = vsel %vm5094_vm10, %v1183_v4, %v5183_v27  ;;  %v1285_v36 = vshrl.u32 %v5363_v23, 16  ;;  %v261_v18 = vld [vmem:[%s5049_s27 + $0xc0] sm:$0xff] }
  0x6d   : > { %v913_v22 = vsel %vm5015_vm3, %v681_v53, %v912_v34  ;;  %1479 = vrot.lane.b32.xlu2 %v1188_v35, %s4964_s28  ;;  %v422_v42 = vsel %vm5015_vm3, 0, %v421_v55  ;;  %v518_v43 = vpack.c.bf16 %v364_v46, %v364_v46  ;;  %v717_v27 = vshrl.u32 %v517_v24, 16  ;;  %v262_v38 = vld [vmem:[%s5049_s27 + $0xc8] sm:$0xff] }
  0x6e   : > { %v1278_v5 = vor.u32 %v1277_v58, %v1274_v29  ;;  %v5385_v11 = vrot.slane %v1281_v33, 5  ;;  %914 = vst [vmem:[#allocation2 + $0x74] sm:$0x1] %v913_v22  ;;  %v720_v44 = vshll.u32 %v517_v24, 16  ;;  %v407_v32 = vsel %vm5015_vm3, 0, %v406_v21 }
  0x6f   : > { %423 = vst [vmem:[#allocation2 + $0x90] sm:$0x1] %v422_v42  ;;  %v635_v40 = vshll.u32 %v5226_v37, 16  ;;  %v1045_v47 = vld [vmem:[#allocation2 + $0x44] sm:$0x1]  ;;  %v725_v49 = vshrl.u32 %v518_v43, 16  ;;  %v294_v51 = vmul.f32 %v5368_v26, %v258_v31  ;;  %v329_v37 = vadd.f32 %v5397_v48, %v293_v25 }
  0x70   : > { %v1279_v45 = vrot.slane %v1278_v5, 4  ;;  %v728_v50 = vshll.u32 %v518_v43, 16  ;;  %v1219_v54 = vshll.u32 %v1045_v47, 16  ;;  %v719_v41 = vrot.slane %v717_v27, 7  ;;  %408 = vst [vmem:[#allocation2 + $0x54] sm:$0x1] %v407_v32 }
  0x71   : > { %v1059_v53 = vld [vmem:[#allocation2 + $0x7c] sm:$0xf]  ;;  %v637_v61 = vor.u32 %v635_v40, %v5245_v56  ;;  %v5403_v3 = vrot.slane %v725_v49, 7  ;;  %v330_v55 = vadd.f32 %v5397_v48, %v294_v51  ;;  %v361_v4 = vmax.f32 %v329_v37, 0.0  ;;  %v480_v22 = vld [vmem:[#allocation2 + $0xa4] sm:$0x1] }
  0x72   : > { %v1284_v57 = vsel %vm5094_vm10, %v1279_v45, %v5385_v11  ;;  %v1060_v59 = vld [vmem:[#allocation2 + $0x80] sm:$0x1]  ;;  %v1329_v60 = vshll.u32 %v1059_v53, 16  ;;  %v1333_v62 = vshrl.u32 %v1059_v53, 16  ;;  %v1221_v0 = vrot.slane %v1219_v54, 5 }
  0x73   : > { %1495 = vrot.lane.b32.xlu1 %v1284_v57, %s4964_s28  ;;  %v1339_v56 = vshll.u32 %v1060_v59, 16  ;;  %v722_v7 = vor.u32 %v720_v44, %v719_v41  ;;  %v723_v10 = vrot.slane %v719_v41, 4  ;;  %v730_v15 = vor.u32 %v728_v50, %v5403_v3  ;;  %v465_v45 = vld [vmem:[#allocation2 + $0x68] sm:$0x1]  ;;  %v265_v47 = vld [vmem:[%s5049_s27 + $0xe0] sm:$0xff] }
  0x74   : > { %v5406_v13 = vrot.slane %v1329_v60, 5  ;;  %v1335_v8 = vrot.slane %v1333_v62, 4  ;;  %v1222_v12 = vsel %vm5094_vm10, %v5351_v2, %v1221_v0  ;;  %v419_v46 = vsel %vm5015_vm3, 0, %v418_v52  ;;  %v477_v37 = vld [vmem:[#allocation2 + $0x98] sm:$0x1] }
  0x75   : > { %v1341_v19 = vrot.slane %v1339_v56, 5  ;;  %v1057_v21 = vld [vmem:[#allocation2 + $0x74] sm:$0x1]  ;;  %1485 = vrot.lane.b32.xlu2 %v1222_v12, %s4964_s28  ;;  %v731_v28 = vsel %vm5100_vm11, %v723_v10, %v730_v15  ;;  %v362_v58 = vmax.f32 %v330_v55, 0.0  ;;  %420 = vst [vmem:[#allocation2 + $0x84] sm:$0x1] %v419_v46  ;;  %v515_v2 = vpack.c.bf16 %v361_v4, %v361_v4 }
  0x76   : > { %v1336_v24 = vor.u32 %v1335_v8, %v5406_v13  ;;  %v1315_v25 = vshll.u32 %v1057_v21, 16  ;;  %v929_v29 = vld [vmem:[#allocation2 + $0x90] sm:$0xf]  ;;  %932 = vst.msk [vmem:[#allocation2 + $0x94] sm:$0xf] %vm373_vm0, %v731_v28  ;;  %v297_v34 = vmul.f32 %v5368_v26, %v261_v18  ;;  %v298_v35 = vmul.f32 %v5368_v26, %v262_v38 }
  0x77   : > { %v930_v33 = vsel %vm5088_vm9, %v722_v7, %v929_v29  ;;  %v894_v42 = vld [vmem:[#allocation2 + $0x54] sm:$0xf]  ;;  %v516_v43 = vpack.c.bf16 %v362_v58, %v362_v58  ;;  %v700_v44 = vshrl.u32 %v515_v2, 16  ;;  %v703_v32 = vshll.u32 %v515_v2, 16 }
  0x78   : > { %v1337_v31 = vrot.slane %v1336_v24, 4  ;;  %v1317_v5 = vrot.slane %v1315_v25, 5  ;;  %931 = vst [vmem:[#allocation2 + $0x90] sm:$0xf] %v930_v33  ;;  %v895_v27 = vsel %vm5088_vm9, %v637_v61, %v894_v42  ;;  %v333_v40 = vadd.f32 %v5397_v48, %v297_v34 }
  0x79   : > { %896 = vst [vmem:[#allocation2 + $0x54] sm:$0xf] %v895_v27  ;;  %v708_v51 = vshrl.u32 %v516_v43, 16  ;;  %v711_v52 = vshll.u32 %v516_v43, 16  ;;  %v702_v53 = vrot.slane %v700_v44, 7  ;;  %v334_v54 = vadd.f32 %v5397_v48, %v298_v35 }
  0x7a   : > { %v1342_v49 = vsel %vm5094_vm10, %v1337_v31, %v1341_v19  ;;  %v1318_v50 = vsel %vm5094_vm10, %v5381_v39, %v1317_v5  ;;  %v365_v41 = vmax.f32 %v333_v40, 0.0  ;;  %v481_v61 = vsel %vm5040_vm5, 0, %v480_v22 }
  0x7b   : > { %1505 = vrot.lane.b32.xlu0 %v1342_v49, %s4964_s28  ;;  %1501 = vrot.lane.b32.xlu1 %v1318_v50, %s4964_s28  ;;  %v5440_v57 = vrot.slane %v708_v51, 7  ;;  %482 = vst [vmem:[#allocation2 + $0xa4] sm:$0x1] %v481_v61  ;;  %v466_v39 = vsel %vm5040_vm5, 0, %v465_v45  ;;  %v5446_v59 = vrot.slane %v1285_v36, 4  ;;  %v301_v60 = vmul.f32 %v5368_v26, %v265_v47  ;;  %v266_v36 = vld [vmem:[%s5049_s27 + $0xe8] sm:$0xff] }
  0x7c   : > { %v705_v62 = vor.u32 %v703_v32, %v702_v53  ;;  %v706_v56 = vrot.slane %v702_v53, 4  ;;  %v922_v0 = vld [vmem:[#allocation2 + $0x84] sm:$0xf]  ;;  %v366_v7 = vmax.f32 %v334_v54, 0.0  ;;  %v5449_v10 = vpack.c.bf16 %v365_v41, %v365_v41  ;;  %467 = vst [vmem:[#allocation2 + $0x68] sm:$0x1] %v466_v39 }
  0x7d   : > { %v1065_v8 = vld [vmem:[#allocation2 + $0x94] sm:$0xf]  ;;  %v713_v15 = vor.u32 %v711_v52, %v5440_v57  ;;  %v664_v55 = vrot.slane %v5327_v17, 4  ;;  %v478_v18 = vsel %vm5040_vm5, 0, %v477_v37  ;;  %v732_v23 = vrot.slane %v5403_v3, 4 }
  0x7e   : > { %v1377_v19 = vshll.u32 %v1065_v8, 16  ;;  %v1381_v12 = vshrl.u32 %v1065_v8, 16  ;;  %v923_v21 = vsel %vm5088_vm9, %v705_v62, %v922_v0  ;;  %v520_v4 = vpack.c.bf16 %v366_v7, %v366_v7  ;;  %479 = vst [vmem:[#allocation2 + $0x98] sm:$0x1] %v478_v18  ;;  %v430_v52 = vld [vmem:[#allocation2 + $0xb4] sm:$0x1] }
  0x7f   : > { %v1064_v38 = vld [vmem:[#allocation2 + $0x90] sm:$0xf]  ;;  %v714_v25 = vsel %vm5100_vm11, %v706_v56, %v713_v15  ;;  %924 = vst [vmem:[#allocation2 + $0x84] sm:$0xf] %v923_v21  ;;  %v734_v17 = vshrl.u32 %v5449_v10, 16  ;;  %v1288_v58 = vor.u32 %v5446_v59, %v5385_v11  ;;  %v302_v33 = vmul.f32 %v5368_v26, %v266_v36 }
  0x80   : > { %v1368_v46 = vshrl.u32 %v1064_v38, 16  ;;  %v1371_v24 = vshll.u32 %v1064_v38, 16  ;;  %v5462_v28 = vrot.slane %v1377_v19, 5  ;;  %v1049_v3 = vld [vmem:[#allocation2 + $0x54] sm:$0xf]  ;;  %v742_v29 = vshrl.u32 %v520_v4, 16 }
  0x81   : > { %925 = vst.msk [vmem:[#allocation2 + $0x88] sm:$0xf] %vm373_vm0, %v714_v25  ;;  %v1248_v35 = vshrl.u32 %v1049_v3, 16  ;;  %v1251_v22 = vshll.u32 %v1049_v3, 16  ;;  %v5468_v31 = vrot.slane %v734_v17, 7  ;;  %v745_v42 = vshll.u32 %v520_v4, 16 }
  0x82   : > { %v1370_v2 = vrot.slane %v1368_v46, 4  ;;  %v1373_v34 = vrot.slane %v1371_v24, 5  ;;  %v744_v5 = vrot.slane %v742_v29, 7  ;;  %v940_v43 = vld [vmem:[#allocation2 + $0xa4] sm:$0x1]  ;;  %v337_v27 = vadd.f32 %v5397_v48, %v301_v60  ;;  %v263_v18 = vld [vmem:[%s5049_s27 + $0xd0] sm:$0xff] }
  0x83   : > { %v1250_v32 = vrot.slane %v1248_v35, 4  ;;  %v1253_v40 = vrot.slane %v1251_v22, 5  ;;  %v905_v45 = vld [vmem:[#allocation2 + $0x68] sm:$0x1]  ;;  %v1383_v47 = vrot.slane %v1381_v12, 4  ;;  %v740_v11 = vrot.slane %v5468_v31, 4 }
  0x84   : > { %v1374_v44 = vor.u32 %v1373_v34, %v1370_v2  ;;  %v747_v49 = vor.u32 %v745_v42, %v744_v5  ;;  %v749_v50 = vrot.slane %v744_v5, 4  ;;  %v906_v51 = vsel %vm5015_vm3, %v664_v55, %v905_v45  ;;  %v415_v56 = vld [vmem:[#allocation2 + $0x78] sm:$0x1]  ;;  %v427_v2 = vld [vmem:[#allocation2 + $0xa8] sm:$0x1] }
  0x85   : > { %v1254_v54 = vor.u32 %v1253_v40, %v1250_v32  ;;  %907 = vst [vmem:[#allocation2 + $0x68] sm:$0x1] %v906_v51  ;;  %v933_v41 = vld [vmem:[#allocation2 + $0x98] sm:$0x1]  ;;  %v338_v61 = vadd.f32 %v5397_v48, %v302_v33  ;;  %v369_v62 = vmax.f32 %v337_v27, 0.0  ;;  %v1289_v38 = vrot.slane %v1288_v58, 4 }
  0x86   : > { %v1375_v53 = vrot.slane %v1374_v44, 4  ;;  %v1061_v37 = vld [vmem:[#allocation2 + $0x84] sm:$0xf]  ;;  %v748_v39 = vsel %vm5100_vm11, %v740_v11, %v747_v49  ;;  %v941_v59 = vsel %vm5015_vm3, %v749_v50, %v940_v43  ;;  %v934_v60 = vsel %vm5015_vm3, %v732_v23, %v933_v41  ;;  %v264_v12 = vld [vmem:[%s5049_s27 + $0xd8] sm:$0xff] }
  0x87   : > { %v1255_v7 = vrot.slane %v1254_v54, 4  ;;  %v1344_v15 = vshrl.u32 %v1061_v37, 16  ;;  %v1347_v55 = vshll.u32 %v1061_v37, 16  ;;  %939 = vst.msk [vmem:[#allocation2 + $0xa0] sm:$0xf] %vm373_vm0, %v748_v39  ;;  %v1384_v23 = vor.u32 %v1383_v47, %v5462_v28 }
  0x88   : > { %v1380_v0 = vsel %vm5094_vm10, %v1375_v53, %v5462_v28  ;;  %v5484_v8 = vld [vmem:[#allocation2 + $0x88] sm:$0xf]  ;;  %v370_v19 = vmax.f32 %v338_v61, 0.0  ;;  %942 = vst [vmem:[#allocation2 + $0xa4] sm:$0x1] %v941_v59  ;;  %v431_v24 = vsel %vm5015_vm3, 0, %v430_v52  ;;  %v523_v17 = vpack.c.bf16 %v369_v62, %v369_v62 }
  0x89   : > { %1511 = vrot.lane.b32.xlu0 %v1380_v0, %s4964_s28  ;;  %v1353_v36 = vshll.u32 %v5484_v8, 16  ;;  %v1260_v21 = vsel %vm5094_vm10, %v1255_v7, %v5299_v20  ;;  %v1346_v4 = vrot.slane %v1344_v15, 4  ;;  %v1349_v46 = vrot.slane %v1347_v55, 5  ;;  %935 = vst [vmem:[#allocation2 + $0x98] sm:$0x1] %v934_v60 }
  0x8a   : > { %1491 = vrot.lane.b32.xlu2 %v1260_v21, %s4964_s28  ;;  %v524_v3 = vpack.c.bf16 %v370_v19, %v370_v19  ;;  %v416_v28 = vsel %vm5015_vm3, 0, %v415_v56  ;;  %432 = vst [vmem:[#allocation2 + $0xb4] sm:$0x1] %v431_v24  ;;  %v686_v20 = vshll.u32 %v5323_v14, 16  ;;  %v299_v58 = vmul.f32 %v5368_v26, %v263_v18 }
  0x8b   : > { %v5498_v25 = vrot.slane %v1353_v36, 5  ;;  %v1350_v29 = vor.u32 %v1349_v46, %v1346_v4  ;;  %v300_v33 = vmul.f32 %v5368_v26, %v264_v12  ;;  %v1385_v35 = vrot.slane %v1384_v23, 4  ;;  %417 = vst [vmem:[#allocation2 + $0x78] sm:$0x1] %v416_v28 }
  0x8c   : > { %v1054_v34 = vld [vmem:[#allocation2 + $0x68] sm:$0x1]  ;;  %v768_v22 = vshrl.u32 %v523_v17, 16  ;;  %v771_v5 = vshll.u32 %v523_v17, 16  ;;  %v776_v42 = vshrl.u32 %v524_v3, 16  ;;  %v779_v44 = vshll.u32 %v524_v3, 16 }
  0x8d   : > { %v1351_v43 = vrot.slane %v1350_v29, 4  ;;  %v1291_v27 = vshll.u32 %v1054_v34, 16  ;;  %v335_v32 = vadd.f32 %v5397_v48, %v299_v58  ;;  %v336_v14 = vadd.f32 %v5397_v48, %v300_v33  ;;  %v474_v29 = vld [vmem:[#allocation2 + $0x8c] sm:$0x1]  ;;  %v486_v33 = vld [vmem:[#allocation2 + $0xbc] sm:$0x1] }
  0x8e   : > { %v770_v40 = vrot.slane %v768_v22, 7  ;;  %v5506_v45 = vrot.slane %v776_v42, 7  ;;  %v428_v26 = vsel %vm5015_vm3, 0, %v427_v2  ;;  %v1068_v11 = vld [vmem:[#allocation2 + $0xa0] sm:$0xf]  ;;  %v688_v50 = vor.u32 %v686_v20, %v5338_v30 }
  0x8f   : > { %v1356_v47 = vsel %vm5094_vm10, %v1351_v43, %v5498_v25  ;;  %v1293_v49 = vrot.slane %v1291_v27, 5  ;;  %v367_v51 = vmax.f32 %v335_v32, 0.0  ;;  %429 = vst [vmem:[#allocation2 + $0xa8] sm:$0x1] %v428_v26  ;;  %v1069_v52 = vld [vmem:[#allocation2 + $0xa4] sm:$0x1] }
  0x90   : > { %1507 = vrot.lane.b32.xlu1 %v1356_v47, %s4964_s28  ;;  %v1401_v53 = vshll.u32 %v1068_v11, 16  ;;  %v1405_v54 = vshrl.u32 %v1068_v11, 16  ;;  %v773_v41 = vor.u32 %v771_v5, %v770_v40  ;;  %v774_v48 = vrot.slane %v770_v40, 4  ;;  %v1066_v39 = vld [vmem:[#allocation2 + $0x98] sm:$0x1] }
  0x91   : > { %v1411_v61 = vshll.u32 %v1069_v52, 16  ;;  %v1294_v37 = vsel %vm5094_vm10, %v1289_v38, %v1293_v49  ;;  %v781_v59 = vor.u32 %v779_v44, %v5506_v45  ;;  %v368_v60 = vmax.f32 %v336_v14, 0.0  ;;  %v950_v0 = vld [vmem:[#allocation2 + $0xb4] sm:$0xf]  ;;  %v424_v27 = vld [vmem:[#allocation2 + $0x9c] sm:$0x1] }
  0x92   : > { %v5519_v62 = vrot.slane %v1401_v53, 5  ;;  %v1407_v30 = vrot.slane %v1405_v54, 4  ;;  %1497 = vrot.lane.b32.xlu2 %v1294_v37, %s4964_s28  ;;  %v1387_v56 = vshll.u32 %v1066_v39, 16  ;;  %v521_v7 = vpack.c.bf16 %v367_v51, %v367_v51  ;;  %v915_v19 = vld [vmem:[#allocation2 + $0x78] sm:$0xf] }
  0x93   : > { %v1413_v15 = vrot.slane %v1411_v61, 5  ;;  %v782_v55 = vsel %vm5100_vm11, %v774_v48, %v781_v59  ;;  %v951_v18 = vsel %vm5088_vm9, %v773_v41, %v950_v0  ;;  %v522_v36 = vpack.c.bf16 %v368_v60, %v368_v60 }
  0x94   : > { %v1408_v38 = vor.u32 %v1407_v30, %v5519_v62  ;;  %v1389_v23 = vrot.slane %v1387_v56, 5  ;;  %952 = vst [vmem:[#allocation2 + $0xb4] sm:$0xf] %v951_v18  ;;  %v751_v12 = vshrl.u32 %v521_v7, 16  ;;  %v916_v21 = vsel %vm5088_vm9, %v688_v50, %v915_v19  ;;  %v1594_v18 = vld [vmem:[#allocation2 + $0x8] sm:$0x1] }
  0x95   : > { %953 = vst.msk [vmem:[#allocation2 + $0xb8] sm:$0xf] %vm373_vm0, %v782_v55  ;;  %v754_v4 = vshll.u32 %v521_v7, 16  ;;  %v759_v46 = vshrl.u32 %v522_v36, 16  ;;  %v762_v24 = vshll.u32 %v522_v36, 16  ;;  %v487_v43 = vsel %vm5040_vm5, 0, %v486_v33 }
  0x96   : > { %v1409_v17 = vrot.slane %v1408_v38, 4  ;;  %v1390_v3 = vsel %vm5094_vm10, %v1385_v35, %v1389_v23  ;;  %917 = vst [vmem:[#allocation2 + $0x78] sm:$0xf] %v916_v21  ;;  %v753_v28 = vrot.slane %v751_v12, 7  ;;  %v943_v58 = vld [vmem:[#allocation2 + $0xa8] sm:$0xf] }
  0x97   : > { %v5532_v20 = vrot.slane %v759_v46, 7  ;;  %v475_v35 = vsel %vm5040_vm5, 0, %v474_v29  ;;  %v1357_v44 = vshrl.u32 %v5484_v8, 16  ;;  %v715_v50 = vrot.slane %v5440_v57, 4  ;;  %488 = vst [vmem:[#allocation2 + $0xbc] sm:$0x1] %v487_v43 }
  0x98   : > { %v1414_v2 = vsel %vm5094_vm10, %v1409_v17, %v1413_v15  ;;  %1513 = vrot.lane.b32.xlu1 %v1390_v3, %s4964_s28  ;;  %v756_v34 = vor.u32 %v754_v4, %v753_v28  ;;  %v757_v22 = vrot.slane %v753_v28, 4  ;;  %476 = vst [vmem:[#allocation2 + $0x8c] sm:$0x1] %v475_v35  ;;  %v5550_v8 = vld [vmem:[#allocation2 + $0x4] sm:$0xf]  ;;  %v425_v48 = vsel %vm5015_vm3, 0, %v424_v27 }
  0x99   : > { %1517 = vrot.lane.b32.xlu0 %v1414_v2, %s4964_s28  ;;  %v764_v5 = vor.u32 %v762_v24, %v5532_v20  ;;  %426 = vst [vmem:[#allocation2 + $0x9c] sm:$0x1] %v425_v48  ;;  %v737_v59 = vshll.u32 %v5449_v10, 16  ;;  %v1693_v57 = vrot.slane %v5550_v8, 5  ;;  %v1359_v30 = vrot.slane %v1357_v44, 4 }
  0x9a   : > { %v944_v42 = vsel %vm5088_vm9, %v756_v34, %v943_v58  ;;  %v783_v56 = vrot.slane %v5506_v45, 4  ;;  %v483_v46 = vld [vmem:[#allocation2 + $0xb0] sm:$0x1]  ;;  %v1696_v58 = vrot.slane %v1594_v18, 5  ;;  %vm1559_vm15 = vcmask 126016  }
  0x9b   : > { %v1073_v32 = vld [vmem:[#allocation2 + $0xb4] sm:$0xf]  ;;  %v765_v40 = vsel %vm5100_vm11, %v757_v22, %v764_v5  ;;  %945 = vst [vmem:[#allocation2 + $0xa8] sm:$0xf] %v944_v42  ;;  %v739_v4 = vor.u32 %v737_v59, %v5468_v31  ;;  %v1695_v29 = vrot.slane %v1693_v57, 4  ;;  %v1360_v22 = vor.u32 %v1359_v30, %v5498_v25 }
  0x9c   : > { %v1074_v14 = vld [vmem:[#allocation2 + $0xb8] sm:$0xf]  ;;  %v1440_v26 = vshrl.u32 %v1073_v32, 16  ;;  %v1443_v47 = vshll.u32 %v1073_v32, 16  ;;  %946 = vst.msk [vmem:[#allocation2 + $0xac] sm:$0xf] %vm373_vm0, %v765_v40  ;;  %v1466_v40 = vpop.permute.xlu0 %1465 }
  0x9d   : > { %v1449_v11 = vshll.u32 %v1074_v14, 16  ;;  %v1058_v49 = vld [vmem:[#allocation2 + $0x78] sm:$0xf]  ;;  %v1453_v7 = vshrl.u32 %v1074_v14, 16  ;;  %v484_v5 = vsel %vm5040_vm5, 0, %v483_v46  ;;  %v1697_v43 = vsel %vm5581_vm14, %v1695_v29, %v1696_v58 }
  0x9e   : > { %v1442_v51 = vrot.slane %v1440_v26, 4  ;;  %v1445_v52 = vrot.slane %v1443_v47, 5  ;;  %v1320_v53 = vshrl.u32 %v1058_v49, 16  ;;  %v1323_v54 = vshll.u32 %v1058_v49, 16  ;;  %v954_v21 = vld [vmem:[#allocation2 + $0xbc] sm:$0x1] }
  0x9f   : > { %v5552_v41 = vrot.slane %v1449_v11, 5  ;;  %v926_v60 = vld [vmem:[#allocation2 + $0x8c] sm:$0x1]  ;;  %v955_v3 = vsel %vm5015_vm3, %v783_v56, %v954_v21  ;;  %v1455_v33 = vrot.slane %v1453_v7, 4  ;;  %485 = vst [vmem:[#allocation2 + $0xb0] sm:$0x1] %v484_v5 }
  0xa0   : > { %v1446_v61 = vor.u32 %v1445_v52, %v1442_v51  ;;  %v1322_v37 = vrot.slane %v1320_v53, 4  ;;  %v1325_v39 = vrot.slane %v1323_v54, 5  ;;  %v927_v36 = vsel %vm5015_vm3, %v715_v50, %v926_v60  ;;  %956 = vst [vmem:[#allocation2 + $0xbc] sm:$0x1] %v955_v3  ;;  %v1598_v32 = vld [vmem:[#allocation2 + $0x18] sm:$0xe] }
  0xa1   : > { %928 = vst [vmem:[#allocation2 + $0x8c] sm:$0x1] %v927_v36  ;;  %v1456_v44 = vor.u32 %v1455_v33, %v5552_v41  ;;  %v1361_v14 = vrot.slane %v1360_v22, 4  ;;  %v5596_v47 = vld [vmem:[#allocation2 + $0x1c] sm:$0xf]  ;;  %v766_v11 = vrot.slane %v5532_v20, 4 }
  0xa2   : > { %v1447_v0 = vrot.slane %v1446_v61, 4  ;;  %v1326_v15 = vor.u32 %v1325_v39, %v1322_v37  ;;  %v1070_v55 = vld [vmem:[#allocation2 + $0xa8] sm:$0xf]  ;;  %v965_v49 = vld [vmem:[#allocation2 + $0x4] sm:$0xf]  ;;  %v4748_v54 = vrot.slane %v1598_v32, 9 }
  0xa3   : > { %v5561_v38 = vld [vmem:[#allocation2 + $0xac] sm:$0xf]  ;;  %v1416_v23 = vshrl.u32 %v1070_v55, 16  ;;  %v1419_v19 = vshll.u32 %v1070_v55, 16  ;;  %997 = vst.msk [vmem:[#allocation3 + $0x4] sm:$0xf] %vm373_vm0, %v965_v49 }
  0xa4   : > { %v1452_v10 = vsel %vm5094_vm10, %v1447_v0, %v5552_v41  ;;  %v1327_v12 = vrot.slane %v1326_v15, 4  ;;  %v1425_v45 = vshll.u32 %v5561_v38, 16  ;;  %v1457_v52 = vrot.slane %v1456_v44, 4  ;;  %1561 = vst.msk [vmem:[#allocation3 + $0x4] sm:$0xf] %vm1559_vm15, %v1466_v40 }
  0xa5   : > { %1523 = vrot.lane.b32.xlu0 %v1452_v10, %s4964_s28  ;;  %v1418_v24 = vrot.slane %v1416_v23, 4  ;;  %v1421_v17 = vrot.slane %v1419_v19, 5  ;;  %v1707_v41 = vrot.slane %v5596_v47, 5  ;;  %v1429_v48 = vshrl.u32 %v5561_v38, 16  ;;  %v5607_v61 = vld [vmem:[#allocation2 + $0x28] sm:$0xf]  ;;  %v1464_v38 = vpop.permute.xlu0 %1463 }
  0xa6   : > { %v1332_v28 = vsel %vm5094_vm10, %v1327_v12, %v5406_v13  ;;  %v5577_v2 = vrot.slane %v1425_v45, 5  ;;  %v936_v13 = vld [vmem:[#allocation2 + $0x9c] sm:$0xf]  ;;  %v947_v37 = vld [vmem:[#allocation2 + $0xb0] sm:$0x1]  ;;  %v1714_v36 = vrot.slane %v5607_v61, 5 }
  0xa7   : > { %1503 = vrot.lane.b32.xlu2 %v1332_v28, %s4964_s28  ;;  %v1422_v31 = vor.u32 %v1421_v17, %v1418_v24  ;;  %v937_v35 = vsel %vm5088_vm9, %v739_v4, %v936_v13  ;;  %v1075_v51 = vld [vmem:[#allocation2 + $0xbc] sm:$0x1]  ;;  %v1595_v60 = vld [vmem:[#allocation2 + $0xc] sm:$0xe]  ;;  %v948_v30 = vsel %vm5015_vm3, %v766_v11, %v947_v37  ;;  %v5612_v7 = vld [vmem:[#allocation2 + $0x10] sm:$0xf]  ;;  %v1708_v55 = vsel %vm5581_vm14, %v4748_v54, %v1707_v41 }
  0xa8   : > { %938 = vst [vmem:[#allocation2 + $0x9c] sm:$0xf] %v937_v35  ;;  %v1063_v27 = vld [vmem:[#allocation2 + $0x8c] sm:$0x1]  ;;  %v1459_v53 = vshll.u32 %v1075_v51, 16  ;;  %v1431_v12 = vrot.slane %v1429_v48, 4 }
  0xa9   : > { %v1423_v42 = vrot.slane %v1422_v31, 4  ;;  %v1363_v26 = vshll.u32 %v1063_v27, 16  ;;  %949 = vst [vmem:[#allocation2 + $0xb0] sm:$0x1] %v948_v30  ;;  %v1603_v18 = vld [vmem:[#allocation2 + $0x2c] sm:$0x1] }
  0xaa   : > { %v1461_v39 = vrot.slane %v1459_v53, 5  ;;  %v964_v23 = vld [vmem:[#allocation2] sm:$0xf]  ;;  %v1472_v45 = vpop.permute.xlu2 %1471  ;;  %v968_v21 = vld [vmem:[#allocation2 + $0x18] sm:$0xf]  ;;  %v4747_v46 = vrot.slane %v1595_v60, 9  ;;  %v1432_v29 = vor.u32 %v1431_v12, %v5577_v2 }
  0xab   : > { %v1428_v25 = vsel %vm5094_vm10, %v1423_v42, %v5577_v2  ;;  %v1365_v50 = vrot.slane %v1363_v26, 5  ;;  %996 = vst.msk [vmem:[#allocation3] sm:$0xf] %vm373_vm0, %v964_v23  ;;  %v1700_v24 = vrot.slane %v5612_v7, 5  ;;  %v1716_v17 = vrot.slane %v1714_v36, 4  ;;  %v1468_v42 = vpop.permute.xlu1 %1467 }
  0xac   : > { %1519 = vrot.lane.b32.xlu1 %v1428_v25, %s4964_s28  ;;  %v1462_v15 = vsel %vm5094_vm10, %v1457_v52, %v1461_v39  ;;  %1560 = vst.msk [vmem:[#allocation3] sm:$0xf] %vm1559_vm15, %v1464_v38  ;;  %v1717_v3 = vrot.slane %v1603_v18, 5  ;;  %v1600_v13 = vld [vmem:[#allocation2 + $0x20] sm:$0x1]  ;;  %v1433_v44 = vrot.slane %v1432_v29, 4 }
  0xad   : > { %1805 = vrot.lane.b32.xlu0 %v1697_v43, %s4965_s8  ;;  %v1366_v20 = vsel %vm5094_vm10, %v1361_v14, %v1365_v50  ;;  %1000 = vst.msk [vmem:[#allocation3 + $0x10] sm:$0xf] %vm373_vm0, %v968_v21  ;;  %v1701_v31 = vsel %vm5581_vm14, %v4747_v46, %v1700_v24  ;;  %v1607_v35 = vld [vmem:[#allocation2 + $0x3c] sm:$0xe]  ;;  %v966_v2 = vld [vmem:[#allocation2 + $0xc] sm:$0xf]  ;;  %v1476_v43 = vpop.permute.xlu0 %1475 }
  0xae   : > { %1564 = vst.msk [vmem:[#allocation3 + $0x10] sm:$0xf] %vm1559_vm15, %v1472_v45  ;;  %v1718_v5 = vsel %vm5581_vm14, %v1716_v17, %v1717_v3  ;;  %v970_v27 = vld [vmem:[#allocation2 + $0x24] sm:$0xf]  ;;  %v969_v40 = vld [vmem:[#allocation2 + $0x1c] sm:$0xf] }
  0xaf   : > { %1509 = vrot.lane.b32.xlu2 %v1366_v20, %s4964_s28  ;;  %v1067_v59 = vld [vmem:[#allocation2 + $0x9c] sm:$0xf]  ;;  %998 = vst.msk [vmem:[#allocation3 + $0x8] sm:$0xf] %vm373_vm0, %v966_v2  ;;  %v1709_v25 = vrot.slane %v1707_v41, 4  ;;  %v1710_v14 = vrot.slane %v1600_v13, 5 }
  0xb0   : > { %v1392_v56 = vshrl.u32 %v1067_v59, 16  ;;  %v1395_v0 = vshll.u32 %v1067_v59, 16  ;;  %v1072_v58 = vld [vmem:[#allocation2 + $0xb0] sm:$0x1]  ;;  %1562 = vst.msk [vmem:[#allocation3 + $0x8] sm:$0xf] %vm1559_vm15, %v1468_v42 }
  0xb1   : > { %v1435_v22 = vshll.u32 %v1072_v58, 16  ;;  %1002 = vst.msk [vmem:[#allocation3 + $0x18] sm:$0xf] %vm373_vm0, %v970_v27  ;;  %v4751_v47 = vrot.slane %v1607_v35, 9  ;;  %v5650_v50 = vld [vmem:[#allocation2 + $0x4c] sm:$0xf]  ;;  %v1711_v52 = vsel %vm5581_vm14, %v1709_v25, %v1710_v14 }
  0xb2   : > { %v1394_v19 = vrot.slane %v1392_v56, 4  ;;  %v1397_v10 = vrot.slane %v1395_v0, 5  ;;  %1566 = vst.msk [vmem:[#allocation3 + $0x18] sm:$0xf] %vm1559_vm15, %v1476_v43  ;;  %v1592_v51 = vld [vmem:[#allocation2] sm:$0xe] }
  0xb3   : > { %v1437_v32 = vrot.slane %v1435_v22, 5  ;;  %1001 = vst.msk [vmem:[#allocation3 + $0x14] sm:$0xf] %vm373_vm0, %v969_v40  ;;  %v1604_v53 = vld [vmem:[#allocation2 + $0x30] sm:$0xe]  ;;  %v1735_v48 = vrot.slane %v5650_v50, 5  ;;  %v1470_v37 = vpop.permute.xlu1 %1469 }
  0xb4   : > { %1525 = vrot.lane.b32.xlu1 %v1462_v15, %s4964_s28  ;;  %v1398_v4 = vor.u32 %v1397_v10, %v1394_v19  ;;  %v5656_v54 = vld [vmem:[#allocation2 + $0x34] sm:$0xf]  ;;  %v967_v20 = vld [vmem:[#allocation2 + $0x10] sm:$0xf]  ;;  %v4746_v60 = vrot.slane %v1592_v51, 9  ;;  %v4750_v0 = vrot.slane %v1604_v53, 9 }
  0xb5   : > { %1811 = vrot.lane.b32.xlu0 %v1708_v55, %s4965_s8  ;;  %v1438_v49 = vsel %vm5094_vm10, %v1433_v44, %v1437_v32  ;;  %v973_v39 = vld [vmem:[#allocation2 + $0x34] sm:$0xf]  ;;  %v1482_v59 = vpop.permute.xlu0 %1481  ;;  %v1612_v30 = vld [vmem:[#allocation2 + $0x50] sm:$0x1]  ;;  %999 = vst.msk [vmem:[#allocation3 + $0xc] sm:$0xf] %vm373_vm0, %v967_v20 }
  0xb6   : > { %v1399_v28 = vrot.slane %v1398_v4, 4  ;;  %1563 = vst.msk [vmem:[#allocation3 + $0xc] sm:$0xf] %vm1559_vm15, %v1470_v37  ;;  %v972_v56 = vld [vmem:[#allocation2 + $0x30] sm:$0xf]  ;;  %v1721_v15 = vrot.slane %v5656_v54, 5  ;;  %v1694_v23 = vsel %vm5581_vm14, %v4746_v60, %v1693_v57 }
  0xb7   : > { %1005 = vst.msk [vmem:[#allocation3 + $0x24] sm:$0xf] %vm373_vm0, %v973_v39  ;;  %v1737_v55 = vrot.slane %v1735_v48, 4  ;;  %v1738_v18 = vrot.slane %v1612_v30, 5  ;;  %v1597_v38 = vld [vmem:[#allocation2 + $0x14] sm:$0x1] }
  0xb8   : > { %v1404_v33 = vsel %vm5094_vm10, %v1399_v28, %v5519_v62  ;;  %v5639_v62 = vld [vmem:[#allocation2 + $0x40] sm:$0xf]  ;;  %v1474_v26 = vpop.permute.xlu2 %1473  ;;  %1569 = vst.msk [vmem:[#allocation3 + $0x24] sm:$0xf] %vm1559_vm15, %v1482_v59  ;;  %v1722_v10 = vsel %vm5581_vm14, %v4750_v0, %v1721_v15  ;;  %v1702_v12 = vrot.slane %v1700_v24, 4  ;;  %v1703_v45 = vrot.slane %v1597_v38, 5 }
  0xb9   : > { %1515 = vrot.lane.b32.xlu2 %v1404_v33, %s4964_s28  ;;  %v1728_v11 = vrot.slane %v5639_v62, 5  ;;  %1565 = vst.msk [vmem:[#allocation3 + $0x14] sm:$0xf] %vm1559_vm15, %v1474_v26  ;;  %v1739_v8 = vsel %vm5581_vm14, %v1737_v55, %v1738_v18  ;;  %v1609_v57 = vld [vmem:[#allocation2 + $0x44] sm:$0x1]  ;;  %v1723_v20 = vrot.slane %v1721_v15, 4 }
  0xba   : > { %1004 = vst.msk [vmem:[#allocation3 + $0x20] sm:$0xf] %vm373_vm0, %v972_v56  ;;  %v971_v21 = vld [vmem:[#allocation2 + $0x28] sm:$0xf]  ;;  %v1616_v3 = vld [vmem:[#allocation2 + $0x60] sm:$0xe] }
  0xbb   : > { %v1729_v41 = vsel %vm5581_vm14, %v4751_v47, %v1728_v11  ;;  %v1478_v4 = vpop.permute.xlu1 %1477  ;;  %v976_v46 = vld [vmem:[#allocation2 + $0x48] sm:$0xf]  ;;  %v1617_v28 = vld [vmem:[#allocation2 + $0x64] sm:$0xf]  ;;  %1003 = vst.msk [vmem:[#allocation3 + $0x1c] sm:$0xf] %vm373_vm0, %v971_v21 }
  0xbc   : > { %1807 = vrot.lane.b32.xlu1 %v1701_v31, %s4965_s8  ;;  %1567 = vst.msk [vmem:[#allocation3 + $0x1c] sm:$0xf] %vm1559_vm15, %v1478_v4  ;;  %v975_v7 = vld [vmem:[#allocation2 + $0x40] sm:$0xf]  ;;  %v1730_v24 = vrot.slane %v1728_v11, 4  ;;  %v1731_v29 = vrot.slane %v1609_v57, 5  ;;  %v1704_v31 = vsel %vm5581_vm14, %v1702_v12, %v1703_v45 }
  0xbd   : > { %1817 = vrot.lane.b32.xlu0 %v1718_v5, %s4965_s8  ;;  %v1488_v17 = vpop.permute.xlu0 %1487  ;;  %1008 = vst.msk [vmem:[#allocation3 + $0x30] sm:$0xf] %vm373_vm0, %v976_v46  ;;  %v4754_v58 = vrot.slane %v1616_v3, 9  ;;  %v1749_v33 = vrot.slane %v1617_v28, 5  ;;  %v5694_v22 = vld [vmem:[#allocation2 + $0x70] sm:$0xf] }
  0xbe   : > { %1572 = vst.msk [vmem:[#allocation3 + $0x30] sm:$0xf] %vm1559_vm15, %v1488_v17  ;;  %v1601_v5 = vld [vmem:[#allocation2 + $0x24] sm:$0xe]  ;;  %v1732_v35 = vsel %vm5581_vm14, %v1730_v24, %v1731_v29  ;;  %v1613_v42 = vld [vmem:[#allocation2 + $0x54] sm:$0xe] }
  0xbf   : > { %1007 = vst.msk [vmem:[#allocation3 + $0x2c] sm:$0xf] %vm373_vm0, %v975_v7  ;;  %v5700_v2 = vld [vmem:[#allocation2 + $0x58] sm:$0xf]  ;;  %v1750_v43 = vsel %vm5581_vm14, %v4754_v58, %v1749_v33  ;;  %v1756_v27 = vrot.slane %v5694_v22, 5  ;;  %v4749_v40 = vrot.slane %v1601_v5, 9 }
  0xc0   : > { %v974_v44 = vld [vmem:[#allocation2 + $0x3c] sm:$0xf]  ;;  %v979_v62 = vld [vmem:[#allocation2 + $0x58] sm:$0xf]  ;;  %v1621_v25 = vld [vmem:[#allocation2 + $0x74] sm:$0x1] }
  0xc1   : > { %1521 = vrot.lane.b32.xlu2 %v1438_v49, %s4964_s28  ;;  %1006 = vst.msk [vmem:[#allocation3 + $0x28] sm:$0xf] %vm373_vm0, %v974_v44  ;;  %v978_v26 = vld [vmem:[#allocation2 + $0x54] sm:$0xf]  ;;  %v4753_v47 = vrot.slane %v1613_v42, 9  ;;  %v1742_v11 = vrot.slane %v5700_v2, 5  ;;  %v1715_v53 = vsel %vm5581_vm14, %v4749_v40, %v1714_v36 }
  0xc2   : > { %1011 = vst.msk [vmem:[#allocation3 + $0x3c] sm:$0xf] %vm373_vm0, %v979_v62  ;;  %v1758_v49 = vrot.slane %v1756_v27, 4  ;;  %v1759_v51 = vrot.slane %v1621_v25, 5  ;;  %v1618_v39 = vld [vmem:[#allocation2 + $0x68] sm:$0x1] }
  0xc3   : > { %1010 = vst.msk [vmem:[#allocation3 + $0x38] sm:$0xf] %vm373_vm0, %v978_v26  ;;  %v1625_v59 = vld [vmem:[#allocation2 + $0x84] sm:$0xe]  ;;  %v977_v60 = vld [vmem:[#allocation2 + $0x4c] sm:$0xf] }
  0xc4   : > { %1813 = vrot.lane.b32.xlu1 %v1711_v52, %s4965_s8  ;;  %v1606_v52 = vld [vmem:[#allocation2 + $0x38] sm:$0x1]  ;;  %v1760_v61 = vsel %vm5581_vm14, %v1758_v49, %v1759_v51  ;;  %v982_v30 = vld [vmem:[#allocation2 + $0x6c] sm:$0xf]  ;;  %v1626_v56 = vld [vmem:[#allocation2 + $0x88] sm:$0xf] }
  0xc5   : > { %1823 = vrot.lane.b32.xlu0 %v1729_v41, %s4965_s8  ;;  %v1743_v41 = vsel %vm5581_vm14, %v4753_v47, %v1742_v11  ;;  %v1724_v37 = vrot.slane %v1606_v52, 5  ;;  %1009 = vst.msk [vmem:[#allocation3 + $0x34] sm:$0xf] %vm373_vm0, %v977_v60  ;;  %v981_v0 = vld [vmem:[#allocation2 + $0x64] sm:$0xf]  ;;  %v1751_v54 = vrot.slane %v1749_v33, 4 }
  0xc6   : > { %v1752_v15 = vrot.slane %v1618_v39, 5  ;;  %1014 = vst.msk [vmem:[#allocation3 + $0x48] sm:$0xf] %vm373_vm0, %v982_v30  ;;  %v4757_v55 = vrot.slane %v1625_v59, 9  ;;  %v1770_v18 = vrot.slane %v1626_v56, 5  ;;  %v1744_v42 = vrot.slane %v1742_v11, 4 }
  0xc7   : > { %v1480_v19 = vpop.permute.xlu2 %1479  ;;  %1013 = vst.msk [vmem:[#allocation3 + $0x44] sm:$0xf] %vm373_vm0, %v981_v0  ;;  %v1622_v45 = vld [vmem:[#allocation2 + $0x78] sm:$0xe]  ;;  %v980_v4 = vld [vmem:[#allocation2 + $0x60] sm:$0xf] }
  0xc8   : > { %1568 = vst.msk [vmem:[#allocation3 + $0x20] sm:$0xf] %vm1559_vm15, %v1480_v19  ;;  %v5737_v19 = vld [vmem:[#allocation2 + $0x94] sm:$0xf]  ;;  %v1753_v12 = vsel %vm5581_vm14, %v1751_v54, %v1752_v15  ;;  %v1771_v57 = vsel %vm5581_vm14, %v4757_v55, %v1770_v18  ;;  %v985_v46 = vld [vmem:[#allocation2 + $0x7c] sm:$0xf] }
  0xc9   : > { %1803 = vrot.lane.b32.xlu2 %v1694_v23, %s4965_s8  ;;  %v1484_v32 = vpop.permute.xlu1 %1483  ;;  %v1725_v23 = vsel %vm5581_vm14, %v1723_v20, %v1724_v37  ;;  %v1777_v21 = vrot.slane %v5737_v19, 5  ;;  %v1630_v3 = vld [vmem:[#allocation2 + $0x98] sm:$0x1]  ;;  %1012 = vst.msk [vmem:[#allocation3 + $0x40] sm:$0xf] %vm373_vm0, %v980_v4  ;;  %v4756_v29 = vrot.slane %v1622_v45, 9 }
  0xca   : > { %1570 = vst.msk [vmem:[#allocation3 + $0x28] sm:$0xf] %vm1559_vm15, %v1484_v32  ;;  %v984_v24 = vld [vmem:[#allocation2 + $0x78] sm:$0xf]  ;;  %v1627_v50 = vld [vmem:[#allocation2 + $0x8c] sm:$0x1] }
  0xcb   : > { %1017 = vst.msk [vmem:[#allocation3 + $0x54] sm:$0xf] %vm373_vm0, %v985_v46  ;;  %v1779_v33 = vrot.slane %v1777_v21, 4  ;;  %v983_v32 = vld [vmem:[#allocation2 + $0x70] sm:$0xf]  ;;  %v1772_v2 = vrot.slane %v1770_v18, 4 }
  0xcc   : > { %1819 = vrot.lane.b32.xlu1 %v1722_v10, %s4965_s8  ;;  %v1610_v10 = vld [vmem:[#allocation2 + $0x48] sm:$0xe]  ;;  %1016 = vst.msk [vmem:[#allocation3 + $0x50] sm:$0xf] %vm373_vm0, %v984_v24  ;;  %v988_v62 = vld [vmem:[#allocation2 + $0x90] sm:$0xf] }
  0xcd   : > { %1829 = vrot.lane.b32.xlu0 %v1739_v8, %s4965_s8  ;;  %v5742_v8 = vld [vmem:[#allocation2 + $0x7c] sm:$0xf]  ;;  %v4752_v17 = vrot.slane %v1610_v10, 9  ;;  %v1635_v40 = vld [vmem:[#allocation2 + $0xac] sm:$0xf]  ;;  %vm1899_vm2 = vcmask 191616  }
  0xce   : > { %v1763_v58 = vrot.slane %v5742_v8, 5  ;;  %1015 = vst.msk [vmem:[#allocation3 + $0x4c] sm:$0xf] %vm373_vm0, %v983_v32  ;;  %v987_v11 = vld [vmem:[#allocation2 + $0x88] sm:$0xf]  ;;  %v1791_v51 = vrot.slane %v1635_v40, 5 }
  0xcf   : > { %v1486_v13 = vpop.permute.xlu2 %1485  ;;  %v1736_v5 = vsel %vm5581_vm14, %v4752_v17, %v1735_v48  ;;  %v1634_v48 = vld [vmem:[#allocation2 + $0xa8] sm:$0xe]  ;;  %1020 = vst.msk [vmem:[#allocation3 + $0x60] sm:$0xf] %vm373_vm0, %v988_v62  ;;  %v5776_v52 = vld [vmem:[#allocation2 + $0xb8] sm:$0xf] }
  0xd0   : > { %1571 = vst.msk [vmem:[#allocation3 + $0x2c] sm:$0xf] %vm1559_vm15, %v1486_v13  ;;  %v1615_v13 = vld [vmem:[#allocation2 + $0x5c] sm:$0x1]  ;;  %v4760_v49 = vrot.slane %v1634_v48, 9  ;;  %v1765_v17 = vrot.slane %v1763_v58, 4 }
  0xd1   : > { %1809 = vrot.lane.b32.xlu2 %v1704_v31, %s4965_s8  ;;  %v1494_v14 = vpop.permute.xlu0 %1493  ;;  %v1490_v36 = vpop.permute.xlu1 %1489  ;;  %v1780_v31 = vrot.slane %v1630_v3, 5  ;;  %1019 = vst.msk [vmem:[#allocation3 + $0x5c] sm:$0xf] %vm373_vm0, %v987_v11  ;;  %v1631_v37 = vld [vmem:[#allocation2 + $0x9c] sm:$0xe]  ;;  %v1793_v3 = vrot.slane %v1791_v51, 4 }
  0xd2   : > { %1575 = vst.msk [vmem:[#allocation3 + $0x3c] sm:$0xf] %vm1559_vm15, %v1494_v14  ;;  %v1773_v14 = vrot.slane %v1627_v50, 5  ;;  %v1632_v39 = vld [vmem:[#allocation2 + $0xa0] sm:$0xf]  ;;  %v1792_v59 = vsel %vm5581_vm14, %v4760_v49, %v1791_v51  ;;  %v4759_v54 = vrot.slane %v1631_v37, 9 }
  0xd3   : > { %1573 = vst.msk [vmem:[#allocation3 + $0x34] sm:$0xf] %vm1559_vm15, %v1490_v36  ;;  %v1781_v44 = vsel %vm5581_vm14, %v1779_v33, %v1780_v31  ;;  %v986_v60 = vld [vmem:[#allocation2 + $0x84] sm:$0xf]  ;;  %v991_v36 = vld [vmem:[#allocation2 + $0xa0] sm:$0xf] }
  0xd4   : > { %1825 = vrot.lane.b32.xlu1 %v1732_v35, %s4965_s8  ;;  %v1764_v35 = vsel %vm5581_vm14, %v4756_v29, %v1763_v58  ;;  %v1774_v20 = vsel %vm5581_vm14, %v1772_v2, %v1773_v14  ;;  %v990_v30 = vld [vmem:[#allocation2 + $0x9c] sm:$0xf]  ;;  %1018 = vst.msk [vmem:[#allocation3 + $0x58] sm:$0xf] %vm373_vm0, %v986_v60  ;;  %v1784_v15 = vrot.slane %v1632_v39, 5  ;;  %vm2653_vm4 = vcmask 322816  }
  0xd5   : > { %1835 = vrot.lane.b32.xlu0 %v1750_v43, %s4965_s8  ;;  %v1745_v43 = vrot.slane %v1615_v13, 5  ;;  %v1639_v0 = vld [vmem:[#allocation2 + $0xbc] sm:$0x1]  ;;  %1023 = vst.msk [vmem:[#allocation3 + $0x6c] sm:$0xf] %vm373_vm0, %v991_v36  ;;  %vm4312_vm6 = vcmask 1043456  }
  0xd6   : > { %1022 = vst.msk [vmem:[#allocation3 + $0x68] sm:$0xf] %vm373_vm0, %v990_v30  ;;  %v1801_v18 = vrot.slane %v1639_v0, 5  ;;  %v1785_v10 = vsel %vm5581_vm14, %v4759_v54, %v1784_v15  ;;  %v1636_v45 = vld [vmem:[#allocation2 + $0xb0] sm:$0x1]  ;;  %v1786_v32 = vrot.slane %v1784_v15, 4 }
  0xd7   : > { %v989_v4 = vld [vmem:[#allocation2 + $0x94] sm:$0xf]  ;;  %v1934_v58 = vld [vmem:[#allocation2 + $0x18] sm:$0xf]  ;;  %v992_v31 = vld [vmem:[#allocation2 + $0xa8] sm:$0xf] }
  0xd8   : > { %v994_v46 = vld [vmem:[#allocation2 + $0xb4] sm:$0xf]  ;;  %1021 = vst.msk [vmem:[#allocation3 + $0x64] sm:$0xf] %vm373_vm0, %v989_v4  ;;  %v995_v40 = vld [vmem:[#allocation2 + $0xb8] sm:$0xf] }
  0xd9   : > { %1815 = vrot.lane.b32.xlu2 %v1715_v53, %s4965_s8  ;;  %v1746_v53 = vsel %vm5581_vm14, %v1744_v42, %v1745_v43  ;;  %1026 = vst.msk [vmem:[#allocation3 + $0x78] sm:$0xf] %vm373_vm0, %v994_v46  ;;  %v1932_v42 = vld [vmem:[#allocation2 + $0xc] sm:$0xf]  ;;  %v1940_v2 = vld [vmem:[#allocation2 + $0x3c] sm:$0xf] }
  0xda   : > { %1024 = vst.msk [vmem:[#allocation3 + $0x70] sm:$0xf] %vm373_vm0, %v992_v31  ;;  %v1938_v49 = vld [vmem:[#allocation2 + $0x30] sm:$0xf]  ;;  %v1943_v51 = vld [vmem:[#allocation2 + $0x4c] sm:$0xf] }
  0xdb   : > { %1027 = vst.msk [vmem:[#allocation3 + $0x7c] sm:$0xf] %vm373_vm0, %v995_v40  ;;  %v1941_v37 = vld [vmem:[#allocation2 + $0x40] sm:$0xf]  ;;  %v1936_v60 = vld [vmem:[#allocation2 + $0x24] sm:$0xf] }
  0xdc   : > { %1831 = vrot.lane.b32.xlu1 %v1743_v41, %s4965_s8  ;;  %v1619_v41 = vld [vmem:[#allocation2 + $0x6c] sm:$0xe]  ;;  %v1946_v39 = vld [vmem:[#allocation2 + $0x60] sm:$0xf]  ;;  %v1944_v30 = vld [vmem:[#allocation2 + $0x54] sm:$0xf] }
  0xdd   : > { %1841 = vrot.lane.b32.xlu0 %v1760_v61, %s4965_s8  ;;  %v1798_v61 = vrot.slane %v5776_v52, 5  ;;  %v4755_v56 = vrot.slane %v1619_v41, 9  ;;  %v1933_v52 = vld [vmem:[#allocation2 + $0x10] sm:$0xf]  ;;  %v4953_v54 = vld [vmem:[%s7184_s1] ss:$0 sm:$0xff] }
  0xde   : > { %v1500_v38 = vpop.permute.xlu0 %1499  ;;  %v1949_v0 = vld [vmem:[#allocation2 + $0x70] sm:$0xf]  ;;  %v1950_v31 = vld [vmem:[#allocation2 + $0x78] sm:$0xf]  ;;  %v1953_v40 = vld [vmem:[#allocation2 + $0x88] sm:$0xf] }
  0xdf   : > { %1578 = vst.msk [vmem:[#allocation3 + $0x48] sm:$0xf] %vm1559_vm15, %v1500_v38  ;;  %v1800_v55 = vrot.slane %v1798_v61, 4  ;;  %v1757_v38 = vsel %vm5581_vm14, %v4755_v56, %v1756_v27  ;;  %v993_v27 = vld [vmem:[#allocation2 + $0xac] sm:$0xf]  ;;  %v267_v56 = vld [vmem:[%s5049_s27 + $0xf0] sm:$0xff] }
  0xe0   : > { %1025 = vst.msk [vmem:[#allocation3 + $0x74] sm:$0xf] %vm373_vm0, %v993_v27  ;;  %v303_v15 = vmul.f32 %v4953_v54, %v267_v56  ;;  %vm2990_vm7 = vcmask 388416   ;;  %vm3184_vm8 = vcmask 454016   ;;  %vm4263_vm12 = vcmask 588800  }
  0xe1   : > { %1821 = vrot.lane.b32.xlu2 %v1725_v23, %s4965_s8  ;;  %v1624_v23 = vld [vmem:[#allocation2 + $0x80] sm:$0x1]  ;;  %vm4405_vm13 = vcmask 64512  }
  0xe2   : > { %v1766_v22 = vrot.slane %v1624_v23, 5 }
  0xe4   : > { %1837 = vrot.lane.b32.xlu1 %v1753_v12, %s4965_s8  ;;  %v1492_v28 = vpop.permute.xlu2 %1491  ;;  %v1802_v12 = vsel %vm5581_vm14, %v1800_v55, %v1801_v18  ;;  %v1767_v8 = vsel %vm5581_vm14, %v1765_v17, %v1766_v22  ;;  %v4954_v18 = vld [vmem:[%s7185_s2] ss:$0 sm:$0xff]  ;;  %v1947_v17 = vld [vmem:[#allocation2 + $0x64] sm:$0xf] }
  0xe5   : > { %v1496_v7 = vpop.permute.xlu1 %1495  ;;  %1847 = vrot.lane.b32.xlu0 %v1771_v57, %s4965_s8  ;;  %1574 = vst.msk [vmem:[#allocation3 + $0x38] sm:$0xf] %vm1559_vm15, %v1492_v28  ;;  %v1794_v28 = vrot.slane %v1636_v45, 5  ;;  %v1939_v45 = vld [vmem:[#allocation2 + $0x34] sm:$0xf] }
  0xe6   : > { %1576 = vst.msk [vmem:[#allocation3 + $0x40] sm:$0xf] %vm1559_vm15, %v1496_v7  ;;  %v1628_v7 = vld [vmem:[#allocation2 + $0x90] sm:$0xe]  ;;  %v1952_v22 = vld [vmem:[#allocation2 + $0x84] sm:$0xf] }
  0xe7   : > { %v1795_v29 = vsel %vm5581_vm14, %v1793_v3, %v1794_v28  ;;  %v4758_v13 = vrot.slane %v1628_v7, 9 }
  0xe9   : > { %1827 = vrot.lane.b32.xlu2 %v1736_v5, %s4965_s8  ;;  %v1778_v5 = vsel %vm5581_vm14, %v4758_v13, %v1777_v21  ;;  %v1637_v21 = vld [vmem:[#allocation2 + $0xb4] sm:$0xe] }
  0xea   : > { %v4761_v14 = vrot.slane %v1637_v21, 9 }
  0xec   : > { %1843 = vrot.lane.b32.xlu1 %v1764_v35, %s4965_s8  ;;  %v1498_v25 = vpop.permute.xlu2 %1497  ;;  %v1633_v35 = vld [vmem:[#allocation2 + $0xa4] sm:$0x1] }
  0xed   : > { %1853 = vrot.lane.b32.xlu0 %v1781_v44, %s4965_s8  ;;  %1577 = vst.msk [vmem:[#allocation3 + $0x44] sm:$0xf] %vm1559_vm15, %v1498_v25  ;;  %v1506_v26 = vpop.permute.xlu0 %1505  ;;  %v1502_v47 = vpop.permute.xlu1 %1501  ;;  %v1937_v44 = vld [vmem:[#allocation2 + $0x28] sm:$0xf]  ;;  %v1787_v62 = vrot.slane %v1633_v35, 5  ;;  %v268_v35 = vld [vmem:[%s5049_s27 + $0xf8] sm:$0xff] }
  0xee   : > { %1581 = vst.msk [vmem:[#allocation3 + $0x54] sm:$0xf] %vm1559_vm15, %v1506_v26  ;;  %v1935_v25 = vld [vmem:[#allocation2 + $0x1c] sm:$0xf] }
  0xef   : > { %1579 = vst.msk [vmem:[#allocation3 + $0x4c] sm:$0xf] %vm1559_vm15, %v1502_v47  ;;  %v1788_v19 = vsel %vm5581_vm14, %v1786_v32, %v1787_v62  ;;  %v1799_v47 = vsel %vm5581_vm14, %v4761_v14, %v1798_v61  ;;  %v2125_v32 = vld [vmem:[#allocation2 + $0xc] sm:$0xf]  ;;  %v1945_v62 = vld [vmem:[#allocation2 + $0x58] sm:$0xf] }
  0xf0   : > { %v2177_v21 = vshll.u32 %v2125_v32, 16 }
  0xf1   : > { %1833 = vrot.lane.b32.xlu2 %v1746_v53, %s4965_s8 }
  0xf4   : > { %1849 = vrot.lane.b32.xlu1 %v1774_v20, %s4965_s8 }
  0xf5   : > { %1859 = vrot.lane.b32.xlu0 %v1792_v59, %s4965_s8 }
  0xf9   : > { %1839 = vrot.lane.b32.xlu2 %v1757_v38, %s4965_s8  ;;  %v339_v38 = vadd.f32 %v4954_v18, %v303_v15 }
  0xfb   : > { %v1512_v57 = vpop.permute.xlu0 %1511 }
  0xfc   : > { %1584 = vst.msk [vmem:[#allocation3 + $0x60] sm:$0xf] %vm1559_vm15, %v1512_v57  ;;  %1855 = vrot.lane.b32.xlu1 %v1785_v10, %s4965_s8  ;;  %v371_v10 = vmax.f32 %v339_v38, 0.0  ;;  %v1951_v38 = vld [vmem:[#allocation2 + $0x7c] sm:$0xf] }
  0xfd   : > { %1865 = vrot.lane.b32.xlu0 %v1802_v12, %s4965_s8  ;;  %v433_v12 = vld [vmem:[#allocation2 + $0xc0] sm:$0x1] }
  0xfe   : > { %v434_v4 = vsel %vm5015_vm3, 0, %v433_v12  ;;  %v525_v46 = vpack.c.bf16 %v371_v10, %v371_v10 }
  0xff   : > { %435 = vst [vmem:[#allocation2 + $0xc0] sm:$0x1] %v434_v4 }
 0x100   : > { %v785_v27 = vshrl.u32 %v525_v46, 16 }
 0x101   : > { %v1504_v24 = vpop.permute.xlu2 %1503  ;;  %1845 = vrot.lane.b32.xlu2 %v1767_v8, %s4965_s8  ;;  %v788_v8 = vshll.u32 %v525_v46, 16  ;;  %v1959_v46 = vld [vmem:[#allocation2 + $0xac] sm:$0xf] }
 0x102   : > { %1580 = vst.msk [vmem:[#allocation3 + $0x50] sm:$0xf] %vm1559_vm15, %v1504_v24  ;;  %v1508_v33 = vpop.permute.xlu1 %1507  ;;  %v5874_v28 = vrot.slane %v785_v27, 7 }
 0x103   : > { %1582 = vst.msk [vmem:[#allocation3 + $0x58] sm:$0xf] %vm1559_vm15, %v1508_v33 }
 0x104   : > { %1861 = vrot.lane.b32.xlu1 %v1795_v29, %s4965_s8  ;;  %v790_v24 = vor.u32 %v788_v8, %v5874_v28  ;;  %v1942_v29 = vld [vmem:[#allocation2 + $0x48] sm:$0xf] }
 0x105   : > { %2000 = vrot.lane.b32.xlu0 %v1934_v58, %s4966_s9 }
 0x106   : > { %v957_v33 = vld [vmem:[#allocation2 + $0xc0] sm:$0xf] }
 0x107   : > { %v958_v13 = vsel %vm5088_vm9, %v790_v24, %v957_v33  ;;  %v2127_v24 = vld [vmem:[#allocation2 + $0x14] sm:$0x1]  ;;  %vm3745_vm9 = vcmask 519616  }
 0x108   : > { %959 = vst [vmem:[#allocation2 + $0xc0] sm:$0xf] %v958_v13 }
 0x109   : > { %1851 = vrot.lane.b32.xlu2 %v1778_v5, %s4965_s8  ;;  %v1510_v43 = vpop.permute.xlu2 %1509  ;;  %v1955_v5 = vld [vmem:[#allocation2 + $0x94] sm:$0xf] }
 0x10a   : > { %v1514_v50 = vpop.permute.xlu1 %1513  ;;  %1583 = vst.msk [vmem:[#allocation3 + $0x5c] sm:$0xf] %vm1559_vm15, %v1510_v43 }
 0x10b   : > { %v1518_v48 = vpop.permute.xlu0 %1517  ;;  %1585 = vst.msk [vmem:[#allocation3 + $0x64] sm:$0xf] %vm1559_vm15, %v1514_v50 }
 0x10c   : > { %1996 = vrot.lane.b32.xlu1 %v1932_v42, %s4966_s9  ;;  %1587 = vst.msk [vmem:[#allocation3 + $0x6c] sm:$0xf] %vm1559_vm15, %v1518_v48  ;;  %v304_v42 = vmul.f32 %v4953_v54, %v268_v35  ;;  %v2138_v35 = vld [vmem:[#allocation2 + $0x40] sm:$0xf] }
 0x10d   : > { %2006 = vrot.lane.b32.xlu0 %v1937_v44, %s4966_s9 }
 0x10e   : > { %v340_v44 = vadd.f32 %v4954_v18, %v304_v42  ;;  %v1954_v42 = vld [vmem:[#allocation2 + $0x90] sm:$0xf] }
 0x110   : > { %v372_v48 = vmax.f32 %v340_v44, 0.0  ;;  %v2135_v44 = vld [vmem:[#allocation2 + $0x34] sm:$0xf] }
 0x111   : > { %1857 = vrot.lane.b32.xlu2 %v1788_v19, %s4965_s8  ;;  %v2174_v19 = vshrl.u32 %v2125_v32, 16  ;;  %v2193_v32 = vshll.u32 %v2127_v24, 16 }
 0x113   : > { %v1516_v26 = vpop.permute.xlu2 %1515 }
 0x114   : > { %2002 = vrot.lane.b32.xlu1 %v1935_v25, %s4966_s9  ;;  %1586 = vst.msk [vmem:[#allocation3 + $0x68] sm:$0xf] %vm1559_vm15, %v1516_v26  ;;  %v526_v25 = vpack.c.bf16 %v372_v48, %v372_v48  ;;  %v1962_v48 = vld [vmem:[#allocation2 + $0xc0] sm:$0xf] }
 0x115   : > { %2012 = vrot.lane.b32.xlu0 %v1940_v2, %s4966_s9  ;;  %v1958_v2 = vld [vmem:[#allocation2 + $0xa8] sm:$0xf] }
 0x116   : > { %v793_v14 = vshrl.u32 %v526_v25, 16 }
 0x117   : > { %v1524_v11 = vpop.permute.xlu0 %1523 }
 0x118   : > { %1590 = vst.msk [vmem:[#allocation3 + $0x78] sm:$0xf] %vm1559_vm15, %v1524_v11  ;;  %v2179_v11 = vrot.slane %v2177_v21, 5 }
 0x119   : > { %1863 = vrot.lane.b32.xlu2 %v1799_v47, %s4965_s8  ;;  %v2176_v47 = vrot.slane %v2174_v19, 4  ;;  %v2283_v19 = vshrl.u32 %v2138_v35, 16 }
 0x11b   : > { %v1522_v53 = vpop.permute.xlu2 %1521 }
 0x11c   : > { %2008 = vrot.lane.b32.xlu1 %v1938_v49, %s4966_s9  ;;  %1589 = vst.msk [vmem:[#allocation3 + $0x74] sm:$0xf] %vm1559_vm15, %v1522_v53  ;;  %v5894_v49 = vrot.slane %v793_v14, 7  ;;  %v2126_v53 = vld [vmem:[#allocation2 + $0x10] sm:$0xf] }
 0x11d   : > { %2018 = vrot.lane.b32.xlu0 %v1943_v51, %s4966_s9  ;;  %v2187_v4 = vshrl.u32 %v2126_v53, 16 }
 0x11e   : > { %v1520_v41 = vpop.permute.xlu1 %1519 }
 0x11f   : > { %1588 = vst.msk [vmem:[#allocation3 + $0x70] sm:$0xf] %vm1559_vm15, %v1520_v41  ;;  %v1806_v20 = vpop.permute.xlu0 %1805  ;;  %v796_v41 = vshll.u32 %v526_v25, 16 }
 0x120   : > { %1901 = vst.msk [vmem:[#allocation3 + $0x4] sm:$0xf] %vm1899_vm2, %v1806_v20 }
 0x121   : > { %1998 = vrot.lane.b32.xlu2 %v1933_v52, %s4966_s9  ;;  %v1948_v52 = vld [vmem:[#allocation2 + $0x6c] sm:$0xf] }
 0x123   : > { %v1804_v61 = vpop.permute.xlu2 %1803 }
 0x124   : > { %2014 = vrot.lane.b32.xlu1 %v1941_v37, %s4966_s9  ;;  %1900 = vst.msk [vmem:[#allocation3] sm:$0xf] %vm1899_vm2, %v1804_v61  ;;  %v2129_v37 = vld [vmem:[#allocation2 + $0x1c] sm:$0xf] }
 0x125   : > { %2024 = vrot.lane.b32.xlu0 %v1946_v39, %s4966_s9  ;;  %v791_v39 = vrot.slane %v5874_v28, 4  ;;  %v1956_v61 = vld [vmem:[#allocation2 + $0x9c] sm:$0xf]  ;;  %v2207_v56 = vshll.u32 %v2129_v37, 16 }
 0x126   : > { %v1526_v59 = vpop.permute.xlu1 %1525 }
 0x127   : > { %1591 = vst.msk [vmem:[#allocation3 + $0x7c] sm:$0xf] %vm1559_vm15, %v1526_v59  ;;  %v1812_v36 = vpop.permute.xlu0 %1811  ;;  %v2180_v59 = vor.u32 %v2179_v11, %v2176_v47  ;;  %v5907_v10 = vrot.slane %v2207_v56, 5  ;;  %v2195_v47 = vrot.slane %v2193_v32, 5  ;;  %v5924_v11 = vld [vmem:[#allocation2 + $0x28] sm:$0xf] }
 0x128   : > { %1904 = vst.msk [vmem:[#allocation3 + $0x10] sm:$0xf] %vm1899_vm2, %v1812_v36  ;;  %v798_v36 = vor.u32 %v796_v41, %v5894_v49  ;;  %v2139_v41 = vld [vmem:[#allocation2 + $0x44] sm:$0x1]  ;;  %v2231_v56 = vshll.u32 %v5924_v11, 16 }
 0x129   : > { %2004 = vrot.lane.b32.xlu2 %v1936_v60, %s4966_s9  ;;  %v2183_v60 = vshll.u32 %v2126_v53, 16 }
 0x12a   : > { %v799_v54 = vsel %vm5100_vm11, %v791_v39, %v798_v36  ;;  %v2143_v36 = vld [vmem:[#allocation2 + $0x54] sm:$0xf]  ;;  %vm4082_vm11 = vcmask 585216  }
 0x12b   : > { %v1810_v55 = vpop.permute.xlu2 %1809  ;;  %960 = vst.msk [vmem:[#allocation2 + $0xc4] sm:$0xf] %vm373_vm0, %v799_v54  ;;  %v2185_v18 = vrot.slane %v2183_v60, 5  ;;  %vm2092_vm0 = vcmask 257216  }
 0x12c   : > { %2020 = vrot.lane.b32.xlu1 %v1944_v30, %s4966_s9  ;;  %1903 = vst.msk [vmem:[#allocation3 + $0xc] sm:$0xf] %vm1899_vm2, %v1810_v55  ;;  %v1961_v30 = vld [vmem:[#allocation2 + $0xb8] sm:$0xf]  ;;  %v2181_v55 = vrot.slane %v2180_v59, 4 }
 0x12d   : > { %2030 = vrot.lane.b32.xlu0 %v1949_v0, %s4966_s9  ;;  %v2211_v0 = vshrl.u32 %v2129_v37, 16  ;;  %v1957_v59 = vld [vmem:[#allocation2 + $0xa0] sm:$0xf] }
 0x12e   : > { %v1808_v23 = vpop.permute.xlu1 %1807 }
 0x12f   : > { %1902 = vst.msk [vmem:[#allocation3 + $0x8] sm:$0xf] %vm1899_vm2, %v1808_v23  ;;  %v1818_v57 = vpop.permute.xlu0 %1817  ;;  %v2213_v12 = vrot.slane %v2211_v0, 4  ;;  %v2289_v0 = vshll.u32 %v2139_v41, 16 }
 0x130   : > { %1907 = vst.msk [vmem:[#allocation3 + $0x1c] sm:$0xf] %vm1899_vm2, %v1818_v57  ;;  %v2134_v57 = vld [vmem:[#allocation2 + $0x30] sm:$0xf] }
 0x131   : > { %2010 = vrot.lane.b32.xlu2 %v1939_v45, %s4966_s9  ;;  %v2130_v45 = vld [vmem:[#allocation2 + $0x20] sm:$0x1]  ;;  %v2249_v28 = vshll.u32 %v2134_v57, 16 }
 0x132   : > { %v2217_v27 = vshll.u32 %v2130_v45, 16 }
 0x133   : > { %v1816_v3 = vpop.permute.xlu2 %1815 }
 0x134   : > { %2026 = vrot.lane.b32.xlu1 %v1947_v17, %s4966_s9  ;;  %1906 = vst.msk [vmem:[#allocation3 + $0x18] sm:$0xf] %vm1899_vm2, %v1816_v3  ;;  %v2186_v17 = vsel %vm5094_vm10, %v2181_v55, %v2185_v18  ;;  %v2246_v3 = vshrl.u32 %v2134_v57, 16  ;;  %v5940_v57 = vrot.slane %v2231_v56, 5 }
 0x135   : > { %2036 = vrot.lane.b32.xlu0 %v1952_v22, %s4966_s9  ;;  %v2214_v22 = vor.u32 %v2213_v12, %v5907_v10  ;;  %v2128_v12 = vld [vmem:[#allocation2 + $0x18] sm:$0xf] }
 0x136   : > { %v1814_v7 = vpop.permute.xlu1 %1813  ;;  %v2248_v13 = vrot.slane %v2246_v3, 4 }
 0x137   : > { %1905 = vst.msk [vmem:[#allocation3 + $0x14] sm:$0xf] %vm1899_vm2, %v1814_v7  ;;  %v1824_v58 = vpop.permute.xlu0 %1823  ;;  %v2189_v7 = vrot.slane %v2187_v4, 4  ;;  %v2215_v33 = vrot.slane %v2214_v22, 4  ;;  %v2291_v4 = vrot.slane %v2289_v0, 5 }
 0x138   : > { %1910 = vst.msk [vmem:[#allocation3 + $0x28] sm:$0xf] %vm1899_vm2, %v1824_v58 }
 0x139   : > { %2016 = vrot.lane.b32.xlu2 %v1942_v29, %s4966_s9  ;;  %v2131_v29 = vld [vmem:[#allocation2 + $0x24] sm:$0xf] }
 0x13b   : > { %v1822_v43 = vpop.permute.xlu2 %1821 }
 0x13c   : > { %2032 = vrot.lane.b32.xlu1 %v1950_v31, %s4966_s9  ;;  %1909 = vst.msk [vmem:[#allocation3 + $0x24] sm:$0xf] %vm1899_vm2, %v1822_v43  ;;  %v2219_v31 = vrot.slane %v2217_v27, 5  ;;  %v2140_v27 = vld [vmem:[#allocation2 + $0x48] sm:$0xf] }
 0x13d   : > { %2042 = vrot.lane.b32.xlu0 %v1955_v5, %s4966_s9  ;;  %v2251_v5 = vrot.slane %v2249_v28, 5  ;;  %v2136_v28 = vld [vmem:[#allocation2 + $0x38] sm:$0x1] }
 0x13e   : > { %v1820_v50 = vpop.permute.xlu1 %1819  ;;  %v2220_v21 = vsel %vm5094_vm10, %v2215_v33, %v2219_v31  ;;  %v2144_v33 = vld [vmem:[#allocation2 + $0x58] sm:$0xf]  ;;  %v2147_v31 = vld [vmem:[#allocation2 + $0x64] sm:$0xf] }
 0x13f   : > { %1908 = vst.msk [vmem:[#allocation3 + $0x20] sm:$0xf] %vm1899_vm2, %v1820_v50  ;;  %v1830_v63 = vpop.permute.xlu0 %1829  ;;  %v2190_v50 = vor.u32 %v2189_v7, %v2185_v18  ;;  %v2252_v25 = vor.u32 %v2251_v5, %v2248_v13  ;;  %v2201_v7 = vshll.u32 %v2128_v12, 16  ;;  %v2294_v13 = vshrl.u32 %v2140_v27, 16 }
 0x140   : > { %1913 = vst.msk [vmem:[#allocation3 + $0x34] sm:$0xf] %vm1899_vm2, %v1830_v63  ;;  %v2225_v63 = vshll.u32 %v2131_v29, 16  ;;  %v2297_v5 = vshll.u32 %v2140_v27, 16  ;;  %v2327_v32 = vshll.u32 %v2144_v33, 16  ;;  %v2331_v56 = vshrl.u32 %v2144_v33, 16 }
 0x141   : > { %2022 = vrot.lane.b32.xlu2 %v1945_v62, %s4966_s9  ;;  %v2222_v62 = vshrl.u32 %v2131_v29, 16  ;;  %v2253_v39 = vrot.slane %v2252_v25, 4  ;;  %v2296_v25 = vrot.slane %v2294_v13, 4  ;;  %v2137_v27 = vld [vmem:[#allocation2 + $0x3c] sm:$0xf] }
 0x142   : > { %v2227_v53 = vrot.slane %v2225_v63, 5  ;;  %v2355_v63 = vshrl.u32 %v2147_v31, 16  ;;  %v5957_v41 = vrot.slane %v2327_v32, 5  ;;  %v2153_v33 = vld [vmem:[#allocation2 + $0x7c] sm:$0xf] }
 0x143   : > { %v1828_v26 = vpop.permute.xlu2 %1827 }
 0x144   : > { %2038 = vrot.lane.b32.xlu1 %v1953_v40, %s4966_s9  ;;  %1912 = vst.msk [vmem:[#allocation3 + $0x30] sm:$0xf] %vm1899_vm2, %v1828_v26  ;;  %v2279_v40 = vshll.u32 %v2138_v35, 16  ;;  %v2191_v26 = vrot.slane %v2190_v50, 4 }
 0x145   : > { %2048 = vrot.lane.b32.xlu0 %v1958_v2, %s4966_s9  ;;  %v2255_v2 = vshll.u32 %v2135_v44, 16 }
 0x146   : > { %v1826_v51 = vpop.permute.xlu1 %1825  ;;  %v2196_v54 = vsel %vm5094_vm10, %v2191_v26, %v2195_v47 }
 0x147   : > { %1911 = vst.msk [vmem:[#allocation3 + $0x2c] sm:$0xf] %vm1899_vm2, %v1826_v51  ;;  %v1836_v20 = vpop.permute.xlu0 %1835  ;;  %v2224_v51 = vrot.slane %v2222_v62, 4  ;;  %v2351_v62 = vshll.u32 %v2147_v31, 16 }
 0x148   : > { %1916 = vst.msk [vmem:[#allocation3 + $0x40] sm:$0xf] %vm1899_vm2, %v1836_v20  ;;  %v2285_v20 = vrot.slane %v2283_v19, 4 }
 0x149   : > { %2028 = vrot.lane.b32.xlu2 %v1948_v52, %s4966_s9  ;;  %v5928_v52 = vrot.slane %v2279_v40, 5  ;;  %v2203_v40 = vrot.slane %v2201_v7, 5 }
 0x14b   : > { %v1834_v15 = vpop.permute.xlu2 %1833  ;;  %v2286_v55 = vor.u32 %v2285_v20, %v5928_v52  ;;  %v5959_v20 = vrot.slane %v2351_v62, 5 }
 0x14c   : > { %2044 = vrot.lane.b32.xlu1 %v1956_v61, %s4966_s9  ;;  %1915 = vst.msk [vmem:[#allocation3 + $0x3c] sm:$0xf] %vm1899_vm2, %v1834_v15  ;;  %v2257_v61 = vrot.slane %v2255_v2, 5  ;;  %v2259_v15 = vshrl.u32 %v2135_v44, 16  ;;  %v2265_v44 = vshll.u32 %v2136_v28, 16  ;;  %v2299_v2 = vrot.slane %v2297_v5, 5 }
 0x14d   : > { %2054 = vrot.lane.b32.xlu0 %v1961_v30, %s4966_s9  ;;  %v2228_v30 = vor.u32 %v2227_v53, %v2224_v51 }
 0x14e   : > { %v1832_v23 = vpop.permute.xlu1 %1831  ;;  %v2258_v18 = vsel %vm5094_vm10, %v2253_v39, %v2257_v61  ;;  %v2261_v22 = vrot.slane %v2259_v15, 4  ;;  %v2267_v47 = vrot.slane %v2265_v44, 5  ;;  %v2152_v39 = vld [vmem:[#allocation2 + $0x78] sm:$0xf]  ;;  %v2300_v0 = vor.u32 %v2299_v2, %v2296_v25 }
 0x14f   : > { %1914 = vst.msk [vmem:[#allocation3 + $0x38] sm:$0xf] %vm1899_vm2, %v1832_v23  ;;  %v1842_v16 = vpop.permute.xlu0 %1841  ;;  %v2321_v23 = vshll.u32 %v2143_v36, 16  ;;  %v2229_v45 = vrot.slane %v2228_v30, 4  ;;  %v2148_v30 = vld [vmem:[#allocation2 + $0x68] sm:$0x1] }
 0x150   : > { %1919 = vst.msk [vmem:[#allocation3 + $0x4c] sm:$0xf] %vm1899_vm2, %v1842_v16  ;;  %v2390_v15 = vshrl.u32 %v2152_v39, 16 }
 0x151   : > { %2034 = vrot.lane.b32.xlu2 %v1951_v38, %s4966_s9  ;;  %v2318_v38 = vshrl.u32 %v2143_v36, 16  ;;  %v2323_v29 = vrot.slane %v2321_v23, 5  ;;  %v2234_v35 = vsel %vm5094_vm10, %v2229_v45, %v5940_v57 }
 0x153   : > { %v1840_v8 = vpop.permute.xlu2 %1839  ;;  %v2320_v24 = vrot.slane %v2318_v38, 4  ;;  %v2361_v38 = vshll.u32 %v2148_v30, 16 }
 0x154   : > { %2050 = vrot.lane.b32.xlu1 %v1959_v46, %s4966_s9  ;;  %1918 = vst.msk [vmem:[#allocation3 + $0x48] sm:$0xf] %vm1899_vm2, %v1840_v8  ;;  %v1960_v46 = vld [vmem:[#allocation2 + $0xb4] sm:$0xf]  ;;  %v2198_v8 = vshrl.u32 %v2128_v12, 16 }
 0x155   : > { %2557 = vrot.lane.b32.xlu0 %v2186_v17, %s4967_s14  ;;  %v2287_v17 = vrot.slane %v2286_v55, 4  ;;  %v2324_v50 = vor.u32 %v2323_v29, %v2320_v24  ;;  %v2393_v55 = vshll.u32 %v2152_v39, 16 }
 0x156   : > { %v1838_v58 = vpop.permute.xlu1 %1837 }
 0x157   : > { %1917 = vst.msk [vmem:[#allocation3 + $0x44] sm:$0xf] %vm1899_vm2, %v1838_v58  ;;  %v1848_v43 = vpop.permute.xlu0 %1847  ;;  %v2325_v53 = vrot.slane %v2324_v50, 4  ;;  %v2395_v28 = vrot.slane %v2393_v55, 5  ;;  %v2157_v55 = vld [vmem:[#allocation2 + $0x8c] sm:$0x1] }
 0x158   : > { %1922 = vst.msk [vmem:[#allocation3 + $0x58] sm:$0xf] %vm1899_vm2, %v1848_v43  ;;  %v2262_v43 = vor.u32 %v2261_v22, %v2257_v61  ;;  %v2235_v61 = vshrl.u32 %v5924_v11, 16  ;;  %v2333_v22 = vrot.slane %v2331_v56, 4 }
 0x159   : > { %2040 = vrot.lane.b32.xlu2 %v1954_v42, %s4966_s9  ;;  %v2292_v42 = vsel %vm5094_vm10, %v2287_v17, %v2291_v4  ;;  %v2330_v11 = vsel %vm5094_vm10, %v2325_v53, %v5957_v41  ;;  %v2145_v17 = vld [vmem:[#allocation2 + $0x5c] sm:$0x1] }
 0x15a   : > { %v2263_v26 = vrot.slane %v2262_v43, 4  ;;  %v2237_v45 = vrot.slane %v2235_v61, 4  ;;  %v2156_v43 = vld [vmem:[#allocation2 + $0x88] sm:$0xf]  ;;  %v2334_v44 = vor.u32 %v2333_v22, %v5957_v41  ;;  %v2337_v50 = vshll.u32 %v2145_v17, 16 }
 0x15b   : > { %v1846_v14 = vpop.permute.xlu2 %1845  ;;  %v2427_v25 = vshrl.u32 %v2156_v43, 16  ;;  %v2433_v22 = vshll.u32 %v2157_v55, 16  ;;  %v6041_v55 = vld [vmem:[#allocation2 + $0x94] sm:$0xf] }
 0x15c   : > { %2056 = vrot.lane.b32.xlu1 %v1962_v48, %s4966_s9  ;;  %1921 = vst.msk [vmem:[#allocation3 + $0x54] sm:$0xf] %vm1899_vm2, %v1846_v14  ;;  %v2200_v48 = vrot.slane %v2198_v8, 4  ;;  %v1963_v14 = vld [vmem:[#allocation2 + $0xc4] sm:$0xf]  ;;  %v2238_v5 = vor.u32 %v2237_v45, %v5940_v57  ;;  %v2335_v53 = vrot.slane %v2334_v44, 4 }
 0x15d   : > { %2563 = vrot.lane.b32.xlu0 %v2220_v21, %s4967_s14  ;;  %v5953_v21 = vld [vmem:[#allocation2 + $0x4c] sm:$0xf]  ;;  %v2339_v41 = vrot.slane %v2337_v50, 5  ;;  %v2429_v56 = vrot.slane %v2427_v25, 4  ;;  %v2435_v44 = vrot.slane %v2433_v22, 5 }
 0x15e   : > { %v1844_v37 = vpop.permute.xlu1 %1843  ;;  %v2303_v36 = vshll.u32 %v5953_v21, 16  ;;  %v2149_v8 = vld [vmem:[#allocation2 + $0x6c] sm:$0xf]  ;;  %v2307_v57 = vshrl.u32 %v5953_v21, 16  ;;  %v2239_v2 = vrot.slane %v2238_v5, 4 }
 0x15f   : > { %1920 = vst.msk [vmem:[#allocation3 + $0x50] sm:$0xf] %vm1899_vm2, %v1844_v37  ;;  %v1854_v60 = vpop.permute.xlu0 %1853  ;;  %v2357_v37 = vrot.slane %v2355_v63, 4  ;;  %v2366_v32 = vshrl.u32 %v2149_v8, 16  ;;  %v2369_v62 = vshll.u32 %v2149_v8, 16 }
 0x160   : > { %1925 = vst.msk [vmem:[#allocation3 + $0x64] sm:$0xf] %vm1899_vm2, %v1854_v60  ;;  %v2204_v60 = vor.u32 %v2203_v40, %v2200_v48  ;;  %v5972_v12 = vrot.slane %v2303_v36, 5  ;;  %v2399_v48 = vshll.u32 %v2153_v33, 16  ;;  %v2403_v36 = vshrl.u32 %v2153_v33, 16 }
 0x161   : > { %2046 = vrot.lane.b32.xlu2 %v1957_v59, %s4966_s9  ;;  %v2371_v39 = vrot.slane %v2369_v62, 5  ;;  %v2154_v5 = vld [vmem:[#allocation2 + $0x80] sm:$0x1]  ;;  %v2165_v62 = vld [vmem:[#allocation2 + $0xac] sm:$0xf] }
 0x162   : > { %v2205_v23 = vrot.slane %v2204_v60, 4  ;;  %v5994_v61 = vrot.slane %v2399_v48, 5  ;;  %v2409_v25 = vshll.u32 %v2154_v5, 16 }
 0x163   : > { %v1852_v16 = vpop.permute.xlu2 %1851 }
 0x164   : > { %2559 = vrot.lane.b32.xlu1 %v2196_v54, %s4967_s14  ;;  %1924 = vst.msk [vmem:[#allocation3 + $0x60] sm:$0xf] %vm1899_vm2, %v1852_v16  ;;  %v2268_v54 = vsel %vm5094_vm10, %v2263_v26, %v2267_v47  ;;  %v2133_v16 = vld [vmem:[#allocation2 + $0x2c] sm:$0x1]  ;;  %v2210_v31 = vsel %vm5094_vm10, %v2205_v23, %v5907_v10  ;;  %v2142_v23 = vld [vmem:[#allocation2 + $0x50] sm:$0x1] }
 0x165   : > { %2569 = vrot.lane.b32.xlu0 %v2258_v18, %s4967_s14  ;;  %v2358_v18 = vor.u32 %v2357_v37, %v5959_v20  ;;  %v2241_v24 = vshll.u32 %v2133_v16, 16  ;;  %v2368_v37 = vrot.slane %v2366_v32, 4  ;;  %v2340_v16 = vsel %vm5094_vm10, %v2335_v53, %v2339_v41 }
 0x166   : > { %v1850_v3 = vpop.permute.xlu1 %1849  ;;  %v2313_v8 = vshll.u32 %v2142_v23, 16 }
 0x167   : > { %1923 = vst.msk [vmem:[#allocation3 + $0x5c] sm:$0xf] %vm1899_vm2, %v1850_v3  ;;  %v1860_v58 = vpop.permute.xlu0 %1859  ;;  %v2392_v3 = vrot.slane %v2390_v15, 4  ;;  %v2359_v29 = vrot.slane %v2358_v18, 4  ;;  %v2372_v18 = vor.u32 %v2371_v39, %v2368_v37 }
 0x168   : > { %1928 = vst.msk [vmem:[#allocation3 + $0x70] sm:$0xf] %vm1899_vm2, %v1860_v58  ;;  %v2363_v58 = vrot.slane %v2361_v38, 5  ;;  %v2315_v37 = vrot.slane %v2313_v8, 5 }
 0x169   : > { %2052 = vrot.lane.b32.xlu2 %v1960_v46, %s4966_s9  ;;  %v2301_v46 = vrot.slane %v2300_v0, 4  ;;  %v2396_v10 = vor.u32 %v2395_v28, %v2392_v3 }
 0x16a   : > { %v2364_v40 = vsel %vm5094_vm10, %v2359_v29, %v2363_v58  ;;  %v2373_v58 = vrot.slane %v2372_v18, 4 }
 0x16b   : > { %v1858_v19 = vpop.permute.xlu2 %1857  ;;  %v2306_v63 = vsel %vm5094_vm10, %v2301_v46, %v5972_v12  ;;  %v2397_v21 = vrot.slane %v2396_v10, 4  ;;  %v489_v46 = vld [vmem:[#allocation2 + $0xc8] sm:$0x1] }
 0x16c   : > { %2565 = vrot.lane.b32.xlu1 %v2234_v35, %s4967_s14  ;;  %1927 = vst.msk [vmem:[#allocation3 + $0x6c] sm:$0xf] %vm1899_vm2, %v1858_v19  ;;  %v2270_v35 = vshrl.u32 %v2137_v27, 16  ;;  %v2423_v19 = vshll.u32 %v2156_v43, 16 }
 0x16d   : > { %2575 = vrot.lane.b32.xlu0 %v2292_v42, %s4967_s14  ;;  %v2273_v42 = vshll.u32 %v2137_v27, 16  ;;  %v2402_v45 = vsel %vm5094_vm10, %v2397_v21, %v5994_v61 }
 0x16e   : > { %v1856_v51 = vpop.permute.xlu1 %1855  ;;  %v2272_v26 = vrot.slane %v2270_v35, 4  ;;  %v5998_v30 = vrot.slane %v2423_v19, 5  ;;  %v2158_v35 = vld [vmem:[#allocation2 + $0x90] sm:$0xf]  ;;  %v800_v19 = vrot.slane %v5894_v49, 4 }
 0x16f   : > { %1926 = vst.msk [vmem:[#allocation3 + $0x68] sm:$0xf] %vm1899_vm2, %v1856_v51  ;;  %v1866_v59 = vpop.permute.xlu0 %1865  ;;  %v2275_v47 = vrot.slane %v2273_v42, 5 }
 0x170   : > { %1931 = vst.msk [vmem:[#allocation3 + $0x7c] sm:$0xf] %vm1899_vm2, %v1866_v59  ;;  %v5996_v59 = vld [vmem:[#allocation2 + $0x70] sm:$0xf]  ;;  %v2430_v17 = vor.u32 %v2429_v56, %v5998_v30  ;;  %v2411_v56 = vrot.slane %v2409_v25, 5 }
 0x171   : > { %2058 = vrot.lane.b32.xlu2 %v1963_v14, %s4966_s9  ;;  %v2243_v14 = vrot.slane %v2241_v24, 5  ;;  %v2276_v15 = vor.u32 %v2275_v47, %v2272_v26  ;;  %v2375_v38 = vshll.u32 %v5996_v59, 16  ;;  %v490_v24 = vsel %vm5040_vm5, 0, %v489_v46  ;;  %v2167_v25 = vld [vmem:[#allocation2 + $0xb4] sm:$0xf]  ;;  %s6667_s9 = scalar_lea.vmem %s7187_s4, %s4892_s22  ;;  %s4745_s22 = sshll.u32 %s7202_s19, 1 }
 0x172   : > { %491 = vst [vmem:[#allocation2 + $0xc8] sm:$0x1] %v490_v24  ;;  %v2431_v43 = vrot.slane %v2430_v17, 4  ;;  %v2495_v26 = vshll.u32 %v2165_v62, 16  ;;  %v2499_v47 = vshrl.u32 %v2165_v62, 16  ;;  %s7063_s12 = scalar_lea.vmem %s7188_s5, %s4745_s22 }
 0x173   : > { %v1864_v4 = vpop.permute.xlu2 %1863  ;;  %v2244_v0 = vsel %vm5094_vm10, %v2239_v2, %v2243_v14  ;;  %v2277_v28 = vrot.slane %v2276_v15, 4  ;;  %v6015_v33 = vrot.slane %v2375_v38, 5  ;;  %v2438_v2 = vshrl.u32 %v2158_v35, 16 }
 0x174   : > { %2571 = vrot.lane.b32.xlu1 %v2268_v54, %s4967_s14  ;;  %1930 = vst.msk [vmem:[#allocation3 + $0x78] sm:$0xf] %vm1899_vm2, %v1864_v4  ;;  %v2309_v4 = vrot.slane %v2307_v57, 4  ;;  %v2441_v14 = vshll.u32 %v2158_v35, 16  ;;  %v2436_v53 = vsel %vm5094_vm10, %v2431_v43, %v2435_v44  ;;  %v2501_v18 = vrot.slane %v2499_v47, 4 }
 0x175   : > { %2581 = vrot.lane.b32.xlu0 %v2330_v11, %s4967_s14  ;;  %v2161_v11 = vld [vmem:[#allocation2 + $0x9c] sm:$0xf]  ;;  %v2171_v47 = vld [vmem:[#allocation2 + $0xc4] sm:$0xf] }
 0x176   : > { %v1862_v7 = vpop.permute.xlu1 %1861  ;;  %v2462_v27 = vshrl.u32 %v2161_v11, 16  ;;  %v2465_v3 = vshll.u32 %v2161_v11, 16  ;;  %v6043_v11 = vrot.slane %v2495_v26, 5 }
 0x177   : > { %1929 = vst.msk [vmem:[#allocation3 + $0x74] sm:$0xf] %vm1899_vm2, %v1862_v7  ;;  %v2001_v13 = vpop.permute.xlu0 %2000  ;;  %v2405_v7 = vrot.slane %v2403_v36, 4 }
 0x178   : > { %2095 = vst.msk [vmem:[#allocation3 + $0x8] sm:$0xf] %vm2092_vm0, %v2001_v13  ;;  %v2310_v13 = vor.u32 %v2309_v4, %v5972_v12  ;;  %v2464_v50 = vrot.slane %v2462_v27, 4  ;;  %v2467_v32 = vrot.slane %v2465_v3, 5  ;;  %v6025_v12 = vld [vmem:[#allocation2 + $0xa0] sm:$0xf] }
 0x179   : > { %2561 = vrot.lane.b32.xlu2 %v2210_v31, %s4967_s14  ;;  %v2146_v31 = vld [vmem:[#allocation2 + $0x60] sm:$0xf]  ;;  %v2406_v48 = vor.u32 %v2405_v7, %v5994_v61  ;;  %v2471_v49 = vshll.u32 %v6025_v12, 16  ;;  %v2379_v4 = vshrl.u32 %v5996_v59, 16  ;;  %v2475_v7 = vshrl.u32 %v6025_v12, 16 }
 0x17a   : > { %v2342_v57 = vshrl.u32 %v2146_v31, 16  ;;  %v2468_v41 = vor.u32 %v2467_v32, %v2464_v50  ;;  %v2170_v27 = vld [vmem:[#allocation2 + $0xc0] sm:$0xf]  ;;  %v2502_v59 = vor.u32 %v2501_v18, %v6043_v11  ;;  %v2151_v50 = vld [vmem:[#allocation2 + $0x74] sm:$0x1] }
 0x17b   : > { %v1999_v51 = vpop.permute.xlu2 %1998  ;;  %v2407_v39 = vrot.slane %v2406_v48, 4  ;;  %v2381_v35 = vrot.slane %v2379_v4, 4  ;;  %v2385_v26 = vshll.u32 %v2151_v50, 16  ;;  %v6082_v4 = vld [vmem:[#allocation2 + $0xb8] sm:$0xf] }
 0x17c   : > { %2577 = vrot.lane.b32.xlu1 %v2306_v63, %s4967_s14  ;;  %2094 = vst.msk [vmem:[#allocation3 + $0x4] sm:$0xf] %vm2092_vm0, %v1999_v51  ;;  %v2282_v63 = vsel %vm5094_vm10, %v2277_v28, %v5928_v52  ;;  %v2378_v52 = vsel %vm5094_vm10, %v2373_v58, %v6015_v33  ;;  %v2311_v51 = vrot.slane %v2310_v13, 4  ;;  %v2344_v21 = vrot.slane %v2342_v57, 4 }
 0x17d   : > { %2587 = vrot.lane.b32.xlu0 %v2364_v40, %s4967_s14  ;;  %v2345_v40 = vshll.u32 %v2146_v31, 16  ;;  %v2469_v23 = vrot.slane %v2468_v41, 4  ;;  %v2447_v28 = vshll.u32 %v6041_v55, 16  ;;  %v2412_v8 = vsel %vm5094_vm10, %v2407_v39, %v2411_v56 }
 0x17e   : > { %v1997_v60 = vpop.permute.xlu1 %1996  ;;  %v2316_v46 = vsel %vm5094_vm10, %v2311_v51, %v2315_v37  ;;  %v2534_v31 = vshrl.u32 %v2170_v27, 16  ;;  %v2537_v13 = vshll.u32 %v2170_v27, 16  ;;  %v2503_v62 = vrot.slane %v2502_v59, 4  ;;  %v6088_v27 = vld [vmem:[#allocation2 + $0x10] sm:$0xf] }
 0x17f   : > { %2093 = vst.msk [vmem:[#allocation3] sm:$0xf] %vm2092_vm0, %v1997_v60  ;;  %v2007_v54 = vpop.permute.xlu0 %2006  ;;  %v2347_v61 = vrot.slane %v2345_v40, 5  ;;  %v961_v60 = vld [vmem:[#allocation2 + $0xc8] sm:$0x1]  ;;  %v6062_v44 = vrot.slane %v2447_v28, 5 }
 0x180   : > { %2098 = vst.msk [vmem:[#allocation3 + $0x14] sm:$0xf] %vm2092_vm0, %v2007_v54  ;;  %v2443_v54 = vrot.slane %v2441_v14, 5  ;;  %v962_v15 = vsel %vm5015_vm3, %v800_v19, %v961_v60  ;;  %v2163_v40 = vld [vmem:[#allocation2 + $0xa4] sm:$0x1]  ;;  %v2536_v12 = vrot.slane %v2534_v31, 4 }
 0x181   : > { %2567 = vrot.lane.b32.xlu2 %v2244_v0, %s4967_s14  ;;  %v2440_v0 = vrot.slane %v2438_v2, 4  ;;  %963 = vst [vmem:[#allocation2 + $0xc8] sm:$0x1] %v962_v15  ;;  %v2348_v22 = vor.u32 %v2347_v61, %v2344_v21  ;;  %v2539_v19 = vrot.slane %v2537_v13, 5  ;;  %v2510_v37 = vshrl.u32 %v2167_v25, 16 }
 0x182   : > { %v2513_v39 = vshll.u32 %v2167_v25, 16  ;;  %v2543_v61 = vshll.u32 %v2171_v47, 16  ;;  %v2547_v28 = vshrl.u32 %v2171_v47, 16  ;;  %v2160_v13 = vld [vmem:[#allocation2 + $0x98] sm:$0x1] }
 0x183   : > { %v2005_v29 = vpop.permute.xlu2 %2004  ;;  %v2444_v3 = vor.u32 %v2443_v54, %v2440_v0  ;;  %v2349_v5 = vrot.slane %v2348_v22, 4  ;;  %v2540_v21 = vor.u32 %v2539_v19, %v2536_v12  ;;  %v2512_v15 = vrot.slane %v2510_v37, 4  ;;  %v3217_v37 = vld [vmem:[#allocation2 + $0x18] sm:$0xf] }
 0x184   : > { %2583 = vrot.lane.b32.xlu1 %v2340_v16, %s4967_s14  ;;  %2097 = vst.msk [vmem:[#allocation3 + $0x10] sm:$0xf] %vm2092_vm0, %v2005_v29  ;;  %v6045_v16 = vrot.slane %v2471_v49, 5  ;;  %v2155_v29 = vld [vmem:[#allocation2 + $0x84] sm:$0xf]  ;;  %v2481_v49 = vshll.u32 %v2163_v40, 16 }
 0x185   : > { %2593 = vrot.lane.b32.xlu0 %v2402_v45, %s4967_s14  ;;  %v2166_v45 = vld [vmem:[#allocation2 + $0xb0] sm:$0x1]  ;;  %v2445_v43 = vrot.slane %v2444_v3, 4  ;;  %v2414_v32 = vshrl.u32 %v2155_v29, 16  ;;  %v2417_v48 = vshll.u32 %v2155_v29, 16  ;;  %v2354_v2 = vsel %vm5094_vm10, %v2349_v5, %v5959_v20 }
 0x186   : > { %v2003_v42 = vpop.permute.xlu1 %2002  ;;  %v2505_v24 = vshll.u32 %v2166_v45, 16  ;;  %v2474_v58 = vsel %vm5094_vm10, %v2469_v23, %v6045_v16  ;;  %v2483_v54 = vrot.slane %v2481_v49, 5  ;;  %v2515_v18 = vrot.slane %v2513_v39, 5  ;;  %v2164_v5 = vld [vmem:[#allocation2 + $0xa8] sm:$0xf] }
 0x187   : > { %2096 = vst.msk [vmem:[#allocation3 + $0xc] sm:$0xf] %vm2092_vm0, %v2003_v42  ;;  %v2013_v10 = vpop.permute.xlu0 %2012  ;;  %v2450_v51 = vsel %vm5094_vm10, %v2445_v43, %v6062_v44  ;;  %v2545_v45 = vrot.slane %v2543_v61, 5  ;;  %v2549_v43 = vrot.slane %v2547_v28, 4  ;;  %v2457_v40 = vshll.u32 %v2160_v13, 16 }
 0x188   : > { %2101 = vst.msk [vmem:[#allocation3 + $0x20] sm:$0xf] %vm2092_vm0, %v2013_v10  ;;  %v2477_v10 = vrot.slane %v2475_v7, 4  ;;  %v2519_v7 = vshll.u32 %v6082_v4, 16  ;;  %v2486_v12 = vshrl.u32 %v2164_v5, 16  ;;  %v2489_v19 = vshll.u32 %v2164_v5, 16 }
 0x189   : > { %2573 = vrot.lane.b32.xlu2 %v2282_v63, %s4967_s14  ;;  %v2507_v63 = vrot.slane %v2505_v24, 5  ;;  %v2784_v24 = vrot.slane %v6088_v27, 5  ;;  %v2550_v25 = vor.u32 %v2549_v43, %v2545_v45  ;;  %v2523_v39 = vshrl.u32 %v6082_v4, 16 }
 0x18a   : > { %v2478_v41 = vor.u32 %v2477_v10, %v6045_v16  ;;  %v2541_v16 = vrot.slane %v2540_v21, 4  ;;  %v2172_v10 = vld [vmem:[#allocation2 + $0xc8] sm:$0x1]  ;;  %v2488_v47 = vrot.slane %v2486_v12, 4 }
 0x18b   : > { %v2011_v36 = vpop.permute.xlu2 %2010  ;;  %v2508_v20 = vsel %vm5094_vm10, %v2503_v62, %v2507_v63  ;;  %v2786_v62 = vrot.slane %v2784_v24, 4 }
 0x18c   : > { %2589 = vrot.lane.b32.xlu1 %v2378_v52, %s4967_s14  ;;  %2100 = vst.msk [vmem:[#allocation3 + $0x1c] sm:$0xf] %vm2092_vm0, %v2011_v36  ;;  %v2382_v52 = vor.u32 %v2381_v35, %v6015_v33  ;;  %v2419_v33 = vrot.slane %v2417_v48, 5  ;;  %v2387_v36 = vrot.slane %v2385_v26, 5  ;;  %v2479_v0 = vrot.slane %v2478_v41, 4 }
 0x18d   : > { %2599 = vrot.lane.b32.xlu0 %v2436_v53, %s4967_s14  ;;  %v2416_v53 = vrot.slane %v2414_v32, 4  ;;  %v2546_v59 = vsel %vm5094_vm10, %v2541_v16, %v2545_v45  ;;  %v2459_v26 = vrot.slane %v2457_v40, 5  ;;  %v2169_v45 = vld [vmem:[#allocation2 + $0xbc] sm:$0x1] }
 0x18e   : > { %v2009_v38 = vpop.permute.xlu1 %2008  ;;  %v2383_v60 = vrot.slane %v2382_v52, 4  ;;  %v2484_v3 = vsel %vm5094_vm10, %v2479_v0, %v2483_v54  ;;  %v2689_v0 = vld [vmem:[#allocation2 + $0x18] sm:$0xe]  ;;  %v6128_v54 = vld [vmem:[#allocation2 + $0x1c] sm:$0xf] }
 0x18f   : > { %2099 = vst.msk [vmem:[#allocation3 + $0x18] sm:$0xf] %vm2092_vm0, %v2009_v38  ;;  %v2019_v17 = vpop.permute.xlu0 %2018  ;;  %v2420_v23 = vor.u32 %v2419_v33, %v2416_v53  ;;  %v2551_v53 = vrot.slane %v2550_v25, 4  ;;  %v4763_v4 = vrot.slane %v2689_v0, 9 }
 0x190   : > { %2104 = vst.msk [vmem:[#allocation3 + $0x2c] sm:$0xf] %vm2092_vm0, %v2019_v17  ;;  %v2388_v17 = vsel %vm5094_vm10, %v2383_v60, %v2387_v36  ;;  %v3266_v60 = vshrl.u32 %v3217_v37, 16  ;;  %v3269_v36 = vshll.u32 %v3217_v37, 16 }
 0x191   : > { %2579 = vrot.lane.b32.xlu2 %v2316_v46, %s4967_s14  ;;  %v2451_v46 = vshrl.u32 %v6041_v55, 16  ;;  %v2421_v55 = vrot.slane %v2420_v23, 4  ;;  %v3779_v23 = vld [vmem:[#allocation2 + $0x1c] sm:$0xf] }
 0x193   : > { %v2017_v42 = vpop.permute.xlu2 %2016  ;;  %v2453_v29 = vrot.slane %v2451_v46, 4  ;;  %v2426_v50 = vsel %vm5094_vm10, %v2421_v55, %v5998_v30  ;;  %v2791_v46 = vrot.slane %v6128_v54, 5 }
 0x194   : > { %2595 = vrot.lane.b32.xlu1 %v2412_v8, %s4967_s14  ;;  %2103 = vst.msk [vmem:[#allocation3 + $0x28] sm:$0xf] %vm2092_vm0, %v2017_v42  ;;  %v2516_v8 = vor.u32 %v2515_v18, %v2512_v15  ;;  %v6101_v42 = vrot.slane %v2519_v7, 5  ;;  %v2525_v18 = vrot.slane %v2523_v39, 4  ;;  %v6134_v7 = vld [vmem:[#allocation2 + $0x1c] sm:$0xf] }
 0x195   : > { %2605 = vrot.lane.b32.xlu0 %v2474_v58, %s4967_s14  ;;  %v2688_v58 = vld [vmem:[#allocation2 + $0x14] sm:$0x1]  ;;  %v3275_v5 = vshll.u32 %v6134_v7, 16 }
 0x196   : > { %v2015_v57 = vpop.permute.xlu1 %2014  ;;  %v2517_v35 = vrot.slane %v2516_v8, 4  ;;  %v2787_v63 = vrot.slane %v2688_v58, 5  ;;  %v3876_v8 = vrot.slane %v3779_v23, 5  ;;  %v2529_v58 = vshll.u32 %v2169_v45, 16  ;;  %v3219_v23 = vld [vmem:[#allocation2 + $0x20] sm:$0x1] }
 0x197   : > { %2102 = vst.msk [vmem:[#allocation3 + $0x24] sm:$0xf] %vm2092_vm0, %v2015_v57  ;;  %v2025_v14 = vpop.permute.xlu0 %2024  ;;  %v2454_v57 = vor.u32 %v2453_v29, %v6062_v44  ;;  %v2491_v44 = vrot.slane %v2489_v19, 5  ;;  %v2526_v29 = vor.u32 %v2525_v18, %v6101_v42  ;;  %v3220_v19 = vld [vmem:[#allocation2 + $0x24] sm:$0xf] }
 0x198   : > { %2107 = vst.msk [vmem:[#allocation3 + $0x38] sm:$0xf] %vm2092_vm0, %v2025_v14  ;;  %v2522_v30 = vsel %vm5094_vm10, %v2517_v35, %v6101_v42  ;;  %v2788_v14 = vsel %vm5581_vm14, %v2786_v62, %v2787_v63  ;;  %v2531_v43 = vrot.slane %v2529_v58, 5  ;;  %v2699_v42 = vld [vmem:[#allocation2 + $0x40] sm:$0xf]  ;;  %v6153_v63 = vrot.slane %v3275_v5, 5 }
 0x199   : > { %2585 = vrot.lane.b32.xlu2 %v2354_v2, %s4967_s14  ;;  %v2553_v2 = vshll.u32 %v2172_v10, 16  ;;  %v2455_v52 = vrot.slane %v2454_v57, 4  ;;  %v2492_v21 = vor.u32 %v2491_v44, %v2488_v47  ;;  %v2527_v35 = vrot.slane %v2526_v29, 4  ;;  %v3231_v29 = vld [vmem:[#allocation2 + $0x50] sm:$0x1] }
 0x19a   : > { %v2812_v57 = vrot.slane %v2699_v42, 5 }
 0x19b   : > { %v2023_v56 = vpop.permute.xlu2 %2022  ;;  %v2555_v41 = vrot.slane %v2553_v2, 5  ;;  %v2493_v15 = vrot.slane %v2492_v21, 4  ;;  %v2532_v40 = vsel %vm5094_vm10, %v2527_v35, %v2531_v43  ;;  %v3221_v21 = vld [vmem:[#allocation2 + $0x28] sm:$0xf] }
 0x19c   : > { %2601 = vrot.lane.b32.xlu1 %v2450_v51, %s4967_s14  ;;  %2106 = vst.msk [vmem:[#allocation3 + $0x34] sm:$0xf] %vm2092_vm0, %v2023_v56  ;;  %v3025_v56 = vld [vmem:[#allocation2 + $0x1c] sm:$0xf] }
 0x19d   : > { %2611 = vrot.lane.b32.xlu0 %v2508_v20, %s4967_s14  ;;  %v2460_v20 = vsel %vm5094_vm10, %v2455_v52, %v2459_v26  ;;  %v2556_v61 = vsel %vm5094_vm10, %v2551_v53, %v2555_v41  ;;  %v2498_v55 = vsel %vm5094_vm10, %v2493_v15, %v6043_v11  ;;  %v3290_v52 = vshrl.u32 %v3220_v19, 16 }
 0x19e   : > { %v2021_v38 = vpop.permute.xlu1 %2020  ;;  %v3293_v26 = vshll.u32 %v3220_v19, 16  ;;  %v3279_v41 = vshrl.u32 %v6134_v7, 16  ;;  %v3299_v15 = vshll.u32 %v3221_v21, 16 }
 0x19f   : > { %2105 = vst.msk [vmem:[#allocation3 + $0x30] sm:$0xf] %vm2092_vm0, %v2021_v38  ;;  %v2031_v22 = vpop.permute.xlu0 %2030  ;;  %v3778_v38 = vld [vmem:[#allocation2 + $0x18] sm:$0xe]  ;;  %v3292_v37 = vrot.slane %v3290_v52, 4 }
 0x1a0   : > { %2110 = vst.msk [vmem:[#allocation3 + $0x44] sm:$0xf] %vm2092_vm0, %v2031_v22  ;;  %v3271_v22 = vrot.slane %v3269_v36, 5  ;;  %v4778_v28 = vrot.slane %v3778_v38, 9  ;;  %v3295_v39 = vrot.slane %v3293_v26, 5  ;;  %v3281_v38 = vrot.slane %v3279_v41, 4 }
 0x1a1   : > { %2591 = vrot.lane.b32.xlu2 %v2388_v17, %s4967_s14  ;;  %v3268_v17 = vrot.slane %v3266_v60, 4  ;;  %v3027_v36 = vld [vmem:[#allocation2 + $0x28] sm:$0xf]  ;;  %v3791_v26 = vld [vmem:[#allocation2 + $0x4c] sm:$0xf] }
 0x1a2   : > { %v3877_v11 = vsel %vm5581_vm14, %v4778_v28, %v3876_v8  ;;  %v3296_v0 = vor.u32 %v3295_v39, %v3292_v37  ;;  %v3790_v52 = vld [vmem:[#allocation2 + $0x48] sm:$0xe]  ;;  %v3241_v39 = vld [vmem:[#allocation2 + $0x78] sm:$0xf] }
 0x1a3   : > { %v2029_v31 = vpop.permute.xlu2 %2028  ;;  %v3272_v13 = vor.u32 %v3271_v22, %v3268_v17  ;;  %v4782_v41 = vrot.slane %v3790_v52, 9 }
 0x1a4   : > { %2607 = vrot.lane.b32.xlu1 %v2484_v3, %s4967_s14  ;;  %2109 = vst.msk [vmem:[#allocation3 + $0x40] sm:$0xf] %vm2092_vm0, %v2029_v31  ;;  %v2792_v31 = vsel %vm5581_vm14, %v4763_v4, %v2791_v46  ;;  %v3024_v4 = vld [vmem:[#allocation2 + $0x18] sm:$0xf]  ;;  %v3297_v22 = vrot.slane %v3296_v0, 4 }
 0x1a5   : > { %2617 = vrot.lane.b32.xlu0 %v2546_v59, %s4967_s14  ;;  %v3273_v62 = vrot.slane %v3272_v13, 4  ;;  %v2712_v0 = vld [vmem:[#allocation2 + $0x74] sm:$0x1] }
 0x1a6   : > { %v2027_v32 = vpop.permute.xlu1 %2026 }
 0x1a7   : > { %2108 = vst.msk [vmem:[#allocation3 + $0x3c] sm:$0xf] %vm2092_vm0, %v2027_v32  ;;  %v2037_v48 = vpop.permute.xlu0 %2036  ;;  %v3278_v25 = vsel %vm5094_vm10, %v3273_v62, %v6153_v63 }
 0x1a8   : > { %2113 = vst.msk [vmem:[#allocation3 + $0x50] sm:$0xf] %vm2092_vm0, %v2037_v48 }
 0x1a9   : > { %2597 = vrot.lane.b32.xlu2 %v2426_v50, %s4967_s14  ;;  %v2698_v50 = vld [vmem:[#allocation2 + $0x3c] sm:$0xe] }
 0x1aa   : > { %v4766_v48 = vrot.slane %v2698_v50, 9 }
 0x1ab   : > { %v2035_v51 = vpop.permute.xlu2 %2034 }
 0x1ac   : > { %2613 = vrot.lane.b32.xlu1 %v2522_v30, %s4967_s14  ;;  %2112 = vst.msk [vmem:[#allocation3 + $0x4c] sm:$0xf] %vm2092_vm0, %v2035_v51  ;;  %v2686_v30 = vld [vmem:[#allocation2 + $0xc] sm:$0xe]  ;;  %v2813_v2 = vsel %vm5581_vm14, %v4766_v48, %v2812_v57  ;;  %v3878_v51 = vrot.slane %v3876_v8, 4 }
 0x1ad   : > { %2896 = vrot.lane.b32.xlu0 %v2788_v14, %s4968_s15  ;;  %v3780_v14 = vld [vmem:[#allocation2 + $0x20] sm:$0x1]  ;;  %v4762_v47 = vrot.slane %v2686_v30, 9 }
 0x1ae   : > { %v2033_v49 = vpop.permute.xlu1 %2032  ;;  %v3879_v53 = vrot.slane %v3780_v14, 5 }
 0x1af   : > { %2111 = vst.msk [vmem:[#allocation3 + $0x48] sm:$0xf] %vm2092_vm0, %v2033_v49  ;;  %v2043_v33 = vpop.permute.xlu0 %2042 }
 0x1b0   : > { %2116 = vst.msk [vmem:[#allocation3 + $0x5c] sm:$0xf] %vm2092_vm0, %v2043_v33  ;;  %v3880_v60 = vsel %vm5581_vm14, %v3878_v51, %v3879_v53 }
 0x1b1   : > { %2603 = vrot.lane.b32.xlu2 %v2460_v20, %s4967_s14  ;;  %v2785_v20 = vsel %vm5581_vm14, %v4762_v47, %v2784_v24 }
 0x1b3   : > { %v2041_v16 = vpop.permute.xlu2 %2040 }
 0x1b4   : > { %2619 = vrot.lane.b32.xlu1 %v2556_v61, %s4967_s14  ;;  %2115 = vst.msk [vmem:[#allocation3 + $0x58] sm:$0xf] %vm2092_vm0, %v2041_v16  ;;  %v3230_v61 = vld [vmem:[#allocation2 + $0x4c] sm:$0xf]  ;;  %v2814_v16 = vrot.slane %v2812_v57, 4 }
 0x1b5   : > { %3090 = vrot.lane.b32.xlu0 %v3025_v56, %s4969_s16  ;;  %v2700_v56 = vld [vmem:[#allocation2 + $0x44] sm:$0x1]  ;;  %v3371_v27 = vshll.u32 %v3230_v61, 16  ;;  %v3375_v18 = vshrl.u32 %v3230_v61, 16  ;;  %v6218_v61 = vld [vmem:[#allocation2 + $0x28] sm:$0xf] }
 0x1b6   : > { %v2039_v3 = vpop.permute.xlu1 %2038  ;;  %v2815_v45 = vrot.slane %v2700_v56, 5  ;;  %v3461_v56 = vshll.u32 %v3241_v39, 16 }
 0x1b7   : > { %2114 = vst.msk [vmem:[#allocation3 + $0x54] sm:$0xf] %vm2092_vm0, %v2039_v3  ;;  %v2049_v59 = vpop.permute.xlu0 %2048  ;;  %v3301_v3 = vrot.slane %v3299_v15, 5  ;;  %v6181_v28 = vrot.slane %v3371_v27, 5  ;;  %v3377_v8 = vrot.slane %v3375_v18, 4 }
 0x1b8   : > { %2119 = vst.msk [vmem:[#allocation3 + $0x68] sm:$0xf] %vm2092_vm0, %v2049_v59  ;;  %v3285_v59 = vshll.u32 %v3219_v23, 16  ;;  %v2816_v58 = vsel %vm5581_vm14, %v2814_v16, %v2815_v45  ;;  %v3229_v27 = vld [vmem:[#allocation2 + $0x48] sm:$0xf]  ;;  %v2843_v45 = vrot.slane %v2712_v0, 5 }
 0x1b9   : > { %2609 = vrot.lane.b32.xlu2 %v2498_v55, %s4967_s14  ;;  %v3282_v55 = vor.u32 %v3281_v38, %v6153_v63  ;;  %v3302_v13 = vsel %vm5094_vm10, %v3297_v22, %v3301_v3  ;;  %v3378_v5 = vor.u32 %v3377_v8, %v6181_v28  ;;  %v3883_v38 = vrot.slane %v6218_v61, 5 }
 0x1ba   : > { %v3287_v43 = vrot.slane %v3285_v59, 5  ;;  %v3365_v8 = vshll.u32 %v3229_v27, 16 }
 0x1bb   : > { %v2047_v32 = vpop.permute.xlu2 %2046  ;;  %v3283_v35 = vrot.slane %v3282_v55, 4  ;;  %v3379_v62 = vrot.slane %v3378_v5, 4 }
 0x1bc   : > { %2898 = vrot.lane.b32.xlu1 %v2792_v31, %s4968_s15  ;;  %2118 = vst.msk [vmem:[#allocation3 + $0x64] sm:$0xf] %vm2092_vm0, %v2047_v32  ;;  %v3303_v31 = vshrl.u32 %v3221_v21, 16  ;;  %v3367_v5 = vrot.slane %v3365_v8, 5 }
 0x1bd   : > { %3986 = vrot.lane.b32.xlu0 %v3877_v11, %s4970_s17  ;;  %v3381_v11 = vshll.u32 %v3231_v29, 16  ;;  %v3288_v48 = vsel %vm5094_vm10, %v3283_v35, %v3287_v43  ;;  %v3792_v29 = vld [vmem:[#allocation2 + $0x50] sm:$0x1] }
 0x1be   : > { %v2045_v10 = vpop.permute.xlu1 %2044  ;;  %v3305_v42 = vrot.slane %v3303_v31, 4  ;;  %v3907_v43 = vrot.slane %v3792_v29, 5 }
 0x1bf   : > { %2117 = vst.msk [vmem:[#allocation3 + $0x60] sm:$0xf] %vm2092_vm0, %v2045_v10  ;;  %v2055_v12 = vpop.permute.xlu0 %2054  ;;  %v3383_v63 = vrot.slane %v3381_v11, 5  ;;  %v3222_v10 = vld [vmem:[#allocation2 + $0x2c] sm:$0x1] }
 0x1c0   : > { %2122 = vst.msk [vmem:[#allocation3 + $0x74] sm:$0xf] %vm2092_vm0, %v2055_v12  ;;  %v3032_v12 = vld [vmem:[#allocation2 + $0x48] sm:$0xf]  ;;  %v3306_v19 = vor.u32 %v3305_v42, %v3301_v3  ;;  %v3309_v30 = vshll.u32 %v3222_v10, 16  ;;  %v3362_v3 = vshrl.u32 %v3229_v27, 16 }
 0x1c1   : > { %2615 = vrot.lane.b32.xlu2 %v2532_v40, %s4967_s14  ;;  %v2691_v40 = vld [vmem:[#allocation2 + $0x20] sm:$0x1] }
 0x1c2   : > { %v2794_v14 = vrot.slane %v2691_v40, 5  ;;  %v3311_v51 = vrot.slane %v3309_v30, 5 }
 0x1c3   : > { %v2053_v44 = vpop.permute.xlu2 %2052 }
 0x1c4   : > { %3649 = vrot.lane.b32.xlu1 %v3278_v25, %s4971_s20  ;;  %2121 = vst.msk [vmem:[#allocation3 + $0x70] sm:$0xf] %vm2092_vm0, %v2053_v44  ;;  %v3384_v25 = vsel %vm5094_vm10, %v3379_v62, %v3383_v63  ;;  %v3307_v44 = vrot.slane %v3306_v19, 4  ;;  %v3033_v62 = vld [vmem:[#allocation2 + $0x4c] sm:$0xf] }
 0x1c5   : > { %2910 = vrot.lane.b32.xlu0 %v2813_v2, %s4968_s15  ;;  %v2793_v2 = vrot.slane %v2791_v46, 4  ;;  %v6210_v46 = vld [vmem:[#allocation2 + $0x70] sm:$0xf] }
 0x1c6   : > { %v2051_v49 = vpop.permute.xlu1 %2050 }
 0x1c7   : > { %2120 = vst.msk [vmem:[#allocation3 + $0x6c] sm:$0xf] %vm2092_vm0, %v2051_v49  ;;  %v2558_v33 = vpop.permute.xlu0 %2557  ;;  %v3904_v49 = vrot.slane %v3791_v26, 5  ;;  %v2795_v37 = vsel %vm5581_vm14, %v2793_v2, %v2794_v14 }
 0x1c8   : > { %2654 = vst.msk [vmem:[#allocation3] sm:$0xf] %vm2653_vm4, %v2558_v33  ;;  %v3781_v33 = vld [vmem:[#allocation2 + $0x24] sm:$0xe] }
 0x1c9   : > { %2894 = vrot.lane.b32.xlu2 %v2785_v20, %s4968_s15  ;;  %v3312_v20 = vsel %vm5094_vm10, %v3307_v44, %v3311_v51  ;;  %v3905_v21 = vsel %vm5581_vm14, %v4782_v41, %v3904_v49  ;;  %v4779_v18 = vrot.slane %v3781_v33, 9  ;;  %v3906_v35 = vrot.slane %v3904_v49, 4  ;;  %v3243_v44 = vld [vmem:[#allocation2 + $0x80] sm:$0x1]  ;;  %v3783_v41 = vld [vmem:[#allocation2 + $0x2c] sm:$0x1] }
 0x1ca   : > { %v3040_v49 = vld [vmem:[#allocation2 + $0x78] sm:$0xf]  ;;  %v3886_v33 = vrot.slane %v3783_v41, 5 }
 0x1cb   : > { %v2059_v24 = vpop.permute.xlu2 %2058  ;;  %v3884_v55 = vsel %vm5581_vm14, %v4779_v18, %v3883_v38 }
 0x1cc   : > { %3988 = vrot.lane.b32.xlu1 %v3880_v60, %s4970_s17  ;;  %2124 = vst.msk [vmem:[#allocation3 + $0x7c] sm:$0xf] %vm2092_vm0, %v2059_v24  ;;  %v2840_v60 = vrot.slane %v6210_v46, 5  ;;  %v3026_v24 = vld [vmem:[#allocation2 + $0x24] sm:$0xf] }
 0x1cd   : > { %3094 = vrot.lane.b32.xlu0 %v3027_v36, %s4969_s16  ;;  %v3458_v36 = vshrl.u32 %v3241_v39, 16 }
 0x1ce   : > { %v2057_v17 = vpop.permute.xlu1 %2056  ;;  %v2842_v16 = vrot.slane %v2840_v60, 4 }
 0x1cf   : > { %2123 = vst.msk [vmem:[#allocation3 + $0x78] sm:$0xf] %vm2092_vm0, %v2057_v17  ;;  %v2564_v7 = vpop.permute.xlu0 %2563  ;;  %v3463_v17 = vrot.slane %v3461_v56, 5 }
 0x1d0   : > { %2657 = vst.msk [vmem:[#allocation3 + $0xc] sm:$0xf] %vm2653_vm4, %v2564_v7  ;;  %v3242_v7 = vld [vmem:[#allocation2 + $0x7c] sm:$0xf]  ;;  %v2844_v59 = vsel %vm5581_vm14, %v2842_v16, %v2843_v45 }
 0x1d1   : > { %3088 = vrot.lane.b32.xlu2 %v3024_v4, %s4969_s16  ;;  %v3460_v4 = vrot.slane %v3458_v36, 4  ;;  %v3467_v31 = vshll.u32 %v3242_v7, 16  ;;  %v3471_v40 = vshrl.u32 %v3242_v7, 16 }
 0x1d3   : > { %v2562_v50 = vpop.permute.xlu2 %2561  ;;  %v3473_v14 = vrot.slane %v3471_v40, 4 }
 0x1d4   : > { %2912 = vrot.lane.b32.xlu1 %v2816_v58, %s4968_s15  ;;  %2656 = vst.msk [vmem:[#allocation3 + $0x8] sm:$0xf] %vm2653_vm4, %v2562_v50  ;;  %v3464_v58 = vor.u32 %v3463_v17, %v3460_v4  ;;  %v2692_v4 = vld [vmem:[#allocation2 + $0x24] sm:$0xe]  ;;  %v6276_v17 = vld [vmem:[#allocation2 + $0x28] sm:$0xf] }
 0x1d5   : > { %3653 = vrot.lane.b32.xlu0 %v3302_v13, %s4971_s20  ;;  %v3364_v13 = vrot.slane %v3362_v3, 4 }
 0x1d6   : > { %v2560_v32 = vpop.permute.xlu1 %2559  ;;  %v3465_v42 = vrot.slane %v3464_v58, 4 }
 0x1d7   : > { %2655 = vst.msk [vmem:[#allocation3 + $0x4] sm:$0xf] %vm2653_vm4, %v2560_v32  ;;  %v2570_v57 = vpop.permute.xlu0 %2569  ;;  %v3469_v32 = vrot.slane %v3467_v31, 5  ;;  %v3368_v10 = vor.u32 %v3367_v5, %v3364_v13 }
 0x1d8   : > { %2660 = vst.msk [vmem:[#allocation3 + $0x18] sm:$0xf] %vm2653_vm4, %v2570_v57  ;;  %v3908_v57 = vsel %vm5581_vm14, %v3906_v35, %v3907_v43  ;;  %v3233_v35 = vld [vmem:[#allocation2 + $0x58] sm:$0xf] }
 0x1d9   : > { %3651 = vrot.lane.b32.xlu2 %v3288_v48, %s4971_s20  ;;  %v6240_v48 = vld [vmem:[#allocation2 + $0x7c] sm:$0xf]  ;;  %v3369_v30 = vrot.slane %v3368_v10, 4 }
 0x1da   : > { %v3932_v19 = vrot.slane %v6240_v48, 5 }
 0x1db   : > { %v2568_v47 = vpop.permute.xlu2 %2567  ;;  %v3374_v51 = vsel %vm5094_vm10, %v3369_v30, %v6181_v28  ;;  %v2702_v28 = vld [vmem:[#allocation2 + $0x4c] sm:$0xf] }
 0x1dc   : > { %3104 = vrot.lane.b32.xlu1 %v3032_v12, %s4969_s16  ;;  %2659 = vst.msk [vmem:[#allocation3 + $0x14] sm:$0xf] %vm2653_vm4, %v2568_v47  ;;  %v3470_v12 = vsel %vm5094_vm10, %v3465_v42, %v3469_v32  ;;  %v3934_v26 = vrot.slane %v3932_v19, 4  ;;  %v2819_v18 = vrot.slane %v2702_v28, 5  ;;  %v2703_v42 = vld [vmem:[#allocation2 + $0x50] sm:$0x1] }
 0x1dd   : > { %3667 = vrot.lane.b32.xlu0 %v3384_v25, %s4971_s20  ;;  %v3804_v25 = vld [vmem:[#allocation2 + $0x80] sm:$0x1] }
 0x1de   : > { %v2566_v53 = vpop.permute.xlu1 %2565  ;;  %v3935_v47 = vrot.slane %v3804_v25, 5  ;;  %v2821_v10 = vrot.slane %v2819_v18, 4 }
 0x1df   : > { %2658 = vst.msk [vmem:[#allocation3 + $0x10] sm:$0xf] %vm2653_vm4, %v2566_v53  ;;  %v2576_v54 = vpop.permute.xlu0 %2575 }
 0x1e0   : > { %2663 = vst.msk [vmem:[#allocation3 + $0x24] sm:$0xf] %vm2653_vm4, %v2576_v54  ;;  %v3477_v54 = vshll.u32 %v3243_v44, 16  ;;  %v3936_v39 = vsel %vm5581_vm14, %v3934_v26, %v3935_v47  ;;  %v3234_v26 = vld [vmem:[#allocation2 + $0x5c] sm:$0x1] }
 0x1e1   : > { %2900 = vrot.lane.b32.xlu2 %v2795_v37, %s4968_s15  ;;  %v3474_v37 = vor.u32 %v3473_v14, %v3469_v32  ;;  %v3041_v14 = vld [vmem:[#allocation2 + $0x7c] sm:$0xf]  ;;  %v3802_v47 = vld [vmem:[#allocation2 + $0x78] sm:$0xe] }
 0x1e2   : > { %v3479_v0 = vrot.slane %v3477_v54, 5 }
 0x1e3   : > { %v2574_v15 = vpop.permute.xlu2 %2573  ;;  %v3475_v56 = vrot.slane %v3474_v37, 4  ;;  %v4786_v37 = vrot.slane %v3802_v47, 9 }
 0x1e4   : > { %3655 = vrot.lane.b32.xlu1 %v3312_v20, %s4971_s20  ;;  %2662 = vst.msk [vmem:[#allocation3 + $0x20] sm:$0xf] %vm2653_vm4, %v2574_v15  ;;  %v3885_v20 = vrot.slane %v3883_v38, 4  ;;  %v3223_v38 = vld [vmem:[#allocation2 + $0x30] sm:$0xf] }
 0x1e5   : > { %4002 = vrot.lane.b32.xlu0 %v3905_v21, %s4970_s17  ;;  %v2701_v21 = vld [vmem:[#allocation2 + $0x48] sm:$0xe]  ;;  %v3480_v16 = vsel %vm5094_vm10, %v3475_v56, %v3479_v0  ;;  %v3317_v3 = vshll.u32 %v3223_v38, 16  ;;  %v3225_v56 = vld [vmem:[#allocation2 + $0x38] sm:$0x1]  ;;  %v3933_v0 = vsel %vm5581_vm14, %v4786_v37, %v3932_v19 }
 0x1e6   : > { %v2572_v23 = vpop.permute.xlu1 %2571  ;;  %v4767_v27 = vrot.slane %v2701_v21, 9 }
 0x1e7   : > { %2661 = vst.msk [vmem:[#allocation3 + $0x1c] sm:$0xf] %vm2653_vm4, %v2572_v23  ;;  %v2582_v22 = vpop.permute.xlu0 %2581  ;;  %v2710_v23 = vld [vmem:[#allocation2 + $0x6c] sm:$0xe]  ;;  %v3319_v31 = vrot.slane %v3317_v3, 5  ;;  %v4913_v3 = vld [vmem:[%s7186_s3 + $0x18] sm:$0xff] }
 0x1e8   : > { %2666 = vst.msk [vmem:[#allocation3 + $0x30] sm:$0xf] %vm2653_vm4, %v2582_v22  ;;  %v2820_v45 = vsel %vm5581_vm14, %v4767_v27, %v2819_v18  ;;  %v3314_v22 = vshrl.u32 %v3223_v38, 16  ;;  %v4770_v8 = vrot.slane %v2710_v23, 9  ;;  %v2694_v18 = vld [vmem:[#allocation2 + $0x2c] sm:$0x1] }
 0x1e9   : > { %3092 = vrot.lane.b32.xlu2 %v3026_v24, %s4969_s16  ;;  %v3887_v24 = vsel %vm5581_vm14, %v3885_v20, %v3886_v33  ;;  %v3333_v38 = vshll.u32 %v3225_v56, 16  ;;  %v2722_v56 = vld [vmem:[#allocation2 + $0x9c] sm:$0xe] }
 0x1ea   : > { %v3316_v58 = vrot.slane %v3314_v22, 4  ;;  %v2841_v13 = vsel %vm5581_vm14, %v4770_v8, %v2840_v60  ;;  %v3399_v60 = vshrl.u32 %v3233_v35, 16 }
 0x1eb   : > { %v2580_v11 = vpop.permute.xlu2 %2579  ;;  %v3335_v8 = vrot.slane %v3333_v38, 5 }
 0x1ec   : > { %3990 = vrot.lane.b32.xlu1 %v3884_v55, %s4970_s17  ;;  %2665 = vst.msk [vmem:[#allocation3 + $0x2c] sm:$0xf] %vm2653_vm4, %v2580_v11  ;;  %v4764_v55 = vrot.slane %v2692_v4, 9  ;;  %v3224_v11 = vld [vmem:[#allocation2 + $0x34] sm:$0xf]  ;;  %v3320_v46 = vor.u32 %v3319_v31, %v3316_v58 }
 0x1ed   : > { %2928 = vrot.lane.b32.xlu0 %v2844_v59, %s4968_s15  ;;  %v2798_v59 = vrot.slane %v6276_v17, 5  ;;  %v3323_v32 = vshll.u32 %v3224_v11, 16  ;;  %v6323_v4 = vld [vmem:[#allocation2 + $0x58] sm:$0xf]  ;;  %v6335_v31 = vld [vmem:[#allocation2 + $0x7c] sm:$0xf] }
 0x1ee   : > { %v2578_v50 = vpop.permute.xlu1 %2577 }
 0x1ef   : > { %2664 = vst.msk [vmem:[#allocation3 + $0x28] sm:$0xf] %vm2653_vm4, %v2578_v50  ;;  %v2588_v63 = vpop.permute.xlu0 %2587  ;;  %v2799_v43 = vsel %vm5581_vm14, %v4764_v55, %v2798_v59  ;;  %v3029_v50 = vld [vmem:[#allocation2 + $0x34] sm:$0xf]  ;;  %v3325_v30 = vrot.slane %v3323_v32, 5  ;;  %v2800_v19 = vrot.slane %v2798_v59, 4 }
 0x1f0   : > { %2669 = vst.msk [vmem:[#allocation3 + $0x3c] sm:$0xf] %vm2653_vm4, %v2588_v63  ;;  %v3911_v59 = vrot.slane %v6323_v4, 5  ;;  %v3232_v32 = vld [vmem:[#allocation2 + $0x54] sm:$0xf] }
 0x1f1   : > { %3106 = vrot.lane.b32.xlu2 %v3033_v62, %s4969_s16  ;;  %v3395_v62 = vshll.u32 %v3233_v35, 16  ;;  %v3784_v35 = vld [vmem:[#allocation2 + $0x30] sm:$0xe] }
 0x1f3   : > { %v2586_v2 = vpop.permute.xlu2 %2585  ;;  %v6296_v25 = vrot.slane %v3395_v62, 5  ;;  %v4911_v62 = vld [vmem:[%s7186_s3 + $0x8] sm:$0xff] }
 0x1f4   : > { %4004 = vrot.lane.b32.xlu1 %v3908_v57, %s4970_s17  ;;  %2668 = vst.msk [vmem:[#allocation3 + $0x38] sm:$0xf] %vm2653_vm4, %v2586_v2  ;;  %v2822_v57 = vrot.slane %v2703_v42, 5  ;;  %v3401_v2 = vrot.slane %v3399_v60, 4  ;;  %v2715_v42 = vld [vmem:[#allocation2 + $0x80] sm:$0x1] }
 0x1f5   : > { %3681 = vrot.lane.b32.xlu0 %v3470_v12, %s4971_s20  ;;  %v3321_v12 = vrot.slane %v3320_v46, 4  ;;  %v4780_v60 = vrot.slane %v3784_v35, 9 }
 0x1f6   : > { %v2584_v52 = vpop.permute.xlu1 %2583  ;;  %v2823_v44 = vsel %vm5581_vm14, %v2821_v10, %v2822_v57  ;;  %v3402_v41 = vor.u32 %v3401_v2, %v6296_v25  ;;  %v3386_v2 = vshrl.u32 %v3232_v32, 16 }
 0x1f7   : > { %2667 = vst.msk [vmem:[#allocation3 + $0x34] sm:$0xf] %vm2653_vm4, %v2584_v52  ;;  %v2594_v53 = vpop.permute.xlu0 %2593 }
 0x1f8   : > { %2672 = vst.msk [vmem:[#allocation3 + $0x48] sm:$0xf] %vm2653_vm4, %v2594_v53  ;;  %v3326_v53 = vsel %vm5094_vm10, %v3321_v12, %v3325_v30  ;;  %v3403_v28 = vrot.slane %v3402_v41, 4  ;;  %v3028_v12 = vld [vmem:[#allocation2 + $0x30] sm:$0xf] }
 0x1f9   : > { %3665 = vrot.lane.b32.xlu2 %v3374_v51, %s4971_s20  ;;  %v3327_v51 = vshrl.u32 %v3224_v11, 16 }
 0x1fb   : > { %v2592_v36 = vpop.permute.xlu2 %2591  ;;  %v3329_v20 = vrot.slane %v3327_v51, 4  ;;  %v3388_v51 = vrot.slane %v3386_v2, 4 }
 0x1fc   : > { %3120 = vrot.lane.b32.xlu1 %v3040_v49, %s4969_s16  ;;  %2671 = vst.msk [vmem:[#allocation3 + $0x44] sm:$0xf] %vm2653_vm4, %v2592_v36  ;;  %v3405_v49 = vshll.u32 %v3234_v26, 16 }
 0x1fd   : > { %4020 = vrot.lane.b32.xlu0 %v3936_v39, %s4970_s17  ;;  %v4155_v39 = vld [vmem:[%s7186_s3 + $0x20] sm:$0xf] }
 0x1fe   : > { %v2590_v15 = vpop.permute.xlu1 %2589  ;;  %v4253_v33 = vunpack.c.l.b16 %v4155_v39  ;;  %v3407_v36 = vrot.slane %v3405_v49, 5  ;;  %v3913_v49 = vrot.slane %v3911_v59, 4  ;;  %v3035_v39 = vld [vmem:[#allocation2 + $0x58] sm:$0xf] }
 0x1ff   : > { %2670 = vst.msk [vmem:[#allocation3 + $0x40] sm:$0xf] %vm2653_vm4, %v2590_v15  ;;  %v2600_v61 = vpop.permute.xlu0 %2599 }
 0x200   : > { %2675 = vst.msk [vmem:[#allocation3 + $0x54] sm:$0xf] %vm2653_vm4, %v2600_v61  ;;  %v4258_v27 = vpack.c.b16 %v4253_v33, %v4253_v33  ;;  %v3330_v61 = vor.u32 %v3329_v20, %v3325_v30  ;;  %v3408_v48 = vsel %vm5094_vm10, %v3403_v28, %v3407_v36  ;;  %v3042_v36 = vld [vmem:[#allocation2 + $0x84] sm:$0xf] }
 0x201   : > { %3992 = vrot.lane.b32.xlu2 %v3887_v24, %s4970_s17  ;;  %v3034_v24 = vld [vmem:[#allocation2 + $0x54] sm:$0xf] }
 0x202   : > { %v4314_v23 = vsel %vm4312_vm6, %v4258_v27, 0  ;;  %v3331_v17 = vrot.slane %v3330_v61, 4  ;;  %v4774_v61 = vrot.slane %v2722_v56, 9 }
 0x203   : > { %v2598_v7 = vpop.permute.xlu2 %2597  ;;  %4319 = vmatpush.bf16.msra.mxu0 %v4314_v23  ;;  %4914 = vmatpush.bf16.msra.mxu1 %v4314_v23 }
 0x204   : > { %3683 = vrot.lane.b32.xlu1 %v3480_v16, %s4971_s20  ;;  %2674 = vst.msk [vmem:[#allocation3 + $0x50] sm:$0xf] %vm2653_vm4, %v2598_v7  ;;  %v2801_v16 = vrot.slane %v2694_v18, 5  ;;  %4915 = vmatpush.bf16.msra.mxu2 %v4314_v23 }
 0x205   : > { %2914 = vrot.lane.b32.xlu0 %v2820_v45, %s4968_s15  ;;  %v3793_v45 = vld [vmem:[#allocation2 + $0x54] sm:$0xe]  ;;  %4916 = vmatpush.bf16.msra.mxu3 %v4314_v23 }
 0x206   : > { %v2596_v29 = vpop.permute.xlu1 %2595  ;;  %v4783_v55 = vrot.slane %v3793_v45, 9 }
 0x207   : > { %2673 = vst.msk [vmem:[#allocation3 + $0x4c] sm:$0xf] %vm2653_vm4, %v2596_v29  ;;  %v2606_v5 = vpop.permute.xlu0 %2605  ;;  %4320 = vmatpush.bf16.msra.mxu0 %v4913_v3  ;;  %v2802_v29 = vsel %vm5581_vm14, %v2800_v19, %v2801_v16  ;;  %4917 = vmatpush.bf16.msra.mxu1 %v4913_v3  ;;  %v3244_v16 = vld [vmem:[#allocation2 + $0x84] sm:$0xf] }
 0x208   : > { %2678 = vst.msk [vmem:[#allocation3 + $0x60] sm:$0xf] %vm2653_vm4, %v2606_v5  ;;  %4918 = vmatpush.bf16.msra.mxu2 %v4913_v3  ;;  %v3336_v5 = vsel %vm5094_vm10, %v3331_v17, %v3335_v8  ;;  %v3912_v11 = vsel %vm5581_vm14, %v4783_v55, %v3911_v59  ;;  %v3482_v8 = vshrl.u32 %v3244_v16, 16  ;;  %v3049_v55 = vld [vmem:[#allocation2 + $0xac] sm:$0xf] }
 0x209   : > { %2926 = vrot.lane.b32.xlu2 %v2841_v13, %s4968_s15  ;;  %v4912_v13 = vld [vmem:[%s7186_s3 + $0x10] sm:$0xff]  ;;  %4919 = vmatpush.bf16.msra.mxu3 %v4913_v3  ;;  %v3786_v3 = vld [vmem:[#allocation2 + $0x38] sm:$0x1] }
 0x20b   : > { %v2604_v63 = vpop.permute.xlu2 %2603  ;;  %4321 = vmatpush.bf16.msra.mxu0 %v4912_v13  ;;  %4920 = vmatpush.bf16.msra.mxu1 %v4912_v13 }
 0x20c   : > { %2902 = vrot.lane.b32.xlu1 %v2799_v43, %s4968_s15  ;;  %2677 = vst.msk [vmem:[#allocation3 + $0x5c] sm:$0xf] %vm2653_vm4, %v2604_v63  ;;  %v6346_v43 = vld [vmem:[#allocation2 + $0x34] sm:$0xf]  ;;  %4921 = vmatpush.bf16.msra.mxu2 %v4912_v13 }
 0x20d   : > { %3098 = vrot.lane.b32.xlu0 %v3029_v50, %s4969_s16  ;;  %v2847_v50 = vrot.slane %v6335_v31, 5  ;;  %4922 = vmatpush.bf16.msra.mxu3 %v4912_v13  ;;  %v3890_v63 = vrot.slane %v6346_v43, 5 }
 0x20e   : > { %v2602_v40 = vpop.permute.xlu1 %2601 }
 0x20f   : > { %2676 = vst.msk [vmem:[#allocation3 + $0x58] sm:$0xf] %vm2653_vm4, %v2602_v40  ;;  %v2612_v52 = vpop.permute.xlu0 %2611  ;;  %v2849_v57 = vrot.slane %v2847_v50, 4  ;;  %v2850_v40 = vrot.slane %v2715_v42, 5  ;;  %4322 = vmatpush.bf16.msra.mxu0 %v4911_v62  ;;  %4923 = vmatpush.bf16.msra.mxu1 %v4911_v62  ;;  %v3891_v26 = vsel %vm5581_vm14, %v4780_v60, %v3890_v63  ;;  %v6404_v60 = vld [vmem:[#allocation2 + $0x88] sm:$0xf] }
 0x210   : > { %2681 = vst.msk [vmem:[#allocation3 + $0x6c] sm:$0xf] %vm2653_vm4, %v2612_v52  ;;  %4924 = vmatpush.bf16.msra.mxu2 %v4911_v62  ;;  %v4910_v52 = vld [vmem:[%s7186_s3] sm:$0xff]  ;;  %v3939_v2 = vrot.slane %v6404_v60, 5  ;;  %v3787_v60 = vld [vmem:[#allocation2 + $0x3c] sm:$0xe] }
 0x211   : > { %3122 = vrot.lane.b32.xlu2 %v3041_v14, %s4969_s16  ;;  %v3389_v14 = vshll.u32 %v3232_v32, 16  ;;  %4925 = vmatpush.bf16.msra.mxu3 %v4911_v62  ;;  %v2851_v47 = vsel %vm5581_vm14, %v2849_v57, %v2850_v40  ;;  %v6399_v32 = vld [vmem:[#allocation2 + $0x88] sm:$0xf] }
 0x213   : > { %v2610_v54 = vpop.permute.xlu2 %2609  ;;  %4323 = vmatpush.bf16.msra.mxu0 %v4910_v52  ;;  %4926 = vmatpush.bf16.msra.mxu1 %v4910_v52 }
 0x214   : > { %2916 = vrot.lane.b32.xlu1 %v2823_v44, %s4968_s15  ;;  %2680 = vst.msk [vmem:[#allocation3 + $0x68] sm:$0xf] %vm2653_vm4, %v2610_v54  ;;  %v3795_v44 = vld [vmem:[#allocation2 + $0x5c] sm:$0x1]  ;;  %4927 = vmatpush.bf16.msra.mxu2 %v4910_v52 }
 0x215   : > { %3657 = vrot.lane.b32.xlu0 %v3326_v53, %s4971_s20  ;;  %v3391_v53 = vrot.slane %v3389_v14, 5  ;;  %4928 = vmatpush.bf16.msra.mxu3 %v4910_v52  ;;  %v3914_v37 = vrot.slane %v3795_v44, 5  ;;  %v3807_v52 = vld [vmem:[#allocation2 + $0x8c] sm:$0x1] }
 0x216   : > { %v2608_v21 = vpop.permute.xlu1 %2607 }
 0x217   : > { %2679 = vst.msk [vmem:[#allocation3 + $0x64] sm:$0xf] %vm2653_vm4, %v2608_v21  ;;  %v2618_v15 = vpop.permute.xlu0 %2617  ;;  %v3392_v33 = vor.u32 %v3391_v53, %v3388_v51  ;;  %v3253_v21 = vld [vmem:[#allocation2 + $0xa8] sm:$0xf]  ;;  %v3915_v28 = vsel %vm5581_vm14, %v3913_v49, %v3914_v37  ;;  %v3941_v49 = vrot.slane %v3939_v2, 4  ;;  %v3942_v37 = vrot.slane %v3807_v52, 5 }
 0x218   : > { %2684 = vst.msk [vmem:[#allocation3 + $0x78] sm:$0xf] %vm2653_vm4, %v2618_v15  ;;  %v3554_v15 = vshrl.u32 %v3253_v21, 16  ;;  %v3557_v27 = vshll.u32 %v3253_v21, 16 }
 0x219   : > { %4018 = vrot.lane.b32.xlu2 %v3933_v0, %s4970_s17  ;;  %v6377_v0 = vld [vmem:[#allocation2 + $0xa0] sm:$0xf]  ;;  %v3393_v18 = vrot.slane %v3392_v33, 4  ;;  %v2724_v33 = vld [vmem:[#allocation2 + $0xa4] sm:$0x1]  ;;  %v3943_v31 = vsel %vm5581_vm14, %v3941_v49, %v3942_v37 }
 0x21a   : > { %v2868_v38 = vrot.slane %v6377_v0, 5  ;;  %v3559_v19 = vrot.slane %v3557_v27, 5  ;;  %v2871_v56 = vrot.slane %v2724_v33, 5  ;;  %v2696_v27 = vld [vmem:[#allocation2 + $0x34] sm:$0xf] }
 0x21b   : > { %v2616_v22 = vpop.permute.xlu2 %2615  ;;  %v3398_v45 = vsel %vm5094_vm10, %v3393_v18, %v6296_v25  ;;  %v3228_v49 = vld [vmem:[#allocation2 + $0x44] sm:$0x1]  ;;  %v3805_v37 = vld [vmem:[#allocation2 + $0x84] sm:$0xe] }
 0x21c   : > { %3108 = vrot.lane.b32.xlu1 %v3034_v24, %s4969_s16  ;;  %2683 = vst.msk [vmem:[#allocation3 + $0x74] sm:$0xf] %vm2653_vm4, %v2616_v22  ;;  %v3254_v22 = vld [vmem:[#allocation2 + $0xac] sm:$0xf]  ;;  %v2869_v17 = vsel %vm5581_vm14, %v4774_v61, %v2868_v38  ;;  %v3357_v33 = vshll.u32 %v3228_v49, 16 }
 0x21d   : > { %3671 = vrot.lane.b32.xlu0 %v3408_v48, %s4971_s20  ;;  %v3556_v48 = vrot.slane %v3554_v15, 4  ;;  %v3563_v59 = vshll.u32 %v3254_v22, 16  ;;  %v3567_v57 = vshrl.u32 %v3254_v22, 16  ;;  %v2695_v15 = vld [vmem:[#allocation2 + $0x30] sm:$0xe] }
 0x21e   : > { %v2614_v7 = vpop.permute.xlu1 %2613  ;;  %v2725_v49 = vld [vmem:[#allocation2 + $0xa8] sm:$0xe] }
 0x21f   : > { %2682 = vst.msk [vmem:[#allocation3 + $0x70] sm:$0xf] %vm2653_vm4, %v2614_v7  ;;  %v2897_v58 = vpop.permute.xlu0 %2896  ;;  %v3485_v7 = vshll.u32 %v3244_v16, 16  ;;  %v3560_v25 = vor.u32 %v3559_v19, %v3556_v48  ;;  %v3569_v51 = vrot.slane %v3567_v57, 4  ;;  %v4765_v48 = vrot.slane %v2695_v15, 9 }
 0x220   : > { %2992 = vst.msk [vmem:[#allocation3 + $0x4] sm:$0xf] %vm2990_vm7, %v2897_v58  ;;  %v3893_v58 = vrot.slane %v3786_v3, 5  ;;  %v2805_v19 = vrot.slane %v2696_v27, 5  ;;  %v3495_v16 = vshrl.u32 %v6399_v32, 16 }
 0x221   : > { %2904 = vrot.lane.b32.xlu2 %v2802_v29, %s4968_s15  ;;  %v3892_v29 = vrot.slane %v3890_v63, 4  ;;  %v3561_v42 = vrot.slane %v3560_v25, 4  ;;  %v2713_v63 = vld [vmem:[#allocation2 + $0x78] sm:$0xe]  ;;  %v3814_v3 = vld [vmem:[#allocation2 + $0xa8] sm:$0xe] }
 0x222   : > { %v4771_v14 = vrot.slane %v2713_v63, 9  ;;  %v2806_v22 = vsel %vm5581_vm14, %v4765_v48, %v2805_v19  ;;  %v2807_v52 = vrot.slane %v2805_v19, 4  ;;  %v3235_v15 = vld [vmem:[#allocation2 + $0x60] sm:$0xf] }
 0x223   : > { %v2895_v46 = vpop.permute.xlu2 %2894  ;;  %v3894_v62 = vsel %vm5581_vm14, %v3892_v29, %v3893_v58  ;;  %v4790_v29 = vrot.slane %v3814_v3, 9  ;;  %v3413_v48 = vshll.u32 %v3235_v15, 16 }
 0x224   : > { %3659 = vrot.lane.b32.xlu1 %v3336_v5, %s4971_s20  ;;  %2991 = vst.msk [vmem:[#allocation3] sm:$0xf] %vm2990_vm7, %v2895_v46  ;;  %v3484_v5 = vrot.slane %v3482_v8, 4  ;;  %v3565_v46 = vrot.slane %v3563_v59, 5  ;;  %v3246_v59 = vld [vmem:[#allocation2 + $0x8c] sm:$0x1] }
 0x225   : > { %4006 = vrot.lane.b32.xlu0 %v3912_v11, %s4970_s17  ;;  %v3487_v11 = vrot.slane %v3485_v7, 5  ;;  %v3497_v7 = vrot.slane %v3495_v16, 4 }
 0x226   : > { %v2620_v10 = vpop.permute.xlu1 %2619 }
 0x227   : > { %2685 = vst.msk [vmem:[#allocation3 + $0x7c] sm:$0xf] %vm2653_vm4, %v2620_v10  ;;  %v3091_v30 = vpop.permute.xlu0 %3090  ;;  %v3043_v10 = vld [vmem:[#allocation2 + $0x88] sm:$0xf]  ;;  %v3488_v40 = vor.u32 %v3487_v11, %v3484_v5 }
 0x228   : > { %3186 = vst.msk [vmem:[#allocation3 + $0x4] sm:$0xf] %vm3184_vm8, %v3091_v30  ;;  %v3566_v30 = vsel %vm5094_vm10, %v3561_v42, %v3565_v46 }
 0x229   : > { %3096 = vrot.lane.b32.xlu2 %v3028_v12, %s4969_s16  ;;  %v3491_v12 = vshll.u32 %v6399_v32, 16  ;;  %v3501_v32 = vshll.u32 %v3246_v59, 16 }
 0x22b   : > { %v3089_v41 = vpop.permute.xlu2 %3088  ;;  %v6415_v44 = vrot.slane %v3491_v12, 5 }
 0x22c   : > { %3994 = vrot.lane.b32.xlu1 %v3891_v26, %s4970_s17  ;;  %3185 = vst.msk [vmem:[#allocation3] sm:$0xf] %vm3184_vm8, %v3089_v41 }
 0x22d   : > { %2932 = vrot.lane.b32.xlu0 %v2851_v47, %s4968_s15  ;;  %v3489_v47 = vrot.slane %v3488_v40, 4 }
 0x22e   : > { %v2899_v54 = vpop.permute.xlu1 %2898 }
 0x22f   : > { %2993 = vst.msk [vmem:[#allocation3 + $0x8] sm:$0xf] %vm2990_vm7, %v2899_v54  ;;  %v3987_v20 = vpop.permute.xlu0 %3986  ;;  %v3255_v54 = vld [vmem:[#allocation2 + $0xb0] sm:$0x1]  ;;  %v3494_v21 = vsel %vm5094_vm10, %v3489_v47, %v6415_v44 }
 0x231   : > { %3110 = vrot.lane.b32.xlu2 %v3035_v39, %s4969_s16  ;;  %v2848_v39 = vsel %vm5581_vm14, %v4771_v14, %v2847_v50  ;;  %v2870_v50 = vrot.slane %v2868_v38, 4 }
 0x233   : > { %v3652_v24 = vpop.permute.xlu2 %3651  ;;  %v2872_v0 = vsel %vm5581_vm14, %v2870_v50, %v2871_v56  ;;  %v3359_v56 = vrot.slane %v3357_v33, 5  ;;  %v3031_v33 = vld [vmem:[#allocation2 + $0x40] sm:$0xf] }
 0x234   : > { %4008 = vrot.lane.b32.xlu1 %v3915_v28, %s4970_s17  ;;  %3747 = vst.msk [vmem:[#allocation3 + $0x4] sm:$0xf] %vm3745_vm9, %v3652_v24  ;;  %v3570_v28 = vor.u32 %v3569_v51, %v3565_v46  ;;  %v3498_v46 = vor.u32 %v3497_v7, %v6415_v44  ;;  %v4781_v7 = vrot.slane %v3787_v60, 9 }
 0x235   : > { %3124 = vrot.lane.b32.xlu0 %v3042_v36, %s4969_s16  ;;  %v3573_v36 = vshll.u32 %v3255_v54, 16 }
 0x236   : > { %v3650_v23 = vpop.permute.xlu1 %3649  ;;  %v3571_v24 = vrot.slane %v3570_v28, 4  ;;  %v3499_v12 = vrot.slane %v3498_v46, 4 }
 0x237   : > { %3746 = vst.msk [vmem:[#allocation3] sm:$0xf] %vm3745_vm9, %v3650_v23  ;;  %v2911_v4 = vpop.permute.xlu0 %2910  ;;  %v3575_v61 = vrot.slane %v3573_v36, 5 }
 0x238   : > { %4083 = vst.msk [vmem:[#allocation3] sm:$0xf] %vm4082_vm11, %v3987_v20 }
 0x239   : > { %2999 = vst.msk [vmem:[#allocation3 + $0x20] sm:$0xf] %vm2990_vm7, %v2911_v4  ;;  %3669 = vrot.lane.b32.xlu2 %v3398_v45, %s4971_s20  ;;  %v6441_v45 = vld [vmem:[#allocation2 + $0x58] sm:$0xf]  ;;  %v3576_v4 = vsel %vm5094_vm10, %v3571_v24, %v3575_v61  ;;  %v3816_v24 = vld [vmem:[#allocation2 + $0xb0] sm:$0x1] }
 0x23a   : > { %v2826_v8 = vrot.slane %v6441_v45, 5  ;;  %v3030_v61 = vld [vmem:[#allocation2 + $0x3c] sm:$0xf] }
 0x23b   : > { %v2901_v13 = vpop.permute.xlu2 %2900 }
 0x23c   : > { %2942 = vrot.lane.b32.xlu1 %v2869_v17, %s4968_s15  ;;  %2994 = vst.msk [vmem:[#allocation3 + $0xc] sm:$0xf] %vm2990_vm7, %v2901_v13  ;;  %v6449_v17 = vld [vmem:[#allocation2 + $0xac] sm:$0xf]  ;;  %v3048_v13 = vld [vmem:[#allocation2 + $0xa8] sm:$0xf] }
 0x23d   : > { %3138 = vrot.lane.b32.xlu0 %v3049_v55, %s4969_s16  ;;  %v2706_v55 = vld [vmem:[#allocation2 + $0x5c] sm:$0x1]  ;;  %v3960_v58 = vrot.slane %v6449_v17, 5  ;;  %v2828_v11 = vrot.slane %v2826_v8, 4 }
 0x23e   : > { %v3989_v35 = vpop.permute.xlu1 %3988 }
 0x23f   : > { %4084 = vst.msk [vmem:[#allocation3 + $0x4] sm:$0xf] %vm4082_vm11, %v3989_v35  ;;  %v3095_v43 = vpop.permute.xlu0 %3094  ;;  %v2829_v35 = vrot.slane %v2706_v55, 5  ;;  %v3962_v16 = vrot.slane %v3960_v58, 4 }
 0x240   : > { %3188 = vst.msk [vmem:[#allocation3 + $0xc] sm:$0xf] %vm3184_vm8, %v3095_v43  ;;  %v3961_v43 = vsel %vm5581_vm14, %v4790_v29, %v3960_v58  ;;  %v6499_v58 = vld [vmem:[#allocation2 + $0x64] sm:$0xf] }
 0x241   : > { %3996 = vrot.lane.b32.xlu2 %v3894_v62, %s4970_s17  ;;  %v3227_v62 = vld [vmem:[#allocation2 + $0x40] sm:$0xf]  ;;  %v2830_v63 = vsel %vm5581_vm14, %v2828_v11, %v2829_v35  ;;  %v3918_v46 = vrot.slane %v6499_v58, 5 }
 0x242   : > { %v3347_v57 = vshll.u32 %v3227_v62, 16  ;;  %v3351_v40 = vshrl.u32 %v3227_v62, 16  ;;  %v3798_v62 = vld [vmem:[#allocation2 + $0x68] sm:$0x1] }
 0x243   : > { %v3093_v26 = vpop.permute.xlu2 %3092 }
 0x244   : > { %3126 = vrot.lane.b32.xlu1 %v3043_v10, %s4969_s16  ;;  %3187 = vst.msk [vmem:[#allocation3 + $0x8] sm:$0xf] %vm3184_vm8, %v3093_v26  ;;  %v2697_v10 = vld [vmem:[#allocation2 + $0x38] sm:$0x1]  ;;  %v6469_v44 = vrot.slane %v3347_v57, 5  ;;  %v3353_v51 = vrot.slane %v3351_v40, 4 }
 0x245   : > { %3697 = vrot.lane.b32.xlu0 %v3566_v30, %s4971_s20  ;;  %v3503_v30 = vrot.slane %v3501_v32, 5  ;;  %v2808_v26 = vrot.slane %v2697_v10, 5 }
 0x246   : > { %v2913_v53 = vpop.permute.xlu1 %2912  ;;  %v4894_v41 = vld [vmem:[#allocation3] sm:$0xff] }
 0x247   : > { %3000 = vst.msk [vmem:[#allocation3 + $0x24] sm:$0xf] %vm2990_vm7, %v2913_v53  ;;  %v3654_v20 = vpop.permute.xlu0 %3653  ;;  %4874 = vmatmul.msk.bf16.vlgmr.msra.gmra.mxu0 %vm4263_vm12, %v4894_v41  ;;  %v3504_v53 = vsel %vm5094_vm10, %v3499_v12, %v3503_v30  ;;  %v2809_v54 = vsel %vm5581_vm14, %v2807_v52, %v2808_v26  ;;  %v3920_v12 = vrot.slane %v3918_v46, 4  ;;  %v3921_v30 = vrot.slane %v3798_v62, 5 }
 0x248   : > { %3748 = vst.msk [vmem:[#allocation3 + $0x8] sm:$0xf] %vm3745_vm9, %v3654_v20  ;;  %v3354_v20 = vor.u32 %v3353_v51, %v6469_v44 }
 0x249   : > { %2930 = vrot.lane.b32.xlu2 %v2848_v39, %s4968_s15  ;;  %v3036_v39 = vld [vmem:[#allocation2 + $0x60] sm:$0xf]  ;;  %v3922_v45 = vsel %vm5581_vm14, %v3920_v12, %v3921_v30 }
 0x24a   : > { %v3355_v50 = vrot.slane %v3354_v20, 4 }
 0x24b   : > { %v3107_v18 = vpop.permute.xlu2 %3106 }
 0x24c   : > { %3685 = vrot.lane.b32.xlu1 %v3494_v21, %s4971_s20  ;;  %3194 = vst.msk [vmem:[#allocation3 + $0x24] sm:$0xf] %vm3184_vm8, %v3107_v18  ;;  %v4787_v21 = vrot.slane %v3805_v37, 9  ;;  %v3360_v19 = vsel %vm5094_vm10, %v3355_v50, %v3359_v56  ;;  %v2726_v37 = vld [vmem:[#allocation2 + $0xac] sm:$0xf] }
 0x24d   : > { %4024 = vrot.lane.b32.xlu0 %v3943_v31, %s4970_s17 }
 0x24e   : > { %v3105_v23 = vpop.permute.xlu1 %3104  ;;  %v3940_v27 = vsel %vm5581_vm14, %v4787_v21, %v3939_v2 }
 0x24f   : > { %3193 = vst.msk [vmem:[#allocation3 + $0x20] sm:$0xf] %vm3184_vm8, %v3105_v23  ;;  %v3668_v38 = vpop.permute.xlu0 %3667  ;;  %v3410_v23 = vshrl.u32 %v3235_v15, 16 }
 0x250   : > { %3755 = vst.msk [vmem:[#allocation3 + $0x24] sm:$0xf] %vm3745_vm9, %v3668_v38  ;;  %v3788_v38 = vld [vmem:[#allocation2 + $0x40] sm:$0xf] }
 0x251   : > { %2944 = vrot.lane.b32.xlu2 %v2872_v0, %s4968_s15  ;;  %v3963_v0 = vrot.slane %v3816_v24, 5  ;;  %v3412_v2 = vrot.slane %v3410_v23, 4  ;;  %v3897_v55 = vrot.slane %v3788_v38, 5  ;;  %v2716_v24 = vld [vmem:[#allocation2 + $0x84] sm:$0xe] }
 0x253   : > { %v3666_v25 = vpop.permute.xlu2 %3665  ;;  %v3964_v59 = vsel %vm5581_vm14, %v3962_v16, %v3963_v0  ;;  %v3237_v0 = vld [vmem:[#allocation2 + $0x68] sm:$0x1] }
 0x254   : > { %3699 = vrot.lane.b32.xlu1 %v3576_v4, %s4971_s20  ;;  %3754 = vst.msk [vmem:[#allocation3 + $0x20] sm:$0xf] %vm3745_vm9, %v3666_v25  ;;  %v6494_v25 = vld [vmem:[#allocation2 + $0x64] sm:$0xf] }
 0x255   : > { %2906 = vrot.lane.b32.xlu0 %v2806_v22, %s4968_s15  ;;  %v3415_v22 = vrot.slane %v3413_v48, 5  ;;  %v3419_v35 = vshll.u32 %v6494_v25, 16 }
 0x256   : > { %v3656_v5 = vpop.permute.xlu1 %3655 }
 0x257   : > { %3749 = vst.msk [vmem:[#allocation3 + $0xc] sm:$0xf] %vm3745_vm9, %v3656_v5  ;;  %v4003_v42 = vpop.permute.xlu0 %4002  ;;  %v3037_v5 = vld [vmem:[#allocation2 + $0x64] sm:$0xf]  ;;  %v3416_v11 = vor.u32 %v3415_v22, %v3412_v2  ;;  %v6511_v57 = vrot.slane %v3419_v35, 5 }
 0x258   : > { %4091 = vst.msk [vmem:[#allocation3 + $0x20] sm:$0xf] %vm4082_vm11, %v4003_v42  ;;  %v3898_v42 = vsel %vm5581_vm14, %v4781_v7, %v3897_v55  ;;  %v3045_v35 = vld [vmem:[#allocation2 + $0x94] sm:$0xf] }
 0x259   : > { %3136 = vrot.lane.b32.xlu2 %v3048_v13, %s4969_s16  ;;  %v2704_v13 = vld [vmem:[#allocation2 + $0x54] sm:$0xe]  ;;  %v3417_v10 = vrot.slane %v3416_v11, 4  ;;  %v2727_v11 = vld [vmem:[#allocation2 + $0xb0] sm:$0x1] }
 0x25a   : > { %v4768_v32 = vrot.slane %v2704_v13, 9  ;;  %v3257_v13 = vld [vmem:[#allocation2 + $0xb8] sm:$0xf] }
 0x25b   : > { %v3993_v14 = vpop.permute.xlu2 %3992  ;;  %v3422_v51 = vsel %vm5094_vm10, %v3417_v10, %v6511_v57  ;;  %v3591_v62 = vshrl.u32 %v3257_v13, 16 }
 0x25c   : > { %4034 = vrot.lane.b32.xlu1 %v3961_v43, %s4970_s17  ;;  %4086 = vst.msk [vmem:[#allocation3 + $0xc] sm:$0xf] %vm4082_vm11, %v3993_v14  ;;  %v2827_v14 = vsel %vm5581_vm14, %v4768_v32, %v2826_v8  ;;  %v3587_v32 = vshll.u32 %v3257_v13, 16 }
 0x25d   : > { %2920 = vrot.lane.b32.xlu0 %v2830_v63, %s4968_s15  ;;  %v3226_v63 = vld [vmem:[#allocation2 + $0x3c] sm:$0xf] }
 0x25e   : > { %v3991_v47 = vpop.permute.xlu1 %3990  ;;  %v3338_v26 = vshrl.u32 %v3226_v63, 16 }
 0x25f   : > { %4085 = vst.msk [vmem:[#allocation3 + $0x8] sm:$0xf] %vm4082_vm11, %v3991_v47  ;;  %v2929_v41 = vpop.permute.xlu0 %2928  ;;  %v3341_v47 = vshll.u32 %v3226_v63, 16 }
 0x260   : > { %3008 = vst.msk [vmem:[#allocation3 + $0x44] sm:$0xf] %vm2990_vm7, %v2929_v41  ;;  %v3340_v8 = vrot.slane %v3338_v26, 4  ;;  %v3593_v26 = vrot.slane %v3591_v62, 4 }
 0x261   : > { %3687 = vrot.lane.b32.xlu2 %v3504_v53, %s4971_s20  ;;  %v3789_v53 = vld [vmem:[#allocation2 + $0x44] sm:$0x1]  ;;  %v3343_v41 = vrot.slane %v3341_v47, 5 }
 0x262   : > { %v3900_v20 = vrot.slane %v3789_v53, 5  ;;  %v3796_v53 = vld [vmem:[#allocation2 + $0x60] sm:$0xe] }
 0x263   : > { %v2927_v28 = vpop.permute.xlu2 %2926  ;;  %v3344_v15 = vor.u32 %v3343_v41, %v3340_v8 }
 0x264   : > { %2908 = vrot.lane.b32.xlu1 %v2809_v54, %s4968_s15  ;;  %3007 = vst.msk [vmem:[#allocation3 + $0x40] sm:$0xf] %vm2990_vm7, %v2927_v28  ;;  %v4775_v28 = vrot.slane %v2725_v49, 9 }
 0x265   : > { %3112 = vrot.lane.b32.xlu0 %v3036_v39, %s4969_s16  ;;  %v3899_v39 = vrot.slane %v3897_v55, 4  ;;  %v3345_v16 = vrot.slane %v3344_v15, 4  ;;  %v2718_v15 = vld [vmem:[#allocation2 + $0x8c] sm:$0x1] }
 0x266   : > { %v4005_v36 = vpop.permute.xlu1 %4004  ;;  %v4895_v31 = vld [vmem:[#allocation3 + $0x8] sm:$0xff] }
 0x267   : > { %4092 = vst.msk [vmem:[#allocation3 + $0x24] sm:$0xf] %vm4082_vm11, %v4005_v36  ;;  %v3682_v18 = vpop.permute.xlu0 %3681  ;;  %4875 = vmatmul.msk.bf16.gmra.mxu0 %vm4263_vm12, %v4895_v31  ;;  %v2875_v36 = vrot.slane %v2726_v37, 5  ;;  %v3423_v31 = vshrl.u32 %v6494_v25, 16  ;;  %v3350_v55 = vsel %vm5094_vm10, %v3345_v16, %v6469_v44 }
 0x269   : > { %4022 = vrot.lane.b32.xlu2 %v3940_v27, %s4970_s17  ;;  %v3247_v27 = vld [vmem:[#allocation2 + $0x90] sm:$0xf]  ;;  %v2876_v23 = vsel %vm5581_vm14, %v4775_v28, %v2875_v36  ;;  %v3425_v60 = vrot.slane %v3423_v31, 4  ;;  %v3249_v28 = vld [vmem:[#allocation2 + $0x98] sm:$0x1] }
 0x26a   : > { %v3506_v48 = vshrl.u32 %v3247_v27, 16 }
 0x26b   : > { %v3123_v4 = vpop.permute.xlu2 %3122 }
 0x26c   : > { %3100 = vrot.lane.b32.xlu1 %v3030_v61, %s4969_s16  ;;  %3202 = vst.msk [vmem:[#allocation3 + $0x44] sm:$0xf] %vm3184_vm8, %v3123_v4  ;;  %v6538_v61 = vld [vmem:[#allocation2 + $0x88] sm:$0xf]  ;;  %v4772_v4 = vrot.slane %v2716_v24, 9  ;;  %v3525_v24 = vshll.u32 %v3249_v28, 16 }
 0x26d   : > { %3663 = vrot.lane.b32.xlu0 %v3360_v19, %s4971_s20  ;;  %v3509_v19 = vshll.u32 %v3247_v27, 16  ;;  %v2854_v2 = vrot.slane %v6538_v61, 5  ;;  %v3050_v27 = vld [vmem:[#allocation2 + $0xb4] sm:$0xf] }
 0x26e   : > { %v3121_v3 = vpop.permute.xlu1 %3120  ;;  %v4898_v17 = vld [vmem:[#allocation3 + $0x20] sm:$0xff] }
 0x26f   : > { %3201 = vst.msk [vmem:[#allocation3 + $0x40] sm:$0xf] %vm3184_vm8, %v3121_v3  ;;  %v4021_v29 = vpop.permute.xlu0 %4020  ;;  %4878 = vmatmul.msk.bf16.vlgmr.msra.gmra.mxu1 %vm4263_vm12, %v4898_v17  ;;  %v3429_v3 = vshll.u32 %v3237_v0, 16  ;;  %v3508_v17 = vrot.slane %v3506_v48, 4  ;;  %v3511_v7 = vrot.slane %v3509_v19, 5  ;;  %v2856_v58 = vrot.slane %v2854_v2, 4 }
 0x270   : > { %3762 = vst.msk [vmem:[#allocation3 + $0x40] sm:$0xf] %vm3745_vm9, %v3682_v18  ;;  %v3901_v18 = vsel %vm5581_vm14, %v3899_v39, %v3900_v20  ;;  %v4784_v39 = vrot.slane %v3796_v53, 9  ;;  %v2857_v48 = vrot.slane %v2718_v15, 5  ;;  %v3817_v19 = vld [vmem:[#allocation2 + $0xb4] sm:$0xe] }
 0x271   : > { %4036 = vrot.lane.b32.xlu2 %v3964_v59, %s4970_s17  ;;  %v3426_v59 = vor.u32 %v3425_v60, %v6511_v57  ;;  %v3431_v63 = vrot.slane %v3429_v3, 5  ;;  %v2877_v57 = vrot.slane %v2875_v36, 4  ;;  %v3527_v60 = vrot.slane %v3525_v24, 5  ;;  %v6623_v15 = vld [vmem:[#allocation2 + $0x70] sm:$0xf] }
 0x272   : > { %v2858_v61 = vsel %vm5581_vm14, %v2856_v58, %v2857_v48  ;;  %v3801_v48 = vld [vmem:[#allocation2 + $0x74] sm:$0x1] }
 0x273   : > { %v4019_v43 = vpop.permute.xlu2 %4018 }
 0x274   : > { %3114 = vrot.lane.b32.xlu1 %v3037_v5, %s4969_s16  ;;  %4099 = vst.msk [vmem:[#allocation3 + $0x40] sm:$0xf] %vm4082_vm11, %v4019_v43  ;;  %v2855_v5 = vsel %vm5581_vm14, %v4772_v4, %v2854_v2  ;;  %v3427_v43 = vrot.slane %v3426_v59, 4  ;;  %v4791_v4 = vrot.slane %v3817_v19, 9  ;;  %v6592_v2 = vld [vmem:[#allocation2 + $0x64] sm:$0xf] }
 0x275   : > { %3998 = vrot.lane.b32.xlu0 %v3898_v42, %s4970_s17  ;;  %v3512_v42 = vor.u32 %v3511_v7, %v3508_v17  ;;  %v3238_v17 = vld [vmem:[#allocation2 + $0x6c] sm:$0xf] }
 0x276   : > { %v3684_v40 = vpop.permute.xlu1 %3683  ;;  %v3432_v47 = vsel %vm5094_vm10, %v3427_v43, %v3431_v63  ;;  %v3434_v13 = vshrl.u32 %v3238_v17, 16 }
 0x277   : > { %3763 = vst.msk [vmem:[#allocation3 + $0x44] sm:$0xf] %vm3745_vm9, %v3684_v40  ;;  %v2915_v52 = vpop.permute.xlu0 %2914  ;;  %v2878_v40 = vrot.slane %v2727_v11, 5  ;;  %v3513_v30 = vrot.slane %v3512_v42, 4  ;;  %v2709_v11 = vld [vmem:[#allocation2 + $0x68] sm:$0x1] }
 0x278   : > { %4100 = vst.msk [vmem:[#allocation3 + $0x44] sm:$0xf] %vm4082_vm11, %v4021_v29  ;;  %v3248_v29 = vld [vmem:[#allocation2 + $0x94] sm:$0xf] }
 0x279   : > { %3001 = vst.msk [vmem:[#allocation3 + $0x28] sm:$0xf] %vm2990_vm7, %v2915_v52  ;;  %2918 = vrot.lane.b32.xlu2 %v2827_v14, %s4968_s15  ;;  %v3515_v44 = vshll.u32 %v3248_v29, 16  ;;  %v6560_v52 = vrot.slane %v3587_v32, 5  ;;  %v2879_v8 = vsel %vm5581_vm14, %v2877_v57, %v2878_v40  ;;  %v3519_v41 = vshrl.u32 %v3248_v29, 16 }
 0x27a   : > { %v2833_v29 = vrot.slane %v6592_v2, 5  ;;  %v3256_v42 = vld [vmem:[#allocation2 + $0xb4] sm:$0xf]  ;;  %v2836_v57 = vrot.slane %v2709_v11, 5  ;;  %v3436_v40 = vrot.slane %v3434_v13, 4 }
 0x27b   : > { %v2905_v54 = vpop.permute.xlu2 %2904  ;;  %v3517_v14 = vrot.slane %v3515_v44, 5  ;;  %v3594_v37 = vor.u32 %v3593_v26, %v6560_v52  ;;  %v3044_v44 = vld [vmem:[#allocation2 + $0x90] sm:$0xf]  ;;  %v3581_v26 = vshll.u32 %v3256_v42, 16  ;;  %v2729_v11 = vld [vmem:[#allocation2 + $0xb8] sm:$0xf] }
 0x27c   : > { %3673 = vrot.lane.b32.xlu1 %v3422_v51, %s4971_s20  ;;  %2996 = vst.msk [vmem:[#allocation3 + $0x14] sm:$0xf] %vm2990_vm7, %v2905_v54 }
 0x27d   : > { %4012 = vrot.lane.b32.xlu0 %v3922_v45, %s4970_s17  ;;  %v3258_v45 = vld [vmem:[#allocation2 + $0xbc] sm:$0x1]  ;;  %v3518_v49 = vsel %vm5094_vm10, %v3513_v30, %v3517_v14  ;;  %v3595_v36 = vrot.slane %v3594_v37, 4  ;;  %v3583_v37 = vrot.slane %v3581_v26, 5 }
 0x27e   : > { %v2903_v21 = vpop.permute.xlu1 %2902  ;;  %v3597_v54 = vshll.u32 %v3258_v45, 16  ;;  %v3819_v45 = vld [vmem:[#allocation2 + $0xbc] sm:$0x1] }
 0x27f   : > { %2995 = vst.msk [vmem:[#allocation3 + $0x10] sm:$0xf] %vm2990_vm7, %v2903_v21  ;;  %v3099_v50 = vpop.permute.xlu0 %3098  ;;  %v4902_v56 = vld [vmem:[#allocation3 + $0x40] sm:$0xff] }
 0x280   : > { %3190 = vst.msk [vmem:[#allocation3 + $0x14] sm:$0xf] %vm3184_vm8, %v3099_v50  ;;  %4882 = vmatmul.msk.bf16.vlgmr.msra.gmra.mxu2 %vm4263_vm12, %v4902_v56  ;;  %v3599_v31 = vrot.slane %v3597_v54, 5  ;;  %v3919_v50 = vsel %vm5581_vm14, %v4784_v39, %v3918_v46  ;;  %v3818_v46 = vld [vmem:[#allocation2 + $0xb8] sm:$0xf] }
 0x281   : > { %3102 = vrot.lane.b32.xlu2 %v3031_v33, %s4969_s16  ;;  %v3521_v33 = vrot.slane %v3519_v41, 4 }
 0x283   : > { %v3097_v38 = vpop.permute.xlu2 %3096 }
 0x284   : > { %4000 = vrot.lane.b32.xlu1 %v3901_v18, %s4970_s17  ;;  %3189 = vst.msk [vmem:[#allocation3 + $0x10] sm:$0xf] %vm3184_vm8, %v3097_v38  ;;  %v3522_v18 = vor.u32 %v3521_v33, %v3517_v14  ;;  %v3578_v14 = vshrl.u32 %v3256_v42, 16 }
 0x285   : > { %2946 = vrot.lane.b32.xlu0 %v2876_v23, %s4968_s15  ;;  %v3600_v23 = vsel %vm5094_vm10, %v3595_v36, %v3599_v31 }
 0x286   : > { %v2917_v22 = vpop.permute.xlu1 %2916  ;;  %v3523_v0 = vrot.slane %v3522_v18, 4 }
 0x287   : > { %3002 = vst.msk [vmem:[#allocation3 + $0x2c] sm:$0xf] %vm2990_vm7, %v2917_v22  ;;  %v3658_v25 = vpop.permute.xlu0 %3657  ;;  %v3967_v22 = vrot.slane %v3818_v46, 5 }
 0x288   : > { %3750 = vst.msk [vmem:[#allocation3 + $0x10] sm:$0xf] %vm3745_vm9, %v3658_v25  ;;  %v3528_v7 = vsel %vm5094_vm10, %v3523_v0, %v3527_v60  ;;  %v6598_v25 = vld [vmem:[#allocation2 + $0x94] sm:$0xf] }
 0x289   : > { %3661 = vrot.lane.b32.xlu2 %v3350_v55, %s4971_s20  ;;  %v3808_v55 = vld [vmem:[#allocation2 + $0x90] sm:$0xe]  ;;  %v3968_v59 = vsel %vm5581_vm14, %v4791_v4, %v3967_v22  ;;  %v3946_v62 = vrot.slane %v6598_v25, 5  ;;  %v3969_v39 = vrot.slane %v3967_v22, 4  ;;  %v3240_v0 = vld [vmem:[#allocation2 + $0x74] sm:$0x1] }
 0x28a   : > { %v4788_v32 = vrot.slane %v3808_v55, 9 }
 0x28b   : > { %v3111_v10 = vpop.permute.xlu2 %3110 }
 0x28c   : > { %2934 = vrot.lane.b32.xlu1 %v2855_v5, %s4968_s15  ;;  %3196 = vst.msk [vmem:[#allocation3 + $0x2c] sm:$0xf] %vm3184_vm8, %v3111_v10  ;;  %v3437_v5 = vshll.u32 %v3238_v17, 16  ;;  %v2835_v10 = vrot.slane %v2833_v29, 4 }
 0x28d   : > { %3130 = vrot.lane.b32.xlu0 %v3045_v35, %s4969_s16 }
 0x28e   : > { %v3109_v12 = vpop.permute.xlu1 %3108  ;;  %v2837_v53 = vsel %vm5581_vm14, %v2835_v10, %v2836_v57  ;;  %v2707_v10 = vld [vmem:[#allocation2 + $0x60] sm:$0xe] }
 0x28f   : > { %3195 = vst.msk [vmem:[#allocation3 + $0x28] sm:$0xf] %vm3184_vm8, %v3109_v12  ;;  %v3672_v51 = vpop.permute.xlu0 %3671  ;;  %v3439_v12 = vrot.slane %v3437_v5, 5  ;;  %v2728_v5 = vld [vmem:[#allocation2 + $0xb4] sm:$0xe] }
 0x290   : > { %3757 = vst.msk [vmem:[#allocation3 + $0x2c] sm:$0xf] %vm3745_vm9, %v3672_v51  ;;  %v3947_v51 = vsel %vm5581_vm14, %v4788_v32, %v3946_v62  ;;  %v4776_v32 = vrot.slane %v2728_v5, 9 }
 0x291   : > { %3675 = vrot.lane.b32.xlu2 %v3432_v47, %s4971_s20  ;;  %v3239_v47 = vld [vmem:[#allocation2 + $0x70] sm:$0xf] }
 0x292   : > { %v3443_v41 = vshll.u32 %v3239_v47, 16  ;;  %v3447_v18 = vshrl.u32 %v3239_v47, 16  ;;  %v4769_v47 = vrot.slane %v2707_v10, 9 }
 0x293   : > { %v3670_v20 = vpop.permute.xlu2 %3669 }
 0x294   : > { %2948 = vrot.lane.b32.xlu1 %v2879_v8, %s4968_s15  ;;  %3756 = vst.msk [vmem:[#allocation3 + $0x28] sm:$0xf] %vm3745_vm9, %v3670_v20  ;;  %v3440_v8 = vor.u32 %v3439_v12, %v3436_v40  ;;  %v3970_v20 = vrot.slane %v3819_v45, 5  ;;  %v3445_v36 = vrot.slane %v3443_v41, 5  ;;  %v3449_v46 = vrot.slane %v3447_v18, 4 }
 0x295   : > { %3689 = vrot.lane.b32.xlu0 %v3518_v49, %s4971_s20  ;;  %v3580_v49 = vrot.slane %v3578_v14, 4  ;;  %v2719_v40 = vld [vmem:[#allocation2 + $0x90] sm:$0xe]  ;;  %v6658_v12 = vld [vmem:[#allocation2 + $0x94] sm:$0xf] }
 0x296   : > { %v3660_v21 = vpop.permute.xlu1 %3659  ;;  %v3441_v28 = vrot.slane %v3440_v8, 4  ;;  %v3450_v17 = vor.u32 %v3449_v46, %v3445_v36  ;;  %v2861_v8 = vrot.slane %v6658_v12, 5 }
 0x297   : > { %3751 = vst.msk [vmem:[#allocation3 + $0x14] sm:$0xf] %vm3745_vm9, %v3660_v21  ;;  %v4007_v56 = vpop.permute.xlu0 %4006 }
 0x298   : > { %4093 = vst.msk [vmem:[#allocation3 + $0x28] sm:$0xf] %vm4082_vm11, %v4007_v56  ;;  %v3584_v56 = vor.u32 %v3583_v37, %v3580_v49  ;;  %v3446_v24 = vsel %vm5094_vm10, %v3441_v28, %v3445_v36  ;;  %v2730_v28 = vld [vmem:[#allocation2 + $0xbc] sm:$0x1]  ;;  %v3047_v36 = vld [vmem:[#allocation2 + $0xa0] sm:$0xf] }
 0x299   : > { %4010 = vrot.lane.b32.xlu2 %v3919_v50, %s4970_s17  ;;  %v3051_v50 = vld [vmem:[#allocation2 + $0xb8] sm:$0xf] }
 0x29a   : > { %v3585_v58 = vrot.slane %v3584_v56, 4 }
 0x29b   : > { %v3997_v16 = vpop.permute.xlu2 %3996 }
 0x29c   : > { %3140 = vrot.lane.b32.xlu1 %v3050_v27, %s4969_s16  ;;  %4088 = vst.msk [vmem:[#allocation3 + $0x14] sm:$0xf] %vm4082_vm11, %v3997_v16  ;;  %v3971_v27 = vsel %vm5581_vm14, %v3969_v39, %v3970_v20  ;;  %v3590_v22 = vsel %vm5094_vm10, %v3585_v58, %v6560_v52  ;;  %v3451_v52 = vrot.slane %v3450_v17, 4  ;;  %v2834_v39 = vsel %vm5581_vm14, %v4769_v47, %v2833_v29  ;;  %v3251_v20 = vld [vmem:[#allocation2 + $0xa0] sm:$0xf] }
 0x29d   : > { %3703 = vrot.lane.b32.xlu0 %v3600_v23, %s4971_s20  ;;  %v3925_v23 = vrot.slane %v6623_v15, 5  ;;  %v2885_v58 = vrot.slane %v2730_v28, 5  ;;  %v436_v17 = vld [vmem:[#allocation2 + $0xcc] sm:$0x1]  ;;  %v492_v15 = vld [vmem:[#allocation2 + $0xd4] sm:$0x1] }
 0x29e   : > { %v3995_v38 = vpop.permute.xlu1 %3994  ;;  %v493_v47 = vsel %vm5040_vm5, 0, %v492_v15 }
 0x29f   : > { %4087 = vst.msk [vmem:[#allocation3 + $0x10] sm:$0xf] %vm4082_vm11, %v3995_v38  ;;  %v2933_v3 = vpop.permute.xlu0 %2932  ;;  %v3927_v60 = vrot.slane %v3925_v23, 4  ;;  %v3928_v38 = vrot.slane %v3801_v48, 5 }
 0x2a0   : > { %3010 = vst.msk [vmem:[#allocation3 + $0x4c] sm:$0xf] %vm2990_vm7, %v2933_v3  ;;  %v3810_v3 = vld [vmem:[#allocation2 + $0x98] sm:$0x1] }
 0x2a1   : > { %2936 = vrot.lane.b32.xlu2 %v2858_v61, %s4968_s15  ;;  %v3038_v61 = vld [vmem:[#allocation2 + $0x6c] sm:$0xf]  ;;  %v3929_v55 = vsel %vm5581_vm14, %v3927_v60, %v3928_v38  ;;  %v3949_v13 = vrot.slane %v3810_v3, 5  ;;  %v3039_v38 = vld [vmem:[#allocation2 + $0x70] sm:$0xf] }
 0x2a2   : > { %494 = vst [vmem:[#allocation2 + $0xd4] sm:$0x1] %v493_v47 }
 0x2a3   : > { %v2931_v35 = vpop.permute.xlu2 %2930 }
 0x2a4   : > { %3691 = vrot.lane.b32.xlu1 %v3528_v7, %s4971_s20  ;;  %3009 = vst.msk [vmem:[#allocation3 + $0x48] sm:$0xf] %vm2990_vm7, %v2931_v35  ;;  %v3453_v7 = vshll.u32 %v3240_v0, 16 }
 0x2a5   : > { %4038 = vrot.lane.b32.xlu0 %v3968_v59, %s4970_s17  ;;  %v3948_v59 = vrot.slane %v3946_v62, 4 }
 0x2a6   : > { %v4009_v43 = vpop.permute.xlu1 %4008  ;;  %v4896_v63 = vld [vmem:[#allocation3 + $0x10] sm:$0xff]  ;;  %v3455_v42 = vrot.slane %v3453_v7, 5 }
 0x2a7   : > { %4094 = vst.msk [vmem:[#allocation3 + $0x2c] sm:$0xf] %vm4082_vm11, %v4009_v43  ;;  %v3125_v30 = vpop.permute.xlu0 %3124  ;;  %4876 = vmatmul.msk.bf16.gmra.mxu0 %vm4263_vm12, %v4896_v63  ;;  %v2882_v43 = vrot.slane %v2729_v11, 5  ;;  %v3950_v62 = vsel %vm5581_vm14, %v3948_v59, %v3949_v13  ;;  %v3250_v63 = vld [vmem:[#allocation2 + $0x9c] sm:$0xf]  ;;  %v437_v13 = vsel %vm5015_vm3, 0, %v436_v17 }
 0x2a8   : > { %3203 = vst.msk [vmem:[#allocation3 + $0x48] sm:$0xf] %vm3184_vm8, %v3125_v30  ;;  %v3456_v57 = vsel %vm5094_vm10, %v3451_v52, %v3455_v42  ;;  %v3530_v14 = vshrl.u32 %v3250_v63, 16  ;;  %v3533_v26 = vshll.u32 %v3250_v63, 16  ;;  %v3052_v63 = vld [vmem:[#allocation2 + $0xc0] sm:$0xf] }
 0x2a9   : > { %3128 = vrot.lane.b32.xlu2 %v3044_v44, %s4969_s16  ;;  %v2883_v30 = vsel %vm5581_vm14, %v4776_v32, %v2882_v43  ;;  %438 = vst [vmem:[#allocation2 + $0xcc] sm:$0x1] %v437_v13 }
 0x2aa   : > { %v3532_v49 = vrot.slane %v3530_v14, 4  ;;  %v3535_v37 = vrot.slane %v3533_v26, 5  ;;  %v3820_v26 = vld [vmem:[#allocation2 + $0xc0] sm:$0xe] }
 0x2ab   : > { %v2945_v54 = vpop.permute.xlu2 %2944 }
 0x2ac   : > { %4026 = vrot.lane.b32.xlu1 %v3947_v51, %s4970_s17  ;;  %3016 = vst.msk [vmem:[#allocation3 + $0x64] sm:$0xf] %vm2990_vm7, %v2945_v54 }
 0x2ad   : > { %2924 = vrot.lane.b32.xlu0 %v2837_v53, %s4968_s15  ;;  %v4773_v53 = vrot.slane %v2719_v40, 9  ;;  %v2863_v40 = vrot.slane %v2861_v8, 4 }
 0x2ae   : > { %v2943_v33 = vpop.permute.xlu1 %2942  ;;  %v4899_v21 = vld [vmem:[#allocation3 + $0x28] sm:$0xff] }
 0x2af   : > { %3015 = vst.msk [vmem:[#allocation3 + $0x60] sm:$0xf] %vm2990_vm7, %v2943_v33  ;;  %v3139_v31 = vpop.permute.xlu0 %3138  ;;  %4879 = vmatmul.msk.bf16.gmra.mxu1 %vm4263_vm12, %v4899_v21  ;;  %v3260_v33 = vld [vmem:[#allocation2 + $0xc4] sm:$0xf]  ;;  %v2862_v21 = vsel %vm5581_vm14, %v4773_v53, %v2861_v8  ;;  %v4792_v8 = vrot.slane %v3820_v26, 9 }
 0x2b0   : > { %3210 = vst.msk [vmem:[#allocation3 + $0x64] sm:$0xf] %vm3184_vm8, %v3139_v31  ;;  %v3536_v31 = vor.u32 %v3535_v37, %v3532_v49  ;;  %v3611_v2 = vshll.u32 %v3260_v33, 16  ;;  %v3615_v56 = vshrl.u32 %v3260_v33, 16  ;;  %v3811_v33 = vld [vmem:[#allocation2 + $0x9c] sm:$0xe] }
 0x2b1   : > { %3142 = vrot.lane.b32.xlu2 %v3051_v50, %s4969_s16  ;;  %v3539_v50 = vshll.u32 %v3251_v20, 16 }
 0x2b2   : > { %v3617_v0 = vrot.slane %v3615_v56, 4 }
 0x2b3   : > { %v3137_v19 = vpop.permute.xlu2 %3136  ;;  %v3541_v46 = vrot.slane %v3539_v50, 5 }
 0x2b4   : > { %4040 = vrot.lane.b32.xlu1 %v3971_v27, %s4970_s17  ;;  %3209 = vst.msk [vmem:[#allocation3 + $0x60] sm:$0xf] %vm3184_vm8, %v3137_v19  ;;  %v3537_v19 = vrot.slane %v3536_v31, 4 }
 0x2b5   : > { %3677 = vrot.lane.b32.xlu0 %v3446_v24, %s4971_s20  ;;  %v2884_v24 = vrot.slane %v2882_v43, 4 }
 0x2b6   : > { %v3127_v16 = vpop.permute.xlu1 %3126  ;;  %v3542_v7 = vsel %vm5094_vm10, %v3537_v19, %v3541_v46 }
 0x2b7   : > { %3204 = vst.msk [vmem:[#allocation3 + $0x4c] sm:$0xf] %vm3184_vm8, %v3127_v16  ;;  %v3698_v4 = vpop.permute.xlu0 %3697  ;;  %v6698_v16 = vrot.slane %v3611_v2, 5  ;;  %v2886_v3 = vsel %vm5581_vm14, %v2884_v24, %v2885_v58  ;;  %v2733_v2 = vld [vmem:[#allocation2 + $0xc8] sm:$0x1]  ;;  %v4789_v58 = vrot.slane %v3811_v33, 9 }
 0x2b8   : > { %3770 = vst.msk [vmem:[#allocation3 + $0x60] sm:$0xf] %vm3745_vm9, %v3698_v4  ;;  %v3261_v4 = vld [vmem:[#allocation2 + $0xc8] sm:$0x1]  ;;  %v3046_v24 = vld [vmem:[#allocation2 + $0x9c] sm:$0xf] }
 0x2b9   : > { %3701 = vrot.lane.b32.xlu2 %v3590_v22, %s4971_s20  ;;  %v3799_v22 = vld [vmem:[#allocation2 + $0x6c] sm:$0xe]  ;;  %v3621_v59 = vshll.u32 %v3261_v4, 16 }
 0x2ba   : > { %v4785_v5 = vrot.slane %v3799_v22, 9 }
 0x2bb   : > { %v3688_v35 = vpop.permute.xlu2 %3687  ;;  %v3623_v43 = vrot.slane %v3621_v59, 5 }
 0x2bc   : > { %3116 = vrot.lane.b32.xlu1 %v3038_v61, %s4969_s16  ;;  %3765 = vst.msk [vmem:[#allocation3 + $0x4c] sm:$0xf] %vm3745_vm9, %v3688_v35  ;;  %v3543_v61 = vshrl.u32 %v3251_v20, 16  ;;  %v3926_v1 = vsel %vm5581_vm14, %v4785_v5, %v3925_v23  ;;  %v3821_v23 = vld [vmem:[#allocation2 + $0xc4] sm:$0xf] }
 0x2bd   : > { %4016 = vrot.lane.b32.xlu0 %v3929_v55, %s4970_s17  ;;  %v3618_v55 = vor.u32 %v3617_v0, %v6698_v16  ;;  %v3974_v49 = vrot.slane %v3821_v23, 5  ;;  %v2892_v0 = vrot.slane %v2733_v2, 5  ;;  %v3825_v23 = vld [vmem:[#allocation2 + $0xd4] sm:$0x1] }
 0x2be   : > { %v3686_v44 = vpop.permute.xlu1 %3685  ;;  %v3545_v35 = vrot.slane %v3543_v61, 4  ;;  %v3263_v61 = vld [vmem:[#allocation2 + $0xd0] sm:$0xf] }
 0x2bf   : > { %3764 = vst.msk [vmem:[#allocation3 + $0x48] sm:$0xf] %vm3745_vm9, %v3686_v44  ;;  %v4025_v25 = vpop.permute.xlu0 %4024  ;;  %v3252_v44 = vld [vmem:[#allocation2 + $0xa4] sm:$0x1]  ;;  %v3619_v32 = vrot.slane %v3618_v55, 4  ;;  %v3975_v28 = vsel %vm5581_vm14, %v4792_v8, %v3974_v49  ;;  %v3635_v13 = vshll.u32 %v3263_v61, 16 }
 0x2c0   : > { %4102 = vst.msk [vmem:[#allocation3 + $0x4c] sm:$0xf] %vm4082_vm11, %v4025_v25  ;;  %v3546_v10 = vor.u32 %v3545_v35, %v3541_v46 }
 0x2c1   : > { %4028 = vrot.lane.b32.xlu2 %v3950_v62, %s4970_s17  ;;  %v2721_v62 = vld [vmem:[#allocation2 + $0x98] sm:$0x1] }
 0x2c2   : > { %v2864_v14 = vrot.slane %v2721_v62, 5  ;;  %v3547_v53 = vrot.slane %v3546_v10, 4 }
 0x2c3   : > { %v4023_v51 = vpop.permute.xlu2 %4022 }
 0x2c4   : > { %3679 = vrot.lane.b32.xlu1 %v3456_v57, %s4971_s20  ;;  %4101 = vst.msk [vmem:[#allocation3 + $0x48] sm:$0xf] %vm4082_vm11, %v4023_v51  ;;  %v6671_v45 = vpop.f32.mrf.mxu0  ;;  %v3549_v57 = vshll.u32 %v3252_v44, 16  ;;  %v2865_v6 = vsel %vm5581_vm14, %v2863_v40, %v2864_v14  ;;  %v3976_v44 = vrot.slane %v3974_v49, 4  ;;  %v3984_v49 = vrot.slane %v3825_v23, 5 }
 0x2c5   : > { %2950 = vrot.lane.b32.xlu0 %v2883_v30, %s4968_s15  ;;  %4406 = vst.msk [vmem:[%s6667_s9] sm:$0xff] %vm4405_vm13, %v6671_v45  ;;  %v3624_v30 = vsel %vm5094_vm10, %v3619_v32, %v3623_v43 }
 0x2c6   : > { %v3700_v41 = vpop.permute.xlu1 %3699 }
 0x2c7   : > { %3771 = vst.msk [vmem:[#allocation3 + $0x64] sm:$0xf] %vm3745_vm9, %v3700_v41  ;;  %v2907_v54 = vpop.permute.xlu0 %2906  ;;  %v3551_v41 = vrot.slane %v3549_v57, 5  ;;  %v6775_v57 = vld [vmem:[#allocation2 + $0xd0] sm:$0xf] }
 0x2c8   : > { %2997 = vst.msk [vmem:[#allocation3 + $0x18] sm:$0xf] %vm2990_vm7, %v2907_v54  ;;  %v6733_v54 = vld [vmem:[#allocation2 + $0xc4] sm:$0xf]  ;;  %v3981_v14 = vrot.slane %v6775_v57, 5 }
 0x2c9   : > { %2922 = vrot.lane.b32.xlu2 %v2834_v39, %s4968_s15  ;;  %v3262_v39 = vld [vmem:[#allocation2 + $0xcc] sm:$0xf]  ;;  %v3552_v20 = vsel %vm5094_vm10, %v3547_v53, %v3551_v41 }
 0x2ca   : > { %v3626_v31 = vshrl.u32 %v3262_v39, 16  ;;  %v3629_v50 = vshll.u32 %v3262_v39, 16  ;;  %v3983_v8 = vrot.slane %v3981_v14, 4  ;;  %v3813_v39 = vld [vmem:[#allocation2 + $0xa4] sm:$0x1] }
 0x2cb   : > { %v4037_v27 = vpop.permute.xlu2 %4036  ;;  %v4903_v29 = vld [vmem:[#allocation3 + $0x48] sm:$0xff]  ;;  %v3956_v2 = vrot.slane %v3813_v39, 5 }
 0x2cc   : > { %2938 = vrot.lane.b32.xlu1 %v2862_v21, %s4968_s15  ;;  %4108 = vst.msk [vmem:[#allocation3 + $0x64] sm:$0xf] %vm4082_vm11, %v4037_v27  ;;  %v6691_v18 = vpop.f32.mrf.mxu0  ;;  %4883 = vmatmul.msk.bf16.gmra.mxu2 %vm4263_vm12, %v4903_v29  ;;  %v6739_v21 = vld [vmem:[#allocation2 + $0xa0] sm:$0xf] }
 0x2cd   : > { %3134 = vrot.lane.b32.xlu0 %v3047_v36, %s4969_s16  ;;  %4407 = vst.msk [vmem:[%s6667_s9 + $0x8] sm:$0xff] %vm4405_vm13, %v6691_v18  ;;  %v2889_v36 = vrot.slane %v6733_v54, 5  ;;  %v3259_v27 = vld [vmem:[#allocation2 + $0xc0] sm:$0xf]  ;;  %v3055_v54 = vld [vmem:[#allocation2 + $0xd0] sm:$0xf] }
 0x2ce   : > { %v4035_v48 = vpop.permute.xlu1 %4034  ;;  %v3602_v22 = vshrl.u32 %v3259_v27, 16 }
 0x2cf   : > { %4107 = vst.msk [vmem:[#allocation3 + $0x60] sm:$0xf] %vm4082_vm11, %v4035_v48  ;;  %v2921_v60 = vpop.permute.xlu0 %2920  ;;  %v3953_v48 = vrot.slane %v6739_v21, 5  ;;  %v2891_v46 = vrot.slane %v2889_v36, 4 }
 0x2d0   : > { %3004 = vst.msk [vmem:[#allocation3 + $0x34] sm:$0xf] %vm2990_vm7, %v2921_v60  ;;  %v3628_v60 = vrot.slane %v3626_v31, 4  ;;  %v3604_v5 = vrot.slane %v3602_v22, 4  ;;  %v3985_v31 = vsel %vm5581_vm14, %v3983_v8, %v3984_v49 }
 0x2d1   : > { %3118 = vrot.lane.b32.xlu2 %v3039_v38, %s4969_s16  ;;  %v3631_v38 = vrot.slane %v3629_v50, 5  ;;  %v3954_v17 = vsel %vm5581_vm14, %v4789_v58, %v3953_v48  ;;  %v2893_v55 = vsel %vm5581_vm14, %v2891_v46, %v2892_v0  ;;  %v3955_v50 = vrot.slane %v3953_v48, 4  ;;  %v2731_v46 = vld [vmem:[#allocation2 + $0xc0] sm:$0xe] }
 0x2d3   : > { %v2919_v11 = vpop.permute.xlu2 %2918  ;;  %v3632_v59 = vor.u32 %v3631_v38, %v3628_v60  ;;  %v3957_v21 = vsel %vm5581_vm14, %v3955_v50, %v3956_v2  ;;  %v4777_v60 = vrot.slane %v2731_v46, 9 }
 0x2d4   : > { %2952 = vrot.lane.b32.xlu1 %v2886_v3, %s4968_s15  ;;  %3003 = vst.msk [vmem:[#allocation3 + $0x30] sm:$0xf] %vm2990_vm7, %v2919_v11  ;;  %v3605_v3 = vshll.u32 %v3259_v27, 16 }
 0x2d5   : > { %3693 = vrot.lane.b32.xlu0 %v3542_v7, %s4971_s20  ;;  %v3822_v7 = vld [vmem:[#allocation2 + $0xc8] sm:$0x1]  ;;  %v2890_v9 = vsel %vm5581_vm14, %v4777_v60, %v2889_v36  ;;  %v3823_v36 = vld [vmem:[#allocation2 + $0xcc] sm:$0xe] }
 0x2d6   : > { %v2909_v52 = vpop.permute.xlu1 %2908  ;;  %v4906_v42 = vld [vmem:[#allocation3 + $0x60] sm:$0xff]  ;;  %v3607_v11 = vrot.slane %v3605_v3, 5  ;;  %v3977_v32 = vrot.slane %v3822_v7, 5 }
 0x2d7   : > { %2998 = vst.msk [vmem:[#allocation3 + $0x1c] sm:$0xf] %vm2990_vm7, %v2909_v52  ;;  %v3113_v25 = vpop.permute.xlu0 %3112  ;;  %4886 = vmatmul.msk.bf16.vlgmr.msra.gmra.mxu3 %vm4263_vm12, %v4906_v42 }
 0x2d8   : > { %3197 = vst.msk [vmem:[#allocation3 + $0x30] sm:$0xf] %vm3184_vm8, %v3113_v25  ;;  %v3633_v25 = vrot.slane %v3632_v59, 4  ;;  %v3608_v10 = vor.u32 %v3607_v11, %v3604_v5  ;;  %v3978_v40 = vsel %vm5581_vm14, %v3976_v44, %v3977_v32  ;;  %v4793_v59 = vrot.slane %v3823_v36, 9 }
 0x2d9   : > { %4014 = vrot.lane.b32.xlu2 %v3926_v1, %s4970_s17  ;;  %v3637_v1 = vrot.slane %v3635_v13, 5 }
 0x2da   : > { %v3609_v26 = vrot.slane %v3608_v10, 4  ;;  %v3982_v11 = vsel %vm5581_vm14, %v4793_v59, %v3981_v14 }
 0x2db   : > { %v3103_v51 = vpop.permute.xlu2 %3102  ;;  %v3638_v15 = vsel %vm5094_vm10, %v3633_v25, %v3637_v1 }
 0x2dc   : > { %3144 = vrot.lane.b32.xlu1 %v3052_v63, %s4969_s16  ;;  %3192 = vst.msk [vmem:[#allocation3 + $0x1c] sm:$0xf] %vm3184_vm8, %v3103_v51  ;;  %v3053_v63 = vld [vmem:[#allocation2 + $0xc4] sm:$0xf] }
 0x2dd   : > { %3707 = vrot.lane.b32.xlu0 %v3624_v30, %s4971_s20  ;;  %v3639_v30 = vshrl.u32 %v3263_v61, 16 }
 0x2de   : > { %v3101_v12 = vpop.permute.xlu1 %3100 }
 0x2df   : > { %3191 = vst.msk [vmem:[#allocation3 + $0x18] sm:$0xf] %vm3184_vm8, %v3101_v12  ;;  %v3664_v37 = vpop.permute.xlu0 %3663  ;;  %v3641_v53 = vrot.slane %v3639_v30, 4  ;;  %v3264_v12 = vld [vmem:[#allocation2 + $0xd4] sm:$0x1] }
 0x2e0   : > { %3753 = vst.msk [vmem:[#allocation3 + $0x1c] sm:$0xf] %vm3745_vm9, %v3664_v37  ;;  %v3614_v37 = vsel %vm5094_vm10, %v3609_v26, %v6698_v16 }
 0x2e1   : > { %2940 = vrot.lane.b32.xlu2 %v2865_v6, %s4968_s15  ;;  %v3642_v33 = vor.u32 %v3641_v53, %v3637_v1 }
 0x2e3   : > { %v3662_v56 = vpop.permute.xlu2 %3661  ;;  %v3643_v27 = vrot.slane %v3642_v33, 4 }
 0x2e4   : > { %3695 = vrot.lane.b32.xlu1 %v3552_v20, %s4971_s20  ;;  %3752 = vst.msk [vmem:[#allocation3 + $0x18] sm:$0xf] %vm3745_vm9, %v3662_v56  ;;  %v6746_v29 = vpop.f32.mrf.mxu0  ;;  %v3054_v20 = vld [vmem:[#allocation2 + $0xcc] sm:$0xf] }
 0x2e5   : > { %4042 = vrot.lane.b32.xlu0 %v3975_v28, %s4970_s17  ;;  %4408 = vst.msk [vmem:[%s6667_s9 + $0x10] sm:$0xff] %vm4405_vm13, %v6746_v29  ;;  %v3645_v28 = vshll.u32 %v3264_v12, 16 }
 0x2e6   : > { %v3115_v19 = vpop.permute.xlu1 %3114 }
 0x2e7   : > { %3198 = vst.msk [vmem:[#allocation3 + $0x34] sm:$0xf] %vm3184_vm8, %v3115_v19  ;;  %v3999_v4 = vpop.permute.xlu0 %3998 }
 0x2e8   : > { %4089 = vst.msk [vmem:[#allocation3 + $0x18] sm:$0xf] %vm4082_vm11, %v3999_v4 }
 0x2e9   : > { %3132 = vrot.lane.b32.xlu2 %v3046_v24, %s4969_s16  ;;  %v3647_v24 = vrot.slane %v3645_v28, 5 }
 0x2eb   : > { %v3676_v35 = vpop.permute.xlu2 %3675  ;;  %v3648_v0 = vsel %vm5094_vm10, %v3643_v27, %v3647_v24 }
 0x2ec   : > { %4030 = vrot.lane.b32.xlu1 %v3954_v17, %s4970_s17  ;;  %3759 = vst.msk [vmem:[#allocation3 + $0x34] sm:$0xf] %vm3745_vm9, %v3676_v35  ;;  %v6766_v52 = vpop.f32.mrf.mxu1  ;;  %v6768_v42 = vpop.f32.mrf.mxu0 }
 0x2ed   : > { %2956 = vrot.lane.b32.xlu0 %v2893_v55, %s4968_s15  ;;  %4414 = vst.msk [vmem:[%s6667_s9 + $0x40] sm:$0xff] %vm4405_vm13, %v6766_v52 }
 0x2ee   : > { %v3674_v43 = vpop.permute.xlu1 %3673  ;;  %4409 = vst.msk [vmem:[%s6667_s9 + $0x18] sm:$0xff] %vm4405_vm13, %v6768_v42 }
 0x2ef   : > { %3758 = vst.msk [vmem:[#allocation3 + $0x30] sm:$0xf] %vm3745_vm9, %v3674_v43  ;;  %v4013_v62 = vpop.permute.xlu0 %4012 }
 0x2f0   : > { %4096 = vst.msk [vmem:[#allocation3 + $0x34] sm:$0xf] %vm4082_vm11, %v4013_v62 }
 0x2f1   : > { %3146 = vrot.lane.b32.xlu2 %v3053_v63, %s4969_s16 }
 0x2f3   : > { %v4011_v47 = vpop.permute.xlu2 %4010 }
 0x2f4   : > { %4044 = vrot.lane.b32.xlu1 %v3978_v40, %s4970_s17  ;;  %4095 = vst.msk [vmem:[#allocation3 + $0x30] sm:$0xf] %vm4082_vm11, %v4011_v47  ;;  %v6789_v51 = vpop.f32.mrf.mxu1 }
 0x2f5   : > { %3709 = vrot.lane.b32.xlu0 %v3638_v15, %s4971_s20  ;;  %4415 = vst.msk [vmem:[%s6667_s9 + $0x48] sm:$0xff] %vm4405_vm13, %v6789_v51 }
 0x2f6   : > { %v4001_v41 = vpop.permute.xlu1 %4000 }
 0x2f7   : > { %4090 = vst.msk [vmem:[#allocation3 + $0x1c] sm:$0xf] %vm4082_vm11, %v4001_v41  ;;  %v2947_v6 = vpop.permute.xlu0 %2946 }
 0x2f8   : > { %3017 = vst.msk [vmem:[#allocation3 + $0x68] sm:$0xf] %vm2990_vm7, %v2947_v6 }
 0x2f9   : > { %3705 = vrot.lane.b32.xlu2 %v3614_v37, %s4971_s20 }
 0x2fb   : > { %v4900_v56 = vld [vmem:[#allocation3 + $0x30] sm:$0xff]  ;;  %v2937_v16 = vpop.permute.xlu2 %2936 }
 0x2fc   : > { %3148 = vrot.lane.b32.xlu1 %v3054_v20, %s4969_s16  ;;  %3012 = vst.msk [vmem:[#allocation3 + $0x54] sm:$0xf] %vm2990_vm7, %v2937_v16  ;;  %4880 = vmatmul.msk.bf16.gmra.mxu1 %vm4263_vm12, %v4900_v56 }
 0x2fd   : > { %4048 = vrot.lane.b32.xlu0 %v3985_v31, %s4970_s17 }
 0x2fe   : > { %v2935_v58 = vpop.permute.xlu1 %2934  ;;  %v4897_v19 = vld [vmem:[#allocation3 + $0x18] sm:$0xff] }
 0x2ff   : > { %3011 = vst.msk [vmem:[#allocation3 + $0x50] sm:$0xf] %vm2990_vm7, %v2935_v58  ;;  %v3131_v48 = vpop.permute.xlu0 %3130  ;;  %4877 = vmatmul.msk.bf16.gmra.mxu0 %vm4263_vm12, %v4897_v19 }
 0x300   : > { %3206 = vst.msk [vmem:[#allocation3 + $0x54] sm:$0xf] %vm3184_vm8, %v3131_v48 }
 0x301   : > { %4032 = vrot.lane.b32.xlu2 %v3957_v21, %s4970_s17 }
 0x303   : > { %v6820_v38 = vpop.f32.mrf.mxu2  ;;  %v3129_v4 = vpop.permute.xlu2 %3128 }
 0x304   : > { %3711 = vrot.lane.b32.xlu1 %v3648_v0, %s4971_s20  ;;  %4422 = vst.msk [vmem:[%s6667_s9 + $0x80] sm:$0xff] %vm4405_vm13, %v6820_v38 }
 0x305   : > { %3205 = vst.msk [vmem:[#allocation3 + $0x50] sm:$0xf] %vm3184_vm8, %v3129_v4 }
 0x306   : > { %v2949_v22 = vpop.permute.xlu1 %2948 }
 0x307   : > { %3018 = vst.msk [vmem:[#allocation3 + $0x6c] sm:$0xf] %vm2990_vm7, %v2949_v22  ;;  %v3690_v3 = vpop.permute.xlu0 %3689 }
 0x308   : > { %3766 = vst.msk [vmem:[#allocation3 + $0x50] sm:$0xf] %vm3745_vm9, %v3690_v3 }
 0x309   : > { %2954 = vrot.lane.b32.xlu2 %v2890_v9, %s4968_s15 }
 0x30b   : > { %v6833_v61 = vpop.f32.mrf.mxu2  ;;  %v3143_v17 = vpop.permute.xlu2 %3142 }
 0x30c   : > { %4423 = vst.msk [vmem:[%s6667_s9 + $0x88] sm:$0xff] %vm4405_vm13, %v6833_v61 }
 0x30d   : > { %3212 = vst.msk [vmem:[#allocation3 + $0x6c] sm:$0xf] %vm3184_vm8, %v3143_v17 }
 0x30e   : > { %v3141_v7 = vpop.permute.xlu1 %3140 }
 0x30f   : > { %3211 = vst.msk [vmem:[#allocation3 + $0x68] sm:$0xf] %vm3184_vm8, %v3141_v7  ;;  %v3704_v55 = vpop.permute.xlu0 %3703 }
 0x310   : > { %3773 = vst.msk [vmem:[#allocation3 + $0x6c] sm:$0xf] %vm3745_vm9, %v3704_v55 }
 0x311   : > { %3150 = vrot.lane.b32.xlu2 %v3055_v54, %s4969_s16 }
 0x313   : > { %v3702_v13 = vpop.permute.xlu2 %3701 }
 0x314   : > { %3772 = vst.msk [vmem:[#allocation3 + $0x68] sm:$0xf] %vm3745_vm9, %v3702_v13 }
 0x316   : > { %v3692_v5 = vpop.permute.xlu1 %3691 }
 0x317   : > { %3767 = vst.msk [vmem:[#allocation3 + $0x54] sm:$0xf] %vm3745_vm9, %v3692_v5  ;;  %v4039_v35 = vpop.permute.xlu0 %4038 }
 0x318   : > { %4109 = vst.msk [vmem:[#allocation3 + $0x68] sm:$0xf] %vm4082_vm11, %v4039_v35  ;;  %v4438_v35 = vsel %vm4405_vm13, %v6671_v45, 0.0 }
 0x319   : > { %4046 = vrot.lane.b32.xlu2 %v3982_v11, %s4970_s17  ;;  %v4439_v11 = vsel %vm4405_vm13, %v6691_v18, 0.0 }
 0x31b   : > { %v4029_v44 = vpop.permute.xlu2 %4028 }
 0x31c   : > { %4104 = vst.msk [vmem:[#allocation3 + $0x54] sm:$0xf] %vm4082_vm11, %v4029_v44  ;;  %v4441_v44 = vsel %vm4405_vm13, %v6746_v29, 0.0 }
 0x31e   : > { %v4027_v32 = vpop.permute.xlu1 %4026 }
 0x31f   : > { %4103 = vst.msk [vmem:[#allocation3 + $0x50] sm:$0xf] %vm4082_vm11, %v4027_v32  ;;  %v2925_v43 = vpop.permute.xlu0 %2924  ;;  %v4440_v32 = vadd.f32 %v4439_v11, %v4438_v35 }
 0x320   : > { %3006 = vst.msk [vmem:[#allocation3 + $0x3c] sm:$0xf] %vm2990_vm7, %v2925_v43  ;;  %v4443_v43 = vsel %vm4405_vm13, %v6768_v42, 0.0 }
 0x323   : > { %v2923_v25 = vpop.permute.xlu2 %2922 }
 0x324   : > { %3005 = vst.msk [vmem:[#allocation3 + $0x38] sm:$0xf] %vm2990_vm7, %v2923_v25  ;;  %v6854_v34 = vpop.f32.mrf.mxu0  ;;  %v4442_v25 = vadd.f32 %v4441_v44, %v4440_v32 }
 0x325   : > { %4410 = vst.msk [vmem:[%s6667_s9 + $0x20] sm:$0xff] %vm4405_vm13, %v6854_v34 }
 0x326   : > { %v4041_v1 = vpop.permute.xlu1 %4040  ;;  %v4904_v62 = vld [vmem:[#allocation3 + $0x50] sm:$0xff] }
 0x327   : > { %4110 = vst.msk [vmem:[#allocation3 + $0x6c] sm:$0xf] %vm4082_vm11, %v4041_v1  ;;  %v3678_v63 = vpop.permute.xlu0 %3677  ;;  %4884 = vmatmul.msk.bf16.gmra.mxu2 %vm4263_vm12, %v4904_v62 }
 0x32b   : > { %v3119_v10 = vpop.permute.xlu2 %3118 }
 0x32c   : > { %3200 = vst.msk [vmem:[#allocation3 + $0x3c] sm:$0xf] %vm3184_vm8, %v3119_v10  ;;  %v6862_v57 = vpop.f32.mrf.mxu1  ;;  %v6864_v40 = vpop.f32.mrf.mxu0  ;;  %v4444_v10 = vadd.f32 %v4443_v43, %v4442_v25 }
 0x32d   : > { %4416 = vst.msk [vmem:[%s6667_s9 + $0x50] sm:$0xff] %vm4405_vm13, %v6862_v57 }
 0x32e   : > { %v3117_v30 = vpop.permute.xlu1 %3116  ;;  %v4907_v15 = vld [vmem:[#allocation3 + $0x68] sm:$0xff]  ;;  %4411 = vst.msk [vmem:[%s6667_s9 + $0x28] sm:$0xff] %vm4405_vm13, %v6864_v40 }
 0x32f   : > { %3199 = vst.msk [vmem:[#allocation3 + $0x38] sm:$0xf] %vm3184_vm8, %v3117_v30  ;;  %v4017_v14 = vpop.permute.xlu0 %4016  ;;  %4887 = vmatmul.msk.bf16.gmra.mxu3 %vm4263_vm12, %v4907_v15  ;;  %v4447_v30 = vsel %vm4405_vm13, %v6864_v40, 0.0 }
 0x330   : > { %3760 = vst.msk [vmem:[#allocation3 + $0x38] sm:$0xf] %vm3745_vm9, %v3678_v63  ;;  %v4445_v63 = vsel %vm4405_vm13, %v6854_v34, 0.0 }
 0x331   : > { %v4446_v15 = vadd.f32 %v4445_v63, %v4444_v10 }
 0x333   : > { %v4015_v26 = vpop.permute.xlu2 %4014 }
 0x334   : > { %4097 = vst.msk [vmem:[#allocation3 + $0x38] sm:$0xf] %vm4082_vm11, %v4015_v26  ;;  %v6876_v23 = vpop.f32.mrf.mxu1  ;;  %v4448_v26 = vadd.f32 %v4447_v30, %v4446_v15 }
 0x335   : > { %4417 = vst.msk [vmem:[%s6667_s9 + $0x58] sm:$0xff] %vm4405_vm13, %v6876_v23 }
 0x336   : > { %v3680_v47 = vpop.permute.xlu1 %3679 }
 0x337   : > { %3761 = vst.msk [vmem:[#allocation3 + $0x3c] sm:$0xf] %vm3745_vm9, %v3680_v47  ;;  %v2951_v53 = vpop.permute.xlu0 %2950 }
 0x338   : > { %4098 = vst.msk [vmem:[#allocation3 + $0x3c] sm:$0xf] %vm4082_vm11, %v4017_v14 }
 0x339   : > { %3019 = vst.msk [vmem:[#allocation3 + $0x70] sm:$0xf] %vm2990_vm7, %v2951_v53 }
 0x33b   : > { %v2941_v41 = vpop.permute.xlu2 %2940 }
 0x33c   : > { %3014 = vst.msk [vmem:[#allocation3 + $0x5c] sm:$0xf] %vm2990_vm7, %v2941_v41 }
 0x33e   : > { %v2939_v12 = vpop.permute.xlu1 %2938 }
 0x33f   : > { %3013 = vst.msk [vmem:[#allocation3 + $0x58] sm:$0xf] %vm2990_vm7, %v2939_v12  ;;  %v4901_v8 = vld [vmem:[#allocation3 + $0x38] sm:$0xff]  ;;  %v3135_v49 = vpop.permute.xlu0 %3134 }
 0x340   : > { %3208 = vst.msk [vmem:[#allocation3 + $0x5c] sm:$0xf] %vm3184_vm8, %v3135_v49  ;;  %4881 = vmatmul.msk.bf16.gmra.mxu1 %vm4263_vm12, %v4901_v8  ;;  %v4453_v49 = vsel %vm4405_vm13, %v6766_v52, 0.0 }
 0x343   : > { %v3133_v37 = vpop.permute.xlu2 %3132 }
 0x344   : > { %3207 = vst.msk [vmem:[#allocation3 + $0x58] sm:$0xf] %vm3184_vm8, %v3133_v37 }
 0x346   : > { %v2953_v6 = vpop.permute.xlu1 %2952 }
 0x347   : > { %3020 = vst.msk [vmem:[#allocation3 + $0x74] sm:$0xf] %vm2990_vm7, %v2953_v6  ;;  %v3694_v39 = vpop.permute.xlu0 %3693  ;;  %v4455_v6 = vsel %vm4405_vm13, %v6789_v51, 0.0 }
 0x348   : > { %3768 = vst.msk [vmem:[#allocation3 + $0x58] sm:$0xf] %vm3745_vm9, %v3694_v39 }
 0x34b   : > { %v3147_v20 = vpop.permute.xlu2 %3146 }
 0x34c   : > { %3214 = vst.msk [vmem:[#allocation3 + $0x74] sm:$0xf] %vm3184_vm8, %v3147_v20 }
 0x34e   : > { %v3145_v33 = vpop.permute.xlu1 %3144 }
 0x34f   : > { %3213 = vst.msk [vmem:[#allocation3 + $0x70] sm:$0xf] %vm3184_vm8, %v3145_v33  ;;  %v3708_v28 = vpop.permute.xlu0 %3707  ;;  %v6894_v31 = vpop.f32.mrf.mxu2  ;;  %v4457_v33 = vsel %vm4405_vm13, %v6862_v57, 0.0 }
 0x350   : > { %3775 = vst.msk [vmem:[#allocation3 + $0x74] sm:$0xf] %vm3745_vm9, %v3708_v28 }
 0x351   : > { %4424 = vst.msk [vmem:[%s6667_s9 + $0x90] sm:$0xff] %vm4405_vm13, %v6894_v31 }
 0x353   : > { %v3706_v50 = vpop.permute.xlu2 %3705 }
 0x354   : > { %3774 = vst.msk [vmem:[#allocation3 + $0x70] sm:$0xf] %vm3745_vm9, %v3706_v50  ;;  %v4459_v50 = vsel %vm4405_vm13, %v6876_v23, 0.0 }
 0x356   : > { %v3696_v2 = vpop.permute.xlu1 %3695 }
 0x357   : > { %3769 = vst.msk [vmem:[#allocation3 + $0x5c] sm:$0xf] %vm3745_vm9, %v3696_v2  ;;  %v4043_v56 = vpop.permute.xlu0 %4042  ;;  %v6902_v16 = vpop.f32.mrf.mxu2 }
 0x358   : > { %4111 = vst.msk [vmem:[#allocation3 + $0x70] sm:$0xf] %vm4082_vm11, %v4043_v56 }
 0x359   : > { %4425 = vst.msk [vmem:[%s6667_s9 + $0x98] sm:$0xff] %vm4405_vm13, %v6902_v16 }
 0x35a   : > { %v6907_v27 = vpop.f32.mrf.mxu3 }
 0x35b   : > { %4430 = vst.msk [vmem:[%s6667_s9 + $0xc0] sm:$0xff] %vm4405_vm13, %v6907_v27  ;;  %v4033_v24 = vpop.permute.xlu2 %4032 }
 0x35c   : > { %4106 = vst.msk [vmem:[#allocation3 + $0x5c] sm:$0xf] %vm4082_vm11, %v4033_v24 }
 0x35e   : > { %v4031_v58 = vpop.permute.xlu1 %4030 }
 0x35f   : > { %4105 = vst.msk [vmem:[#allocation3 + $0x58] sm:$0xf] %vm4082_vm11, %v4031_v58  ;;  %v2957_v19 = vpop.permute.xlu0 %2956 }
 0x360   : > { %3022 = vst.msk [vmem:[#allocation3 + $0x7c] sm:$0xf] %vm2990_vm7, %v2957_v19 }
 0x362   : > { %v6915_v21 = vpop.f32.mrf.mxu3 }
 0x363   : > { %4431 = vst.msk [vmem:[%s6667_s9 + $0xc8] sm:$0xff] %vm4405_vm13, %v6915_v21  ;;  %v2955_v48 = vpop.permute.xlu2 %2954 }
 0x364   : > { %3021 = vst.msk [vmem:[#allocation3 + $0x78] sm:$0xf] %vm2990_vm7, %v2955_v48 }
 0x366   : > { %v4045_v46 = vpop.permute.xlu1 %4044  ;;  %v4905_v0 = vld [vmem:[#allocation3 + $0x58] sm:$0xff] }
 0x367   : > { %4112 = vst.msk [vmem:[#allocation3 + $0x74] sm:$0xf] %vm4082_vm11, %v4045_v46  ;;  %4885 = vmatmul.msk.bf16.gmra.mxu2 %vm4263_vm12, %v4905_v0  ;;  %v3710_v60 = vpop.permute.xlu0 %3709 }
 0x36b   : > { %v3151_v4 = vpop.permute.xlu2 %3150 }
 0x36c   : > { %3216 = vst.msk [vmem:[#allocation3 + $0x7c] sm:$0xf] %vm3184_vm8, %v3151_v4  ;;  %v4469_v4 = vsel %vm4405_vm13, %v6820_v38, 0.0 }
 0x36e   : > { %v3149_v22 = vpop.permute.xlu1 %3148  ;;  %v4908_v9 = vld [vmem:[#allocation3 + $0x70] sm:$0xff] }
 0x36f   : > { %3215 = vst.msk [vmem:[#allocation3 + $0x78] sm:$0xf] %vm3184_vm8, %v3149_v22  ;;  %4888 = vmatmul.msk.bf16.gmra.mxu3 %vm4263_vm12, %v4908_v9  ;;  %v4049_v17 = vpop.permute.xlu0 %4048  ;;  %v4471_v9 = vsel %vm4405_vm13, %v6833_v61, 0.0 }
 0x370   : > { %3776 = vst.msk [vmem:[#allocation3 + $0x78] sm:$0xf] %vm3745_vm9, %v3710_v60 }
 0x373   : > { %v4047_v3 = vpop.permute.xlu2 %4046 }
 0x374   : > { %4113 = vst.msk [vmem:[#allocation3 + $0x78] sm:$0xf] %vm4082_vm11, %v4047_v3 }
 0x376   : > { %v3712_v7 = vpop.permute.xlu1 %3711 }
 0x377   : > { %3777 = vst.msk [vmem:[#allocation3 + $0x7c] sm:$0xf] %vm3745_vm9, %v3712_v7 }
 0x378   : > { %4114 = vst.msk [vmem:[#allocation3 + $0x7c] sm:$0xf] %vm4082_vm11, %v4049_v17  ;;  %v4473_v17 = vsel %vm4405_vm13, %v6894_v31, 0.0 }
 0x379   : > { %v6930_v54 = vpop.f32.mrf.mxu1 }
 0x37a   : > { %4418 = vst.msk [vmem:[%s6667_s9 + $0x60] sm:$0xff] %vm4405_vm13, %v6930_v54  ;;  %v4461_v56 = vsel %vm4405_vm13, %v6930_v54, 0.0 }
 0x37c   : > { %v6935_v55 = vpop.f32.mrf.mxu0 }
 0x37d   : > { %4412 = vst.msk [vmem:[%s6667_s9 + $0x30] sm:$0xff] %vm4405_vm13, %v6935_v55  ;;  %v4449_v14 = vsel %vm4405_vm13, %v6935_v55, 0.0 }
 0x37e   : > { %v4450_v53 = vadd.f32 %v4449_v14, %v4448_v26 }
 0x37f   : > { %v4909_v36 = vld [vmem:[#allocation3 + $0x78] sm:$0xff] }
 0x380   : > { %4889 = vmatmul.msk.bf16.gmra.mxu3 %vm4263_vm12, %v4909_v36  ;;  %v4475_v36 = vsel %vm4405_vm13, %v6902_v16, 0.0 }
 0x381   : > { %v6941_v59 = vpop.f32.mrf.mxu1 }
 0x382   : > { %4419 = vst.msk [vmem:[%s6667_s9 + $0x68] sm:$0xff] %vm4405_vm13, %v6941_v59  ;;  %v4463_v58 = vsel %vm4405_vm13, %v6941_v59, 0.0 }
 0x384   : > { %v6946_v13 = vpop.f32.mrf.mxu0 }
 0x385   : > { %4413 = vst.msk [vmem:[%s6667_s9 + $0x38] sm:$0xff] %vm4405_vm13, %v6946_v13  ;;  %v4451_v47 = vsel %vm4405_vm13, %v6946_v13, 0.0 }
 0x386   : > { %v4452_v12 = vadd.f32 %v4451_v47, %v4450_v53  ;;  %v4485_v47 = vsel %vm4405_vm13, %v6907_v27, 0.0 }
 0x388   : > { %v4454_v37 = vadd.f32 %v4453_v49, %v4452_v12  ;;  %v4487_v12 = vsel %vm4405_vm13, %v6915_v21, 0.0 }
 0x38a   : > { %v4456_v39 = vadd.f32 %v4455_v6, %v4454_v37 }
 0x38c   : > { %v4458_v28 = vadd.f32 %v4457_v33, %v4456_v39  ;;  %v4972_v33 = vmov 256.0  }
 0x38d   : > { %4949 = vrcp.f32 %v4972_v33 }
 0x38e   : > { %v4460_v2 = vadd.f32 %v4459_v50, %v4458_v28 }
 0x390   : > { %v4462_v24 = vadd.f32 %v4461_v56, %v4460_v2 }
 0x392   : > { %v4464_v48 = vadd.f32 %v4463_v58, %v4462_v24 }
 0x393   : > { %v4950_v24 = vpop.eup %4949 }
 0x394   : > { %vm4512_vm3 = vweird.f32 %v4950_v24 }
 0x3aa   : > { %v6951_v5 = vpop.f32.mrf.mxu2 }
 0x3ab   : > { %4426 = vst.msk [vmem:[%s6667_s9 + $0xa0] sm:$0xff] %vm4405_vm13, %v6951_v5  ;;  %v4477_v44 = vsel %vm4405_vm13, %v6951_v5, 0.0 }
 0x3b2   : > { %v6964_v1 = vpop.f32.mrf.mxu2  ;;  %v6966_v62 = vpop.f32.mrf.mxu3 }
 0x3b3   : > { %4427 = vst.msk [vmem:[%s6667_s9 + $0xa8] sm:$0xff] %vm4405_vm13, %v6964_v1  ;;  %v4479_v43 = vsel %vm4405_vm13, %v6964_v1, 0.0  ;;  %v4489_v6 = vsel %vm4405_vm13, %v6966_v62, 0.0 }
 0x3b4   : > { %4432 = vst.msk [vmem:[%s6667_s9 + $0xd0] sm:$0xff] %vm4405_vm13, %v6966_v62 }
 0x3ba   : > { %v6982_v41 = vpop.f32.mrf.mxu3 }
 0x3bb   : > { %4433 = vst.msk [vmem:[%s6667_s9 + $0xd8] sm:$0xff] %vm4405_vm13, %v6982_v41  ;;  %v4491_v28 = vsel %vm4405_vm13, %v6982_v41, 0.0 }
 0x3bd   : > { %v6987_v8 = vpop.f32.mrf.mxu1 }
 0x3be   : > { %4420 = vst.msk [vmem:[%s6667_s9 + $0x70] sm:$0xff] %vm4405_vm13, %v6987_v8  ;;  %v4465_v19 = vsel %vm4405_vm13, %v6987_v8, 0.0 }
 0x3bf   : > { %v4466_v0 = vadd.f32 %v4465_v19, %v4464_v48 }
 0x3c5   : > { %v6996_v20 = vpop.f32.mrf.mxu1 }
 0x3c6   : > { %4421 = vst.msk [vmem:[%s6667_s9 + $0x78] sm:$0xff] %vm4405_vm13, %v6996_v20  ;;  %v4467_v46 = vsel %vm4405_vm13, %v6996_v20, 0.0 }
 0x3c7   : > { %v4468_v60 = vadd.f32 %v4467_v46, %v4466_v0  ;;  %v4508_v46 = vmul.f32 256.0, %v4950_v24 }
 0x3c9   : > { %v4470_v22 = vadd.f32 %v4469_v4, %v4468_v60 }
 0x3cb   : > { %v4472_v3 = vadd.f32 %v4471_v9, %v4470_v22  ;;  %v4509_v9 = vsub.f32 1.0, %v4508_v46 }
 0x3cd   : > { %v4474_v7 = vadd.f32 %v4473_v17, %v4472_v3 }
 0x3cf   : > { %v4476_v11 = vadd.f32 %v4475_v36, %v4474_v7  ;;  %v4510_v7 = vmul.f32 %v4950_v24, %v4509_v9 }
 0x3d1   : > { %v4478_v32 = vadd.f32 %v4477_v44, %v4476_v11  ;;  %v4511_v44 = vadd.f32 %v4950_v24, %v4510_v7 }
 0x3d3   : > { %v4480_v63 = vadd.f32 %v4479_v43, %v4478_v32 }
 0x3ea   : > { %v7021_v35 = vpop.f32.mrf.mxu2 }
 0x3eb   : > { %4428 = vst.msk [vmem:[%s6667_s9 + $0xb0] sm:$0xff] %vm4405_vm13, %v7021_v35  ;;  %v4481_v25 = vsel %vm4405_vm13, %v7021_v35, 0.0 }
 0x3ec   : > { %v4482_v10 = vadd.f32 %v4481_v25, %v4480_v63  ;;  %v4513_v25 = vsel %vm4512_vm3, %v4950_v24, %v4511_v44 }
 0x3f2   : > { %v7032_v30 = vpop.f32.mrf.mxu2  ;;  %v4395_v15 = vpop.f32.mrf.mxu3 }
 0x3f3   : > { %4429 = vst.msk [vmem:[%s6667_s9 + $0xb8] sm:$0xff] %vm4405_vm13, %v7032_v30  ;;  %v4483_v14 = vsel %vm4405_vm13, %v7032_v30, 0.0  ;;  %v4493_v56 = vsel %vm4405_vm13, %v4395_v15, 0.0 }
 0x3f4   : > { %v4484_v26 = vadd.f32 %v4483_v14, %v4482_v10  ;;  %4434 = vst.msk [vmem:[%s6667_s9 + $0xe0] sm:$0xff] %vm4405_vm13, %v4395_v15 }
 0x3f6   : > { %v4486_v53 = vadd.f32 %v4485_v47, %v4484_v26 }
 0x3f8   : > { %v4488_v49 = vadd.f32 %v4487_v12, %v4486_v53 }
 0x3fa   : > { %v4397_v37 = vpop.f32.mrf.mxu3  ;;  %v4490_v39 = vadd.f32 %v4489_v6, %v4488_v49 }
 0x3fb   : > { %4435 = vst.msk [vmem:[%s6667_s9 + $0xe8] sm:$0xff] %vm4405_vm13, %v4397_v37  ;;  %v4495_v19 = vsel %vm4405_vm13, %v4397_v37, 0.0 }
 0x3fc   : > { %v4492_v50 = vadd.f32 %v4491_v28, %v4490_v39 }
 0x3fe   : > { %v4494_v58 = vadd.f32 %v4493_v56, %v4492_v50 }
 0x400   : > { %v4496_v0 = vadd.f32 %v4495_v19, %v4494_v58 }
 0x403   : > { %v4400_v2 = vpop.f32.mrf.mxu3 }
 0x404   : > { %4436 = vst.msk [vmem:[%s6667_s9 + $0xf0] sm:$0xff] %vm4405_vm13, %v4400_v2  ;;  %v4497_v48 = vsel %vm4405_vm13, %v4400_v2, 0.0 }
 0x405   : > { %v4498_v60 = vadd.f32 %v4497_v48, %v4496_v0 }
 0x40b   : > { %v4402_v4 = vpop.f32.mrf.mxu3 }
 0x40c   : > { %4437 = vst.msk [vmem:[%s6667_s9 + $0xf8] sm:$0xff] %vm4405_vm13, %v4402_v4  ;;  %v4499_v22 = vsel %vm4405_vm13, %v4402_v4, 0.0 }
 0x40d   : > { %v4500_v3 = vadd.f32 %v4499_v22, %v4498_v60 }
 0x40f   : > { %v4501_v17 = vrot.slane %v4500_v3, 4 }
 0x411   : > { %v4502_v36 = vadd.f32 %v4501_v17, %v4500_v3 }
 0x413   : > { %v4503_v11 = vrot.slane %v4502_v36, 2 }
 0x415   : > { %v4504_v32 = vadd.f32 %v4503_v11, %v4502_v36 }
 0x417   : > { %v4505_v43 = vrot.slane %v4504_v32, 1 }
 0x419   : > { %v4506_v63 = vadd.f32 %v4505_v43, %v4504_v32 }
 0x41b   : > { %v7065_v10 = vmul.f32 %v4513_v25, %v4506_v63 }
 0x41d   : > { %4515 = vst.msk [vmem:[%s7063_s12] sm:$0x1] %vm376_vm1, %v7065_v10  ;;  %v7071_v14 = vsub.f32 %v4395_v15, %v7065_v10  ;;  %v7074_v26 = vsub.f32 %v4397_v37, %v7065_v10  ;;  %v7077_v47 = vsub.f32 %v4400_v2, %v7065_v10  ;;  %v7080_v53 = vsub.f32 %v4402_v4, %v7065_v10 }
 0x41e   : > { %v4516_v12 = vsub.f32 %v6671_v45, %v7065_v10  ;;  %v4517_v49 = vsub.f32 %v6691_v18, %v7065_v10  ;;  %v4518_v6 = vsub.f32 %v6746_v29, %v7065_v10  ;;  %v4519_v15 = vsub.f32 %v6768_v42, %v7065_v10 }
 0x41f   : > { %v4520_v33 = vsub.f32 %v6854_v34, %v7065_v10  ;;  %v4521_v50 = vsub.f32 %v6864_v40, %v7065_v10  ;;  %v4522_v29 = vsub.f32 %v6935_v55, %v7065_v10  ;;  %v4523_v34 = vsub.f32 %v6946_v13, %v7065_v10 }
 0x420   : > { %v4548_v37 = vmul.f32 %v4516_v12, %v4516_v12  ;;  %v4549_v39 = vmul.f32 %v4517_v49, %v4517_v49  ;;  %v4550_v28 = vmul.f32 %v4518_v6, %v4518_v6  ;;  %v4551_v2 = vmul.f32 %v4519_v15, %v4519_v15 }
 0x421   : > { %v4552_v24 = vmul.f32 %v4520_v33, %v4520_v33  ;;  %v4553_v19 = vmul.f32 %v4521_v50, %v4521_v50  ;;  %v4524_v46 = vsub.f32 %v6766_v52, %v7065_v10  ;;  %v4554_v0 = vmul.f32 %v4522_v29, %v4522_v29 }
 0x422   : > { %v4580_v45 = vsel %vm4405_vm13, %v4548_v37, 0.0  ;;  %v4581_v18 = vsel %vm4405_vm13, %v4549_v39, 0.0  ;;  %v4583_v42 = vsel %vm4405_vm13, %v4550_v28, 0.0  ;;  %v4585_v48 = vsel %vm4405_vm13, %v4551_v2, 0.0 }
 0x423   : > { %v4582_v56 = vadd.f32 %v4581_v18, %v4580_v45  ;;  %v4587_v60 = vsel %vm4405_vm13, %v4552_v24, 0.0  ;;  %v4525_v55 = vsub.f32 %v6789_v51, %v7065_v10  ;;  %v4555_v22 = vmul.f32 %v4523_v34, %v4523_v34 }
 0x424   : > { %v4589_v9 = vsel %vm4405_vm13, %v4553_v19, 0.0  ;;  %v4526_v13 = vsub.f32 %v6862_v57, %v7065_v10  ;;  %v4556_v17 = vmul.f32 %v4524_v46, %v4524_v46  ;;  %v4591_v7 = vsel %vm4405_vm13, %v4554_v0, 0.0 }
 0x425   : > { %v4584_v58 = vadd.f32 %v4583_v42, %v4582_v56  ;;  %v4527_v52 = vsub.f32 %v6876_v23, %v7065_v10  ;;  %v4557_v11 = vmul.f32 %v4525_v55, %v4525_v55  ;;  %v4593_v44 = vsel %vm4405_vm13, %v4555_v22, 0.0 }
 0x426   : > { %v4528_v51 = vsub.f32 %v6930_v54, %v7065_v10  ;;  %v4558_v43 = vmul.f32 %v4526_v13, %v4526_v13  ;;  %v4595_v25 = vsel %vm4405_vm13, %v4556_v17, 0.0  ;;  %v4529_v57 = vsub.f32 %v6941_v59, %v7065_v10 }
 0x427   : > { %v4586_v40 = vadd.f32 %v4585_v48, %v4584_v58  ;;  %v4559_v12 = vmul.f32 %v4527_v52, %v4527_v52  ;;  %v4597_v49 = vsel %vm4405_vm13, %v4557_v11, 0.0  ;;  %v4530_v23 = vsub.f32 %v6987_v8, %v7065_v10 }
 0x428   : > { %v4560_v15 = vmul.f32 %v4528_v51, %v4528_v51  ;;  %v4599_v37 = vsel %vm4405_vm13, %v4558_v43, 0.0  ;;  %v4531_v54 = vsub.f32 %v6996_v20, %v7065_v10  ;;  %v4561_v33 = vmul.f32 %v4529_v57, %v4529_v57 }
 0x429   : > { %v4588_v4 = vadd.f32 %v4587_v60, %v4586_v40  ;;  %v4601_v28 = vsel %vm4405_vm13, %v4559_v12, 0.0  ;;  %v4532_v59 = vsub.f32 %v6820_v38, %v7065_v10  ;;  %v4562_v2 = vmul.f32 %v4530_v23, %v4530_v23 }
 0x42a   : > { %v4603_v45 = vsel %vm4405_vm13, %v4560_v15, 0.0  ;;  %v4533_v8 = vsub.f32 %v6833_v61, %v7065_v10  ;;  %v4563_v56 = vmul.f32 %v4531_v54, %v4531_v54  ;;  %v4605_v29 = vsel %vm4405_vm13, %v4561_v33, 0.0 }
 0x42b   : > { %v4590_v3 = vadd.f32 %v4589_v9, %v4588_v4  ;;  %v4534_v20 = vsub.f32 %v6894_v31, %v7065_v10  ;;  %v4564_v42 = vmul.f32 %v4532_v59, %v4532_v59  ;;  %v4607_v58 = vsel %vm4405_vm13, %v4562_v2, 0.0 }
 0x42c   : > { %v4535_v38 = vsub.f32 %v6902_v16, %v7065_v10  ;;  %v4565_v19 = vmul.f32 %v4533_v8, %v4533_v8  ;;  %v4609_v48 = vsel %vm4405_vm13, %v4563_v56, 0.0  ;;  %v4536_v61 = vsub.f32 %v6951_v5, %v7065_v10 }
 0x42d   : > { %v4592_v36 = vadd.f32 %v4591_v7, %v4590_v3  ;;  %v4566_v46 = vmul.f32 %v4534_v20, %v4534_v20  ;;  %v4611_v0 = vsel %vm4405_vm13, %v4564_v42, 0.0  ;;  %v4537_v31 = vsub.f32 %v6964_v1, %v7065_v10 }
 0x42e   : > { %v4567_v4 = vmul.f32 %v4535_v38, %v4535_v38  ;;  %v4613_v55 = vsel %vm4405_vm13, %v4565_v19, 0.0  ;;  %v4538_v16 = vsub.f32 %v7021_v35, %v7065_v10  ;;  %v4568_v9 = vmul.f32 %v4536_v61, %v4536_v61 }
 0x42f   : > { %v4594_v32 = vadd.f32 %v4593_v44, %v4592_v36  ;;  %v4615_v3 = vsel %vm4405_vm13, %v4566_v46, 0.0  ;;  %v4539_v5 = vsub.f32 %v7032_v30, %v7065_v10  ;;  %v4569_v17 = vmul.f32 %v4537_v31, %v4537_v31 }
 0x430   : > { %v4617_v7 = vsel %vm4405_vm13, %v4567_v4, 0.0  ;;  %v4540_v1 = vsub.f32 %v6907_v27, %v7065_v10  ;;  %v4570_v52 = vmul.f32 %v4538_v16, %v4538_v16  ;;  %v4619_v11 = vsel %vm4405_vm13, %v4568_v9, 0.0 }
 0x431   : > { %v4596_v63 = vadd.f32 %v4595_v25, %v4594_v32  ;;  %v4541_v35 = vsub.f32 %v6915_v21, %v7065_v10  ;;  %v4571_v32 = vmul.f32 %v4539_v5, %v4539_v5  ;;  %v4621_v51 = vsel %vm4405_vm13, %v4569_v17, 0.0 }
 0x432   : > { %v4542_v30 = vsub.f32 %v6966_v62, %v7065_v10  ;;  %v4572_v25 = vmul.f32 %v4540_v1, %v4540_v1  ;;  %v4543_v27 = vsub.f32 %v6982_v41, %v7065_v10  ;;  %v4576_v62 = vmul.f32 %v7071_v14, %v7071_v14 }
 0x433   : > { %v4598_v6 = vadd.f32 %v4597_v49, %v4596_v63  ;;  %v4623_v63 = vsel %vm4405_vm13, %v4570_v52, 0.0  ;;  %v4573_v12 = vmul.f32 %v4541_v35, %v4541_v35  ;;  %v4625_v49 = vsel %vm4405_vm13, %v4571_v32, 0.0 }
 0x434   : > { %v4574_v23 = vmul.f32 %v4542_v30, %v4542_v30  ;;  %v4627_v21 = vsel %vm4405_vm13, %v4572_v25, 0.0  ;;  %v4577_v41 = vmul.f32 %v7074_v26, %v7074_v26  ;;  %v4578_v59 = vmul.f32 %v7077_v47, %v7077_v47 }
 0x435   : > { %v4600_v39 = vadd.f32 %v4599_v37, %v4598_v6  ;;  %v4575_v37 = vmul.f32 %v4543_v27, %v4543_v27  ;;  %v4635_v2 = vsel %vm4405_vm13, %v4576_v62, 0.0 }
 0x436   : > { %v4631_v33 = vsel %vm4405_vm13, %v4574_v23, 0.0  ;;  %v4637_v14 = vsel %vm4405_vm13, %v4577_v41, 0.0  ;;  %v4639_v56 = vsel %vm4405_vm13, %v4578_v59, 0.0 }
 0x437   : > { %v4602_v50 = vadd.f32 %v4601_v28, %v4600_v39  ;;  %v4629_v39 = vsel %vm4405_vm13, %v4573_v12, 0.0  ;;  %v4633_v10 = vsel %vm4405_vm13, %v4575_v37, 0.0 }
 0x439   : > { %v4604_v18 = vadd.f32 %v4603_v45, %v4602_v50 }
 0x43b   : > { %v4606_v24 = vadd.f32 %v4605_v29, %v4604_v18  ;;  %v4579_v18 = vmul.f32 %v7080_v53, %v7080_v53 }
 0x43d   : > { %v4608_v34 = vadd.f32 %v4607_v58, %v4606_v24  ;;  %v4641_v26 = vsel %vm4405_vm13, %v4579_v18, 0.0 }
 0x43f   : > { %v4610_v40 = vadd.f32 %v4609_v48, %v4608_v34 }
 0x441   : > { %v4612_v60 = vadd.f32 %v4611_v0, %v4610_v40 }
 0x443   : > { %v4614_v22 = vadd.f32 %v4613_v55, %v4612_v60 }
 0x445   : > { %v4616_v13 = vadd.f32 %v4615_v3, %v4614_v22 }
 0x447   : > { %v4618_v36 = vadd.f32 %v4617_v7, %v4616_v13 }
 0x449   : > { %v4620_v44 = vadd.f32 %v4619_v11, %v4618_v36 }
 0x44b   : > { %v4622_v43 = vadd.f32 %v4621_v51, %v4620_v44 }
 0x44d   : > { %v4624_v57 = vadd.f32 %v4623_v63, %v4622_v43 }
 0x44f   : > { %v4626_v6 = vadd.f32 %v4625_v49, %v4624_v57 }
 0x451   : > { %v4628_v15 = vadd.f32 %v4627_v21, %v4626_v6 }
 0x453   : > { %v4630_v54 = vadd.f32 %v4629_v39, %v4628_v15 }
 0x455   : > { %v4632_v28 = vadd.f32 %v4631_v33, %v4630_v54 }
 0x457   : > { %v4634_v50 = vadd.f32 %v4633_v10, %v4632_v28 }
 0x459   : > { %v4636_v45 = vadd.f32 %v4635_v2, %v4634_v50 }
 0x45b   : > { %v4638_v8 = vadd.f32 %v4637_v14, %v4636_v45 }
 0x45d   : > { %v4640_v29 = vadd.f32 %v4639_v56, %v4638_v8 }
 0x45f   : > { %v4642_v24 = vadd.f32 %v4641_v26, %v4640_v29 }
 0x461   : > { %v4643_v20 = vrot.slane %v4642_v24, 4 }
 0x463   : > { %v4644_v42 = vadd.f32 %v4643_v20, %v4642_v24 }
 0x465   : > { %v4645_v58 = vrot.slane %v4644_v42, 2 }
 0x467   : > { %v4646_v47 = vadd.f32 %v4645_v58, %v4644_v42 }
 0x469   : > { %v4647_v34 = vrot.slane %v4646_v47, 1 }
 0x46b   : > { %v4648_v38 = vadd.f32 %v4647_v34, %v4646_v47 }
 0x46d   : > { %4649 = vst.msk [vmem:[%s7063_s12 + $0x1] sm:$0x1] %vm376_vm1, %v4648_v38 }
 0x46e PF: > { %s16_s18 = sadd.s32 1, %s4961_s18  }
 0x46f   : > { %p13_p4 = scmp.ge.s32.totalorder %s16_s18, 4  }
 0x471   :  { %15 = sbr.rel (!%p13_p4) target bundleno = 1 (0x1), region = 81 }

</bundles_post_ra>
